<compile_context>
chip_gen: v5e
topology: v5e:2x2
jax: 0.10.0
libtpu: 0.0.40
codegen_flags: <defaults>
</compile_context>

<pallas_src>
import numpy as np

import jax
import jax.numpy as jnp
from jax.experimental import pallas as pl
from jax.experimental.pallas import tpu as pltpu


_VMEM_SPEC = pl.BlockSpec(memory_space=pltpu.MemorySpace.VMEM)

_N = 4  # rows per spatial-H position: 2 branches x 2 batch elements


# -----------------------------------------------------------------------------
# The fused kernel
# -----------------------------------------------------------------------------
def _mmwavoice_kernel(
    x_ref,
    stem_w, stem_b,
    l1c1_w, l1c1_b, l1d_w, l1d_b, l1c2_w, l1c2_b,
    l2c1_w, l2c1_b, l2d_w, l2d_b, l2c2_w, l2c2_b,
    l3c1_w, l3c1_b, l3d_w, l3d_b, l3c2_w, l3c2_b,
    l4c1_w, l4c1_b, l4c2_w, l4c2_b,
    l5c1_w, l5c1_b, l5c2_w, l5c2_b,
    ml, mr, s_red, s_exp, e_mat, et_mat, p4, p8,
    se_w1, se_w2, ia_w1, ia_w2,
    out_ref,
    # VMEM scratch (all activations live here)
    s_xe, s_xo, s_stem, s_pool,
    s_l1a, s_l2in, s_e2, s_o2, s_l2a,
    s_l3in, s_e3, s_o3, s_l3a,
    s_l4in, s_l4a, s_l5in, s_l5a,
):
    f32 = jnp.float32
    bf16 = jnp.bfloat16
    N = _N

    def mm(a, w):                       # bf16 MXU matmul, f32 accumulate
        return jnp.dot(a.astype(bf16), w, preferred_element_type=f32)

    def mmf(a, w):                      # small f32 matmul (constants / SE)
        return jnp.dot(a, w, preferred_element_type=f32)

    def sigmoid(z):
        return 1.0 / (1.0 + jnp.exp(-z))

    # -- zero the padded activation scratch (pad rows == conv zero-padding) ----
    for s in (s_xe, s_xo, s_stem, s_pool, s_l1a, s_l2in, s_e2, s_o2, s_l2a,
              s_l3in, s_e3, s_o3, s_l3a, s_l4in, s_l4a, s_l5in, s_l5a):
        s[...] = jnp.zeros(s.shape, f32)

    # -- stem: 7x7 conv, stride (2,1), pad 3 ------------------------------------
    # Input rows were split by H-parity in the wrapper (even rows first), so
    # every H-tap of the stride-2 conv is a contiguous 64-row window:
    #   output hs = sum_d W[d] * input[2*hs + d],  d = -3..3
    # even d -> even stack (pad 1 top/bot), odd d -> odd stack (pad 2 top, 1 bot).
    s_xe[N:N + 64, :] = x_ref[0:64, :]            # even input rows h=0,2,...,30
    s_xo[2 * N:2 * N + 64, :] = x_ref[64:128, :]  # odd  input rows h=1,3,...,31
    acc = (mm(s_xo[0:64, :],             stem_w[0]) +     # d = -3
           mm(s_xe[0:64, :],             stem_w[1]) +     # d = -2
           mm(s_xo[N:N + 64, :],         stem_w[2]) +     # d = -1
           mm(s_xe[N:N + 64, :],         stem_w[3]) +     # d =  0
           mm(s_xo[2 * N:2 * N + 64, :], stem_w[4]) +     # d =  1
           mm(s_xe[2 * N:2 * N + 64, :], stem_w[5]) +     # d =  2
           mm(s_xo[3 * N:3 * N + 64, :], stem_w[6]))      # d =  3
    # BN (scale folded into weights) + bias + ReLU; 16 H positions at blocks 1..16
    s_stem[N:N + 64, :] = jnp.maximum(acc + stem_b[...], 0.0)

    # -- 3x3 / stride-2 maxpool -------------------------------------------------
    # H-window max at stride 1 over the 16 stem rows (0-padding is safe
    # post-ReLU), then subsample every 2nd position into the compact pool
    # buffer, then W-window max via zero-padded +-1-block shift matrices.
    # The pool W-stride-2 subsample is folded into layer1's band weights.
    q = jnp.maximum(jnp.maximum(s_stem[0:64, :], s_stem[N:N + 64, :]),
                    s_stem[2 * N:2 * N + 64, :])
    for hp in range(8):
        s_pool[(1 + hp) * N:(2 + hp) * N, :] = q[2 * hp * N:(2 * hp + 1) * N, :]
    p = s_pool[N:N + 32, :]
    s_pool[N:N + 32, :] = jnp.maximum(
        p, jnp.maximum(mmf(p, ml[...]), mmf(p, mr[...])))

    # -- layer1: BasicBlock 8 -> 16, stride (1,1), 1x1 downsample ---------------
    acc = (mm(s_pool[0:32, :],             l1c1_w[0]) +
           mm(s_pool[N:N + 32, :],         l1c1_w[1]) +
           mm(s_pool[2 * N:2 * N + 32, :], l1c1_w[2]))
    s_l1a[N:N + 32, :] = jnp.maximum(acc + l1c1_b[...], 0.0)
    res1 = mm(s_pool[N:N + 32, :], l1d_w[0]) + l1d_b[...]
    acc = (mm(s_l1a[0:32, :],             l1c2_w[0]) +
           mm(s_l1a[N:N + 32, :],         l1c2_w[1]) +
           mm(s_l1a[2 * N:2 * N + 32, :], l1c2_w[2]))
    s_l2in[N:N + 32, :] = jnp.maximum(acc + l1c2_b[...] + res1, 0.0)

    # -- layer2: BasicBlock 16 -> 24, stride (2,1), 1x1 downsample ---------------
    # H-stride-2 reads: gather input rows by parity into compact buffers so
    # every tap is one contiguous-window matmul.
    for j in range(4):   # spatial-even rows (center tap + downsample input)
        s_e2[j * N:(j + 1) * N, :] = s_l2in[(2 * j + 1) * N:(2 * j + 2) * N, :]
    for j in range(5):   # spatial-odd rows, incl. top zero pad
        s_o2[j * N:(j + 1) * N, :] = s_l2in[(2 * j) * N:(2 * j + 1) * N, :]
    acc = (mm(s_o2[0:16, :],     l2c1_w[0]) +
           mm(s_e2[0:16, :],     l2c1_w[1]) +
           mm(s_o2[N:N + 16, :], l2c1_w[2]))
    s_l2a[N:N + 16, :] = jnp.maximum(acc + l2c1_b[...], 0.0)
    res2 = mm(s_e2[0:16, :], l2d_w[0]) + l2d_b[...]
    acc = (mm(s_l2a[0:16, :],             l2c2_w[0]) +
           mm(s_l2a[N:N + 16, :],         l2c2_w[1]) +
           mm(s_l2a[2 * N:2 * N + 16, :], l2c2_w[2]))
    s_l3in[N:N + 16, :] = jnp.maximum(acc + l2c2_b[...] + res2, 0.0)

    # -- layer3: BasicBlock 24 -> 24, stride (2,1), 1x1 downsample ---------------
    for j in range(2):
        s_e3[j * N:(j + 1) * N, :] = s_l3in[(2 * j + 1) * N:(2 * j + 2) * N, :]
    for j in range(3):
        s_o3[j * N:(j + 1) * N, :] = s_l3in[(2 * j) * N:(2 * j + 1) * N, :]
    acc = (mm(s_o3[0:8, :],     l3c1_w[0]) +
           mm(s_e3[0:8, :],     l3c1_w[1]) +
           mm(s_o3[N:N + 8, :], l3c1_w[2]))
    s_l3a[N:N + 8, :] = jnp.maximum(acc + l3c1_b[...], 0.0)
    res3 = mm(s_e3[0:8, :], l3d_w[0]) + l3d_b[...]
    acc = (mm(s_l3a[0:8, :],             l3c2_w[0]) +
           mm(s_l3a[N:N + 8, :],         l3c2_w[1]) +
           mm(s_l3a[2 * N:2 * N + 8, :], l3c2_w[2]))
    x = jnp.maximum(acc + l3c2_b[...] + res3, 0.0)        # layer3 out (8, 192)

    # -- cross squeeze-excite (channels gated by the *other* branch) -------------
    def gap(v):  # global average pool per (branch,batch) row -> (4, 24)
        return mmf(et_mat[...], mmf(v, s_red[...])) * (1.0 / 16.0)

    g = sigmoid(mmf(jnp.maximum(mmf(gap(x), se_w1[...]), 0.0), se_w2[...]))
    gate = mmf(e_mat[...], mmf(mmf(p4[...], g), s_exp[...]))   # branch-swapped
    x = x * (1.0 + gate)
    s_l4in[N:N + 8, :] = x

    # -- layer4: BasicBlock 24 -> 24, identity residual ---------------------------
    acc = (mm(s_l4in[0:8, :],             l4c1_w[0]) +
           mm(s_l4in[N:N + 8, :],         l4c1_w[1]) +
           mm(s_l4in[2 * N:2 * N + 8, :], l4c1_w[2]))
    s_l4a[N:N + 8, :] = jnp.maximum(acc + l4c1_b[...], 0.0)
    acc = (mm(s_l4a[0:8, :],             l4c2_w[0]) +
           mm(s_l4a[N:N + 8, :],         l4c2_w[1]) +
           mm(s_l4a[2 * N:2 * N + 8, :], l4c2_w[2]))
    s_l5in[N:N + 8, :] = jnp.maximum(acc + l4c2_b[...] + s_l4in[N:N + 8, :], 0.0)

    # -- layer5: BasicBlock 24 -> 24, identity residual ---------------------------
    acc = (mm(s_l5in[0:8, :],             l5c1_w[0]) +
           mm(s_l5in[N:N + 8, :],         l5c1_w[1]) +
           mm(s_l5in[2 * N:2 * N + 8, :], l5c1_w[2]))
    s_l5a[N:N + 8, :] = jnp.maximum(acc + l5c1_b[...], 0.0)
    acc = (mm(s_l5a[0:8, :],             l5c2_w[0]) +
           mm(s_l5a[N:N + 8, :],         l5c2_w[1]) +
           mm(s_l5a[2 * N:2 * N + 8, :], l5c2_w[2]))
    x = jnp.maximum(acc + l5c2_b[...] + s_l5in[N:N + 8, :], 0.0)

    # -- inter-attention: out = a * x1 + (1 - a) * x2 -----------------------------
    gsum = gap(x)
    gsum = gsum + mmf(p4[...], gsum)
    a = sigmoid(mmf(jnp.maximum(mmf(gsum, ia_w1[...]), 0.0), ia_w2[...]))
    a_full = mmf(e_mat[...], mmf(a, s_exp[...]))            # (8, 192)
    x_sw = mmf(p8[...], x)                                  # branches swapped
    out_ref[...] = a_full * x + (1.0 - a_full) * x_sw


# -----------------------------------------------------------------------------
# Parameter preparation (band weights, folded BN, constants)
# -----------------------------------------------------------------------------
def _bn_scale_bias(c, eps=1e-5):
    gamma = np.ones(c, np.float32)
    beta = np.zeros(c, np.float32)
    mean = np.zeros(c, np.float32)
    var = np.ones(c, np.float32)
    scale = gamma / np.sqrt(var + eps)
    bias = beta - mean * scale
    return scale, bias


def _band(w, scale, w_out, w_src, pad, w_scale=1):
    """(kh,kw,ci,co) conv weight -> (kh, w_src*ci, w_out*co) banded matmul
    weights, BN scale folded, W taps / W-zero-padding / folded W-subsampling
    (`w_scale`) baked into the band structure."""
    w = np.asarray(w, np.float32) * np.asarray(scale, np.float32)[None, None, None, :]
    kh, kw, ci, co = w.shape
    band = np.zeros((kh, w_src * ci, w_out * co), np.float32)
    for i in range(kh):
        for j in range(kw):
            for wo in range(w_out):
                ws = w_scale * (wo + j - pad)
                if 0 <= ws < w_src:
                    band[i, ws * ci:(ws + 1) * ci, wo * co:(wo + 1) * co] = w[i, j]
    return jnp.asarray(band, jnp.bfloat16)


def _bias_row(bias, w_out):
    return jnp.asarray(np.tile(np.asarray(bias, np.float32), w_out)[None, :],
                       jnp.float32)


def init_params(key):
    ks = iter(jax.random.split(key, 64))

    def cw(kh, kw, ci, co):  # Conv2d weights ~ N(0, 0.01), as in __init__
        return 0.01 * jax.random.normal(next(ks), (kh, kw, ci, co), jnp.float32)

    p = {}
    p['stem_w'] = cw(7, 7, 1, 8)
    p['l1c1_w'] = cw(3, 3, 8, 16)
    p['l1c2_w'] = cw(3, 3, 16, 16)
    p['l1d_w'] = cw(1, 1, 8, 16)
    p['l2c1_w'] = cw(3, 3, 16, 24)
    p['l2c2_w'] = cw(3, 3, 24, 24)
    p['l2d_w'] = cw(1, 1, 16, 24)
    p['l3c1_w'] = cw(3, 3, 24, 24)
    p['l3c2_w'] = cw(3, 3, 24, 24)
    p['l3d_w'] = cw(1, 1, 24, 24)
    p['l4c1_w'] = cw(3, 3, 24, 24)
    p['l4c2_w'] = cw(3, 3, 24, 24)
    p['l5c1_w'] = cw(3, 3, 24, 24)
    p['l5c2_w'] = cw(3, 3, 24, 24)
    p['se_w1'] = cw(1, 1, 24, 6).reshape(24, 6)
    p['se_w2'] = cw(1, 1, 6, 24).reshape(6, 24)
    p['ia_w1'] = cw(1, 1, 24, 6).reshape(24, 6)
    p['ia_w2'] = cw(1, 1, 6, 24).reshape(6, 24)
    return p


def prepare_inputs(p):
    bn8, bn16, bn24 = _bn_scale_bias(8), _bn_scale_bias(16), _bn_scale_bias(24)
    args = []

    def add_conv(w, bn, w_out, w_src, pad, w_scale=1):
        scale, bias = bn
        args.append(_band(w, scale, w_out, w_src, pad, w_scale))
        args.append(_bias_row(bias, w_out))

    add_conv(p['stem_w'], bn8, 16, 16, 3)                 # stem (W stride 1)
    add_conv(p['l1c1_w'], bn16, 8, 16, 1, w_scale=2)      # reads W-stride-1 pool
    add_conv(p['l1d_w'], bn16, 8, 16, 0, w_scale=2)
    add_conv(p['l1c2_w'], bn16, 8, 8, 1)
    add_conv(p['l2c1_w'], bn24, 8, 8, 1)
    add_conv(p['l2d_w'], bn24, 8, 8, 0)
    add_conv(p['l2c2_w'], bn24, 8, 8, 1)
    add_conv(p['l3c1_w'], bn24, 8, 8, 1)
    add_conv(p['l3d_w'], bn24, 8, 8, 0)
    add_conv(p['l3c2_w'], bn24, 8, 8, 1)
    add_conv(p['l4c1_w'], bn24, 8, 8, 1)
    add_conv(p['l4c2_w'], bn24, 8, 8, 1)
    add_conv(p['l5c1_w'], bn24, 8, 8, 1)
    add_conv(p['l5c2_w'], bn24, 8, 8, 1)

    # maxpool W-neighbour shift matrices (channel block size 8, zero boundary)
    ml = jnp.asarray(np.eye(128, k=8, dtype=np.float32))
    mr = jnp.asarray(np.eye(128, k=-8, dtype=np.float32))
    # GAP / broadcast helpers for C=24, W=8, H=2, 4 rows per h
    s_red = jnp.asarray(np.tile(np.eye(24, dtype=np.float32), (8, 1)))   # (192,24)
    s_exp = jnp.asarray(np.tile(np.eye(24, dtype=np.float32), (1, 8)))   # (24,192)
    e_mat = jnp.asarray(np.tile(np.eye(4, dtype=np.float32), (2, 1)))    # (8,4)
    et_mat = jnp.asarray(np.tile(np.eye(4, dtype=np.float32), (1, 2)))   # (4,8)
    sw = np.zeros((4, 4), np.float32)
    sw[0, 2] = sw[1, 3] = sw[2, 0] = sw[3, 1] = 1.0                      # branch swap
    p4 = jnp.asarray(sw)
    p8 = jnp.asarray(np.kron(np.eye(2, dtype=np.float32), sw))           # (8,8)

    args += [ml, mr, s_red, s_exp, e_mat, et_mat, p4, p8,
             p['se_w1'], p['se_w2'], p['ia_w1'], p['ia_w2']]
    return args


# -----------------------------------------------------------------------------
# Forward pass wrapper
# -----------------------------------------------------------------------------
def mmwavoice_forward(prep, x1, x2):
    """x1, x2: NHWC (2, 32, 16, 1). Returns NHWC (2, 2, 8, 24)."""
    # pack both branches + batch into 4 rows per spatial-H position, then
    # split by H-parity (even rows first) so the stride-2 stem reads only
    # contiguous row windows in-kernel.
    x = jnp.stack([x1, x2], axis=0)              # (branch, b, H, W, C)
    x = jnp.transpose(x, (2, 0, 1, 3, 4))        # (H, branch, b, W, C)
    x = x.reshape(32, _N, 16)                    # row-group = h, row = branch*2 + b
    x = jnp.concatenate([x[0::2], x[1::2]], axis=0).reshape(32 * _N, 16)

    out = pl.pallas_call(
        _mmwavoice_kernel,
        out_shape=jax.ShapeDtypeStruct((8, 192), jnp.float32),
        in_specs=[_VMEM_SPEC] * (1 + len(prep)),
        out_specs=_VMEM_SPEC,
        scratch_shapes=[
            pltpu.VMEM((72, 16), jnp.float32),    # s_xe   even input rows (pad 1/1)
            pltpu.VMEM((80, 16), jnp.float32),    # s_xo   odd input rows (pad 2/1)
            pltpu.VMEM((72, 128), jnp.float32),   # s_stem stride-2 stem out (pad 1/1)
            pltpu.VMEM((40, 128), jnp.float32),   # s_pool subsampled maxpool (pad 1/1)
            pltpu.VMEM((40, 128), jnp.float32),   # s_l1a  layer1 conv1 out
            pltpu.VMEM((40, 128), jnp.float32),   # s_l2in layer1 block out
            pltpu.VMEM((16, 128), jnp.float32),   # s_e2   layer2 even-row gather
            pltpu.VMEM((24, 128), jnp.float32),   # s_o2   layer2 odd-row gather
            pltpu.VMEM((24, 192), jnp.float32),   # s_l2a  layer2 conv1 out
            pltpu.VMEM((24, 192), jnp.float32),   # s_l3in layer2 block out
            pltpu.VMEM((8, 192), jnp.float32),    # s_e3   layer3 even-row gather
            pltpu.VMEM((16, 192), jnp.float32),   # s_o3   layer3 odd-row gather
            pltpu.VMEM((16, 192), jnp.float32),   # s_l3a  layer3 conv1 out
            pltpu.VMEM((16, 192), jnp.float32),   # s_l4in
            pltpu.VMEM((16, 192), jnp.float32),   # s_l4a
            pltpu.VMEM((16, 192), jnp.float32),   # s_l5in
            pltpu.VMEM((16, 192), jnp.float32),   # s_l5a
        ],
    )(x, *prep)

    # out rows = h*4 + (branch*2 + b); branch-0 rows hold a*x1 + (1-a)*x2
    out = out.reshape(2, 4, 8, 24)[:, 0:2]       # (h, b, w, c)
    return jnp.transpose(out, (1, 0, 2, 3))      # NHWC (b, h, w, c)


if __name__ == "__main__":
    key = jax.random.PRNGKey(0)
    k1, k2, kp = jax.random.split(key, 3)
    # PyTorch NCHW (2, 1, 32, 16)  ==  our NHWC (2, 32, 16, 1)
    x1 = jax.random.normal(k1, (2, 32, 16, 1), jnp.float32)
    x2 = jax.random.normal(k2, (2, 32, 16, 1), jnp.float32)
    params = init_params(kp)
    prep = prepare_inputs(params)
    out = jax.jit(mmwavoice_forward)(prep, x1, x2)
    jax.block_until_ready(out)
    assert out.shape == (2, 2, 8, 24) and out.dtype == jnp.float32
    print("KERNEL_OK")
</pallas_src>

<mosaic_0001>
module attributes {stable_mosaic.version = 11 : i64} {
  func.func @_mmwavoice_kernel(%arg0: memref<128x16xf32, #tpu.memory_space<vmem>>, %arg1: memref<7x16x128xbf16, #tpu.memory_space<vmem>>, %arg2: memref<1x128xf32, #tpu.memory_space<vmem>>, %arg3: memref<3x128x128xbf16, #tpu.memory_space<vmem>>, %arg4: memref<1x128xf32, #tpu.memory_space<vmem>>, %arg5: memref<1x128x128xbf16, #tpu.memory_space<vmem>>, %arg6: memref<1x128xf32, #tpu.memory_space<vmem>>, %arg7: memref<3x128x128xbf16, #tpu.memory_space<vmem>>, %arg8: memref<1x128xf32, #tpu.memory_space<vmem>>, %arg9: memref<3x128x192xbf16, #tpu.memory_space<vmem>>, %arg10: memref<1x192xf32, #tpu.memory_space<vmem>>, %arg11: memref<1x128x192xbf16, #tpu.memory_space<vmem>>, %arg12: memref<1x192xf32, #tpu.memory_space<vmem>>, %arg13: memref<3x192x192xbf16, #tpu.memory_space<vmem>>, %arg14: memref<1x192xf32, #tpu.memory_space<vmem>>, %arg15: memref<3x192x192xbf16, #tpu.memory_space<vmem>>, %arg16: memref<1x192xf32, #tpu.memory_space<vmem>>, %arg17: memref<1x192x192xbf16, #tpu.memory_space<vmem>>, %arg18: memref<1x192xf32, #tpu.memory_space<vmem>>, %arg19: memref<3x192x192xbf16, #tpu.memory_space<vmem>>, %arg20: memref<1x192xf32, #tpu.memory_space<vmem>>, %arg21: memref<3x192x192xbf16, #tpu.memory_space<vmem>>, %arg22: memref<1x192xf32, #tpu.memory_space<vmem>>, %arg23: memref<3x192x192xbf16, #tpu.memory_space<vmem>>, %arg24: memref<1x192xf32, #tpu.memory_space<vmem>>, %arg25: memref<3x192x192xbf16, #tpu.memory_space<vmem>>, %arg26: memref<1x192xf32, #tpu.memory_space<vmem>>, %arg27: memref<3x192x192xbf16, #tpu.memory_space<vmem>>, %arg28: memref<1x192xf32, #tpu.memory_space<vmem>>, %arg29: memref<128x128xf32, #tpu.memory_space<vmem>>, %arg30: memref<128x128xf32, #tpu.memory_space<vmem>>, %arg31: memref<192x24xf32, #tpu.memory_space<vmem>>, %arg32: memref<24x192xf32, #tpu.memory_space<vmem>>, %arg33: memref<8x4xf32, #tpu.memory_space<vmem>>, %arg34: memref<4x8xf32, #tpu.memory_space<vmem>>, %arg35: memref<4x4xf32, #tpu.memory_space<vmem>>, %arg36: memref<8x8xf32, #tpu.memory_space<vmem>>, %arg37: memref<24x6xf32, #tpu.memory_space<vmem>>, %arg38: memref<6x24xf32, #tpu.memory_space<vmem>>, %arg39: memref<24x6xf32, #tpu.memory_space<vmem>>, %arg40: memref<6x24xf32, #tpu.memory_space<vmem>>, %arg41: memref<8x192xf32, #tpu.memory_space<vmem>>, %arg42: memref<72x16xf32, #tpu.memory_space<vmem>>, %arg43: memref<80x16xf32, #tpu.memory_space<vmem>>, %arg44: memref<72x128xf32, #tpu.memory_space<vmem>>, %arg45: memref<40x128xf32, #tpu.memory_space<vmem>>, %arg46: memref<40x128xf32, #tpu.memory_space<vmem>>, %arg47: memref<40x128xf32, #tpu.memory_space<vmem>>, %arg48: memref<16x128xf32, #tpu.memory_space<vmem>>, %arg49: memref<24x128xf32, #tpu.memory_space<vmem>>, %arg50: memref<24x192xf32, #tpu.memory_space<vmem>>, %arg51: memref<24x192xf32, #tpu.memory_space<vmem>>, %arg52: memref<8x192xf32, #tpu.memory_space<vmem>>, %arg53: memref<16x192xf32, #tpu.memory_space<vmem>>, %arg54: memref<16x192xf32, #tpu.memory_space<vmem>>, %arg55: memref<16x192xf32, #tpu.memory_space<vmem>>, %arg56: memref<16x192xf32, #tpu.memory_space<vmem>>, %arg57: memref<16x192xf32, #tpu.memory_space<vmem>>, %arg58: memref<16x192xf32, #tpu.memory_space<vmem>>) attributes {dimension_semantics = [], scalar_prefetch = 0 : i64, scratch_operands = 17 : i64, tpu.core_type = #tpu.core_type<tc>} {
    %cst = arith.constant 0.000000e+00 : f32
    %0 = vector.broadcast %cst : f32 to vector<72x16xf32>
    %c0 = arith.constant 0 : index
    %c0_0 = arith.constant 0 : index
    %1 = vector.load %arg42[%c0, %c0_0] : memref<72x16xf32, #tpu.memory_space<vmem>>, vector<72x16xf32>
    tpu.vector_store %arg42[%c0, %c0_0], %0 {strides = array<i32>} : memref<72x16xf32, #tpu.memory_space<vmem>>, vector<72x16xf32>,
    %cst_1 = arith.constant 0.000000e+00 : f32
    %2 = vector.broadcast %cst_1 : f32 to vector<80x16xf32>
    %c0_2 = arith.constant 0 : index
    %c0_3 = arith.constant 0 : index
    %3 = vector.load %arg43[%c0_2, %c0_3] : memref<80x16xf32, #tpu.memory_space<vmem>>, vector<80x16xf32>
    tpu.vector_store %arg43[%c0_2, %c0_3], %2 {strides = array<i32>} : memref<80x16xf32, #tpu.memory_space<vmem>>, vector<80x16xf32>,
    %cst_4 = arith.constant 0.000000e+00 : f32
    %4 = vector.broadcast %cst_4 : f32 to vector<72x128xf32>
    %c0_5 = arith.constant 0 : index
    %c0_6 = arith.constant 0 : index
    %5 = vector.load %arg44[%c0_5, %c0_6] : memref<72x128xf32, #tpu.memory_space<vmem>>, vector<72x128xf32>
    tpu.vector_store %arg44[%c0_5, %c0_6], %4 {strides = array<i32>} : memref<72x128xf32, #tpu.memory_space<vmem>>, vector<72x128xf32>,
    %cst_7 = arith.constant 0.000000e+00 : f32
    %6 = vector.broadcast %cst_7 : f32 to vector<40x128xf32>
    %c0_8 = arith.constant 0 : index
    %c0_9 = arith.constant 0 : index
    %7 = vector.load %arg45[%c0_8, %c0_9] : memref<40x128xf32, #tpu.memory_space<vmem>>, vector<40x128xf32>
    tpu.vector_store %arg45[%c0_8, %c0_9], %6 {strides = array<i32>} : memref<40x128xf32, #tpu.memory_space<vmem>>, vector<40x128xf32>,
    %cst_10 = arith.constant 0.000000e+00 : f32
    %8 = vector.broadcast %cst_10 : f32 to vector<40x128xf32>
    %c0_11 = arith.constant 0 : index
    %c0_12 = arith.constant 0 : index
    %9 = vector.load %arg46[%c0_11, %c0_12] : memref<40x128xf32, #tpu.memory_space<vmem>>, vector<40x128xf32>
    tpu.vector_store %arg46[%c0_11, %c0_12], %8 {strides = array<i32>} : memref<40x128xf32, #tpu.memory_space<vmem>>, vector<40x128xf32>,
    %cst_13 = arith.constant 0.000000e+00 : f32
    %10 = vector.broadcast %cst_13 : f32 to vector<40x128xf32>
    %c0_14 = arith.constant 0 : index
    %c0_15 = arith.constant 0 : index
    %11 = vector.load %arg47[%c0_14, %c0_15] : memref<40x128xf32, #tpu.memory_space<vmem>>, vector<40x128xf32>
    tpu.vector_store %arg47[%c0_14, %c0_15], %10 {strides = array<i32>} : memref<40x128xf32, #tpu.memory_space<vmem>>, vector<40x128xf32>,
    %cst_16 = arith.constant 0.000000e+00 : f32
    %12 = vector.broadcast %cst_16 : f32 to vector<16x128xf32>
    %c0_17 = arith.constant 0 : index
    %c0_18 = arith.constant 0 : index
    %13 = vector.load %arg48[%c0_17, %c0_18] : memref<16x128xf32, #tpu.memory_space<vmem>>, vector<16x128xf32>
    tpu.vector_store %arg48[%c0_17, %c0_18], %12 {strides = array<i32>} : memref<16x128xf32, #tpu.memory_space<vmem>>, vector<16x128xf32>,
    %cst_19 = arith.constant 0.000000e+00 : f32
    %14 = vector.broadcast %cst_19 : f32 to vector<24x128xf32>
    %c0_20 = arith.constant 0 : index
    %c0_21 = arith.constant 0 : index
    %15 = vector.load %arg49[%c0_20, %c0_21] : memref<24x128xf32, #tpu.memory_space<vmem>>, vector<24x128xf32>
    tpu.vector_store %arg49[%c0_20, %c0_21], %14 {strides = array<i32>} : memref<24x128xf32, #tpu.memory_space<vmem>>, vector<24x128xf32>,
    %cst_22 = arith.constant 0.000000e+00 : f32
    %16 = vector.broadcast %cst_22 : f32 to vector<24x192xf32>
    %c0_23 = arith.constant 0 : index
    %c0_24 = arith.constant 0 : index
    %17 = vector.load %arg50[%c0_23, %c0_24] : memref<24x192xf32, #tpu.memory_space<vmem>>, vector<24x192xf32>
    tpu.vector_store %arg50[%c0_23, %c0_24], %16 {strides = array<i32>} : memref<24x192xf32, #tpu.memory_space<vmem>>, vector<24x192xf32>,
    %cst_25 = arith.constant 0.000000e+00 : f32
    %18 = vector.broadcast %cst_25 : f32 to vector<24x192xf32>
    %c0_26 = arith.constant 0 : index
    %c0_27 = arith.constant 0 : index
    %19 = vector.load %arg51[%c0_26, %c0_27] : memref<24x192xf32, #tpu.memory_space<vmem>>, vector<24x192xf32>
    tpu.vector_store %arg51[%c0_26, %c0_27], %18 {strides = array<i32>} : memref<24x192xf32, #tpu.memory_space<vmem>>, vector<24x192xf32>,
    %cst_28 = arith.constant 0.000000e+00 : f32
    %20 = vector.broadcast %cst_28 : f32 to vector<8x192xf32>
    %c0_29 = arith.constant 0 : index
    %c0_30 = arith.constant 0 : index
    %21 = vector.load %arg52[%c0_29, %c0_30] : memref<8x192xf32, #tpu.memory_space<vmem>>, vector<8x192xf32>
    tpu.vector_store %arg52[%c0_29, %c0_30], %20 {strides = array<i32>} : memref<8x192xf32, #tpu.memory_space<vmem>>, vector<8x192xf32>,
    %cst_31 = arith.constant 0.000000e+00 : f32
    %22 = vector.broadcast %cst_31 : f32 to vector<16x192xf32>
    %c0_32 = arith.constant 0 : index
    %c0_33 = arith.constant 0 : index
    %23 = vector.load %arg53[%c0_32, %c0_33] : memref<16x192xf32, #tpu.memory_space<vmem>>, vector<16x192xf32>
    tpu.vector_store %arg53[%c0_32, %c0_33], %22 {strides = array<i32>} : memref<16x192xf32, #tpu.memory_space<vmem>>, vector<16x192xf32>,
    %cst_34 = arith.constant 0.000000e+00 : f32
    %24 = vector.broadcast %cst_34 : f32 to vector<16x192xf32>
    %c0_35 = arith.constant 0 : index
    %c0_36 = arith.constant 0 : index
    %25 = vector.load %arg54[%c0_35, %c0_36] : memref<16x192xf32, #tpu.memory_space<vmem>>, vector<16x192xf32>
    tpu.vector_store %arg54[%c0_35, %c0_36], %24 {strides = array<i32>} : memref<16x192xf32, #tpu.memory_space<vmem>>, vector<16x192xf32>,
    %cst_37 = arith.constant 0.000000e+00 : f32
    %26 = vector.broadcast %cst_37 : f32 to vector<16x192xf32>
    %c0_38 = arith.constant 0 : index
    %c0_39 = arith.constant 0 : index
    %27 = vector.load %arg55[%c0_38, %c0_39] : memref<16x192xf32, #tpu.memory_space<vmem>>, vector<16x192xf32>
    tpu.vector_store %arg55[%c0_38, %c0_39], %26 {strides = array<i32>} : memref<16x192xf32, #tpu.memory_space<vmem>>, vector<16x192xf32>,
    %cst_40 = arith.constant 0.000000e+00 : f32
    %28 = vector.broadcast %cst_40 : f32 to vector<16x192xf32>
    %c0_41 = arith.constant 0 : index
    %c0_42 = arith.constant 0 : index
    %29 = vector.load %arg56[%c0_41, %c0_42] : memref<16x192xf32, #tpu.memory_space<vmem>>, vector<16x192xf32>
    tpu.vector_store %arg56[%c0_41, %c0_42], %28 {strides = array<i32>} : memref<16x192xf32, #tpu.memory_space<vmem>>, vector<16x192xf32>,
    %cst_43 = arith.constant 0.000000e+00 : f32
    %30 = vector.broadcast %cst_43 : f32 to vector<16x192xf32>
    %c0_44 = arith.constant 0 : index
    %c0_45 = arith.constant 0 : index
    %31 = vector.load %arg57[%c0_44, %c0_45] : memref<16x192xf32, #tpu.memory_space<vmem>>, vector<16x192xf32>
    tpu.vector_store %arg57[%c0_44, %c0_45], %30 {strides = array<i32>} : memref<16x192xf32, #tpu.memory_space<vmem>>, vector<16x192xf32>,
    %cst_46 = arith.constant 0.000000e+00 : f32
    %32 = vector.broadcast %cst_46 : f32 to vector<16x192xf32>
    %c0_47 = arith.constant 0 : index
    %c0_48 = arith.constant 0 : index
    %33 = vector.load %arg58[%c0_47, %c0_48] : memref<16x192xf32, #tpu.memory_space<vmem>>, vector<16x192xf32>
    tpu.vector_store %arg58[%c0_47, %c0_48], %32 {strides = array<i32>} : memref<16x192xf32, #tpu.memory_space<vmem>>, vector<16x192xf32>,
    %c0_49 = arith.constant 0 : index
    %c0_50 = arith.constant 0 : index
    %34 = vector.load %arg0[%c0_49, %c0_50] : memref<128x16xf32, #tpu.memory_space<vmem>>, vector<64x16xf32>
    %c4 = arith.constant 4 : index
    %c0_51 = arith.constant 0 : index
    %35 = vector.load %arg42[%c4, %c0_51] : memref<72x16xf32, #tpu.memory_space<vmem>>, vector<64x16xf32>
    tpu.vector_store %arg42[%c4, %c0_51], %34 {strides = array<i32>} : memref<72x16xf32, #tpu.memory_space<vmem>>, vector<64x16xf32>,
    %c64 = arith.constant 64 : index
    %c0_52 = arith.constant 0 : index
    %36 = vector.load %arg0[%c64, %c0_52] : memref<128x16xf32, #tpu.memory_space<vmem>>, vector<64x16xf32>
    %c8 = arith.constant 8 : index
    %c0_53 = arith.constant 0 : index
    %37 = vector.load %arg43[%c8, %c0_53] : memref<80x16xf32, #tpu.memory_space<vmem>>, vector<64x16xf32>
    tpu.vector_store %arg43[%c8, %c0_53], %36 {strides = array<i32>} : memref<80x16xf32, #tpu.memory_space<vmem>>, vector<64x16xf32>,
    %c0_54 = arith.constant 0 : index
    %c0_55 = arith.constant 0 : index
    %38 = vector.load %arg43[%c0_54, %c0_55] : memref<80x16xf32, #tpu.memory_space<vmem>>, vector<64x16xf32>
    %c0_56 = arith.constant 0 : index
    %c0_57 = arith.constant 0 : index
    %c0_58 = arith.constant 0 : index
    %39 = vector.load %arg1[%c0_56, %c0_57, %c0_58] : memref<7x16x128xbf16, #tpu.memory_space<vmem>>, vector<1x16x128xbf16>
    %40 = vector.shape_cast %39 : vector<1x16x128xbf16> to vector<16x128xbf16>
    %41 = arith.truncf %38 : vector<64x16xf32> to vector<64x16xbf16>
    %cst_59 = arith.constant dense<0.000000e+00> : vector<64x128xf32>
    %42 = tpu.matmul %41, %40, %cst_59 {dimension_numbers = #tpu.dot_dimension_numbers<[1], [0], [0], [1], [0, 0, 1, 1], [], []>} : vector<64x16xbf16>, vector<16x128xbf16>, vector<64x128xf32> -> vector<64x128xf32>
    %c0_60 = arith.constant 0 : index
    %c0_61 = arith.constant 0 : index
    %43 = vector.load %arg42[%c0_60, %c0_61] : memref<72x16xf32, #tpu.memory_space<vmem>>, vector<64x16xf32>
    %c1 = arith.constant 1 : index
    %c0_62 = arith.constant 0 : index
    %c0_63 = arith.constant 0 : index
    %44 = vector.load %arg1[%c1, %c0_62, %c0_63] : memref<7x16x128xbf16, #tpu.memory_space<vmem>>, vector<1x16x128xbf16>
    %45 = vector.shape_cast %44 : vector<1x16x128xbf16> to vector<16x128xbf16>
    %46 = arith.truncf %43 : vector<64x16xf32> to vector<64x16xbf16>
    %cst_64 = arith.constant dense<0.000000e+00> : vector<64x128xf32>
    %47 = tpu.matmul %46, %45, %cst_64 {dimension_numbers = #tpu.dot_dimension_numbers<[1], [0], [0], [1], [0, 0, 1, 1], [], []>} : vector<64x16xbf16>, vector<16x128xbf16>, vector<64x128xf32> -> vector<64x128xf32>
    %48 = arith.addf %42, %47 : vector<64x128xf32>
    %c4_65 = arith.constant 4 : index
    %c0_66 = arith.constant 0 : index
    %49 = vector.load %arg43[%c4_65, %c0_66] : memref<80x16xf32, #tpu.memory_space<vmem>>, vector<64x16xf32>
    %c2 = arith.constant 2 : index
    %c0_67 = arith.constant 0 : index
    %c0_68 = arith.constant 0 : index
    %50 = vector.load %arg1[%c2, %c0_67, %c0_68] : memref<7x16x128xbf16, #tpu.memory_space<vmem>>, vector<1x16x128xbf16>
    %51 = vector.shape_cast %50 : vector<1x16x128xbf16> to vector<16x128xbf16>
    %52 = arith.truncf %49 : vector<64x16xf32> to vector<64x16xbf16>
    %cst_69 = arith.constant dense<0.000000e+00> : vector<64x128xf32>
    %53 = tpu.matmul %52, %51, %cst_69 {dimension_numbers = #tpu.dot_dimension_numbers<[1], [0], [0], [1], [0, 0, 1, 1], [], []>} : vector<64x16xbf16>, vector<16x128xbf16>, vector<64x128xf32> -> vector<64x128xf32>
    %54 = arith.addf %48, %53 : vector<64x128xf32>
    %c4_70 = arith.constant 4 : index
    %c0_71 = arith.constant 0 : index
    %55 = vector.load %arg42[%c4_70, %c0_71] : memref<72x16xf32, #tpu.memory_space<vmem>>, vector<64x16xf32>
    %c3 = arith.constant 3 : index
    %c0_72 = arith.constant 0 : index
    %c0_73 = arith.constant 0 : index
    %56 = vector.load %arg1[%c3, %c0_72, %c0_73] : memref<7x16x128xbf16, #tpu.memory_space<vmem>>, vector<1x16x128xbf16>
    %57 = vector.shape_cast %56 : vector<1x16x128xbf16> to vector<16x128xbf16>
    %58 = arith.truncf %55 : vector<64x16xf32> to vector<64x16xbf16>
    %cst_74 = arith.constant dense<0.000000e+00> : vector<64x128xf32>
    %59 = tpu.matmul %58, %57, %cst_74 {dimension_numbers = #tpu.dot_dimension_numbers<[1], [0], [0], [1], [0, 0, 1, 1], [], []>} : vector<64x16xbf16>, vector<16x128xbf16>, vector<64x128xf32> -> vector<64x128xf32>
    %60 = arith.addf %54, %59 : vector<64x128xf32>
    %c8_75 = arith.constant 8 : index
    %c0_76 = arith.constant 0 : index
    %61 = vector.load %arg43[%c8_75, %c0_76] : memref<80x16xf32, #tpu.memory_space<vmem>>, vector<64x16xf32>
    %c4_77 = arith.constant 4 : index
    %c0_78 = arith.constant 0 : index
    %c0_79 = arith.constant 0 : index
    %62 = vector.load %arg1[%c4_77, %c0_78, %c0_79] : memref<7x16x128xbf16, #tpu.memory_space<vmem>>, vector<1x16x128xbf16>
    %63 = vector.shape_cast %62 : vector<1x16x128xbf16> to vector<16x128xbf16>
    %64 = arith.truncf %61 : vector<64x16xf32> to vector<64x16xbf16>
    %cst_80 = arith.constant dense<0.000000e+00> : vector<64x128xf32>
    %65 = tpu.matmul %64, %63, %cst_80 {dimension_numbers = #tpu.dot_dimension_numbers<[1], [0], [0], [1], [0, 0, 1, 1], [], []>} : vector<64x16xbf16>, vector<16x128xbf16>, vector<64x128xf32> -> vector<64x128xf32>
    %66 = arith.addf %60, %65 : vector<64x128xf32>
    %c8_81 = arith.constant 8 : index
    %c0_82 = arith.constant 0 : index
    %67 = vector.load %arg42[%c8_81, %c0_82] : memref<72x16xf32, #tpu.memory_space<vmem>>, vector<64x16xf32>
    %c5 = arith.constant 5 : index
    %c0_83 = arith.constant 0 : index
    %c0_84 = arith.constant 0 : index
    %68 = vector.load %arg1[%c5, %c0_83, %c0_84] : memref<7x16x128xbf16, #tpu.memory_space<vmem>>, vector<1x16x128xbf16>
    %69 = vector.shape_cast %68 : vector<1x16x128xbf16> to vector<16x128xbf16>
    %70 = arith.truncf %67 : vector<64x16xf32> to vector<64x16xbf16>
    %cst_85 = arith.constant dense<0.000000e+00> : vector<64x128xf32>
    %71 = tpu.matmul %70, %69, %cst_85 {dimension_numbers = #tpu.dot_dimension_numbers<[1], [0], [0], [1], [0, 0, 1, 1], [], []>} : vector<64x16xbf16>, vector<16x128xbf16>, vector<64x128xf32> -> vector<64x128xf32>
    %72 = arith.addf %66, %71 : vector<64x128xf32>
    %c12 = arith.constant 12 : index
    %c0_86 = arith.constant 0 : index
    %73 = vector.load %arg43[%c12, %c0_86] : memref<80x16xf32, #tpu.memory_space<vmem>>, vector<64x16xf32>
    %c6 = arith.constant 6 : index
    %c0_87 = arith.constant 0 : index
    %c0_88 = arith.constant 0 : index
    %74 = vector.load %arg1[%c6, %c0_87, %c0_88] : memref<7x16x128xbf16, #tpu.memory_space<vmem>>, vector<1x16x128xbf16>
    %75 = vector.shape_cast %74 : vector<1x16x128xbf16> to vector<16x128xbf16>
    %76 = arith.truncf %73 : vector<64x16xf32> to vector<64x16xbf16>
    %cst_89 = arith.constant dense<0.000000e+00> : vector<64x128xf32>
    %77 = tpu.matmul %76, %75, %cst_89 {dimension_numbers = #tpu.dot_dimension_numbers<[1], [0], [0], [1], [0, 0, 1, 1], [], []>} : vector<64x16xbf16>, vector<16x128xbf16>, vector<64x128xf32> -> vector<64x128xf32>
    %78 = arith.addf %72, %77 : vector<64x128xf32>
    %c0_90 = arith.constant 0 : index
    %c0_91 = arith.constant 0 : index
    %79 = vector.load %arg2[%c0_90, %c0_91] : memref<1x128xf32, #tpu.memory_space<vmem>>, vector<1x128xf32>
    %80 = vector.broadcast %79 : vector<1x128xf32> to vector<64x128xf32>
    %81 = arith.addf %78, %80 : vector<64x128xf32>
    %cst_92 = arith.constant 0.000000e+00 : f32
    %82 = vector.broadcast %cst_92 : f32 to vector<64x128xf32>
    %83 = arith.maximumf %81, %82 : vector<64x128xf32>
    %c4_93 = arith.constant 4 : index
    %c0_94 = arith.constant 0 : index
    %84 = vector.load %arg44[%c4_93, %c0_94] : memref<72x128xf32, #tpu.memory_space<vmem>>, vector<64x128xf32>
    tpu.vector_store %arg44[%c4_93, %c0_94], %83 {strides = array<i32>} : memref<72x128xf32, #tpu.memory_space<vmem>>, vector<64x128xf32>,
    %c0_95 = arith.constant 0 : index
    %c0_96 = arith.constant 0 : index
    %85 = vector.load %arg44[%c0_95, %c0_96] : memref<72x128xf32, #tpu.memory_space<vmem>>, vector<64x128xf32>
    %c4_97 = arith.constant 4 : index
    %c0_98 = arith.constant 0 : index
    %86 = vector.load %arg44[%c4_97, %c0_98] : memref<72x128xf32, #tpu.memory_space<vmem>>, vector<64x128xf32>
    %87 = arith.maximumf %85, %86 : vector<64x128xf32>
    %c8_99 = arith.constant 8 : index
    %c0_100 = arith.constant 0 : index
    %88 = vector.load %arg44[%c8_99, %c0_100] : memref<72x128xf32, #tpu.memory_space<vmem>>, vector<64x128xf32>
    %89 = arith.maximumf %87, %88 : vector<64x128xf32>
    %90 = vector.extract_strided_slice %89 {offsets = [0, 0], sizes = [4, 128], strides = [1, 1]} : vector<64x128xf32> to vector<4x128xf32>
    %c4_101 = arith.constant 4 : index
    %c0_102 = arith.constant 0 : index
    %91 = vector.load %arg45[%c4_101, %c0_102] : memref<40x128xf32, #tpu.memory_space<vmem>>, vector<4x128xf32>
    tpu.vector_store %arg45[%c4_101, %c0_102], %90 {strides = array<i32>} : memref<40x128xf32, #tpu.memory_space<vmem>>, vector<4x128xf32>,
    %92 = vector.extract_strided_slice %89 {offsets = [8, 0], sizes = [4, 128], strides = [1, 1]} : vector<64x128xf32> to vector<4x128xf32>
    %c8_103 = arith.constant 8 : index
    %c0_104 = arith.constant 0 : index
    %93 = vector.load %arg45[%c8_103, %c0_104] : memref<40x128xf32, #tpu.memory_space<vmem>>, vector<4x128xf32>
    tpu.vector_store %arg45[%c8_103, %c0_104], %92 {strides = array<i32>} : memref<40x128xf32, #tpu.memory_space<vmem>>, vector<4x128xf32>,
    %94 = vector.extract_strided_slice %89 {offsets = [16, 0], sizes = [4, 128], strides = [1, 1]} : vector<64x128xf32> to vector<4x128xf32>
    %c12_105 = arith.constant 12 : index
    %c0_106 = arith.constant 0 : index
    %95 = vector.load %arg45[%c12_105, %c0_106] : memref<40x128xf32, #tpu.memory_space<vmem>>, vector<4x128xf32>
    tpu.vector_store %arg45[%c12_105, %c0_106], %94 {strides = array<i32>} : memref<40x128xf32, #tpu.memory_space<vmem>>, vector<4x128xf32>,
    %96 = vector.extract_strided_slice %89 {offsets = [24, 0], sizes = [4, 128], strides = [1, 1]} : vector<64x128xf32> to vector<4x128xf32>
    %c16 = arith.constant 16 : index
    %c0_107 = arith.constant 0 : index
    %97 = vector.load %arg45[%c16, %c0_107] : memref<40x128xf32, #tpu.memory_space<vmem>>, vector<4x128xf32>
    tpu.vector_store %arg45[%c16, %c0_107], %96 {strides = array<i32>} : memref<40x128xf32, #tpu.memory_space<vmem>>, vector<4x128xf32>,
    %98 = vector.extract_strided_slice %89 {offsets = [32, 0], sizes = [4, 128], strides = [1, 1]} : vector<64x128xf32> to vector<4x128xf32>
    %c20 = arith.constant 20 : index
    %c0_108 = arith.constant 0 : index
    %99 = vector.load %arg45[%c20, %c0_108] : memref<40x128xf32, #tpu.memory_space<vmem>>, vector<4x128xf32>
    tpu.vector_store %arg45[%c20, %c0_108], %98 {strides = array<i32>} : memref<40x128xf32, #tpu.memory_space<vmem>>, vector<4x128xf32>,
    %100 = vector.extract_strided_slice %89 {offsets = [40, 0], sizes = [4, 128], strides = [1, 1]} : vector<64x128xf32> to vector<4x128xf32>
    %c24 = arith.constant 24 : index
    %c0_109 = arith.constant 0 : index
    %101 = vector.load %arg45[%c24, %c0_109] : memref<40x128xf32, #tpu.memory_space<vmem>>, vector<4x128xf32>
    tpu.vector_store %arg45[%c24, %c0_109], %100 {strides = array<i32>} : memref<40x128xf32, #tpu.memory_space<vmem>>, vector<4x128xf32>,
    %102 = vector.extract_strided_slice %89 {offsets = [48, 0], sizes = [4, 128], strides = [1, 1]} : vector<64x128xf32> to vector<4x128xf32>
    %c28 = arith.constant 28 : index
    %c0_110 = arith.constant 0 : index
    %103 = vector.load %arg45[%c28, %c0_110] : memref<40x128xf32, #tpu.memory_space<vmem>>, vector<4x128xf32>
    tpu.vector_store %arg45[%c28, %c0_110], %102 {strides = array<i32>} : memref<40x128xf32, #tpu.memory_space<vmem>>, vector<4x128xf32>,
    %104 = vector.extract_strided_slice %89 {offsets = [56, 0], sizes = [4, 128], strides = [1, 1]} : vector<64x128xf32> to vector<4x128xf32>
    %c32 = arith.constant 32 : index
    %c0_111 = arith.constant 0 : index
    %105 = vector.load %arg45[%c32, %c0_111] : memref<40x128xf32, #tpu.memory_space<vmem>>, vector<4x128xf32>
    tpu.vector_store %arg45[%c32, %c0_111], %104 {strides = array<i32>} : memref<40x128xf32, #tpu.memory_space<vmem>>, vector<4x128xf32>,
    %c4_112 = arith.constant 4 : index
    %c0_113 = arith.constant 0 : index
    %106 = vector.load %arg45[%c4_112, %c0_113] : memref<40x128xf32, #tpu.memory_space<vmem>>, vector<32x128xf32>
    %c0_114 = arith.constant 0 : index
    %c0_115 = arith.constant 0 : index
    %107 = vector.load %arg29[%c0_114, %c0_115] : memref<128x128xf32, #tpu.memory_space<vmem>>, vector<128x128xf32>
    %cst_116 = arith.constant dense<0.000000e+00> : vector<32x128xf32>
    %108 = tpu.matmul %106, %107, %cst_116 {dimension_numbers = #tpu.dot_dimension_numbers<[1], [0], [0], [1], [0, 0, 1, 1], [], []>} : vector<32x128xf32>, vector<128x128xf32>, vector<32x128xf32> -> vector<32x128xf32>
    %c0_117 = arith.constant 0 : index
    %c0_118 = arith.constant 0 : index
    %109 = vector.load %arg30[%c0_117, %c0_118] : memref<128x128xf32, #tpu.memory_space<vmem>>, vector<128x128xf32>
    %cst_119 = arith.constant dense<0.000000e+00> : vector<32x128xf32>
    %110 = tpu.matmul %106, %109, %cst_119 {dimension_numbers = #tpu.dot_dimension_numbers<[1], [0], [0], [1], [0, 0, 1, 1], [], []>} : vector<32x128xf32>, vector<128x128xf32>, vector<32x128xf32> -> vector<32x128xf32>
    %111 = arith.maximumf %108, %110 : vector<32x128xf32>
    %112 = arith.maximumf %106, %111 : vector<32x128xf32>
    %c4_120 = arith.constant 4 : index
    %c0_121 = arith.constant 0 : index
    %113 = vector.load %arg45[%c4_120, %c0_121] : memref<40x128xf32, #tpu.memory_space<vmem>>, vector<32x128xf32>
    tpu.vector_store %arg45[%c4_120, %c0_121], %112 {strides = array<i32>} : memref<40x128xf32, #tpu.memory_space<vmem>>, vector<32x128xf32>,
    %c0_122 = arith.constant 0 : index
    %c0_123 = arith.constant 0 : index
    %114 = vector.load %arg45[%c0_122, %c0_123] : memref<40x128xf32, #tpu.memory_space<vmem>>, vector<32x128xf32>
    %c0_124 = arith.constant 0 : index
    %c0_125 = arith.constant 0 : index
    %c0_126 = arith.constant 0 : index
    %115 = vector.load %arg3[%c0_124, %c0_125, %c0_126] : memref<3x128x128xbf16, #tpu.memory_space<vmem>>, vector<1x128x128xbf16>
    %116 = vector.shape_cast %115 : vector<1x128x128xbf16> to vector<128x128xbf16>
    %117 = arith.truncf %114 : vector<32x128xf32> to vector<32x128xbf16>
    %cst_127 = arith.constant dense<0.000000e+00> : vector<32x128xf32>
    %118 = tpu.matmul %117, %116, %cst_127 {dimension_numbers = #tpu.dot_dimension_numbers<[1], [0], [0], [1], [0, 0, 1, 1], [], []>} : vector<32x128xbf16>, vector<128x128xbf16>, vector<32x128xf32> -> vector<32x128xf32>
    %c4_128 = arith.constant 4 : index
    %c0_129 = arith.constant 0 : index
    %119 = vector.load %arg45[%c4_128, %c0_129] : memref<40x128xf32, #tpu.memory_space<vmem>>, vector<32x128xf32>
    %c1_130 = arith.constant 1 : index
    %c0_131 = arith.constant 0 : index
    %c0_132 = arith.constant 0 : index
    %120 = vector.load %arg3[%c1_130, %c0_131, %c0_132] : memref<3x128x128xbf16, #tpu.memory_space<vmem>>, vector<1x128x128xbf16>
    %121 = vector.shape_cast %120 : vector<1x128x128xbf16> to vector<128x128xbf16>
    %122 = arith.truncf %119 : vector<32x128xf32> to vector<32x128xbf16>
    %cst_133 = arith.constant dense<0.000000e+00> : vector<32x128xf32>
    %123 = tpu.matmul %122, %121, %cst_133 {dimension_numbers = #tpu.dot_dimension_numbers<[1], [0], [0], [1], [0, 0, 1, 1], [], []>} : vector<32x128xbf16>, vector<128x128xbf16>, vector<32x128xf32> -> vector<32x128xf32>
    %124 = arith.addf %118, %123 : vector<32x128xf32>
    %c8_134 = arith.constant 8 : index
    %c0_135 = arith.constant 0 : index
    %125 = vector.load %arg45[%c8_134, %c0_135] : memref<40x128xf32, #tpu.memory_space<vmem>>, vector<32x128xf32>
    %c2_136 = arith.constant 2 : index
    %c0_137 = arith.constant 0 : index
    %c0_138 = arith.constant 0 : index
    %126 = vector.load %arg3[%c2_136, %c0_137, %c0_138] : memref<3x128x128xbf16, #tpu.memory_space<vmem>>, vector<1x128x128xbf16>
    %127 = vector.shape_cast %126 : vector<1x128x128xbf16> to vector<128x128xbf16>
    %128 = arith.truncf %125 : vector<32x128xf32> to vector<32x128xbf16>
    %cst_139 = arith.constant dense<0.000000e+00> : vector<32x128xf32>
    %129 = tpu.matmul %128, %127, %cst_139 {dimension_numbers = #tpu.dot_dimension_numbers<[1], [0], [0], [1], [0, 0, 1, 1], [], []>} : vector<32x128xbf16>, vector<128x128xbf16>, vector<32x128xf32> -> vector<32x128xf32>
    %130 = arith.addf %124, %129 : vector<32x128xf32>
    %c0_140 = arith.constant 0 : index
    %c0_141 = arith.constant 0 : index
    %131 = vector.load %arg4[%c0_140, %c0_141] : memref<1x128xf32, #tpu.memory_space<vmem>>, vector<1x128xf32>
    %132 = vector.broadcast %131 : vector<1x128xf32> to vector<32x128xf32>
    %133 = arith.addf %130, %132 : vector<32x128xf32>
    %cst_142 = arith.constant 0.000000e+00 : f32
    %134 = vector.broadcast %cst_142 : f32 to vector<32x128xf32>
    %135 = arith.maximumf %133, %134 : vector<32x128xf32>
    %c4_143 = arith.constant 4 : index
    %c0_144 = arith.constant 0 : index
    %136 = vector.load %arg46[%c4_143, %c0_144] : memref<40x128xf32, #tpu.memory_space<vmem>>, vector<32x128xf32>
    tpu.vector_store %arg46[%c4_143, %c0_144], %135 {strides = array<i32>} : memref<40x128xf32, #tpu.memory_space<vmem>>, vector<32x128xf32>,
    %c4_145 = arith.constant 4 : index
    %c0_146 = arith.constant 0 : index
    %137 = vector.load %arg45[%c4_145, %c0_146] : memref<40x128xf32, #tpu.memory_space<vmem>>, vector<32x128xf32>
    %c0_147 = arith.constant 0 : index
    %c0_148 = arith.constant 0 : index
    %c0_149 = arith.constant 0 : index
    %138 = vector.load %arg5[%c0_147, %c0_148, %c0_149] : memref<1x128x128xbf16, #tpu.memory_space<vmem>>, vector<1x128x128xbf16>
    %139 = vector.shape_cast %138 : vector<1x128x128xbf16> to vector<128x128xbf16>
    %140 = arith.truncf %137 : vector<32x128xf32> to vector<32x128xbf16>
    %cst_150 = arith.constant dense<0.000000e+00> : vector<32x128xf32>
    %141 = tpu.matmul %140, %139, %cst_150 {dimension_numbers = #tpu.dot_dimension_numbers<[1], [0], [0], [1], [0, 0, 1, 1], [], []>} : vector<32x128xbf16>, vector<128x128xbf16>, vector<32x128xf32> -> vector<32x128xf32>
    %c0_151 = arith.constant 0 : index
    %c0_152 = arith.constant 0 : index
    %142 = vector.load %arg6[%c0_151, %c0_152] : memref<1x128xf32, #tpu.memory_space<vmem>>, vector<1x128xf32>
    %143 = vector.broadcast %142 : vector<1x128xf32> to vector<32x128xf32>
    %144 = arith.addf %141, %143 : vector<32x128xf32>
    %c0_153 = arith.constant 0 : index
    %c0_154 = arith.constant 0 : index
    %145 = vector.load %arg46[%c0_153, %c0_154] : memref<40x128xf32, #tpu.memory_space<vmem>>, vector<32x128xf32>
    %c0_155 = arith.constant 0 : index
    %c0_156 = arith.constant 0 : index
    %c0_157 = arith.constant 0 : index
    %146 = vector.load %arg7[%c0_155, %c0_156, %c0_157] : memref<3x128x128xbf16, #tpu.memory_space<vmem>>, vector<1x128x128xbf16>
    %147 = vector.shape_cast %146 : vector<1x128x128xbf16> to vector<128x128xbf16>
    %148 = arith.truncf %145 : vector<32x128xf32> to vector<32x128xbf16>
    %cst_158 = arith.constant dense<0.000000e+00> : vector<32x128xf32>
    %149 = tpu.matmul %148, %147, %cst_158 {dimension_numbers = #tpu.dot_dimension_numbers<[1], [0], [0], [1], [0, 0, 1, 1], [], []>} : vector<32x128xbf16>, vector<128x128xbf16>, vector<32x128xf32> -> vector<32x128xf32>
    %c4_159 = arith.constant 4 : index
    %c0_160 = arith.constant 0 : index
    %150 = vector.load %arg46[%c4_159, %c0_160] : memref<40x128xf32, #tpu.memory_space<vmem>>, vector<32x128xf32>
    %c1_161 = arith.constant 1 : index
    %c0_162 = arith.constant 0 : index
    %c0_163 = arith.constant 0 : index
    %151 = vector.load %arg7[%c1_161, %c0_162, %c0_163] : memref<3x128x128xbf16, #tpu.memory_space<vmem>>, vector<1x128x128xbf16>
    %152 = vector.shape_cast %151 : vector<1x128x128xbf16> to vector<128x128xbf16>
    %153 = arith.truncf %150 : vector<32x128xf32> to vector<32x128xbf16>
    %cst_164 = arith.constant dense<0.000000e+00> : vector<32x128xf32>
    %154 = tpu.matmul %153, %152, %cst_164 {dimension_numbers = #tpu.dot_dimension_numbers<[1], [0], [0], [1], [0, 0, 1, 1], [], []>} : vector<32x128xbf16>, vector<128x128xbf16>, vector<32x128xf32> -> vector<32x128xf32>
    %155 = arith.addf %149, %154 : vector<32x128xf32>
    %c8_165 = arith.constant 8 : index
    %c0_166 = arith.constant 0 : index
    %156 = vector.load %arg46[%c8_165, %c0_166] : memref<40x128xf32, #tpu.memory_space<vmem>>, vector<32x128xf32>
    %c2_167 = arith.constant 2 : index
    %c0_168 = arith.constant 0 : index
    %c0_169 = arith.constant 0 : index
    %157 = vector.load %arg7[%c2_167, %c0_168, %c0_169] : memref<3x128x128xbf16, #tpu.memory_space<vmem>>, vector<1x128x128xbf16>
    %158 = vector.shape_cast %157 : vector<1x128x128xbf16> to vector<128x128xbf16>
    %159 = arith.truncf %156 : vector<32x128xf32> to vector<32x128xbf16>
    %cst_170 = arith.constant dense<0.000000e+00> : vector<32x128xf32>
    %160 = tpu.matmul %159, %158, %cst_170 {dimension_numbers = #tpu.dot_dimension_numbers<[1], [0], [0], [1], [0, 0, 1, 1], [], []>} : vector<32x128xbf16>, vector<128x128xbf16>, vector<32x128xf32> -> vector<32x128xf32>
    %161 = arith.addf %155, %160 : vector<32x128xf32>
    %c0_171 = arith.constant 0 : index
    %c0_172 = arith.constant 0 : index
    %162 = vector.load %arg8[%c0_171, %c0_172] : memref<1x128xf32, #tpu.memory_space<vmem>>, vector<1x128xf32>
    %163 = vector.broadcast %162 : vector<1x128xf32> to vector<32x128xf32>
    %164 = arith.addf %161, %163 : vector<32x128xf32>
    %165 = arith.addf %164, %144 : vector<32x128xf32>
    %cst_173 = arith.constant 0.000000e+00 : f32
    %166 = vector.broadcast %cst_173 : f32 to vector<32x128xf32>
    %167 = arith.maximumf %165, %166 : vector<32x128xf32>
    %c4_174 = arith.constant 4 : index
    %c0_175 = arith.constant 0 : index
    %168 = vector.load %arg47[%c4_174, %c0_175] : memref<40x128xf32, #tpu.memory_space<vmem>>, vector<32x128xf32>
    tpu.vector_store %arg47[%c4_174, %c0_175], %167 {strides = array<i32>} : memref<40x128xf32, #tpu.memory_space<vmem>>, vector<32x128xf32>,
    %c4_176 = arith.constant 4 : index
    %c0_177 = arith.constant 0 : index
    %169 = vector.load %arg47[%c4_176, %c0_177] : memref<40x128xf32, #tpu.memory_space<vmem>>, vector<4x128xf32>
    %c0_178 = arith.constant 0 : index
    %c0_179 = arith.constant 0 : index
    %170 = vector.load %arg48[%c0_178, %c0_179] : memref<16x128xf32, #tpu.memory_space<vmem>>, vector<4x128xf32>
    tpu.vector_store %arg48[%c0_178, %c0_179], %169 {strides = array<i32>} : memref<16x128xf32, #tpu.memory_space<vmem>>, vector<4x128xf32>,
    %c12_180 = arith.constant 12 : index
    %c0_181 = arith.constant 0 : index
    %171 = vector.load %arg47[%c12_180, %c0_181] : memref<40x128xf32, #tpu.memory_space<vmem>>, vector<4x128xf32>
    %c4_182 = arith.constant 4 : index
    %c0_183 = arith.constant 0 : index
    %172 = vector.load %arg48[%c4_182, %c0_183] : memref<16x128xf32, #tpu.memory_space<vmem>>, vector<4x128xf32>
    tpu.vector_store %arg48[%c4_182, %c0_183], %171 {strides = array<i32>} : memref<16x128xf32, #tpu.memory_space<vmem>>, vector<4x128xf32>,
    %c20_184 = arith.constant 20 : index
    %c0_185 = arith.constant 0 : index
    %173 = vector.load %arg47[%c20_184, %c0_185] : memref<40x128xf32, #tpu.memory_space<vmem>>, vector<4x128xf32>
    %c8_186 = arith.constant 8 : index
    %c0_187 = arith.constant 0 : index
    %174 = vector.load %arg48[%c8_186, %c0_187] : memref<16x128xf32, #tpu.memory_space<vmem>>, vector<4x128xf32>
    tpu.vector_store %arg48[%c8_186, %c0_187], %173 {strides = array<i32>} : memref<16x128xf32, #tpu.memory_space<vmem>>, vector<4x128xf32>,
    %c28_188 = arith.constant 28 : index
    %c0_189 = arith.constant 0 : index
    %175 = vector.load %arg47[%c28_188, %c0_189] : memref<40x128xf32, #tpu.memory_space<vmem>>, vector<4x128xf32>
    %c12_190 = arith.constant 12 : index
    %c0_191 = arith.constant 0 : index
    %176 = vector.load %arg48[%c12_190, %c0_191] : memref<16x128xf32, #tpu.memory_space<vmem>>, vector<4x128xf32>
    tpu.vector_store %arg48[%c12_190, %c0_191], %175 {strides = array<i32>} : memref<16x128xf32, #tpu.memory_space<vmem>>, vector<4x128xf32>,
    %c0_192 = arith.constant 0 : index
    %c0_193 = arith.constant 0 : index
    %177 = vector.load %arg47[%c0_192, %c0_193] : memref<40x128xf32, #tpu.memory_space<vmem>>, vector<4x128xf32>
    %c0_194 = arith.constant 0 : index
    %c0_195 = arith.constant 0 : index
    %178 = vector.load %arg49[%c0_194, %c0_195] : memref<24x128xf32, #tpu.memory_space<vmem>>, vector<4x128xf32>
    tpu.vector_store %arg49[%c0_194, %c0_195], %177 {strides = array<i32>} : memref<24x128xf32, #tpu.memory_space<vmem>>, vector<4x128xf32>,
    %c8_196 = arith.constant 8 : index
    %c0_197 = arith.constant 0 : index
    %179 = vector.load %arg47[%c8_196, %c0_197] : memref<40x128xf32, #tpu.memory_space<vmem>>, vector<4x128xf32>
    %c4_198 = arith.constant 4 : index
    %c0_199 = arith.constant 0 : index
    %180 = vector.load %arg49[%c4_198, %c0_199] : memref<24x128xf32, #tpu.memory_space<vmem>>, vector<4x128xf32>
    tpu.vector_store %arg49[%c4_198, %c0_199], %179 {strides = array<i32>} : memref<24x128xf32, #tpu.memory_space<vmem>>, vector<4x128xf32>,
    %c16_200 = arith.constant 16 : index
    %c0_201 = arith.constant 0 : index
    %181 = vector.load %arg47[%c16_200, %c0_201] : memref<40x128xf32, #tpu.memory_space<vmem>>, vector<4x128xf32>
    %c8_202 = arith.constant 8 : index
    %c0_203 = arith.constant 0 : index
    %182 = vector.load %arg49[%c8_202, %c0_203] : memref<24x128xf32, #tpu.memory_space<vmem>>, vector<4x128xf32>
    tpu.vector_store %arg49[%c8_202, %c0_203], %181 {strides = array<i32>} : memref<24x128xf32, #tpu.memory_space<vmem>>, vector<4x128xf32>,
    %c24_204 = arith.constant 24 : index
    %c0_205 = arith.constant 0 : index
    %183 = vector.load %arg47[%c24_204, %c0_205] : memref<40x128xf32, #tpu.memory_space<vmem>>, vector<4x128xf32>
    %c12_206 = arith.constant 12 : index
    %c0_207 = arith.constant 0 : index
    %184 = vector.load %arg49[%c12_206, %c0_207] : memref<24x128xf32, #tpu.memory_space<vmem>>, vector<4x128xf32>
    tpu.vector_store %arg49[%c12_206, %c0_207], %183 {strides = array<i32>} : memref<24x128xf32, #tpu.memory_space<vmem>>, vector<4x128xf32>,
    %c32_208 = arith.constant 32 : index
    %c0_209 = arith.constant 0 : index
    %185 = vector.load %arg47[%c32_208, %c0_209] : memref<40x128xf32, #tpu.memory_space<vmem>>, vector<4x128xf32>
    %c16_210 = arith.constant 16 : index
    %c0_211 = arith.constant 0 : index
    %186 = vector.load %arg49[%c16_210, %c0_211] : memref<24x128xf32, #tpu.memory_space<vmem>>, vector<4x128xf32>
    tpu.vector_store %arg49[%c16_210, %c0_211], %185 {strides = array<i32>} : memref<24x128xf32, #tpu.memory_space<vmem>>, vector<4x128xf32>,
    %c0_212 = arith.constant 0 : index
    %c0_213 = arith.constant 0 : index
    %187 = vector.load %arg49[%c0_212, %c0_213] : memref<24x128xf32, #tpu.memory_space<vmem>>, vector<16x128xf32>
    %c0_214 = arith.constant 0 : index
    %c0_215 = arith.constant 0 : index
    %c0_216 = arith.constant 0 : index
    %188 = vector.load %arg9[%c0_214, %c0_215, %c0_216] : memref<3x128x192xbf16, #tpu.memory_space<vmem>>, vector<1x128x192xbf16>
    %189 = vector.shape_cast %188 : vector<1x128x192xbf16> to vector<128x192xbf16>
    %190 = arith.truncf %187 : vector<16x128xf32> to vector<16x128xbf16>
    %cst_217 = arith.constant dense<0.000000e+00> : vector<16x192xf32>
    %191 = tpu.matmul %190, %189, %cst_217 {dimension_numbers = #tpu.dot_dimension_numbers<[1], [0], [0], [1], [0, 0, 1, 1], [], []>} : vector<16x128xbf16>, vector<128x192xbf16>, vector<16x192xf32> -> vector<16x192xf32>
    %c0_218 = arith.constant 0 : index
    %c0_219 = arith.constant 0 : index
    %192 = vector.load %arg48[%c0_218, %c0_219] : memref<16x128xf32, #tpu.memory_space<vmem>>, vector<16x128xf32>
    %c1_220 = arith.constant 1 : index
    %c0_221 = arith.constant 0 : index
    %c0_222 = arith.constant 0 : index
    %193 = vector.load %arg9[%c1_220, %c0_221, %c0_222] : memref<3x128x192xbf16, #tpu.memory_space<vmem>>, vector<1x128x192xbf16>
    %194 = vector.shape_cast %193 : vector<1x128x192xbf16> to vector<128x192xbf16>
    %195 = arith.truncf %192 : vector<16x128xf32> to vector<16x128xbf16>
    %cst_223 = arith.constant dense<0.000000e+00> : vector<16x192xf32>
    %196 = tpu.matmul %195, %194, %cst_223 {dimension_numbers = #tpu.dot_dimension_numbers<[1], [0], [0], [1], [0, 0, 1, 1], [], []>} : vector<16x128xbf16>, vector<128x192xbf16>, vector<16x192xf32> -> vector<16x192xf32>
    %197 = arith.addf %191, %196 : vector<16x192xf32>
    %c4_224 = arith.constant 4 : index
    %c0_225 = arith.constant 0 : index
    %198 = vector.load %arg49[%c4_224, %c0_225] : memref<24x128xf32, #tpu.memory_space<vmem>>, vector<16x128xf32>
    %c2_226 = arith.constant 2 : index
    %c0_227 = arith.constant 0 : index
    %c0_228 = arith.constant 0 : index
    %199 = vector.load %arg9[%c2_226, %c0_227, %c0_228] : memref<3x128x192xbf16, #tpu.memory_space<vmem>>, vector<1x128x192xbf16>
    %200 = vector.shape_cast %199 : vector<1x128x192xbf16> to vector<128x192xbf16>
    %201 = arith.truncf %198 : vector<16x128xf32> to vector<16x128xbf16>
    %cst_229 = arith.constant dense<0.000000e+00> : vector<16x192xf32>
    %202 = tpu.matmul %201, %200, %cst_229 {dimension_numbers = #tpu.dot_dimension_numbers<[1], [0], [0], [1], [0, 0, 1, 1], [], []>} : vector<16x128xbf16>, vector<128x192xbf16>, vector<16x192xf32> -> vector<16x192xf32>
    %203 = arith.addf %197, %202 : vector<16x192xf32>
    %c0_230 = arith.constant 0 : index
    %c0_231 = arith.constant 0 : index
    %204 = vector.load %arg10[%c0_230, %c0_231] : memref<1x192xf32, #tpu.memory_space<vmem>>, vector<1x192xf32>
    %205 = vector.broadcast %204 : vector<1x192xf32> to vector<16x192xf32>
    %206 = arith.addf %203, %205 : vector<16x192xf32>
    %cst_232 = arith.constant 0.000000e+00 : f32
    %207 = vector.broadcast %cst_232 : f32 to vector<16x192xf32>
    %208 = arith.maximumf %206, %207 : vector<16x192xf32>
    %c4_233 = arith.constant 4 : index
    %c0_234 = arith.constant 0 : index
    %209 = vector.load %arg50[%c4_233, %c0_234] : memref<24x192xf32, #tpu.memory_space<vmem>>, vector<16x192xf32>
    tpu.vector_store %arg50[%c4_233, %c0_234], %208 {strides = array<i32>} : memref<24x192xf32, #tpu.memory_space<vmem>>, vector<16x192xf32>,
    %c0_235 = arith.constant 0 : index
    %c0_236 = arith.constant 0 : index
    %210 = vector.load %arg48[%c0_235, %c0_236] : memref<16x128xf32, #tpu.memory_space<vmem>>, vector<16x128xf32>
    %c0_237 = arith.constant 0 : index
    %c0_238 = arith.constant 0 : index
    %c0_239 = arith.constant 0 : index
    %211 = vector.load %arg11[%c0_237, %c0_238, %c0_239] : memref<1x128x192xbf16, #tpu.memory_space<vmem>>, vector<1x128x192xbf16>
    %212 = vector.shape_cast %211 : vector<1x128x192xbf16> to vector<128x192xbf16>
    %213 = arith.truncf %210 : vector<16x128xf32> to vector<16x128xbf16>
    %cst_240 = arith.constant dense<0.000000e+00> : vector<16x192xf32>
    %214 = tpu.matmul %213, %212, %cst_240 {dimension_numbers = #tpu.dot_dimension_numbers<[1], [0], [0], [1], [0, 0, 1, 1], [], []>} : vector<16x128xbf16>, vector<128x192xbf16>, vector<16x192xf32> -> vector<16x192xf32>
    %c0_241 = arith.constant 0 : index
    %c0_242 = arith.constant 0 : index
    %215 = vector.load %arg12[%c0_241, %c0_242] : memref<1x192xf32, #tpu.memory_space<vmem>>, vector<1x192xf32>
    %216 = vector.broadcast %215 : vector<1x192xf32> to vector<16x192xf32>
    %217 = arith.addf %214, %216 : vector<16x192xf32>
    %c0_243 = arith.constant 0 : index
    %c0_244 = arith.constant 0 : index
    %218 = vector.load %arg50[%c0_243, %c0_244] : memref<24x192xf32, #tpu.memory_space<vmem>>, vector<16x192xf32>
    %c0_245 = arith.constant 0 : index
    %c0_246 = arith.constant 0 : index
    %c0_247 = arith.constant 0 : index
    %219 = vector.load %arg13[%c0_245, %c0_246, %c0_247] : memref<3x192x192xbf16, #tpu.memory_space<vmem>>, vector<1x192x192xbf16>
    %220 = vector.shape_cast %219 : vector<1x192x192xbf16> to vector<192x192xbf16>
    %221 = arith.truncf %218 : vector<16x192xf32> to vector<16x192xbf16>
    %cst_248 = arith.constant dense<0.000000e+00> : vector<16x192xf32>
    %222 = tpu.matmul %221, %220, %cst_248 {dimension_numbers = #tpu.dot_dimension_numbers<[1], [0], [0], [1], [0, 0, 1, 1], [], []>} : vector<16x192xbf16>, vector<192x192xbf16>, vector<16x192xf32> -> vector<16x192xf32>
    %c4_249 = arith.constant 4 : index
    %c0_250 = arith.constant 0 : index
    %223 = vector.load %arg50[%c4_249, %c0_250] : memref<24x192xf32, #tpu.memory_space<vmem>>, vector<16x192xf32>
    %c1_251 = arith.constant 1 : index
    %c0_252 = arith.constant 0 : index
    %c0_253 = arith.constant 0 : index
    %224 = vector.load %arg13[%c1_251, %c0_252, %c0_253] : memref<3x192x192xbf16, #tpu.memory_space<vmem>>, vector<1x192x192xbf16>
    %225 = vector.shape_cast %224 : vector<1x192x192xbf16> to vector<192x192xbf16>
    %226 = arith.truncf %223 : vector<16x192xf32> to vector<16x192xbf16>
    %cst_254 = arith.constant dense<0.000000e+00> : vector<16x192xf32>
    %227 = tpu.matmul %226, %225, %cst_254 {dimension_numbers = #tpu.dot_dimension_numbers<[1], [0], [0], [1], [0, 0, 1, 1], [], []>} : vector<16x192xbf16>, vector<192x192xbf16>, vector<16x192xf32> -> vector<16x192xf32>
    %228 = arith.addf %222, %227 : vector<16x192xf32>
    %c8_255 = arith.constant 8 : index
    %c0_256 = arith.constant 0 : index
    %229 = vector.load %arg50[%c8_255, %c0_256] : memref<24x192xf32, #tpu.memory_space<vmem>>, vector<16x192xf32>
    %c2_257 = arith.constant 2 : index
    %c0_258 = arith.constant 0 : index
    %c0_259 = arith.constant 0 : index
    %230 = vector.load %arg13[%c2_257, %c0_258, %c0_259] : memref<3x192x192xbf16, #tpu.memory_space<vmem>>, vector<1x192x192xbf16>
    %231 = vector.shape_cast %230 : vector<1x192x192xbf16> to vector<192x192xbf16>
    %232 = arith.truncf %229 : vector<16x192xf32> to vector<16x192xbf16>
    %cst_260 = arith.constant dense<0.000000e+00> : vector<16x192xf32>
    %233 = tpu.matmul %232, %231, %cst_260 {dimension_numbers = #tpu.dot_dimension_numbers<[1], [0], [0], [1], [0, 0, 1, 1], [], []>} : vector<16x192xbf16>, vector<192x192xbf16>, vector<16x192xf32> -> vector<16x192xf32>
    %234 = arith.addf %228, %233 : vector<16x192xf32>
    %c0_261 = arith.constant 0 : index
    %c0_262 = arith.constant 0 : index
    %235 = vector.load %arg14[%c0_261, %c0_262] : memref<1x192xf32, #tpu.memory_space<vmem>>, vector<1x192xf32>
    %236 = vector.broadcast %235 : vector<1x192xf32> to vector<16x192xf32>
    %237 = arith.addf %234, %236 : vector<16x192xf32>
    %238 = arith.addf %237, %217 : vector<16x192xf32>
    %cst_263 = arith.constant 0.000000e+00 : f32
    %239 = vector.broadcast %cst_263 : f32 to vector<16x192xf32>
    %240 = arith.maximumf %238, %239 : vector<16x192xf32>
    %c4_264 = arith.constant 4 : index
    %c0_265 = arith.constant 0 : index
    %241 = vector.load %arg51[%c4_264, %c0_265] : memref<24x192xf32, #tpu.memory_space<vmem>>, vector<16x192xf32>
    tpu.vector_store %arg51[%c4_264, %c0_265], %240 {strides = array<i32>} : memref<24x192xf32, #tpu.memory_space<vmem>>, vector<16x192xf32>,
    %c4_266 = arith.constant 4 : index
    %c0_267 = arith.constant 0 : index
    %242 = vector.load %arg51[%c4_266, %c0_267] : memref<24x192xf32, #tpu.memory_space<vmem>>, vector<4x192xf32>
    %c0_268 = arith.constant 0 : index
    %c0_269 = arith.constant 0 : index
    %243 = vector.load %arg52[%c0_268, %c0_269] : memref<8x192xf32, #tpu.memory_space<vmem>>, vector<4x192xf32>
    tpu.vector_store %arg52[%c0_268, %c0_269], %242 {strides = array<i32>} : memref<8x192xf32, #tpu.memory_space<vmem>>, vector<4x192xf32>,
    %c12_270 = arith.constant 12 : index
    %c0_271 = arith.constant 0 : index
    %244 = vector.load %arg51[%c12_270, %c0_271] : memref<24x192xf32, #tpu.memory_space<vmem>>, vector<4x192xf32>
    %c4_272 = arith.constant 4 : index
    %c0_273 = arith.constant 0 : index
    %245 = vector.load %arg52[%c4_272, %c0_273] : memref<8x192xf32, #tpu.memory_space<vmem>>, vector<4x192xf32>
    tpu.vector_store %arg52[%c4_272, %c0_273], %244 {strides = array<i32>} : memref<8x192xf32, #tpu.memory_space<vmem>>, vector<4x192xf32>,
    %c0_274 = arith.constant 0 : index
    %c0_275 = arith.constant 0 : index
    %246 = vector.load %arg51[%c0_274, %c0_275] : memref<24x192xf32, #tpu.memory_space<vmem>>, vector<4x192xf32>
    %c0_276 = arith.constant 0 : index
    %c0_277 = arith.constant 0 : index
    %247 = vector.load %arg53[%c0_276, %c0_277] : memref<16x192xf32, #tpu.memory_space<vmem>>, vector<4x192xf32>
    tpu.vector_store %arg53[%c0_276, %c0_277], %246 {strides = array<i32>} : memref<16x192xf32, #tpu.memory_space<vmem>>, vector<4x192xf32>,
    %c8_278 = arith.constant 8 : index
    %c0_279 = arith.constant 0 : index
    %248 = vector.load %arg51[%c8_278, %c0_279] : memref<24x192xf32, #tpu.memory_space<vmem>>, vector<4x192xf32>
    %c4_280 = arith.constant 4 : index
    %c0_281 = arith.constant 0 : index
    %249 = vector.load %arg53[%c4_280, %c0_281] : memref<16x192xf32, #tpu.memory_space<vmem>>, vector<4x192xf32>
    tpu.vector_store %arg53[%c4_280, %c0_281], %248 {strides = array<i32>} : memref<16x192xf32, #tpu.memory_space<vmem>>, vector<4x192xf32>,
    %c16_282 = arith.constant 16 : index
    %c0_283 = arith.constant 0 : index
    %250 = vector.load %arg51[%c16_282, %c0_283] : memref<24x192xf32, #tpu.memory_space<vmem>>, vector<4x192xf32>
    %c8_284 = arith.constant 8 : index
    %c0_285 = arith.constant 0 : index
    %251 = vector.load %arg53[%c8_284, %c0_285] : memref<16x192xf32, #tpu.memory_space<vmem>>, vector<4x192xf32>
    tpu.vector_store %arg53[%c8_284, %c0_285], %250 {strides = array<i32>} : memref<16x192xf32, #tpu.memory_space<vmem>>, vector<4x192xf32>,
    %c0_286 = arith.constant 0 : index
    %c0_287 = arith.constant 0 : index
    %252 = vector.load %arg53[%c0_286, %c0_287] : memref<16x192xf32, #tpu.memory_space<vmem>>, vector<8x192xf32>
    %c0_288 = arith.constant 0 : index
    %c0_289 = arith.constant 0 : index
    %c0_290 = arith.constant 0 : index
    %253 = vector.load %arg15[%c0_288, %c0_289, %c0_290] : memref<3x192x192xbf16, #tpu.memory_space<vmem>>, vector<1x192x192xbf16>
    %254 = vector.shape_cast %253 : vector<1x192x192xbf16> to vector<192x192xbf16>
    %255 = arith.truncf %252 : vector<8x192xf32> to vector<8x192xbf16>
    %cst_291 = arith.constant dense<0.000000e+00> : vector<8x192xf32>
    %256 = tpu.matmul %255, %254, %cst_291 {dimension_numbers = #tpu.dot_dimension_numbers<[1], [0], [0], [1], [0, 0, 1, 1], [], []>} : vector<8x192xbf16>, vector<192x192xbf16>, vector<8x192xf32> -> vector<8x192xf32>
    %c0_292 = arith.constant 0 : index
    %c0_293 = arith.constant 0 : index
    %257 = vector.load %arg52[%c0_292, %c0_293] : memref<8x192xf32, #tpu.memory_space<vmem>>, vector<8x192xf32>
    %c1_294 = arith.constant 1 : index
    %c0_295 = arith.constant 0 : index
    %c0_296 = arith.constant 0 : index
    %258 = vector.load %arg15[%c1_294, %c0_295, %c0_296] : memref<3x192x192xbf16, #tpu.memory_space<vmem>>, vector<1x192x192xbf16>
    %259 = vector.shape_cast %258 : vector<1x192x192xbf16> to vector<192x192xbf16>
    %260 = arith.truncf %257 : vector<8x192xf32> to vector<8x192xbf16>
    %cst_297 = arith.constant dense<0.000000e+00> : vector<8x192xf32>
    %261 = tpu.matmul %260, %259, %cst_297 {dimension_numbers = #tpu.dot_dimension_numbers<[1], [0], [0], [1], [0, 0, 1, 1], [], []>} : vector<8x192xbf16>, vector<192x192xbf16>, vector<8x192xf32> -> vector<8x192xf32>
    %262 = arith.addf %256, %261 : vector<8x192xf32>
    %c4_298 = arith.constant 4 : index
    %c0_299 = arith.constant 0 : index
    %263 = vector.load %arg53[%c4_298, %c0_299] : memref<16x192xf32, #tpu.memory_space<vmem>>, vector<8x192xf32>
    %c2_300 = arith.constant 2 : index
    %c0_301 = arith.constant 0 : index
    %c0_302 = arith.constant 0 : index
    %264 = vector.load %arg15[%c2_300, %c0_301, %c0_302] : memref<3x192x192xbf16, #tpu.memory_space<vmem>>, vector<1x192x192xbf16>
    %265 = vector.shape_cast %264 : vector<1x192x192xbf16> to vector<192x192xbf16>
    %266 = arith.truncf %263 : vector<8x192xf32> to vector<8x192xbf16>
    %cst_303 = arith.constant dense<0.000000e+00> : vector<8x192xf32>
    %267 = tpu.matmul %266, %265, %cst_303 {dimension_numbers = #tpu.dot_dimension_numbers<[1], [0], [0], [1], [0, 0, 1, 1], [], []>} : vector<8x192xbf16>, vector<192x192xbf16>, vector<8x192xf32> -> vector<8x192xf32>
    %268 = arith.addf %262, %267 : vector<8x192xf32>
    %c0_304 = arith.constant 0 : index
    %c0_305 = arith.constant 0 : index
    %269 = vector.load %arg16[%c0_304, %c0_305] : memref<1x192xf32, #tpu.memory_space<vmem>>, vector<1x192xf32>
    %270 = vector.broadcast %269 : vector<1x192xf32> to vector<8x192xf32>
    %271 = arith.addf %268, %270 : vector<8x192xf32>
    %cst_306 = arith.constant 0.000000e+00 : f32
    %272 = vector.broadcast %cst_306 : f32 to vector<8x192xf32>
    %273 = arith.maximumf %271, %272 : vector<8x192xf32>
    %c4_307 = arith.constant 4 : index
    %c0_308 = arith.constant 0 : index
    %274 = vector.load %arg54[%c4_307, %c0_308] : memref<16x192xf32, #tpu.memory_space<vmem>>, vector<8x192xf32>
    tpu.vector_store %arg54[%c4_307, %c0_308], %273 {strides = array<i32>} : memref<16x192xf32, #tpu.memory_space<vmem>>, vector<8x192xf32>,
    %c0_309 = arith.constant 0 : index
    %c0_310 = arith.constant 0 : index
    %275 = vector.load %arg52[%c0_309, %c0_310] : memref<8x192xf32, #tpu.memory_space<vmem>>, vector<8x192xf32>
    %c0_311 = arith.constant 0 : index
    %c0_312 = arith.constant 0 : index
    %c0_313 = arith.constant 0 : index
    %276 = vector.load %arg17[%c0_311, %c0_312, %c0_313] : memref<1x192x192xbf16, #tpu.memory_space<vmem>>, vector<1x192x192xbf16>
    %277 = vector.shape_cast %276 : vector<1x192x192xbf16> to vector<192x192xbf16>
    %278 = arith.truncf %275 : vector<8x192xf32> to vector<8x192xbf16>
    %cst_314 = arith.constant dense<0.000000e+00> : vector<8x192xf32>
    %279 = tpu.matmul %278, %277, %cst_314 {dimension_numbers = #tpu.dot_dimension_numbers<[1], [0], [0], [1], [0, 0, 1, 1], [], []>} : vector<8x192xbf16>, vector<192x192xbf16>, vector<8x192xf32> -> vector<8x192xf32>
    %c0_315 = arith.constant 0 : index
    %c0_316 = arith.constant 0 : index
    %280 = vector.load %arg18[%c0_315, %c0_316] : memref<1x192xf32, #tpu.memory_space<vmem>>, vector<1x192xf32>
    %281 = vector.broadcast %280 : vector<1x192xf32> to vector<8x192xf32>
    %282 = arith.addf %279, %281 : vector<8x192xf32>
    %c0_317 = arith.constant 0 : index
    %c0_318 = arith.constant 0 : index
    %283 = vector.load %arg54[%c0_317, %c0_318] : memref<16x192xf32, #tpu.memory_space<vmem>>, vector<8x192xf32>
    %c0_319 = arith.constant 0 : index
    %c0_320 = arith.constant 0 : index
    %c0_321 = arith.constant 0 : index
    %284 = vector.load %arg19[%c0_319, %c0_320, %c0_321] : memref<3x192x192xbf16, #tpu.memory_space<vmem>>, vector<1x192x192xbf16>
    %285 = vector.shape_cast %284 : vector<1x192x192xbf16> to vector<192x192xbf16>
    %286 = arith.truncf %283 : vector<8x192xf32> to vector<8x192xbf16>
    %cst_322 = arith.constant dense<0.000000e+00> : vector<8x192xf32>
    %287 = tpu.matmul %286, %285, %cst_322 {dimension_numbers = #tpu.dot_dimension_numbers<[1], [0], [0], [1], [0, 0, 1, 1], [], []>} : vector<8x192xbf16>, vector<192x192xbf16>, vector<8x192xf32> -> vector<8x192xf32>
    %c4_323 = arith.constant 4 : index
    %c0_324 = arith.constant 0 : index
    %288 = vector.load %arg54[%c4_323, %c0_324] : memref<16x192xf32, #tpu.memory_space<vmem>>, vector<8x192xf32>
    %c1_325 = arith.constant 1 : index
    %c0_326 = arith.constant 0 : index
    %c0_327 = arith.constant 0 : index
    %289 = vector.load %arg19[%c1_325, %c0_326, %c0_327] : memref<3x192x192xbf16, #tpu.memory_space<vmem>>, vector<1x192x192xbf16>
    %290 = vector.shape_cast %289 : vector<1x192x192xbf16> to vector<192x192xbf16>
    %291 = arith.truncf %288 : vector<8x192xf32> to vector<8x192xbf16>
    %cst_328 = arith.constant dense<0.000000e+00> : vector<8x192xf32>
    %292 = tpu.matmul %291, %290, %cst_328 {dimension_numbers = #tpu.dot_dimension_numbers<[1], [0], [0], [1], [0, 0, 1, 1], [], []>} : vector<8x192xbf16>, vector<192x192xbf16>, vector<8x192xf32> -> vector<8x192xf32>
    %293 = arith.addf %287, %292 : vector<8x192xf32>
    %c8_329 = arith.constant 8 : index
    %c0_330 = arith.constant 0 : index
    %294 = vector.load %arg54[%c8_329, %c0_330] : memref<16x192xf32, #tpu.memory_space<vmem>>, vector<8x192xf32>
    %c2_331 = arith.constant 2 : index
    %c0_332 = arith.constant 0 : index
    %c0_333 = arith.constant 0 : index
    %295 = vector.load %arg19[%c2_331, %c0_332, %c0_333] : memref<3x192x192xbf16, #tpu.memory_space<vmem>>, vector<1x192x192xbf16>
    %296 = vector.shape_cast %295 : vector<1x192x192xbf16> to vector<192x192xbf16>
    %297 = arith.truncf %294 : vector<8x192xf32> to vector<8x192xbf16>
    %cst_334 = arith.constant dense<0.000000e+00> : vector<8x192xf32>
    %298 = tpu.matmul %297, %296, %cst_334 {dimension_numbers = #tpu.dot_dimension_numbers<[1], [0], [0], [1], [0, 0, 1, 1], [], []>} : vector<8x192xbf16>, vector<192x192xbf16>, vector<8x192xf32> -> vector<8x192xf32>
    %299 = arith.addf %293, %298 : vector<8x192xf32>
    %c0_335 = arith.constant 0 : index
    %c0_336 = arith.constant 0 : index
    %300 = vector.load %arg20[%c0_335, %c0_336] : memref<1x192xf32, #tpu.memory_space<vmem>>, vector<1x192xf32>
    %301 = vector.broadcast %300 : vector<1x192xf32> to vector<8x192xf32>
    %302 = arith.addf %299, %301 : vector<8x192xf32>
    %303 = arith.addf %302, %282 : vector<8x192xf32>
    %cst_337 = arith.constant 0.000000e+00 : f32
    %304 = vector.broadcast %cst_337 : f32 to vector<8x192xf32>
    %305 = arith.maximumf %303, %304 : vector<8x192xf32>
    %c0_338 = arith.constant 0 : index
    %c0_339 = arith.constant 0 : index
    %306 = vector.load %arg34[%c0_338, %c0_339] : memref<4x8xf32, #tpu.memory_space<vmem>>, vector<4x8xf32>
    %c0_340 = arith.constant 0 : index
    %c0_341 = arith.constant 0 : index
    %307 = vector.load %arg31[%c0_340, %c0_341] : memref<192x24xf32, #tpu.memory_space<vmem>>, vector<192x24xf32>
    %cst_342 = arith.constant dense<0.000000e+00> : vector<8x24xf32>
    %308 = tpu.matmul %305, %307, %cst_342 {dimension_numbers = #tpu.dot_dimension_numbers<[1], [0], [0], [1], [0, 0, 1, 1], [], []>} : vector<8x192xf32>, vector<192x24xf32>, vector<8x24xf32> -> vector<8x24xf32>
    %cst_343 = arith.constant dense<0.000000e+00> : vector<4x24xf32>
    %309 = tpu.matmul %306, %308, %cst_343 {dimension_numbers = #tpu.dot_dimension_numbers<[1], [0], [0], [1], [0, 0, 1, 1], [], []>} : vector<4x8xf32>, vector<8x24xf32>, vector<4x24xf32> -> vector<4x24xf32>
    %cst_344 = arith.constant 6.250000e-02 : f32
    %310 = vector.broadcast %cst_344 : f32 to vector<4x24xf32>
    %311 = arith.mulf %309, %310 : vector<4x24xf32>
    %c0_345 = arith.constant 0 : index
    %c0_346 = arith.constant 0 : index
    %312 = vector.load %arg37[%c0_345, %c0_346] : memref<24x6xf32, #tpu.memory_space<vmem>>, vector<24x6xf32>
    %cst_347 = arith.constant dense<0.000000e+00> : vector<4x6xf32>
    %313 = tpu.matmul %311, %312, %cst_347 {dimension_numbers = #tpu.dot_dimension_numbers<[1], [0], [0], [1], [0, 0, 1, 1], [], []>} : vector<4x24xf32>, vector<24x6xf32>, vector<4x6xf32> -> vector<4x6xf32>
    %cst_348 = arith.constant 0.000000e+00 : f32
    %314 = vector.broadcast %cst_348 : f32 to vector<4x6xf32>
    %315 = arith.maximumf %313, %314 : vector<4x6xf32>
    %c0_349 = arith.constant 0 : index
    %c0_350 = arith.constant 0 : index
    %316 = vector.load %arg38[%c0_349, %c0_350] : memref<6x24xf32, #tpu.memory_space<vmem>>, vector<6x24xf32>
    %cst_351 = arith.constant dense<0.000000e+00> : vector<4x24xf32>
    %317 = tpu.matmul %315, %316, %cst_351 {dimension_numbers = #tpu.dot_dimension_numbers<[1], [0], [0], [1], [0, 0, 1, 1], [], []>} : vector<4x6xf32>, vector<6x24xf32>, vector<4x24xf32> -> vector<4x24xf32>
    %cst_352 = arith.constant 0.000000e+00 : f32
    %318 = vector.broadcast %cst_352 : f32 to vector<4x24xf32>
    %319 = arith.subf %318, %317 : vector<4x24xf32>
    %320 = math.exp %319 : vector<4x24xf32>
    %cst_353 = arith.constant 1.000000e+00 : f32
    %321 = vector.broadcast %cst_353 : f32 to vector<4x24xf32>
    %322 = arith.addf %321, %320 : vector<4x24xf32>
    %cst_354 = arith.constant 1.000000e+00 : f32
    %323 = vector.broadcast %cst_354 : f32 to vector<4x24xf32>
    %324 = arith.divf %323, %322 : vector<4x24xf32>
    %c0_355 = arith.constant 0 : index
    %c0_356 = arith.constant 0 : index
    %325 = vector.load %arg33[%c0_355, %c0_356] : memref<8x4xf32, #tpu.memory_space<vmem>>, vector<8x4xf32>
    %c0_357 = arith.constant 0 : index
    %c0_358 = arith.constant 0 : index
    %326 = vector.load %arg35[%c0_357, %c0_358] : memref<4x4xf32, #tpu.memory_space<vmem>>, vector<4x4xf32>
    %cst_359 = arith.constant dense<0.000000e+00> : vector<4x24xf32>
    %327 = tpu.matmul %326, %324, %cst_359 {dimension_numbers = #tpu.dot_dimension_numbers<[1], [0], [0], [1], [0, 0, 1, 1], [], []>} : vector<4x4xf32>, vector<4x24xf32>, vector<4x24xf32> -> vector<4x24xf32>
    %c0_360 = arith.constant 0 : index
    %c0_361 = arith.constant 0 : index
    %328 = vector.load %arg32[%c0_360, %c0_361] : memref<24x192xf32, #tpu.memory_space<vmem>>, vector<24x192xf32>
    %cst_362 = arith.constant dense<0.000000e+00> : vector<4x192xf32>
    %329 = tpu.matmul %327, %328, %cst_362 {dimension_numbers = #tpu.dot_dimension_numbers<[1], [0], [0], [1], [0, 0, 1, 1], [], []>} : vector<4x24xf32>, vector<24x192xf32>, vector<4x192xf32> -> vector<4x192xf32>
    %cst_363 = arith.constant dense<0.000000e+00> : vector<8x192xf32>
    %330 = tpu.matmul %325, %329, %cst_363 {dimension_numbers = #tpu.dot_dimension_numbers<[1], [0], [0], [1], [0, 0, 1, 1], [], []>} : vector<8x4xf32>, vector<4x192xf32>, vector<8x192xf32> -> vector<8x192xf32>
    %cst_364 = arith.constant 1.000000e+00 : f32
    %331 = vector.broadcast %cst_364 : f32 to vector<8x192xf32>
    %332 = arith.addf %331, %330 : vector<8x192xf32>
    %333 = arith.mulf %305, %332 : vector<8x192xf32>
    %c4_365 = arith.constant 4 : index
    %c0_366 = arith.constant 0 : index
    %334 = vector.load %arg55[%c4_365, %c0_366] : memref<16x192xf32, #tpu.memory_space<vmem>>, vector<8x192xf32>
    tpu.vector_store %arg55[%c4_365, %c0_366], %333 {strides = array<i32>} : memref<16x192xf32, #tpu.memory_space<vmem>>, vector<8x192xf32>,
    %c0_367 = arith.constant 0 : index
    %c0_368 = arith.constant 0 : index
    %335 = vector.load %arg55[%c0_367, %c0_368] : memref<16x192xf32, #tpu.memory_space<vmem>>, vector<8x192xf32>
    %c0_369 = arith.constant 0 : index
    %c0_370 = arith.constant 0 : index
    %c0_371 = arith.constant 0 : index
    %336 = vector.load %arg21[%c0_369, %c0_370, %c0_371] : memref<3x192x192xbf16, #tpu.memory_space<vmem>>, vector<1x192x192xbf16>
    %337 = vector.shape_cast %336 : vector<1x192x192xbf16> to vector<192x192xbf16>
    %338 = arith.truncf %335 : vector<8x192xf32> to vector<8x192xbf16>
    %cst_372 = arith.constant dense<0.000000e+00> : vector<8x192xf32>
    %339 = tpu.matmul %338, %337, %cst_372 {dimension_numbers = #tpu.dot_dimension_numbers<[1], [0], [0], [1], [0, 0, 1, 1], [], []>} : vector<8x192xbf16>, vector<192x192xbf16>, vector<8x192xf32> -> vector<8x192xf32>
    %c4_373 = arith.constant 4 : index
    %c0_374 = arith.constant 0 : index
    %340 = vector.load %arg55[%c4_373, %c0_374] : memref<16x192xf32, #tpu.memory_space<vmem>>, vector<8x192xf32>
    %c1_375 = arith.constant 1 : index
    %c0_376 = arith.constant 0 : index
    %c0_377 = arith.constant 0 : index
    %341 = vector.load %arg21[%c1_375, %c0_376, %c0_377] : memref<3x192x192xbf16, #tpu.memory_space<vmem>>, vector<1x192x192xbf16>
    %342 = vector.shape_cast %341 : vector<1x192x192xbf16> to vector<192x192xbf16>
    %343 = arith.truncf %340 : vector<8x192xf32> to vector<8x192xbf16>
    %cst_378 = arith.constant dense<0.000000e+00> : vector<8x192xf32>
    %344 = tpu.matmul %343, %342, %cst_378 {dimension_numbers = #tpu.dot_dimension_numbers<[1], [0], [0], [1], [0, 0, 1, 1], [], []>} : vector<8x192xbf16>, vector<192x192xbf16>, vector<8x192xf32> -> vector<8x192xf32>
    %345 = arith.addf %339, %344 : vector<8x192xf32>
    %c8_379 = arith.constant 8 : index
    %c0_380 = arith.constant 0 : index
    %346 = vector.load %arg55[%c8_379, %c0_380] : memref<16x192xf32, #tpu.memory_space<vmem>>, vector<8x192xf32>
    %c2_381 = arith.constant 2 : index
    %c0_382 = arith.constant 0 : index
    %c0_383 = arith.constant 0 : index
    %347 = vector.load %arg21[%c2_381, %c0_382, %c0_383] : memref<3x192x192xbf16, #tpu.memory_space<vmem>>, vector<1x192x192xbf16>
    %348 = vector.shape_cast %347 : vector<1x192x192xbf16> to vector<192x192xbf16>
    %349 = arith.truncf %346 : vector<8x192xf32> to vector<8x192xbf16>
    %cst_384 = arith.constant dense<0.000000e+00> : vector<8x192xf32>
    %350 = tpu.matmul %349, %348, %cst_384 {dimension_numbers = #tpu.dot_dimension_numbers<[1], [0], [0], [1], [0, 0, 1, 1], [], []>} : vector<8x192xbf16>, vector<192x192xbf16>, vector<8x192xf32> -> vector<8x192xf32>
    %351 = arith.addf %345, %350 : vector<8x192xf32>
    %c0_385 = arith.constant 0 : index
    %c0_386 = arith.constant 0 : index
    %352 = vector.load %arg22[%c0_385, %c0_386] : memref<1x192xf32, #tpu.memory_space<vmem>>, vector<1x192xf32>
    %353 = vector.broadcast %352 : vector<1x192xf32> to vector<8x192xf32>
    %354 = arith.addf %351, %353 : vector<8x192xf32>
    %cst_387 = arith.constant 0.000000e+00 : f32
    %355 = vector.broadcast %cst_387 : f32 to vector<8x192xf32>
    %356 = arith.maximumf %354, %355 : vector<8x192xf32>
    %c4_388 = arith.constant 4 : index
    %c0_389 = arith.constant 0 : index
    %357 = vector.load %arg56[%c4_388, %c0_389] : memref<16x192xf32, #tpu.memory_space<vmem>>, vector<8x192xf32>
    tpu.vector_store %arg56[%c4_388, %c0_389], %356 {strides = array<i32>} : memref<16x192xf32, #tpu.memory_space<vmem>>, vector<8x192xf32>,
    %c0_390 = arith.constant 0 : index
    %c0_391 = arith.constant 0 : index
    %358 = vector.load %arg56[%c0_390, %c0_391] : memref<16x192xf32, #tpu.memory_space<vmem>>, vector<8x192xf32>
    %c0_392 = arith.constant 0 : index
    %c0_393 = arith.constant 0 : index
    %c0_394 = arith.constant 0 : index
    %359 = vector.load %arg23[%c0_392, %c0_393, %c0_394] : memref<3x192x192xbf16, #tpu.memory_space<vmem>>, vector<1x192x192xbf16>
    %360 = vector.shape_cast %359 : vector<1x192x192xbf16> to vector<192x192xbf16>
    %361 = arith.truncf %358 : vector<8x192xf32> to vector<8x192xbf16>
    %cst_395 = arith.constant dense<0.000000e+00> : vector<8x192xf32>
    %362 = tpu.matmul %361, %360, %cst_395 {dimension_numbers = #tpu.dot_dimension_numbers<[1], [0], [0], [1], [0, 0, 1, 1], [], []>} : vector<8x192xbf16>, vector<192x192xbf16>, vector<8x192xf32> -> vector<8x192xf32>
    %c4_396 = arith.constant 4 : index
    %c0_397 = arith.constant 0 : index
    %363 = vector.load %arg56[%c4_396, %c0_397] : memref<16x192xf32, #tpu.memory_space<vmem>>, vector<8x192xf32>
    %c1_398 = arith.constant 1 : index
    %c0_399 = arith.constant 0 : index
    %c0_400 = arith.constant 0 : index
    %364 = vector.load %arg23[%c1_398, %c0_399, %c0_400] : memref<3x192x192xbf16, #tpu.memory_space<vmem>>, vector<1x192x192xbf16>
    %365 = vector.shape_cast %364 : vector<1x192x192xbf16> to vector<192x192xbf16>
    %366 = arith.truncf %363 : vector<8x192xf32> to vector<8x192xbf16>
    %cst_401 = arith.constant dense<0.000000e+00> : vector<8x192xf32>
    %367 = tpu.matmul %366, %365, %cst_401 {dimension_numbers = #tpu.dot_dimension_numbers<[1], [0], [0], [1], [0, 0, 1, 1], [], []>} : vector<8x192xbf16>, vector<192x192xbf16>, vector<8x192xf32> -> vector<8x192xf32>
    %368 = arith.addf %362, %367 : vector<8x192xf32>
    %c8_402 = arith.constant 8 : index
    %c0_403 = arith.constant 0 : index
    %369 = vector.load %arg56[%c8_402, %c0_403] : memref<16x192xf32, #tpu.memory_space<vmem>>, vector<8x192xf32>
    %c2_404 = arith.constant 2 : index
    %c0_405 = arith.constant 0 : index
    %c0_406 = arith.constant 0 : index
    %370 = vector.load %arg23[%c2_404, %c0_405, %c0_406] : memref<3x192x192xbf16, #tpu.memory_space<vmem>>, vector<1x192x192xbf16>
    %371 = vector.shape_cast %370 : vector<1x192x192xbf16> to vector<192x192xbf16>
    %372 = arith.truncf %369 : vector<8x192xf32> to vector<8x192xbf16>
    %cst_407 = arith.constant dense<0.000000e+00> : vector<8x192xf32>
    %373 = tpu.matmul %372, %371, %cst_407 {dimension_numbers = #tpu.dot_dimension_numbers<[1], [0], [0], [1], [0, 0, 1, 1], [], []>} : vector<8x192xbf16>, vector<192x192xbf16>, vector<8x192xf32> -> vector<8x192xf32>
    %374 = arith.addf %368, %373 : vector<8x192xf32>
    %c0_408 = arith.constant 0 : index
    %c0_409 = arith.constant 0 : index
    %375 = vector.load %arg24[%c0_408, %c0_409] : memref<1x192xf32, #tpu.memory_space<vmem>>, vector<1x192xf32>
    %376 = vector.broadcast %375 : vector<1x192xf32> to vector<8x192xf32>
    %377 = arith.addf %374, %376 : vector<8x192xf32>
    %c4_410 = arith.constant 4 : index
    %c0_411 = arith.constant 0 : index
    %378 = vector.load %arg55[%c4_410, %c0_411] : memref<16x192xf32, #tpu.memory_space<vmem>>, vector<8x192xf32>
    %379 = arith.addf %377, %378 : vector<8x192xf32>
    %cst_412 = arith.constant 0.000000e+00 : f32
    %380 = vector.broadcast %cst_412 : f32 to vector<8x192xf32>
    %381 = arith.maximumf %379, %380 : vector<8x192xf32>
    %c4_413 = arith.constant 4 : index
    %c0_414 = arith.constant 0 : index
    %382 = vector.load %arg57[%c4_413, %c0_414] : memref<16x192xf32, #tpu.memory_space<vmem>>, vector<8x192xf32>
    tpu.vector_store %arg57[%c4_413, %c0_414], %381 {strides = array<i32>} : memref<16x192xf32, #tpu.memory_space<vmem>>, vector<8x192xf32>,
    %c0_415 = arith.constant 0 : index
    %c0_416 = arith.constant 0 : index
    %383 = vector.load %arg57[%c0_415, %c0_416] : memref<16x192xf32, #tpu.memory_space<vmem>>, vector<8x192xf32>
    %c0_417 = arith.constant 0 : index
    %c0_418 = arith.constant 0 : index
    %c0_419 = arith.constant 0 : index
    %384 = vector.load %arg25[%c0_417, %c0_418, %c0_419] : memref<3x192x192xbf16, #tpu.memory_space<vmem>>, vector<1x192x192xbf16>
    %385 = vector.shape_cast %384 : vector<1x192x192xbf16> to vector<192x192xbf16>
    %386 = arith.truncf %383 : vector<8x192xf32> to vector<8x192xbf16>
    %cst_420 = arith.constant dense<0.000000e+00> : vector<8x192xf32>
    %387 = tpu.matmul %386, %385, %cst_420 {dimension_numbers = #tpu.dot_dimension_numbers<[1], [0], [0], [1], [0, 0, 1, 1], [], []>} : vector<8x192xbf16>, vector<192x192xbf16>, vector<8x192xf32> -> vector<8x192xf32>
    %c4_421 = arith.constant 4 : index
    %c0_422 = arith.constant 0 : index
    %388 = vector.load %arg57[%c4_421, %c0_422] : memref<16x192xf32, #tpu.memory_space<vmem>>, vector<8x192xf32>
    %c1_423 = arith.constant 1 : index
    %c0_424 = arith.constant 0 : index
    %c0_425 = arith.constant 0 : index
    %389 = vector.load %arg25[%c1_423, %c0_424, %c0_425] : memref<3x192x192xbf16, #tpu.memory_space<vmem>>, vector<1x192x192xbf16>
    %390 = vector.shape_cast %389 : vector<1x192x192xbf16> to vector<192x192xbf16>
    %391 = arith.truncf %388 : vector<8x192xf32> to vector<8x192xbf16>
    %cst_426 = arith.constant dense<0.000000e+00> : vector<8x192xf32>
    %392 = tpu.matmul %391, %390, %cst_426 {dimension_numbers = #tpu.dot_dimension_numbers<[1], [0], [0], [1], [0, 0, 1, 1], [], []>} : vector<8x192xbf16>, vector<192x192xbf16>, vector<8x192xf32> -> vector<8x192xf32>
    %393 = arith.addf %387, %392 : vector<8x192xf32>
    %c8_427 = arith.constant 8 : index
    %c0_428 = arith.constant 0 : index
    %394 = vector.load %arg57[%c8_427, %c0_428] : memref<16x192xf32, #tpu.memory_space<vmem>>, vector<8x192xf32>
    %c2_429 = arith.constant 2 : index
    %c0_430 = arith.constant 0 : index
    %c0_431 = arith.constant 0 : index
    %395 = vector.load %arg25[%c2_429, %c0_430, %c0_431] : memref<3x192x192xbf16, #tpu.memory_space<vmem>>, vector<1x192x192xbf16>
    %396 = vector.shape_cast %395 : vector<1x192x192xbf16> to vector<192x192xbf16>
    %397 = arith.truncf %394 : vector<8x192xf32> to vector<8x192xbf16>
    %cst_432 = arith.constant dense<0.000000e+00> : vector<8x192xf32>
    %398 = tpu.matmul %397, %396, %cst_432 {dimension_numbers = #tpu.dot_dimension_numbers<[1], [0], [0], [1], [0, 0, 1, 1], [], []>} : vector<8x192xbf16>, vector<192x192xbf16>, vector<8x192xf32> -> vector<8x192xf32>
    %399 = arith.addf %393, %398 : vector<8x192xf32>
    %c0_433 = arith.constant 0 : index
    %c0_434 = arith.constant 0 : index
    %400 = vector.load %arg26[%c0_433, %c0_434] : memref<1x192xf32, #tpu.memory_space<vmem>>, vector<1x192xf32>
    %401 = vector.broadcast %400 : vector<1x192xf32> to vector<8x192xf32>
    %402 = arith.addf %399, %401 : vector<8x192xf32>
    %cst_435 = arith.constant 0.000000e+00 : f32
    %403 = vector.broadcast %cst_435 : f32 to vector<8x192xf32>
    %404 = arith.maximumf %402, %403 : vector<8x192xf32>
    %c4_436 = arith.constant 4 : index
    %c0_437 = arith.constant 0 : index
    %405 = vector.load %arg58[%c4_436, %c0_437] : memref<16x192xf32, #tpu.memory_space<vmem>>, vector<8x192xf32>
    tpu.vector_store %arg58[%c4_436, %c0_437], %404 {strides = array<i32>} : memref<16x192xf32, #tpu.memory_space<vmem>>, vector<8x192xf32>,
    %c0_438 = arith.constant 0 : index
    %c0_439 = arith.constant 0 : index
    %406 = vector.load %arg58[%c0_438, %c0_439] : memref<16x192xf32, #tpu.memory_space<vmem>>, vector<8x192xf32>
    %c0_440 = arith.constant 0 : index
    %c0_441 = arith.constant 0 : index
    %c0_442 = arith.constant 0 : index
    %407 = vector.load %arg27[%c0_440, %c0_441, %c0_442] : memref<3x192x192xbf16, #tpu.memory_space<vmem>>, vector<1x192x192xbf16>
    %408 = vector.shape_cast %407 : vector<1x192x192xbf16> to vector<192x192xbf16>
    %409 = arith.truncf %406 : vector<8x192xf32> to vector<8x192xbf16>
    %cst_443 = arith.constant dense<0.000000e+00> : vector<8x192xf32>
    %410 = tpu.matmul %409, %408, %cst_443 {dimension_numbers = #tpu.dot_dimension_numbers<[1], [0], [0], [1], [0, 0, 1, 1], [], []>} : vector<8x192xbf16>, vector<192x192xbf16>, vector<8x192xf32> -> vector<8x192xf32>
    %c4_444 = arith.constant 4 : index
    %c0_445 = arith.constant 0 : index
    %411 = vector.load %arg58[%c4_444, %c0_445] : memref<16x192xf32, #tpu.memory_space<vmem>>, vector<8x192xf32>
    %c1_446 = arith.constant 1 : index
    %c0_447 = arith.constant 0 : index
    %c0_448 = arith.constant 0 : index
    %412 = vector.load %arg27[%c1_446, %c0_447, %c0_448] : memref<3x192x192xbf16, #tpu.memory_space<vmem>>, vector<1x192x192xbf16>
    %413 = vector.shape_cast %412 : vector<1x192x192xbf16> to vector<192x192xbf16>
    %414 = arith.truncf %411 : vector<8x192xf32> to vector<8x192xbf16>
    %cst_449 = arith.constant dense<0.000000e+00> : vector<8x192xf32>
    %415 = tpu.matmul %414, %413, %cst_449 {dimension_numbers = #tpu.dot_dimension_numbers<[1], [0], [0], [1], [0, 0, 1, 1], [], []>} : vector<8x192xbf16>, vector<192x192xbf16>, vector<8x192xf32> -> vector<8x192xf32>
    %416 = arith.addf %410, %415 : vector<8x192xf32>
    %c8_450 = arith.constant 8 : index
    %c0_451 = arith.constant 0 : index
    %417 = vector.load %arg58[%c8_450, %c0_451] : memref<16x192xf32, #tpu.memory_space<vmem>>, vector<8x192xf32>
    %c2_452 = arith.constant 2 : index
    %c0_453 = arith.constant 0 : index
    %c0_454 = arith.constant 0 : index
    %418 = vector.load %arg27[%c2_452, %c0_453, %c0_454] : memref<3x192x192xbf16, #tpu.memory_space<vmem>>, vector<1x192x192xbf16>
    %419 = vector.shape_cast %418 : vector<1x192x192xbf16> to vector<192x192xbf16>
    %420 = arith.truncf %417 : vector<8x192xf32> to vector<8x192xbf16>
    %cst_455 = arith.constant dense<0.000000e+00> : vector<8x192xf32>
    %421 = tpu.matmul %420, %419, %cst_455 {dimension_numbers = #tpu.dot_dimension_numbers<[1], [0], [0], [1], [0, 0, 1, 1], [], []>} : vector<8x192xbf16>, vector<192x192xbf16>, vector<8x192xf32> -> vector<8x192xf32>
    %422 = arith.addf %416, %421 : vector<8x192xf32>
    %c0_456 = arith.constant 0 : index
    %c0_457 = arith.constant 0 : index
    %423 = vector.load %arg28[%c0_456, %c0_457] : memref<1x192xf32, #tpu.memory_space<vmem>>, vector<1x192xf32>
    %424 = vector.broadcast %423 : vector<1x192xf32> to vector<8x192xf32>
    %425 = arith.addf %422, %424 : vector<8x192xf32>
    %c4_458 = arith.constant 4 : index
    %c0_459 = arith.constant 0 : index
    %426 = vector.load %arg57[%c4_458, %c0_459] : memref<16x192xf32, #tpu.memory_space<vmem>>, vector<8x192xf32>
    %427 = arith.addf %425, %426 : vector<8x192xf32>
    %cst_460 = arith.constant 0.000000e+00 : f32
    %428 = vector.broadcast %cst_460 : f32 to vector<8x192xf32>
    %429 = arith.maximumf %427, %428 : vector<8x192xf32>
    %c0_461 = arith.constant 0 : index
    %c0_462 = arith.constant 0 : index
    %430 = vector.load %arg34[%c0_461, %c0_462] : memref<4x8xf32, #tpu.memory_space<vmem>>, vector<4x8xf32>
    %c0_463 = arith.constant 0 : index
    %c0_464 = arith.constant 0 : index
    %431 = vector.load %arg31[%c0_463, %c0_464] : memref<192x24xf32, #tpu.memory_space<vmem>>, vector<192x24xf32>
    %cst_465 = arith.constant dense<0.000000e+00> : vector<8x24xf32>
    %432 = tpu.matmul %429, %431, %cst_465 {dimension_numbers = #tpu.dot_dimension_numbers<[1], [0], [0], [1], [0, 0, 1, 1], [], []>} : vector<8x192xf32>, vector<192x24xf32>, vector<8x24xf32> -> vector<8x24xf32>
    %cst_466 = arith.constant dense<0.000000e+00> : vector<4x24xf32>
    %433 = tpu.matmul %430, %432, %cst_466 {dimension_numbers = #tpu.dot_dimension_numbers<[1], [0], [0], [1], [0, 0, 1, 1], [], []>} : vector<4x8xf32>, vector<8x24xf32>, vector<4x24xf32> -> vector<4x24xf32>
    %cst_467 = arith.constant 6.250000e-02 : f32
    %434 = vector.broadcast %cst_467 : f32 to vector<4x24xf32>
    %435 = arith.mulf %433, %434 : vector<4x24xf32>
    %c0_468 = arith.constant 0 : index
    %c0_469 = arith.constant 0 : index
    %436 = vector.load %arg35[%c0_468, %c0_469] : memref<4x4xf32, #tpu.memory_space<vmem>>, vector<4x4xf32>
    %cst_470 = arith.constant dense<0.000000e+00> : vector<4x24xf32>
    %437 = tpu.matmul %436, %435, %cst_470 {dimension_numbers = #tpu.dot_dimension_numbers<[1], [0], [0], [1], [0, 0, 1, 1], [], []>} : vector<4x4xf32>, vector<4x24xf32>, vector<4x24xf32> -> vector<4x24xf32>
    %438 = arith.addf %435, %437 : vector<4x24xf32>
    %c0_471 = arith.constant 0 : index
    %c0_472 = arith.constant 0 : index
    %439 = vector.load %arg39[%c0_471, %c0_472] : memref<24x6xf32, #tpu.memory_space<vmem>>, vector<24x6xf32>
    %cst_473 = arith.constant dense<0.000000e+00> : vector<4x6xf32>
    %440 = tpu.matmul %438, %439, %cst_473 {dimension_numbers = #tpu.dot_dimension_numbers<[1], [0], [0], [1], [0, 0, 1, 1], [], []>} : vector<4x24xf32>, vector<24x6xf32>, vector<4x6xf32> -> vector<4x6xf32>
    %cst_474 = arith.constant 0.000000e+00 : f32
    %441 = vector.broadcast %cst_474 : f32 to vector<4x6xf32>
    %442 = arith.maximumf %440, %441 : vector<4x6xf32>
    %c0_475 = arith.constant 0 : index
    %c0_476 = arith.constant 0 : index
    %443 = vector.load %arg40[%c0_475, %c0_476] : memref<6x24xf32, #tpu.memory_space<vmem>>, vector<6x24xf32>
    %cst_477 = arith.constant dense<0.000000e+00> : vector<4x24xf32>
    %444 = tpu.matmul %442, %443, %cst_477 {dimension_numbers = #tpu.dot_dimension_numbers<[1], [0], [0], [1], [0, 0, 1, 1], [], []>} : vector<4x6xf32>, vector<6x24xf32>, vector<4x24xf32> -> vector<4x24xf32>
    %cst_478 = arith.constant 0.000000e+00 : f32
    %445 = vector.broadcast %cst_478 : f32 to vector<4x24xf32>
    %446 = arith.subf %445, %444 : vector<4x24xf32>
    %447 = math.exp %446 : vector<4x24xf32>
    %cst_479 = arith.constant 1.000000e+00 : f32
    %448 = vector.broadcast %cst_479 : f32 to vector<4x24xf32>
    %449 = arith.addf %448, %447 : vector<4x24xf32>
    %cst_480 = arith.constant 1.000000e+00 : f32
    %450 = vector.broadcast %cst_480 : f32 to vector<4x24xf32>
    %451 = arith.divf %450, %449 : vector<4x24xf32>
    %c0_481 = arith.constant 0 : index
    %c0_482 = arith.constant 0 : index
    %452 = vector.load %arg33[%c0_481, %c0_482] : memref<8x4xf32, #tpu.memory_space<vmem>>, vector<8x4xf32>
    %c0_483 = arith.constant 0 : index
    %c0_484 = arith.constant 0 : index
    %453 = vector.load %arg32[%c0_483, %c0_484] : memref<24x192xf32, #tpu.memory_space<vmem>>, vector<24x192xf32>
    %cst_485 = arith.constant dense<0.000000e+00> : vector<4x192xf32>
    %454 = tpu.matmul %451, %453, %cst_485 {dimension_numbers = #tpu.dot_dimension_numbers<[1], [0], [0], [1], [0, 0, 1, 1], [], []>} : vector<4x24xf32>, vector<24x192xf32>, vector<4x192xf32> -> vector<4x192xf32>
    %cst_486 = arith.constant dense<0.000000e+00> : vector<8x192xf32>
    %455 = tpu.matmul %452, %454, %cst_486 {dimension_numbers = #tpu.dot_dimension_numbers<[1], [0], [0], [1], [0, 0, 1, 1], [], []>} : vector<8x4xf32>, vector<4x192xf32>, vector<8x192xf32> -> vector<8x192xf32>
    %c0_487 = arith.constant 0 : index
    %c0_488 = arith.constant 0 : index
    %456 = vector.load %arg36[%c0_487, %c0_488] : memref<8x8xf32, #tpu.memory_space<vmem>>, vector<8x8xf32>
    %cst_489 = arith.constant dense<0.000000e+00> : vector<8x192xf32>
    %457 = tpu.matmul %456, %429, %cst_489 {dimension_numbers = #tpu.dot_dimension_numbers<[1], [0], [0], [1], [0, 0, 1, 1], [], []>} : vector<8x8xf32>, vector<8x192xf32>, vector<8x192xf32> -> vector<8x192xf32>
    %458 = arith.mulf %455, %429 : vector<8x192xf32>
    %cst_490 = arith.constant 1.000000e+00 : f32
    %459 = vector.broadcast %cst_490 : f32 to vector<8x192xf32>
    %460 = arith.subf %459, %455 : vector<8x192xf32>
    %461 = arith.mulf %460, %457 : vector<8x192xf32>
    %462 = arith.addf %458, %461 : vector<8x192xf32>
    %c0_491 = arith.constant 0 : index
    %c0_492 = arith.constant 0 : index
    %463 = vector.load %arg41[%c0_491, %c0_492] : memref<8x192xf32, #tpu.memory_space<vmem>>, vector<8x192xf32>
    tpu.vector_store %arg41[%c0_491, %c0_492], %462 {strides = array<i32>} : memref<8x192xf32, #tpu.memory_space<vmem>>, vector<8x192xf32>,
    return
  }
}

</mosaic_0001>

<bundles_post_ra>
// kernel: mmwavoice_forward.1
= control target key start
LH: loop header
LB: loop body
LE: loop exit
PB: predicated region body
PF: predicated region fallthrough
CT: control target
= control target key end

     0   :  { %s12261_s6 = smov 1   ;;  %s12262_s10 = smov 2   ;;  %s13859_s0 = inlined_call_operand.smem [shape: u32[42], index: -1, kind: input, shape index: {}] }
   0x1   :  { %s12341_s5 = sld [smem:[%s13859_s0]]   ;;  %s12263_s14 = smov 3  }
   0x2   :  { %s12346_s9 = sld [smem:[%s13859_s0 + %s12261_s6]]   ;;  %s12264_s18 = smov 4  }
   0x3   :  { %s12351_s13 = sld [smem:[%s13859_s0 + %s12262_s10]]   ;;  %s12265_s22 = smov 5  }
   0x4   :  { %s12356_s17 = sld [smem:[%s13859_s0 + %s12263_s14]]   ;;  %s12266_s26 = smov 6  }
   0x5   :  { %s12361_s21 = sld [smem:[%s13859_s0 + %s12264_s18]]   ;;  %s12267_s30 = smov 7  }
   0x6   :  { %s12366_s25 = sld [smem:[%s13859_s0 + %s12265_s22]]   ;;  %s12268_s4 = smov 8  }
   0x7   :  { %13881 = sst [smem:[#allocation69_spill]] %s12341_s5  ;;  %s12269_s10 = smov 9  }
   0x8   :  { %s12371_s29 = sld [smem:[%s13859_s0 + %s12266_s26]]   ;;  %s12270_s15 = smov 10  }
   0x9   :  { %13882 = sst [smem:[#allocation70_spill]] %s12351_s13  ;;  %s12271_s20 = smov 11  }
   0xa   :  { %13883 = sst [smem:[#allocation71_spill]] %s12356_s17  ;;  %s12272_s26 = smov 12  }
   0xb   :  { %s12376_s3 = sld [smem:[%s13859_s0 + %s12267_s30]]   ;;  %s12273_s1 = smov 13  }
   0xc   :  { %13884 = sst [smem:[#allocation72_spill]] %s12366_s25  ;;  %s12274_s7 = smov 14  }
   0xd   :  { %s12381_s8 = sld [smem:[%s13859_s0 + %s12268_s4]]   ;;  %s12276_s22 = smov 16  }
   0xe   :  { %s12386_s14 = sld [smem:[%s13859_s0 + %s12269_s10]]   ;;  %s12277_s28 = smov 17  }
   0xf   :  { %s12391_s19 = sld [smem:[%s13859_s0 + %s12270_s15]]   ;;  %s12275_s15 = smov 15  }
  0x10   :  { %s12396_s24 = sld [smem:[%s13859_s0 + %s12271_s20]]  }
  0x11   :  { %s12401_s30 = sld [smem:[%s13859_s0 + %s12272_s26]]  }
  0x12   :  { %s12406_s6 = sld [smem:[%s13859_s0 + %s12273_s1]]  }
  0x13   :  { %s12411_s12 = sld [smem:[%s13859_s0 + %s12274_s7]]   ;;  %s12278_s7 = smov 18  }
  0x14   :  { %13885 = sst [smem:[#allocation73_spill]] %s12386_s14 }
  0x15   :  { %13886 = sst [smem:[#allocation74_spill]] %s12391_s19 }
  0x16   :  { %13887 = sst [smem:[#allocation75_spill]] %s12396_s24 }
  0x17   :  { %s12416_s20 = sld [smem:[%s13859_s0 + %s12275_s15]]   ;;  %s12279_s15 = smov 19  }
  0x18   :  { %13888 = sst [smem:[#allocation76_spill]] %s12406_s6 }
  0x19   :  { %13889 = sst [smem:[#allocation77_spill]] %s12411_s12 }
  0x1a   :  { %s12421_s27 = sld [smem:[%s13859_s0 + %s12276_s22]]   ;;  %s12280_s22 = smov 20  }
  0x1b   :  { %s12426_s4 = sld [smem:[%s13859_s0 + %s12277_s28]]   ;;  %s12281_s28 = smov 21  }
  0x1c   :  { %s12431_s19 = sld [smem:[%s13859_s0 + %s12278_s7]]   ;;  %s12282_s7 = smov 22  }
  0x1d   :  { %13890 = sst [smem:[#allocation78_spill]] %s12416_s20 }
  0x1e   :  { %s12436_s20 = sld [smem:[%s13859_s0 + %s12279_s15]]   ;;  %s12283_s15 = smov 23  }
  0x1f   :  { %s12441_s6 = sld [smem:[%s13859_s0 + %s12280_s22]]   ;;  %s12284_s22 = smov 24  }
  0x20   :  { %s12446_s24 = sld [smem:[%s13859_s0 + %s12281_s28]]   ;;  %s12285_s28 = smov 25  }
  0x21   :  { %13891 = sst [smem:[#allocation79_spill]] %s12426_s4 }
  0x22   :  { %s12451_s14 = sld [smem:[%s13859_s0 + %s12282_s7]]   ;;  %s12286_s7 = smov 26  }
  0x23   :  { %s12456_s25 = sld [smem:[%s13859_s0 + %s12283_s15]]   ;;  %s12287_s15 = smov 27  }
  0x24   :  { %13892 = sst [smem:[#allocation80_spill]] %s12436_s20 }
  0x25   :  { %s12461_s17 = sld [smem:[%s13859_s0 + %s12284_s22]]   ;;  %s12288_s22 = smov 28  }
  0x26   :  { %13893 = sst [smem:[#allocation81_spill]] %s12446_s24 }
  0x27   :  { %s12466_s13 = sld [smem:[%s13859_s0 + %s12285_s28]]   ;;  %s12289_s28 = smov 29  }
  0x28   :  { %s12471_s5 = sld [smem:[%s13859_s0 + %s12286_s7]]   ;;  %s12290_s7 = smov 30  }
  0x29   :  { %13894 = sst [smem:[#allocation82_spill]] %s12456_s25 }
  0x2a   :  { %s12476_s25 = sld [smem:[%s13859_s0 + %s12287_s15]]   ;;  %s12291_s15 = smov 31  }
  0x2b   :  { %s12481_s24 = sld [smem:[%s13859_s0 + %s12288_s22]]   ;;  %s12292_s22 = smov 32  }
  0x2c   :  { %s12491_s20 = sld [smem:[%s13859_s0 + %s12290_s7]]   ;;  %s12294_s7 = smov 34  }
  0x2d   :  { %13895 = sst [smem:[#allocation83_spill]] %s12466_s13 }
  0x2e   :  { %s12486_s13 = sld [smem:[%s13859_s0 + %s12289_s28]]   ;;  %s12293_s28 = smov 33  }
  0x2f   :  { %s12501_s4 = sld [smem:[%s13859_s0 + %s12292_s22]]   ;;  %s12296_s22 = smov 36  }
  0x30   :  { %13896 = sst [smem:[#allocation84_spill]] %s12476_s25 }
  0x31   :  { %s12496_s25 = sld [smem:[%s13859_s0 + %s12291_s15]]   ;;  %s12295_s15 = smov 35  }
  0x32   :  { %13898 = sst [smem:[#allocation86_spill]] %s12491_s20 }
  0x33   :  { %s12511_s20 = sld [smem:[%s13859_s0 + %s12294_s7]]   ;;  %s12298_s7 = smov 38  }
  0x34   :  { %13897 = sst [smem:[#allocation85_spill]] %s12486_s13 }
  0x35   :  { %s12506_s13 = sld [smem:[%s13859_s0 + %s12293_s28]]   ;;  %s12297_s28 = smov 37  }
  0x36   :  { %s12521_s12 = sld [smem:[%s13859_s0 + %s12296_s22]]   ;;  %s12300_s22 = smov 40  }
  0x37   :  { %13899 = sst [smem:[#allocation87_spill]] %s12496_s25 }
  0x38   :  { %s12516_s25 = sld [smem:[%s13859_s0 + %s12295_s15]]   ;;  %s12299_s15 = smov 39  }
  0x39   :  { %13901 = sst [smem:[#allocation89_spill]] %s12511_s20 }
  0x3a   :  { %s12531_s20 = sld [smem:[%s13859_s0 + %s12298_s7]]  }
  0x3b   :  { %13900 = sst [smem:[#allocation88_spill]] %s12506_s13 }
  0x3c   :  { %13903 = sst [smem:[#allocation91_spill]] %s12521_s12 }
  0x3d   :  { %s12526_s13 = sld [smem:[%s13859_s0 + %s12297_s28]]   ;;  %s12301_s28 = smov 41  }
  0x3e   :  { %13902 = sst [smem:[#allocation90_spill]] %s12516_s25 }
  0x3f   :  { %s12536_s25 = sld [smem:[%s13859_s0 + %s12299_s15]]  }
  0x40   :  { %s12541_s12 = sld [smem:[%s13859_s0 + %s12300_s22]]  }
  0x43   :  { %13904 = sst [smem:[#allocation92_spill]] %s12526_s13 }
  0x44   :  { %s12546_s13 = sld [smem:[%s13859_s0 + %s12301_s28]]  }
  0x45   :  { %88 = vsyncpa [#allocation20], 0 }
  0x46   :  { %89 = vsyncpa [#allocation22], 0 }
  0x47   :  { %90 = vsyncpa [#allocation25], 0 }
  0x48   :  { %91 = vsyncpa [#allocation28], 0 }
  0x49   :  { %92 = vsyncpa [#allocation31], 0 }
  0x4a   :  { %93 = vsyncpa [#allocation34], 0 }
  0x4b   :  { %94 = vsyncpa [#allocation37], 0 }
  0x4c   :  { %95 = vsyncpa [#allocation40], 0 }
  0x4d   :  { %96 = vsyncpa [#allocation43], 0 }
  0x4e   :  { %97 = vsyncpa [#allocation46], 0 }
  0x4f   :  { %98 = vsyncpa [#allocation49], 0 }
  0x50   :  { %99 = vsyncpa [#allocation52], 0  ;;  %s125_s7 = sshll.u32 %s12361_s21, 4  ;;  %s126_s7 = int_to_ptr.hbm [resolvable:$true] %s125_s7 }
  0x51   :  { %100 = vsyncpa [#allocation55], 0  ;;  %s12302_s0 = smov [#allocation21]   ;;  %s11659_s11 = sshra.s32 %s126_s7, 4  ;;  %s11660_s11 = int_to_ptr.hbm [resolvable:$true] %s11659_s11 }
  0x52   :  { %s127_s10 = sshll.u32 %s12302_s0, 4  ;;  %s11661_s15 = scalar_lea.hbm %s11660_s11, 1  ;;  %s128_s10 = int_to_ptr.vmem [resolvable:$true] %s127_s10 }
  0x53   :  { %p11662_p0 = scmp.ne.s32.totalorder %s11660_s11, %s11661_s15  ;;  %s11663_s16 = scalar_lea.hbm %s12361_s21, 1 }
  0x54   :  { %p11664_p1 = scmp.lt.s32.totalorder %s11660_s11, %s12361_s21  ;;  %p11665_p2 = scmp.lt.s32.totalorder %s11663_s16, %s11661_s15 }
  0x56   :  { %p11666_p3 = por %p11665_p2, %p11664_p1 }
  0x58   :  { %p11667_p4 = pnand %p11666_p3, %p11662_p0 }
  0x5a   :  { %11670 = shalt.err (!%p11667_p4)
}
  0x5b   :  { %130 = dma.hbm_to_vmem [thread:$0]  %s126_s7, 16, %s128_s10, [#allocation22]  }
  0x5c   :  { %s148_s18 = sshll.u32 %s12376_s3, 4  ;;  %s12303_s22 = smov [#allocation24]   ;;  %s149_s18 = int_to_ptr.hbm [resolvable:$true] %s148_s18 }
  0x5d   :  { %s150_s23 = sshll.u32 %s12303_s22, 4  ;;  %s179_s26 = sshll.u32 %s12401_s30, 4  ;;  %s151_s23 = int_to_ptr.vmem [resolvable:$true] %s150_s23  ;;  %s12553_s26 = int_to_ptr.hbm [resolvable:$true] %s179_s26 }
  0x5e   :  { %s11683_s28 = sshra.s32 %s149_s18, 4  ;;  %s11687_s1 = scalar_lea.hbm %s12376_s3, 192  ;;  %s11684_s28 = int_to_ptr.hbm [resolvable:$true] %s11683_s28 }
  0x5f   :  { %s11685_s21 = scalar_lea.hbm %s11684_s28, 192  ;;  %p11688_p6 = scmp.lt.s32.totalorder %s11684_s28, %s12376_s3 }
  0x60   :  { %p11686_p5 = scmp.ne.s32.totalorder %s11684_s28, %s11685_s21  ;;  %p11689_p7 = scmp.lt.s32.totalorder %s11687_s1, %s11685_s21 }
  0x62   :  { %p11690_p8 = por %p11689_p7, %p11688_p6 }
  0x64   :  { %p11691_p9 = pnand %p11690_p8, %p11686_p5 }
  0x66   :  { %11694 = shalt.err (!%p11691_p9)
}
  0x67   :  { %s12304_s2 = smov 64   ;;  %s12305_s7 = smov 4  }
  0x68   :  { %156 = dma.hbm_to_vmem [thread:$0]  %s149_s18, 3072, %s151_s23, [#allocation25], %s12304_s2, %s12304_s2, %s12305_s7  }
  0x69   :  { %s205_s0 = sshll.u32 %s12421_s27, 4  ;;  %s12306_s10 = smov [#allocation27]   ;;  %s206_s0 = int_to_ptr.hbm [resolvable:$true] %s205_s0 }
  0x6a   :  { %s181_s11 = sshll.u32 %s12306_s10, 4  ;;  %s11707_s3 = sshra.s32 %s12553_s26, 4  ;;  %s182_s11 = int_to_ptr.vmem [resolvable:$true] %s181_s11  ;;  %s11708_s3 = int_to_ptr.hbm [resolvable:$true] %s11707_s3 }
  0x6b   :  { %s11709_s15 = scalar_lea.hbm %s11708_s3, 2  ;;  %s11711_s16 = scalar_lea.hbm %s12401_s30, 2 }
  0x6c   :  { %p11710_p10 = scmp.ne.s32.totalorder %s11708_s3, %s11709_s15  ;;  %p11712_p11 = scmp.lt.s32.totalorder %s11708_s3, %s12401_s30 }
  0x6d   :  { %p11713_p12 = scmp.lt.s32.totalorder %s11711_s16, %s11709_s15 }
  0x6f   :  { %p11714_p13 = por %p11713_p12, %p11712_p11 }
  0x71   :  { %p11715_p0 = pnand %p11714_p13, %p11710_p10 }
  0x73   :  { %11718 = shalt.err (!%p11715_p0)
}
  0x74   :  { %184 = dma.hbm_to_vmem [thread:$0]  %s12553_s26, 32, %s182_s11, [#allocation28]  }
  0x75   :  { %s12307_s18 = smov [#allocation30]   ;;  %s229_s23 = sshll.u32 %s12431_s19, 4  ;;  %s230_s23 = int_to_ptr.hbm [resolvable:$true] %s229_s23 }
  0x76   :  { %s207_s22 = sshll.u32 %s12307_s18, 4  ;;  %s11731_s28 = sshra.s32 %s206_s0, 4  ;;  %s208_s22 = int_to_ptr.vmem [resolvable:$true] %s207_s22  ;;  %s11732_s28 = int_to_ptr.hbm [resolvable:$true] %s11731_s28 }
  0x77   :  { %s11733_s21 = scalar_lea.hbm %s11732_s28, 2  ;;  %s11735_s1 = scalar_lea.hbm %s12421_s27, 2 }
  0x78   :  { %p11734_p1 = scmp.ne.s32.totalorder %s11732_s28, %s11733_s21  ;;  %p11736_p2 = scmp.lt.s32.totalorder %s11732_s28, %s12421_s27 }
  0x79   :  { %p11737_p3 = scmp.lt.s32.totalorder %s11735_s1, %s11733_s21 }
  0x7b   :  { %p11738_p4 = por %p11737_p3, %p11736_p2 }
  0x7d   :  { %p11739_p5 = pnand %p11738_p4, %p11734_p1 }
  0x7f   :  { %11742 = shalt.err (!%p11739_p5)
}
  0x80   :  { %210 = dma.hbm_to_vmem [thread:$0]  %s206_s0, 32, %s208_s22, [#allocation31]  }
  0x81   :  { %s253_s30 = sshll.u32 %s12441_s6, 4  ;;  %s12308_s26 = smov [#allocation33]   ;;  %s254_s30 = int_to_ptr.hbm [resolvable:$true] %s253_s30 }
  0x82   :  { %s231_s10 = sshll.u32 %s12308_s26, 4  ;;  %s11755_s11 = sshra.s32 %s230_s23, 4  ;;  %s232_s10 = int_to_ptr.vmem [resolvable:$true] %s231_s10  ;;  %s11756_s11 = int_to_ptr.hbm [resolvable:$true] %s11755_s11 }
  0x83   :  { %s11757_s3 = scalar_lea.hbm %s11756_s11, 2  ;;  %s11759_s15 = scalar_lea.hbm %s12431_s19, 2 }
  0x84   :  { %p11758_p6 = scmp.ne.s32.totalorder %s11756_s11, %s11757_s3  ;;  %p11760_p7 = scmp.lt.s32.totalorder %s11756_s11, %s12431_s19 }
  0x85   :  { %p11761_p8 = scmp.lt.s32.totalorder %s11759_s15, %s11757_s3 }
  0x87   :  { %p11762_p9 = por %p11761_p8, %p11760_p7 }
  0x89   :  { %p11763_p10 = pnand %p11762_p9, %p11758_p6 }
  0x8b   :  { %11766 = shalt.err (!%p11763_p10)
}
  0x8c   :  { %234 = dma.hbm_to_vmem [thread:$0]  %s230_s23, 32, %s232_s10, [#allocation34]  }
  0x8d   :  { %s12309_s27 = smov [#allocation36]   ;;  %s277_s16 = sshll.u32 %s12451_s14, 4  ;;  %s278_s16 = int_to_ptr.hbm [resolvable:$true] %s277_s16 }
  0x8e   :  { %s255_s0 = sshll.u32 %s12309_s27, 4  ;;  %s11779_s18 = sshra.s32 %s254_s30, 4  ;;  %s256_s0 = int_to_ptr.vmem [resolvable:$true] %s255_s0  ;;  %s11780_s18 = int_to_ptr.hbm [resolvable:$true] %s11779_s18 }
  0x8f   :  { %s11781_s22 = scalar_lea.hbm %s11780_s18, 2  ;;  %s11783_s28 = scalar_lea.hbm %s12441_s6, 2 }
  0x90   :  { %p11782_p11 = scmp.ne.s32.totalorder %s11780_s18, %s11781_s22  ;;  %p11784_p12 = scmp.lt.s32.totalorder %s11780_s18, %s12441_s6 }
  0x91   :  { %p11785_p13 = scmp.lt.s32.totalorder %s11783_s28, %s11781_s22 }
  0x93   :  { %p11786_p0 = por %p11785_p13, %p11784_p12 }
  0x95   :  { %p11787_p1 = pnand %p11786_p0, %p11782_p11 }
  0x97   :  { %11790 = shalt.err (!%p11787_p1)
}
  0x98   :  { %258 = dma.hbm_to_vmem [thread:$0]  %s254_s30, 32, %s256_s0, [#allocation37]  }
  0x99   :  { %s301_s19 = sshll.u32 %s12461_s17, 4  ;;  %s12310_s23 = smov [#allocation39]   ;;  %s302_s19 = int_to_ptr.hbm [resolvable:$true] %s301_s19 }
  0x9a   :  { %s279_s21 = sshll.u32 %s12310_s23, 4  ;;  %s11803_s1 = sshra.s32 %s278_s16, 4  ;;  %s280_s21 = int_to_ptr.vmem [resolvable:$true] %s279_s21  ;;  %s11804_s1 = int_to_ptr.hbm [resolvable:$true] %s11803_s1 }
  0x9b   :  { %s11805_s26 = scalar_lea.hbm %s11804_s1, 2  ;;  %s11807_s10 = scalar_lea.hbm %s12451_s14, 2 }
  0x9c   :  { %p11806_p2 = scmp.ne.s32.totalorder %s11804_s1, %s11805_s26  ;;  %p11808_p3 = scmp.lt.s32.totalorder %s11804_s1, %s12451_s14 }
  0x9d   :  { %p11809_p4 = scmp.lt.s32.totalorder %s11807_s10, %s11805_s26 }
  0x9f   :  { %p11810_p5 = por %p11809_p4, %p11808_p3 }
  0xa1   :  { %p11811_p6 = pnand %p11810_p5, %p11806_p2 }
  0xa3   :  { %11814 = shalt.err (!%p11811_p6)
}
  0xa4   :  { %282 = dma.hbm_to_vmem [thread:$0]  %s278_s16, 32, %s280_s21, [#allocation40]  }
  0xa5   :  { %s12311_s6 = smov [#allocation42]   ;;  %s325_s11 = sshll.u32 %s12471_s5, 4  ;;  %s326_s11 = int_to_ptr.hbm [resolvable:$true] %s325_s11 }
  0xa6   :  { %s303_s30 = sshll.u32 %s12311_s6, 4  ;;  %s11827_s3 = sshra.s32 %s302_s19, 4  ;;  %s304_s30 = int_to_ptr.vmem [resolvable:$true] %s303_s30  ;;  %s11828_s3 = int_to_ptr.hbm [resolvable:$true] %s11827_s3 }
  0xa7   :  { %s11829_s15 = scalar_lea.hbm %s11828_s3, 2  ;;  %s11831_s27 = scalar_lea.hbm %s12461_s17, 2 }
  0xa8   :  { %p11830_p7 = scmp.ne.s32.totalorder %s11828_s3, %s11829_s15  ;;  %p11832_p8 = scmp.lt.s32.totalorder %s11828_s3, %s12461_s17 }
  0xa9   :  { %p11833_p9 = scmp.lt.s32.totalorder %s11831_s27, %s11829_s15 }
  0xab   :  { %p11834_p10 = por %p11833_p9, %p11832_p8 }
  0xad   :  { %p11835_p11 = pnand %p11834_p10, %p11830_p7 }
  0xaf   :  { %11838 = shalt.err (!%p11835_p11)
}
  0xb0   :  { %306 = dma.hbm_to_vmem [thread:$0]  %s302_s19, 32, %s304_s30, [#allocation43]  }
  0xb1   :  { %s349_s14 = sshll.u32 %s12481_s24, 4  ;;  %s12312_s0 = smov [#allocation45]   ;;  %s350_s14 = int_to_ptr.hbm [resolvable:$true] %s349_s14 }
  0xb2   :  { %s327_s16 = sshll.u32 %s12312_s0, 4  ;;  %s11851_s18 = sshra.s32 %s326_s11, 4  ;;  %s328_s16 = int_to_ptr.vmem [resolvable:$true] %s327_s16  ;;  %s11852_s18 = int_to_ptr.hbm [resolvable:$true] %s11851_s18 }
  0xb3   :  { %s11853_s22 = scalar_lea.hbm %s11852_s18, 2  ;;  %s11855_s28 = scalar_lea.hbm %s12471_s5, 2 }
  0xb4   :  { %p11854_p12 = scmp.ne.s32.totalorder %s11852_s18, %s11853_s22  ;;  %p11856_p13 = scmp.lt.s32.totalorder %s11852_s18, %s12471_s5 }
  0xb5   :  { %p11857_p0 = scmp.lt.s32.totalorder %s11855_s28, %s11853_s22 }
  0xb7   :  { %p11858_p1 = por %p11857_p0, %p11856_p13 }
  0xb9   :  { %p11859_p2 = pnand %p11858_p1, %p11854_p12 }
  0xbb   :  { %11862 = shalt.err (!%p11859_p2)
}
  0xbc   :  { %330 = dma.hbm_to_vmem [thread:$0]  %s326_s11, 32, %s328_s16, [#allocation46]  }
  0xbd   :  { %s12313_s17 = smov [#allocation48]   ;;  %s376_s23 = sshll.u32 %s12501_s4, 4  ;;  %s12584_s23 = int_to_ptr.hbm [resolvable:$true] %s376_s23 }
  0xbe   :  { %s351_s19 = sshll.u32 %s12313_s17, 4  ;;  %s11875_s21 = sshra.s32 %s350_s14, 4  ;;  %s352_s19 = int_to_ptr.vmem [resolvable:$true] %s351_s19  ;;  %s11876_s21 = int_to_ptr.hbm [resolvable:$true] %s11875_s21 }
  0xbf   :  { %s11877_s1 = scalar_lea.hbm %s11876_s21, 2  ;;  %s11879_s26 = scalar_lea.hbm %s12481_s24, 2 }
  0xc0   :  { %p11878_p3 = scmp.ne.s32.totalorder %s11876_s21, %s11877_s1  ;;  %p11880_p4 = scmp.lt.s32.totalorder %s11876_s21, %s12481_s24 }
  0xc1   :  { %p11881_p5 = scmp.lt.s32.totalorder %s11879_s26, %s11877_s1 }
  0xc3   :  { %p11882_p6 = por %p11881_p5, %p11880_p4 }
  0xc5   :  { %p11883_p7 = pnand %p11882_p6, %p11878_p3 }
  0xc7   :  { %11886 = shalt.err (!%p11883_p7)
}
  0xc8   :  { %354 = dma.hbm_to_vmem [thread:$0]  %s350_s14, 32, %s352_s19, [#allocation49]  }
  0xc9   :  { %s12314_s5 = smov [#allocation51]   ;;  %s107_s6 = sshll.u32 %s12346_s9, 4  ;;  %s108_s6 = int_to_ptr.hbm [resolvable:$true] %s107_s6 }
  0xca   :  { %s378_s10 = sshll.u32 %s12314_s5, 4  ;;  %s11899_s30 = sshra.s32 %s12584_s23, 4  ;;  %s379_s10 = int_to_ptr.vmem [resolvable:$true] %s378_s10  ;;  %s11900_s30 = int_to_ptr.hbm [resolvable:$true] %s11899_s30 }
  0xcb   :  { %s11901_s11 = scalar_lea.hbm %s11900_s30, 48  ;;  %s11903_s3 = scalar_lea.hbm %s12501_s4, 48 }
  0xcc   :  { %p11902_p8 = scmp.ne.s32.totalorder %s11900_s30, %s11901_s11  ;;  %p11904_p9 = scmp.lt.s32.totalorder %s11900_s30, %s12501_s4 }
  0xcd   :  { %p11905_p10 = scmp.lt.s32.totalorder %s11903_s3, %s11901_s11 }
  0xcf   :  { %p11906_p11 = por %p11905_p10, %p11904_p9 }
  0xd1   :  { %p11907_p12 = pnand %p11906_p11, %p11902_p8 }
  0xd3   :  { %11910 = shalt.err (!%p11907_p12)
}
  0xd4   :  { %s12315_s24 = smov 256   ;;  %s12316_s15 = smov 16  }
  0xd5   :  { %384 = dma.hbm_to_vmem [thread:$0]  %s12584_s23, 768, %s379_s10, [#allocation52], %s12315_s24, %s12315_s24, %s12316_s15  }
  0xd6   :  { %s12317_s27 = smov [#allocation19]   ;;  %s138_s0 = sshll.u32 %s12371_s29, 4  ;;  %s139_s0 = int_to_ptr.hbm [resolvable:$true] %s138_s0 }
  0xd7   :  { %s109_s14 = sshll.u32 %s12317_s27, 4  ;;  %s11923_s16 = sshra.s32 %s108_s6, 4  ;;  %s110_s14 = int_to_ptr.vmem [resolvable:$true] %s109_s14  ;;  %s11924_s16 = int_to_ptr.hbm [resolvable:$true] %s11923_s16 }
  0xd8   :  { %s11925_s4 = scalar_lea.hbm %s11924_s16, 56  ;;  %s11927_s18 = scalar_lea.hbm %s12346_s9, 56 }
  0xd9   :  { %p11926_p13 = scmp.ne.s32.totalorder %s11924_s16, %s11925_s4  ;;  %p11928_p0 = scmp.lt.s32.totalorder %s11924_s16, %s12346_s9 }
  0xda   :  { %p11929_p1 = scmp.lt.s32.totalorder %s11927_s18, %s11925_s4 }
  0xdc   :  { %p11930_p2 = por %p11929_p1, %p11928_p0 }
  0xde   :  { %p11931_p3 = pnand %p11930_p2, %p11926_p13 }
  0xe0   :  { %11934 = shalt.err (!%p11931_p3)
}
  0xe1   :  { %115 = dma.hbm_to_vmem [thread:$0]  %s108_s6, 896, %s110_s14, [#allocation20], %s12304_s2, %s12304_s2, %s12305_s7  }
  0xe2   :  { %s162_s22 = sshll.u32 %s12381_s8, 4  ;;  %s12318_s28 = smov [#allocation23]   ;;  %s163_s22 = int_to_ptr.hbm [resolvable:$true] %s162_s22 }
  0xe3   :  { %s140_s17 = sshll.u32 %s12318_s28, 4  ;;  %s11947_s19 = sshra.s32 %s139_s0, 4  ;;  %s141_s17 = int_to_ptr.vmem [resolvable:$true] %s140_s17  ;;  %s11948_s19 = int_to_ptr.hbm [resolvable:$true] %s11947_s19 }
  0xe4   :  { %s11949_s23 = scalar_lea.hbm %s11948_s19, 1  ;;  %s11951_s9 = scalar_lea.hbm %s12371_s29, 1 }
  0xe5   :  { %p11950_p4 = scmp.ne.s32.totalorder %s11948_s19, %s11949_s23  ;;  %p11952_p5 = scmp.lt.s32.totalorder %s11948_s19, %s12371_s29 }
  0xe6   :  { %p11953_p6 = scmp.lt.s32.totalorder %s11951_s9, %s11949_s23 }
  0xe8   :  { %p11954_p7 = por %p11953_p6, %p11952_p5 }
  0xea   :  { %p11955_p8 = pnand %p11954_p7, %p11950_p4 }
  0xec   :  { %11958 = shalt.err (!%p11955_p8)
}
  0xed   :  { %143 = dma.hbm_to_vmem [thread:$0]  %s139_s0, 16, %s141_s17, [#allocation22]  }
  0xee   :  { %s13905_s21 = sld [smem:[#allocation77_spill]]  ;;  %s12319_s2 = smov [#allocation26]  }
  0xef   :  { %s164_s7 = sshll.u32 %s12319_s2, 4  ;;  %s11971_s26 = sshra.s32 %s163_s22, 4  ;;  %s165_s7 = int_to_ptr.vmem [resolvable:$true] %s164_s7  ;;  %s11972_s26 = int_to_ptr.hbm [resolvable:$true] %s11971_s26 }
  0xf0   :  { %s11973_s5 = scalar_lea.hbm %s11972_s26, 1  ;;  %s11975_s10 = scalar_lea.hbm %s12381_s8, 1 }
  0xf1   :  { %p11974_p9 = scmp.ne.s32.totalorder %s11972_s26, %s11973_s5  ;;  %p11976_p10 = scmp.lt.s32.totalorder %s11972_s26, %s12381_s8 }
  0xf2   :  { %p11977_p11 = scmp.lt.s32.totalorder %s11975_s10, %s11973_s5 }
  0xf4   :  { %s192_s1 = sshll.u32 %s13905_s21, 4  ;;  %p11978_p12 = por %p11977_p11, %p11976_p10  ;;  %s193_s1 = int_to_ptr.hbm [resolvable:$true] %s192_s1 }
  0xf6   :  { %p11979_p13 = pnand %p11978_p12, %p11974_p9 }
  0xf8   :  { %11982 = shalt.err (!%p11979_p13)
}
  0xf9   :  { %167 = dma.hbm_to_vmem [thread:$0]  %s163_s22, 16, %s165_s7, [#allocation25]  }
  0xfa   :  { %s13906_s29 = sld [smem:[#allocation79_spill]]  ;;  %s12320_s30 = smov [#allocation29]  }
  0xfb   :  { %s194_s11 = sshll.u32 %s12320_s30, 4  ;;  %s11995_s3 = sshra.s32 %s193_s1, 4  ;;  %s195_s11 = int_to_ptr.vmem [resolvable:$true] %s194_s11  ;;  %s11996_s3 = int_to_ptr.hbm [resolvable:$true] %s11995_s3 }
  0xfc   :  { %s11997_s24 = scalar_lea.hbm %s11996_s3, 2  ;;  %s11999_s15 = scalar_lea.hbm %s13905_s21, 2 }
  0xfd   :  { %p11998_p0 = scmp.ne.s32.totalorder %s11996_s3, %s11997_s24  ;;  %p12000_p1 = scmp.lt.s32.totalorder %s11996_s3, %s13905_s21 }
  0xfe   :  { %p12001_p2 = scmp.lt.s32.totalorder %s11999_s15, %s11997_s24 }
 0x100   :  { %s215_s6 = sshll.u32 %s13906_s29, 4  ;;  %p12002_p3 = por %p12001_p2, %p12000_p1  ;;  %s12606_s6 = int_to_ptr.hbm [resolvable:$true] %s215_s6 }
 0x102   :  { %p12003_p4 = pnand %p12002_p3, %p11998_p0 }
 0x104   :  { %12006 = shalt.err (!%p12003_p4)
}
 0x105   :  { %197 = dma.hbm_to_vmem [thread:$0]  %s193_s1, 32, %s195_s11, [#allocation28]  }
 0x106   :  { %s12321_s8 = smov [#allocation32]   ;;  %s12019_s14 = sshra.s32 %s12606_s6, 4  ;;  %s12020_s14 = int_to_ptr.hbm [resolvable:$true] %s12019_s14 }
 0x107   :  { %s217_s27 = sshll.u32 %s12321_s8, 4  ;;  %s12021_s0 = scalar_lea.hbm %s12020_s14, 192  ;;  %s218_s27 = int_to_ptr.vmem [resolvable:$true] %s217_s27 }
 0x108   :  { %p12022_p5 = scmp.ne.s32.totalorder %s12020_s14, %s12021_s0  ;;  %s12023_s16 = scalar_lea.hbm %s13906_s29, 192 }
 0x109   :  { %p12024_p6 = scmp.lt.s32.totalorder %s12020_s14, %s13906_s29  ;;  %p12025_p7 = scmp.lt.s32.totalorder %s12023_s16, %s12021_s0 }
 0x10b   :  { %p12026_p8 = por %p12025_p7, %p12024_p6 }
 0x10d   :  { %p12027_p9 = pnand %p12026_p8, %p12022_p5 }
 0x10f   :  { %12030 = shalt.err (!%p12027_p9)
}
 0x110   :  { %s12322_s4 = smov 128   ;;  %s13907_s18 = sld [smem:[#allocation80_spill]] }
 0x111   :  { %s13908_s22 = sld [smem:[#allocation81_spill]]  ;;  %s12323_s28 = smov 8  }
 0x112   :  { %223 = dma.hbm_to_vmem [thread:$0]  %s12606_s6, 3072, %s218_s27, [#allocation31], %s12322_s4, %s12322_s4, %s12323_s28  }
 0x113   :  { %s12324_s19 = smov [#allocation35]  }
 0x114   :  { %s241_s23 = sshll.u32 %s12324_s19, 4  ;;  %s242_s23 = int_to_ptr.vmem [resolvable:$true] %s241_s23 }
 0x116   :  { %s239_s17 = sshll.u32 %s13907_s18, 4  ;;  %s12047_s7 = scalar_lea.hbm %s13907_s18, 576  ;;  %s240_s17 = int_to_ptr.hbm [resolvable:$true] %s239_s17 }
 0x117   :  { %s263_s9 = sshll.u32 %s13908_s22, 4  ;;  %s12043_s21 = sshra.s32 %s240_s17, 4  ;;  %s12044_s21 = int_to_ptr.hbm [resolvable:$true] %s12043_s21  ;;  %s264_s9 = int_to_ptr.hbm [resolvable:$true] %s263_s9 }
 0x118   :  { %s12045_s2 = scalar_lea.hbm %s12044_s21, 576  ;;  %p12048_p11 = scmp.lt.s32.totalorder %s12044_s21, %s13907_s18 }
 0x119   :  { %p12046_p10 = scmp.ne.s32.totalorder %s12044_s21, %s12045_s2  ;;  %p12049_p12 = scmp.lt.s32.totalorder %s12047_s7, %s12045_s2 }
 0x11b   :  { %p12050_p13 = por %p12049_p12, %p12048_p11 }
 0x11d   :  { %p12051_p0 = pnand %p12050_p13, %p12046_p10 }
 0x11f   :  { %12054 = shalt.err (!%p12051_p0)
}
 0x120   :  { %s13909_s1 = sld [smem:[#allocation82_spill]]  ;;  %s12325_s26 = smov [#allocation38]  }
 0x121   :  { %247 = dma.hbm_to_vmem [thread:$0]  %s240_s17, 9216, %s242_s23, [#allocation34], %s12322_s4, %s12322_s4, %s12323_s28  }
 0x122   :  { %s265_s5 = sshll.u32 %s12325_s26, 4  ;;  %s12067_s29 = sshra.s32 %s264_s9, 4  ;;  %s266_s5 = int_to_ptr.vmem [resolvable:$true] %s265_s5  ;;  %s12068_s29 = int_to_ptr.hbm [resolvable:$true] %s12067_s29 }
 0x123   :  { %s12069_s6 = scalar_lea.hbm %s12068_s29, 576  ;;  %s12071_s30 = scalar_lea.hbm %s13908_s22, 576 }
 0x124   :  { %p12070_p1 = scmp.ne.s32.totalorder %s12068_s29, %s12069_s6  ;;  %p12072_p2 = scmp.lt.s32.totalorder %s12068_s29, %s13908_s22 }
 0x125   :  { %p12073_p3 = scmp.lt.s32.totalorder %s12071_s30, %s12069_s6 }
 0x126   :  { %s287_s10 = sshll.u32 %s13909_s1, 4  ;;  %s12625_s10 = int_to_ptr.hbm [resolvable:$true] %s287_s10 }
 0x127   :  { %p12074_p4 = por %p12073_p3, %p12072_p2 }
 0x129   :  { %p12075_p5 = pnand %p12074_p4, %p12070_p1 }
 0x12b   :  { %12078 = shalt.err (!%p12075_p5)
}
 0x12c   :  { %s13910_s11 = sld [smem:[#allocation83_spill]]  ;;  %s12326_s24 = smov [#allocation41]  }
 0x12d   :  { %271 = dma.hbm_to_vmem [thread:$0]  %s264_s9, 9216, %s266_s5, [#allocation37], %s12322_s4, %s12322_s4, %s12323_s28  }
 0x12e   :  { %s289_s15 = sshll.u32 %s12326_s24, 4  ;;  %s12091_s8 = sshra.s32 %s12625_s10, 4  ;;  %s290_s15 = int_to_ptr.vmem [resolvable:$true] %s289_s15  ;;  %s12092_s8 = int_to_ptr.hbm [resolvable:$true] %s12091_s8 }
 0x12f   :  { %s12093_s27 = scalar_lea.hbm %s12092_s8, 576  ;;  %s12095_s14 = scalar_lea.hbm %s13909_s1, 576 }
 0x130   :  { %p12094_p6 = scmp.ne.s32.totalorder %s12092_s8, %s12093_s27  ;;  %p12096_p7 = scmp.lt.s32.totalorder %s12092_s8, %s13909_s1 }
 0x131   :  { %p12097_p8 = scmp.lt.s32.totalorder %s12095_s14, %s12093_s27 }
 0x132   :  { %s311_s3 = sshll.u32 %s13910_s11, 4  ;;  %s12633_s3 = int_to_ptr.hbm [resolvable:$true] %s311_s3 }
 0x133   :  { %p12098_p9 = por %p12097_p8, %p12096_p7 }
 0x135   :  { %p12099_p10 = pnand %p12098_p9, %p12094_p6 }
 0x137   :  { %12102 = shalt.err (!%p12099_p10)
}
 0x138   :  { %s13911_s0 = sld [smem:[#allocation84_spill]]  ;;  %s12327_s16 = smov [#allocation44]  }
 0x139   :  { %295 = dma.hbm_to_vmem [thread:$0]  %s12625_s10, 9216, %s290_s15, [#allocation40], %s12322_s4, %s12322_s4, %s12323_s28  }
 0x13a   :  { %s313_s18 = sshll.u32 %s12327_s16, 4  ;;  %s12115_s17 = sshra.s32 %s12633_s3, 4  ;;  %s314_s18 = int_to_ptr.vmem [resolvable:$true] %s313_s18  ;;  %s12116_s17 = int_to_ptr.hbm [resolvable:$true] %s12115_s17 }
 0x13b   :  { %s12117_s19 = scalar_lea.hbm %s12116_s17, 576  ;;  %s12119_s23 = scalar_lea.hbm %s13910_s11, 576 }
 0x13c   :  { %p12118_p11 = scmp.ne.s32.totalorder %s12116_s17, %s12117_s19  ;;  %p12120_p12 = scmp.lt.s32.totalorder %s12116_s17, %s13910_s11 }
 0x13d   :  { %p12121_p13 = scmp.lt.s32.totalorder %s12119_s23, %s12117_s19 }
 0x13e   :  { %s335_s22 = sshll.u32 %s13911_s0, 4  ;;  %s12643_s22 = int_to_ptr.hbm [resolvable:$true] %s335_s22 }
 0x13f   :  { %p12122_p0 = por %p12121_p13, %p12120_p12 }
 0x141   :  { %p12123_p1 = pnand %p12122_p0, %p12118_p11 }
 0x143   :  { %12126 = shalt.err (!%p12123_p1)
}
 0x144   :  { %s13912_s9 = sld [smem:[#allocation86_spill]]  ;;  %s12328_s2 = smov [#allocation47]  }
 0x145   :  { %319 = dma.hbm_to_vmem [thread:$0]  %s12633_s3, 9216, %s314_s18, [#allocation43], %s12322_s4, %s12322_s4, %s12323_s28  }
 0x146   :  { %s337_s7 = sshll.u32 %s12328_s2, 4  ;;  %s12139_s1 = sshra.s32 %s12643_s22, 4  ;;  %s338_s7 = int_to_ptr.vmem [resolvable:$true] %s337_s7  ;;  %s12140_s1 = int_to_ptr.hbm [resolvable:$true] %s12139_s1 }
 0x147   :  { %s12141_s26 = scalar_lea.hbm %s12140_s1, 576  ;;  %s12143_s5 = scalar_lea.hbm %s13911_s0, 576 }
 0x148   :  { %p12142_p2 = scmp.ne.s32.totalorder %s12140_s1, %s12141_s26  ;;  %p12144_p3 = scmp.lt.s32.totalorder %s12140_s1, %s13911_s0 }
 0x149   :  { %p12145_p4 = scmp.lt.s32.totalorder %s12143_s5, %s12141_s26 }
 0x14a   :  { %s361_s21 = sshll.u32 %s13912_s9, 4  ;;  %s12653_s21 = int_to_ptr.hbm [resolvable:$true] %s361_s21 }
 0x14b   :  { %p12146_p5 = por %p12145_p4, %p12144_p3 }
 0x14d   :  { %p12147_p6 = pnand %p12146_p5, %p12142_p2 }
 0x14f   :  { %12150 = shalt.err (!%p12147_p6)
}
 0x150   :  { %s13913_s10 = sld [smem:[#allocation90_spill]]  ;;  %s12329_s29 = smov [#allocation50]  }
 0x151   :  { %343 = dma.hbm_to_vmem [thread:$0]  %s12643_s22, 9216, %s338_s7, [#allocation46], %s12322_s4, %s12322_s4, %s12323_s28  }
 0x152   :  { %s363_s6 = sshll.u32 %s12329_s29, 4  ;;  %s12163_s11 = sshra.s32 %s12653_s21, 4  ;;  %s364_s6 = int_to_ptr.vmem [resolvable:$true] %s363_s6  ;;  %s12164_s11 = int_to_ptr.hbm [resolvable:$true] %s12163_s11 }
 0x153   :  { %s12165_s3 = scalar_lea.hbm %s12164_s11, 128  ;;  %s12167_s24 = scalar_lea.hbm %s13912_s9, 128 }
 0x154   :  { %p12166_p7 = scmp.ne.s32.totalorder %s12164_s11, %s12165_s3  ;;  %p12168_p8 = scmp.lt.s32.totalorder %s12164_s11, %s13912_s9 }
 0x155   :  { %p12169_p9 = scmp.lt.s32.totalorder %s12167_s24, %s12165_s3 }
 0x156   :  { %s394_s30 = sshll.u32 %s13913_s10, 4  ;;  %s395_s30 = int_to_ptr.hbm [resolvable:$true] %s394_s30 }
 0x157   :  { %p12170_p10 = por %p12169_p9, %p12168_p8 }
 0x159   :  { %p12171_p11 = pnand %p12170_p10, %p12166_p7 }
 0x15b   :  { %12174 = shalt.err (!%p12171_p11)
}
 0x15c   :  { %369 = dma.hbm_to_vmem [thread:$0]  %s12653_s21, 2048, %s364_s6, [#allocation49], %s12322_s4, %s12322_s4, %s12323_s28  }
 0x15d   :  { %s413_s15 = sshll.u32 %s12541_s12, 4  ;;  %s12330_s8 = smov [#allocation53]   ;;  %s414_s15 = int_to_ptr.hbm [resolvable:$true] %s413_s15 }
 0x15e   :  { %s396_s27 = sshll.u32 %s12330_s8, 4  ;;  %s12187_s14 = sshra.s32 %s395_s30, 4  ;;  %s397_s27 = int_to_ptr.vmem [resolvable:$true] %s396_s27  ;;  %s12188_s14 = int_to_ptr.hbm [resolvable:$true] %s12187_s14 }
 0x15f   :  { %s12189_s0 = scalar_lea.hbm %s12188_s14, 4  ;;  %s12191_s16 = scalar_lea.hbm %s13913_s10, 4 }
 0x160   :  { %p12190_p12 = scmp.ne.s32.totalorder %s12188_s14, %s12189_s0  ;;  %p12192_p13 = scmp.lt.s32.totalorder %s12188_s14, %s13913_s10 }
 0x161   :  { %p12193_p0 = scmp.lt.s32.totalorder %s12191_s16, %s12189_s0 }
 0x163   :  { %p12194_p1 = por %p12193_p0, %p12192_p13 }
 0x165   :  { %p12195_p2 = pnand %p12194_p1, %p12190_p12 }
 0x167   :  { %12198 = shalt.err (!%p12195_p2)
}
 0x168   :  { %399 = dma.hbm_to_vmem [thread:$0]  %s395_s30, 64, %s397_s27, [#allocation52]  }
 0x169   :  { %s12331_s18 = smov [#allocation54]   ;;  %s12211_s28 = sshra.s32 %s414_s15, 4  ;;  %s12212_s28 = int_to_ptr.hbm [resolvable:$true] %s12211_s28 }
 0x16a   :  { %s415_s4 = sshll.u32 %s12331_s18, 4  ;;  %s12213_s22 = scalar_lea.hbm %s12212_s28, 8  ;;  %s416_s4 = int_to_ptr.vmem [resolvable:$true] %s415_s4 }
 0x16b   :  { %p12214_p3 = scmp.ne.s32.totalorder %s12212_s28, %s12213_s22  ;;  %s12215_s17 = scalar_lea.hbm %s12541_s12, 8 }
 0x16c   :  { %p12216_p4 = scmp.lt.s32.totalorder %s12212_s28, %s12541_s12  ;;  %p12217_p5 = scmp.lt.s32.totalorder %s12215_s17, %s12213_s22 }
 0x16e   :  { %p12218_p6 = por %p12217_p5, %p12216_p4 }
 0x170   :  { %p12219_p7 = pnand %p12218_p6, %p12214_p3 }
 0x172   :  { %12222 = shalt.err (!%p12219_p7)
}
 0x173   :  { %418 = dma.hbm_to_vmem [thread:$0]  %s414_s15, 128, %s416_s4, [#allocation55]  }
 0x174   :  { %12235 = dma.done.wait [#allocation20], 896  }
 0x175   :  { %12236 = vsyncadd [#allocation20], 4294966400 }
 0x176   :  { %12237 = dma.done.wait [#allocation22], 32  }
 0x177   :  { %12238 = vsyncadd [#allocation22], 4294967264 }
 0x178   :  { %12239 = dma.done.wait [#allocation25], 3088  }
 0x179   :  { %12240 = vsyncadd [#allocation25], 4294964208 }
 0x17a   :  { %12241 = dma.done.wait [#allocation28], 64  }
 0x17b   :  { %12242 = vsyncadd [#allocation28], 4294967232 }
 0x17c   :  { %12243 = dma.done.wait [#allocation31], 3104  }
 0x17d   :  { %12244 = vsyncadd [#allocation31], 4294964192 }
 0x17e   :  { %12245 = dma.done.wait [#allocation34], 9248  }
 0x17f   :  { %12246 = vsyncadd [#allocation34], 4294958048 }
 0x180   :  { %12247 = dma.done.wait [#allocation37], 9248  }
 0x181   :  { %12248 = vsyncadd [#allocation37], 4294958048 }
 0x182   :  { %12249 = dma.done.wait [#allocation40], 9248  }
 0x183   :  { %12250 = vsyncadd [#allocation40], 4294958048 }
 0x184   :  { %12251 = dma.done.wait [#allocation43], 9248  }
 0x185   :  { %12252 = vsyncadd [#allocation43], 4294958048 }
 0x186   :  { %12253 = dma.done.wait [#allocation46], 9248  }
 0x187   :  { %12254 = vsyncadd [#allocation46], 4294958048 }
 0x188   :  { %12255 = dma.done.wait [#allocation49], 2080  }
 0x189   :  { %12256 = vsyncadd [#allocation49], 4294965216 }
 0x18a   :  { %12257 = dma.done.wait [#allocation52], 832  }
 0x18b   :  { %12258 = vsyncadd [#allocation52], 4294966464 }
 0x18c   :  { %12259 = dma.done.wait [#allocation55], 128  }
 0x18d   :  { %12260 = vsyncadd [#allocation55], 4294967168  ;;  %s13914_s12 = sld [smem:[#allocation69_spill]]  ;;  %vm516_vm0 = vcmask 130048   ;;  %v12332_v0 = vmov 0.0   ;;  %v10920_v1 = vld [vmem:[#allocation19 + $0x8] sm:$0xff] }
 0x18e   :  { %517 = vst.msk [vmem:[#allocation2] sm:$0xff] %vm516_vm0, %v12332_v0  ;;  %v10919_v2 = vld [vmem:[#allocation19] sm:$0xff]  ;;  %v10921_v3 = vld [vmem:[#allocation19 + $0x10] sm:$0xff]  ;;  %v10922_v4 = vld [vmem:[#allocation19 + $0x18] sm:$0xff]  ;;  %690 = vmatpush.bf16.msra.mxu0 %v10920_v1  ;;  %s13915_s19 = sld [smem:[#allocation85_spill]]  ;;  %vm566_vm1 = vcmask 523264  }
 0x18f   :  { %518 = vst.msk [vmem:[#allocation2 + $0x8] sm:$0xff] %vm516_vm0, %v12332_v0  ;;  %737 = vmatpush.bf16.msra.mxu1 %v10919_v2  ;;  %799 = vmatpush.bf16.msra.mxu2 %v10921_v3  ;;  %v10925_v13 = vld [vmem:[#allocation19 + $0x30] sm:$0xff]  ;;  %v10923_v14 = vld [vmem:[#allocation19 + $0x20] sm:$0xff]  ;;  %v10924_v15 = vld [vmem:[#allocation19 + $0x28] sm:$0xff]  ;;  %s13916_s23 = sld [smem:[#allocation70_spill]]  ;;  %vm2403_vm2 = vcmask 523268  }
 0x190   :  { %519 = vst.msk [vmem:[#allocation2 + $0x10] sm:$0xff] %vm516_vm0, %v12332_v0  ;;  %869 = vmatpush.bf16.msra.mxu3 %v10922_v4  ;;  %s13917_s9 = sld [smem:[#allocation71_spill]]  ;;  %vm2389_vm3 = vcmask 1043456   ;;  %vm2408_vm4 = vcmask 519168   ;;  %vm2610_vm5 = vcmask 1045504   ;;  %vm4809_vm6 = vcmask 64512  }
 0x191   :  { %520 = vst.msk [vmem:[#allocation2 + $0x18] sm:$0xff] %vm516_vm0, %v12332_v0  ;;  %s13918_s21 = sld [smem:[#allocation72_spill]]  ;;  %vm4837_vm7 = vcmask 195584   ;;  %vm4863_vm8 = vcmask 48128   ;;  %vm4912_vm13 = vcmask 31744  }
 0x192   :  { %521 = vst.msk [vmem:[#allocation2 + $0x20] sm:$0xff] %vm516_vm0, %v12332_v0  ;;  %939 = vmatpush.bf16.msrb.mxu0 %v10923_v14  ;;  %s13919_s2 = sld [smem:[#allocation73_spill]] }
 0x193   :  { %522 = vst.msk [vmem:[#allocation2 + $0x28] sm:$0xff] %vm516_vm0, %v12332_v0  ;;  %v604_v5 = vld [vmem:[%s13914_s12] sm:$0xff]  ;;  %v605_v6 = vld [vmem:[%s13914_s12 + $0x8] sm:$0xff]  ;;  %1079 = vmatpush.bf16.msrb.mxu2 %v10925_v13  ;;  %1009 = vmatpush.bf16.msrb.mxu1 %v10924_v15  ;;  %v606_v18 = vld [vmem:[%s13914_s12 + $0x10] sm:$0xff]  ;;  %s13920_s7 = sld [smem:[#allocation75_spill]] }
 0x194   :  { %523 = vst.msk [vmem:[#allocation2 + $0x30] sm:$0xff] %vm516_vm0, %v12332_v0  ;;  %v620_v16 = vld [vmem:[%s13914_s12 + $0x40] sm:$0xff]  ;;  %v621_v17 = vld [vmem:[%s13914_s12 + $0x48] sm:$0xff]  ;;  %v607_v19 = vld [vmem:[%s13914_s12 + $0x18] sm:$0xff]  ;;  %s13921_s1 = sld [smem:[#allocation76_spill]] }
 0x195   :  { %524 = vst.msk [vmem:[#allocation2 + $0x38] sm:$0xff] %vm516_vm0, %v12332_v0  ;;  %v622_v20 = vld [vmem:[%s13914_s12 + $0x50] sm:$0xff]  ;;  %v623_v21 = vld [vmem:[%s13914_s12 + $0x58] sm:$0xff]  ;;  %v608_v22 = vld [vmem:[%s13914_s12 + $0x20] sm:$0xff]  ;;  %s13922_s26 = sld [smem:[#allocation74_spill]] }
 0x196   :  { %612 = vst.msk [vmem:[#allocation2 + $0x4] sm:$0xff] %vm516_vm0, %v604_v5  ;;  %v609_v23 = vld [vmem:[%s13914_s12 + $0x28] sm:$0xff]  ;;  %v624_v25 = vld [vmem:[%s13914_s12 + $0x60] sm:$0xff]  ;;  %v610_v38 = vld [vmem:[%s13914_s12 + $0x30] sm:$0xff]  ;;  %s13923_s5 = sld [smem:[#allocation78_spill]] }
 0x197   :  { %613 = vst.msk [vmem:[#allocation2 + $0xc] sm:$0xff] %vm516_vm0, %v605_v6  ;;  %v625_v26 = vld [vmem:[%s13914_s12 + $0x68] sm:$0xff]  ;;  %v611_v39 = vld [vmem:[%s13914_s12 + $0x38] sm:$0xff]  ;;  %v626_v40 = vld [vmem:[%s13914_s12 + $0x70] sm:$0xff]  ;;  %s13924_s10 = sld [smem:[#allocation87_spill]] }
 0x198   :  { %525 = vst.msk [vmem:[#allocation2 + $0x40] sm:$0xff] %vm516_vm0, %v12332_v0  ;;  %v627_v41 = vld [vmem:[%s13914_s12 + $0x78] sm:$0xff]  ;;  %s13925_s29 = sld [smem:[#allocation92_spill]] }
 0x199   :  { %526 = vst.msk [vmem:[#allocation3] sm:$0xff] %vm516_vm0, %v12332_v0  ;;  %s13926_s6 = sld [smem:[#allocation89_spill]] }
 0x19a   :  { %527 = vst.msk [vmem:[#allocation3 + $0x8] sm:$0xff] %vm516_vm0, %v12332_v0 }
 0x19b   :  { %528 = vst.msk [vmem:[#allocation3 + $0x10] sm:$0xff] %vm516_vm0, %v12332_v0 }
 0x19c   :  { %529 = vst.msk [vmem:[#allocation3 + $0x18] sm:$0xff] %vm516_vm0, %v12332_v0 }
 0x19d   :  { %v650_v7 = vld [vmem:[#allocation2] sm:$0xff]  ;;  %530 = vst.msk [vmem:[#allocation3 + $0x20] sm:$0xff] %vm516_vm0, %v12332_v0 }
 0x19e   :  { %v12707_v8 = vld [vmem:[#allocation2 + $0x8] sm:$0xff]  ;;  %531 = vst.msk [vmem:[#allocation3 + $0x28] sm:$0xff] %vm516_vm0, %v12332_v0 }
 0x19f   :  { %v661_v9 = vpack.c.bf16 %v12707_v8, %v650_v7  ;;  %532 = vst.msk [vmem:[#allocation3 + $0x30] sm:$0xff] %vm516_vm0, %v12332_v0  ;;  %v829_v10 = vld [vmem:[#allocation2 + $0x4] sm:$0xff]  ;;  %v830_v11 = vld [vmem:[#allocation2 + $0xc] sm:$0xff] }
 0x1a0   :  { %533 = vst.msk [vmem:[#allocation3 + $0x38] sm:$0xff] %vm516_vm0, %v12332_v0  ;;  %v840_v12 = vpack.c.bf16 %v830_v11, %v829_v10  ;;  %v636_v24 = vld [vmem:[#allocation3] sm:$0xff] }
 0x1a1   :  { %8043 = vmatmul.msk.bf16.vlgmr.msra.gmra.mxu0 %vm516_vm0, %v661_v9  ;;  %534 = vst.msk [vmem:[#allocation3 + $0x40] sm:$0xff] %vm516_vm0, %v12332_v0 }
 0x1a2   :  { %535 = vst.msk [vmem:[#allocation3 + $0x48] sm:$0xff] %vm516_vm0, %v12332_v0  ;;  %8067 = vmatmul.msk.bf16.vlgmr.msra.gmra.mxu3 %vm516_vm0, %v840_v12 }
 0x1a3   :  { %536 = vst [vmem:[#allocation4] sm:$0xff] %v12332_v0 }
 0x1a4   :  { %537 = vst [vmem:[#allocation4 + $0x8] sm:$0xff] %v12332_v0 }
 0x1a5   :  { %538 = vst [vmem:[#allocation4 + $0x10] sm:$0xff] %v12332_v0 }
 0x1a6   :  { %539 = vst [vmem:[#allocation4 + $0x18] sm:$0xff] %v12332_v0 }
 0x1a7   :  { %540 = vst [vmem:[#allocation4 + $0x20] sm:$0xff] %v12332_v0 }
 0x1a8   :  { %541 = vst [vmem:[#allocation4 + $0x28] sm:$0xff] %v12332_v0 }
 0x1a9   :  { %542 = vst [vmem:[#allocation4 + $0x30] sm:$0xff] %v12332_v0 }
 0x1aa   :  { %543 = vst [vmem:[#allocation4 + $0x38] sm:$0xff] %v12332_v0 }
 0x1ab   :  { %544 = vst [vmem:[#allocation4 + $0x40] sm:$0xff] %v12332_v0 }
 0x1ac   :  { %545 = vst [vmem:[#allocation5] sm:$0xff] %v12332_v0 }
 0x1ad   :  { %546 = vst [vmem:[#allocation5 + $0x8] sm:$0xff] %v12332_v0 }
 0x1ae   :  { %547 = vst [vmem:[#allocation5 + $0x10] sm:$0xff] %v12332_v0 }
 0x1af   :  { %548 = vst [vmem:[#allocation5 + $0x18] sm:$0xff] %v12332_v0 }
 0x1b0   :  { %549 = vst [vmem:[#allocation5 + $0x20] sm:$0xff] %v12332_v0 }
 0x1b1   :  { %550 = vst [vmem:[#allocation6] sm:$0xff] %v12332_v0 }
 0x1b2   :  { %551 = vst [vmem:[#allocation6 + $0x8] sm:$0xff] %v12332_v0 }
 0x1b3   :  { %552 = vst [vmem:[#allocation6 + $0x10] sm:$0xff] %v12332_v0 }
 0x1b4   :  { %553 = vst [vmem:[#allocation6 + $0x18] sm:$0xff] %v12332_v0 }
 0x1b5   :  { %554 = vst [vmem:[#allocation6 + $0x20] sm:$0xff] %v12332_v0 }
 0x1b6   :  { %555 = vst [vmem:[#allocation7] sm:$0xff] %v12332_v0 }
 0x1b7   :  { %556 = vst [vmem:[#allocation7 + $0x8] sm:$0xff] %v12332_v0 }
 0x1b8   :  { %557 = vst [vmem:[#allocation7 + $0x10] sm:$0xff] %v12332_v0 }
 0x1b9   :  { %558 = vst [vmem:[#allocation7 + $0x18] sm:$0xff] %v12332_v0 }
 0x1ba   :  { %559 = vst [vmem:[#allocation7 + $0x20] sm:$0xff] %v12332_v0 }
 0x1bb   :  { %560 = vst [vmem:[#allocation8] sm:$0xff] %v12332_v0 }
 0x1bc   :  { %561 = vst [vmem:[#allocation8 + $0x8] sm:$0xff] %v12332_v0 }
 0x1bd   :  { %562 = vst [vmem:[#allocation9] sm:$0xff] %v12332_v0 }
 0x1be   :  { %563 = vst [vmem:[#allocation9 + $0x8] sm:$0xff] %v12332_v0 }
 0x1bf   :  { %564 = vst [vmem:[#allocation9 + $0x10] sm:$0xff] %v12332_v0 }
 0x1c0   :  { %565 = vst [vmem:[#allocation10] sm:$0xff] %v12332_v0 }
 0x1c1   :  { %570 = vst [vmem:[#allocation10 + $0x20] sm:$0xff] %v12332_v0 }
 0x1c2   :  { %572 = vst [vmem:[#allocation11] sm:$0xff] %v12332_v0 }
 0x1c3   :  { %576 = vst [vmem:[#allocation11 + $0x20] sm:$0xff] %v12332_v0 }
 0x1c4   :  { %578 = vst [vmem:[#allocation12] sm:$0xff] %v12332_v0 }
 0x1c5   :  { %580 = vst [vmem:[#allocation13] sm:$0xff] %v12332_v0 }
 0x1c6   :  { %582 = vst [vmem:[#allocation13 + $0x10] sm:$0xff] %v12332_v0 }
 0x1c7   :  { %584 = vst [vmem:[#allocation14] sm:$0xff] %v12332_v0 }
 0x1c8   :  { %586 = vst [vmem:[#allocation14 + $0x10] sm:$0xff] %v12332_v0 }
 0x1c9   :  { %588 = vst [vmem:[#allocation15] sm:$0xff] %v12332_v0 }
 0x1ca   :  { %590 = vst [vmem:[#allocation15 + $0x10] sm:$0xff] %v12332_v0 }
 0x1cb   :  { %592 = vst [vmem:[#allocation16] sm:$0xff] %v12332_v0 }
 0x1cc   :  { %594 = vst [vmem:[#allocation16 + $0x10] sm:$0xff] %v12332_v0 }
 0x1cd   :  { %596 = vst [vmem:[#allocation17] sm:$0xff] %v12332_v0 }
 0x1ce   :  { %598 = vst [vmem:[#allocation17 + $0x10] sm:$0xff] %v12332_v0 }
 0x1cf   :  { %600 = vst [vmem:[#allocation18] sm:$0xff] %v12332_v0 }
 0x1d0   :  { %602 = vst [vmem:[#allocation18 + $0x10] sm:$0xff] %v12332_v0 }
 0x1d1   :  { %628 = vst.msk [vmem:[#allocation3 + $0x8] sm:$0xff] %vm516_vm0, %v620_v16 }
 0x1d2   :  { %629 = vst.msk [vmem:[#allocation3 + $0x10] sm:$0xff] %vm516_vm0, %v621_v17 }
 0x1d3   :  { %614 = vst.msk [vmem:[#allocation2 + $0x14] sm:$0xff] %vm516_vm0, %v606_v18 }
 0x1d4   :  { %615 = vst.msk [vmem:[#allocation2 + $0x1c] sm:$0xff] %vm516_vm0, %v607_v19 }
 0x1d5   :  { %630 = vst.msk [vmem:[#allocation3 + $0x18] sm:$0xff] %vm516_vm0, %v622_v20 }
 0x1d6   :  { %631 = vst.msk [vmem:[#allocation3 + $0x20] sm:$0xff] %vm516_vm0, %v623_v21 }
 0x1d7   :  { %616 = vst.msk [vmem:[#allocation2 + $0x24] sm:$0xff] %vm516_vm0, %v608_v22 }
 0x1d8   :  { %v12785_v27 = vld [vmem:[#allocation3 + $0x8] sm:$0xff]  ;;  %617 = vst.msk [vmem:[#allocation2 + $0x2c] sm:$0xff] %vm516_vm0, %v609_v23 }
 0x1d9   :  { %v759_v28 = vld [vmem:[#allocation3 + $0x4] sm:$0xff]  ;;  %v646_v29 = vpack.c.bf16 %v12785_v27, %v636_v24  ;;  %v12789_v30 = vld [vmem:[#allocation3 + $0xc] sm:$0xff]  ;;  %632 = vst.msk [vmem:[#allocation3 + $0x28] sm:$0xff] %vm516_vm0, %v624_v25 }
 0x1da   :  { %v770_v31 = vpack.c.bf16 %v12789_v30, %v759_v28  ;;  %v12793_v32 = vld [vmem:[#allocation2 + $0x10] sm:$0xff]  ;;  %633 = vst.msk [vmem:[#allocation3 + $0x30] sm:$0xff] %vm516_vm0, %v625_v26  ;;  %v638_v42 = vld [vmem:[#allocation3 + $0x10] sm:$0xff] }
 0x1db   :  { %v831_v33 = vld [vmem:[#allocation2 + $0x14] sm:$0xff]  ;;  %8051 = vmatmul.msk.bf16.vlgmr.msra.gmra.mxu1 %vm516_vm0, %v646_v29  ;;  %v832_v35 = vld [vmem:[#allocation2 + $0x1c] sm:$0xff]  ;;  %618 = vst.msk [vmem:[#allocation2 + $0x34] sm:$0xff] %vm516_vm0, %v610_v38  ;;  %v910_v9 = vpack.c.bf16 %v638_v42, %v12785_v27  ;;  %v980_v10 = vpack.c.bf16 %v12793_v32, %v12707_v8 }
 0x1dc   :  { %v12797_v34 = vld [vmem:[#allocation2 + $0x18] sm:$0xff]  ;;  %8059 = vmatmul.msk.bf16.vlgmr.msra.gmra.mxu2 %vm516_vm0, %v770_v31  ;;  %v841_v37 = vpack.c.bf16 %v832_v35, %v831_v33  ;;  %619 = vst.msk [vmem:[#allocation2 + $0x3c] sm:$0xff] %vm516_vm0, %v611_v39  ;;  %v639_v43 = vld [vmem:[#allocation3 + $0x18] sm:$0xff] }
 0x1dd   :  { %v662_v36 = vpack.c.bf16 %v12797_v34, %v12793_v32  ;;  %634 = vst.msk [vmem:[#allocation3 + $0x38] sm:$0xff] %vm516_vm0, %v626_v40  ;;  %v761_v44 = vld [vmem:[#allocation3 + $0x14] sm:$0xff]  ;;  %v762_v45 = vld [vmem:[#allocation3 + $0x1c] sm:$0xff]  ;;  %v647_v47 = vpack.c.bf16 %v639_v43, %v638_v42 }
 0x1de   :  { %8068 = vmatmul.msk.bf16.gmra.mxu3 %vm516_vm0, %v841_v37  ;;  %635 = vst.msk [vmem:[#allocation3 + $0x40] sm:$0xff] %vm516_vm0, %v627_v41  ;;  %v654_v46 = vld [vmem:[#allocation2 + $0x20] sm:$0xff]  ;;  %v771_v51 = vpack.c.bf16 %v762_v45, %v761_v44  ;;  %v640_v54 = vld [vmem:[#allocation3 + $0x20] sm:$0xff]  ;;  %v1050_v11 = vpack.c.bf16 %v761_v44, %v12789_v30 }
 0x1df   :  { %8044 = vmatmul.msk.bf16.gmra.mxu0 %vm516_vm0, %v662_v36  ;;  %v655_v48 = vld [vmem:[#allocation2 + $0x28] sm:$0xff]  ;;  %v911_v12 = vpack.c.bf16 %v640_v54, %v639_v43  ;;  %v981_v13 = vpack.c.bf16 %v654_v46, %v12797_v34 }
 0x1e0   :  { %v833_v49 = vld [vmem:[#allocation2 + $0x24] sm:$0xff]  ;;  %v834_v50 = vld [vmem:[#allocation2 + $0x2c] sm:$0xff]  ;;  %v663_v52 = vpack.c.bf16 %v655_v48, %v654_v46 }
 0x1e1   :  { %v842_v53 = vpack.c.bf16 %v834_v50, %v833_v49  ;;  %v641_v55 = vld [vmem:[#allocation3 + $0x28] sm:$0xff]  ;;  %v642_v2 = vld [vmem:[#allocation3 + $0x30] sm:$0xff]  ;;  %v1201_v49 = vld [vmem:[%s13915_s19 + $0x60] sm:$0xff] }
 0x1e2   :  { %v763_v56 = vld [vmem:[#allocation3 + $0x24] sm:$0xff]  ;;  %v764_v57 = vld [vmem:[#allocation3 + $0x2c] sm:$0xff]  ;;  %v648_v59 = vpack.c.bf16 %v641_v55, %v640_v54  ;;  %v912_v15 = vpack.c.bf16 %v642_v2, %v641_v55 }
 0x1e3   :  { %v656_v58 = vld [vmem:[#allocation2 + $0x30] sm:$0xff]  ;;  %v657_v60 = vld [vmem:[#allocation2 + $0x38] sm:$0xff]  ;;  %v772_v63 = vpack.c.bf16 %v764_v57, %v763_v56  ;;  %v1051_v14 = vpack.c.bf16 %v763_v56, %v762_v45  ;;  %v976_v19 = vld [vmem:[#allocation2 + $0x40] sm:$0xff] }
 0x1e4   :  { %v835_v61 = vld [vmem:[#allocation2 + $0x34] sm:$0xff]  ;;  %v836_v62 = vld [vmem:[#allocation2 + $0x3c] sm:$0xff]  ;;  %v664_v0 = vpack.c.bf16 %v657_v60, %v656_v58  ;;  %v982_v8 = vpack.c.bf16 %v656_v58, %v655_v48  ;;  %v983_v21 = vpack.c.bf16 %v976_v19, %v657_v60  ;;  %v1202_v48 = vld [vmem:[%s13915_s19 + $0x68] sm:$0xff] }
 0x1e5   :  { %v843_v1 = vpack.c.bf16 %v836_v62, %v835_v61  ;;  %v643_v3 = vld [vmem:[#allocation3 + $0x38] sm:$0xff]  ;;  %v906_v16 = vld [vmem:[#allocation3 + $0x40] sm:$0xff]  ;;  %v1204_v45 = vld [vmem:[%s13915_s19 + $0x78] sm:$0xff] }
 0x1e6   :  { %v765_v4 = vld [vmem:[#allocation3 + $0x34] sm:$0xff]  ;;  %v766_v5 = vld [vmem:[#allocation3 + $0x3c] sm:$0xff]  ;;  %v649_v6 = vpack.c.bf16 %v643_v3, %v642_v2  ;;  %v913_v18 = vpack.c.bf16 %v906_v16, %v643_v3  ;;  %v1046_v20 = vld [vmem:[#allocation3 + $0x44] sm:$0xff]  ;;  %1205 = vmatpush.msrb.mxu3 %v1204_v45 }
 0x1e7   :  { %v773_v7 = vpack.c.bf16 %v766_v5, %v765_v4  ;;  %v1052_v17 = vpack.c.bf16 %v765_v4, %v764_v57  ;;  %v1053_v23 = vpack.c.bf16 %v1046_v20, %v766_v5  ;;  %v1203_v46 = vld [vmem:[%s13915_s19 + $0x70] sm:$0xff]  ;;  %v1198_v58 = vld [vmem:[%s13915_s19 + $0x48] sm:$0xff] }
 0x1e8   :  { %1206 = vmatpush.msrb.mxu3 %v1203_v46  ;;  %v1199_v55 = vld [vmem:[%s13915_s19 + $0x50] sm:$0xff]  ;;  %v1194_v5 = vld [vmem:[%s13915_s19 + $0x28] sm:$0xff] }
 0x1e9   :  { %v1195_v2 = vld [vmem:[%s13915_s19 + $0x30] sm:$0xff] }
 0x1ea   :  { %1207 = vmatpush.msrb.mxu3 %v1202_v48 }
 0x1eb   :  { %8052 = vmatmul.msk.bf16.gmra.mxu1 %vm516_vm0, %v647_v47 }
 0x1ec   :  { %8060 = vmatmul.msk.bf16.gmra.mxu2 %vm516_vm0, %v771_v51  ;;  %1208 = vmatpush.msrb.mxu3 %v1201_v49 }
 0x1ee   :  { %8069 = vmatmul.msk.bf16.gmra.mxu3 %vm516_vm0, %v842_v53 }
 0x1ef   :  { %8045 = vmatmul.msk.bf16.gmra.mxu0 %vm516_vm0, %v663_v52  ;;  %v1200_v52 = vld [vmem:[%s13915_s19 + $0x58] sm:$0xff] }
 0x1f0   :  { %1209 = vmatpush.msrb.mxu3 %v1200_v52 }
 0x1f2   :  { %1210 = vmatpush.msrb.mxu3 %v1199_v55 }
 0x1f4   :  { %1211 = vmatpush.msrb.mxu3 %v1198_v58 }
 0x1fb   :  { %8053 = vmatmul.msk.bf16.gmra.mxu1 %vm516_vm0, %v648_v59  ;;  %v1197_v59 = vld [vmem:[%s13915_s19 + $0x40] sm:$0xff] }
 0x1fc   :  { %8061 = vmatmul.msk.bf16.gmra.mxu2 %vm516_vm0, %v772_v63  ;;  %1212 = vmatpush.msrb.mxu3 %v1197_v59  ;;  %v1196_v63 = vld [vmem:[%s13915_s19 + $0x38] sm:$0xff] }
 0x1fe   :  { %8070 = vmatmul.msk.bf16.gmra.mxu3 %vm516_vm0, %v843_v1 }
 0x1ff   :  { %8046 = vmatmul.msk.bf16.gmra.mxu0 %vm516_vm0, %v664_v0  ;;  %1213 = vmatpush.msrb.mxu3 %v1196_v63 }
 0x201   :  { %1214 = vmatpush.msrb.mxu3 %v1195_v2 }
 0x203   :  { %1215 = vmatpush.msrb.mxu3 %v1194_v5 }
 0x20b   :  { %8054 = vmatmul.msk.bf16.gmra.mxu1 %vm516_vm0, %v649_v6 }
 0x20c   :  { %8062 = vmatmul.msk.bf16.gmra.mxu2 %vm516_vm0, %v773_v7 }
 0x20f   :  { %8075 = vmatmul.msk.bf16.vlgmr.msrb.gmra.mxu0 %vm516_vm0, %v910_v9  ;;  %v12885_v9 = vld [vmem:[%s13916_s23] ss:$0 sm:$0xff] }
 0x21b   :  { %8083 = vmatmul.msk.bf16.vlgmr.msrb.gmra.mxu1 %vm516_vm0, %v980_v10  ;;  %v1193_v10 = vld [vmem:[%s13915_s19 + $0x20] sm:$0xff] }
 0x21c   :  { %8091 = vmatmul.msk.bf16.vlgmr.msrb.gmra.mxu2 %vm516_vm0, %v1050_v11  ;;  %1216 = vmatpush.msrb.mxu3 %v1193_v10 }
 0x21e   :  { %v692_v22 = vpop.f32.mrf.mxu0 }
 0x21f   :  { %8076 = vmatmul.msk.bf16.gmra.mxu0 %vm516_vm0, %v911_v12 }
 0x225   :  { %v871_v42 = vpop.f32.mrf.mxu3 }
 0x226   :  { %v694_v24 = vpop.f32.mrf.mxu0 }
 0x22b   :  { %8084 = vmatmul.msk.bf16.gmra.mxu1 %vm516_vm0, %v981_v13 }
 0x22c   :  { %8092 = vmatmul.msk.bf16.gmra.mxu2 %vm516_vm0, %v1051_v14 }
 0x22d   :  { %v873_v53 = vpop.f32.mrf.mxu3 }
 0x22f   :  { %8077 = vmatmul.msk.bf16.gmra.mxu0 %vm516_vm0, %v912_v15  ;;  %v1192_v15 = vld [vmem:[%s13915_s19 + $0x18] sm:$0xff] }
 0x230   :  { %1217 = vmatpush.msrb.mxu3 %v1192_v15 }
 0x23b   :  { %8085 = vmatmul.msk.bf16.gmra.mxu1 %vm516_vm0, %v982_v8 }
 0x23c   :  { %8093 = vmatmul.msk.bf16.gmra.mxu2 %vm516_vm0, %v1052_v17 }
 0x23f   :  { %8078 = vmatmul.msk.bf16.gmra.mxu0 %vm516_vm0, %v913_v18  ;;  %v1191_v18 = vld [vmem:[%s13915_s19 + $0x10] sm:$0xff] }
 0x240   :  { %1218 = vmatpush.msrb.mxu3 %v1191_v18  ;;  %v1245_v18 = vld [vmem:[#allocation50 + $0x58] sm:$0xff] }
 0x24b   :  { %8086 = vmatmul.msk.bf16.gmra.mxu1 %vm516_vm0, %v983_v21  ;;  %v1190_v21 = vld [vmem:[%s13915_s19 + $0x8] sm:$0xff] }
 0x24c   :  { %8094 = vmatmul.msk.bf16.gmra.mxu2 %vm516_vm0, %v1053_v23  ;;  %1219 = vmatpush.msrb.mxu3 %v1190_v21 }
 0x258   :  { %v739_v25 = vpop.f32.mrf.mxu1 }
 0x259   :  { %v740_v54 = vadd.f32 %v739_v25, %v692_v22 }
 0x25c   :  { %v12839_v26 = vpop.f32.mrf.mxu0 }
 0x25f   :  { %v801_v27 = vpop.f32.mrf.mxu2 }
 0x260   :  { %v741_v28 = vpop.f32.mrf.mxu1  ;;  %v821_v57 = vadd.f32 %v801_v27, %v740_v54 }
 0x261   :  { %v742_v0 = vadd.f32 %v741_v28, %v694_v24  ;;  %v876_v3 = vpop.f32.mrf.mxu3  ;;  %v1189_v24 = vld [vmem:[%s13915_s19] sm:$0xff] }
 0x262   :  { %v891_v61 = vadd.f32 %v871_v42, %v821_v57  ;;  %1220 = vmatpush.msrb.mxu3 %v1189_v24 }
 0x264   :  { %v12841_v29 = vpop.f32.mrf.mxu0 }
 0x267   :  { %v803_v30 = vpop.f32.mrf.mxu2 }
 0x268   :  { %v744_v31 = vpop.f32.mrf.mxu1  ;;  %v822_v4 = vadd.f32 %v803_v30, %v742_v0 }
 0x269   :  { %v745_v8 = vadd.f32 %v744_v31, %v12839_v26  ;;  %v878_v22 = vpop.f32.mrf.mxu3 }
 0x26a   :  { %v892_v12 = vadd.f32 %v873_v53, %v822_v4 }
 0x26c   :  { %v12843_v32 = vpop.f32.mrf.mxu0 }
 0x26f   :  { %v12845_v33 = vpop.f32.mrf.mxu2 }
 0x270   :  { %v12847_v34 = vpop.f32.mrf.mxu1  ;;  %v823_v19 = vadd.f32 %v12845_v33, %v745_v8  ;;  %v1247_v8 = vld [vmem:[#allocation50 + $0x68] sm:$0xff] }
 0x271   :  { %v747_v31 = vadd.f32 %v12847_v34, %v12841_v29  ;;  %v881_v48 = vpop.f32.mrf.mxu3 }
 0x272   :  { %v893_v28 = vadd.f32 %v876_v3, %v823_v19 }
 0x274   :  { %v12849_v35 = vpop.f32.mrf.mxu0 }
 0x277   :  { %v12851_v36 = vpop.f32.mrf.mxu2 }
 0x278   :  { %v12853_v37 = vpop.f32.mrf.mxu1  ;;  %v824_v33 = vadd.f32 %v12851_v36, %v747_v31 }
 0x279   :  { %v750_v57 = vadd.f32 %v12853_v37, %v12843_v32  ;;  %v883_v4 = vpop.f32.mrf.mxu3 }
 0x27a   :  { %v894_v52 = vadd.f32 %v878_v22, %v824_v33  ;;  %v1244_v22 = vld [vmem:[#allocation50 + $0x50] sm:$0xff] }
 0x27c   :  { %v12855_v38 = vpop.f32.mrf.mxu0 }
 0x27f   :  { %v12857_v39 = vpop.f32.mrf.mxu2 }
 0x280   :  { %v12859_v40 = vpop.f32.mrf.mxu1  ;;  %v825_v58 = vadd.f32 %v12857_v39, %v750_v57  ;;  %v1239_v57 = vld [vmem:[#allocation50 + $0x28] sm:$0xff] }
 0x281   :  { %v752_v32 = vadd.f32 %v12859_v40, %v12849_v35 }
 0x284   :  { %v12861_v41 = vpop.f32.mrf.mxu0 }
 0x287   :  { %v12863_v43 = vpop.f32.mrf.mxu2 }
 0x288   :  { %v12865_v44 = vpop.f32.mrf.mxu1 }
 0x28c   :  { %v941_v47 = vpop.f32.mrf.mxu0 }
 0x28d   :  { %v961_v1 = vadd.f32 %v941_v47, %v891_v61 }
 0x28f   :  { %v12871_v50 = vpop.f32.mrf.mxu2 }
 0x290   :  { %v12873_v51 = vpop.f32.mrf.mxu1 }
 0x294   :  { %v943_v56 = vpop.f32.mrf.mxu0 }
 0x295   :  { %v962_v17 = vadd.f32 %v943_v56, %v892_v12  ;;  %v1248_v12 = vld [vmem:[#allocation50 + $0x70] sm:$0xff] }
 0x297   :  { %v12879_v60 = vpop.f32.mrf.mxu2 }
 0x298   :  { %v1011_v62 = vpop.f32.mrf.mxu1 }
 0x299   :  { %v1031_v7 = vadd.f32 %v1011_v62, %v961_v1  ;;  %v895_v1 = vadd.f32 %v881_v48, %v825_v58 }
 0x29c   :  { %v946_v6 = vpop.f32.mrf.mxu0 }
 0x29d   :  { %v963_v45 = vadd.f32 %v946_v6, %v893_v28  ;;  %v1249_v6 = vld [vmem:[#allocation50 + $0x78] sm:$0xff]  ;;  %v1243_v28 = vld [vmem:[#allocation50 + $0x48] sm:$0xff] }
 0x29e   :  { %1250 = vmatpush.msra.mxu3 %v1249_v6 }
 0x29f   :  { %v1081_v11 = vpop.f32.mrf.mxu2 }
 0x2a0   :  { %v1101_v13 = vadd.f32 %v1081_v11, %v1031_v7  ;;  %v1013_v14 = vpop.f32.mrf.mxu1  ;;  %v826_v7 = vadd.f32 %v12863_v43, %v752_v32  ;;  %1251 = vmatpush.msra.mxu3 %v1248_v12  ;;  %v755_v43 = vadd.f32 %v12865_v44, %v12855_v38 }
 0x2a1   :  { %v1032_v23 = vadd.f32 %v1013_v14, %v962_v17 }
 0x2a2   :  { %v1113_v16 = vadd.f32 %v12885_v9, %v1101_v13  ;;  %1252 = vmatpush.msra.mxu3 %v1247_v8  ;;  %v896_v35 = vadd.f32 %v883_v4, %v826_v7  ;;  %v827_v24 = vadd.f32 %v12871_v50, %v755_v43  ;;  %v1241_v50 = vld [vmem:[#allocation50 + $0x38] sm:$0xff]  ;;  %v1235_v4 = vld [vmem:[#allocation50 + $0x8] sm:$0xff] }
 0x2a4   :  { %v1121_v20 = vmax.f32 %v1113_v16, 0.0  ;;  %v948_v27 = vpop.f32.mrf.mxu0  ;;  %v1246_v16 = vld [vmem:[#allocation50 + $0x60] sm:$0xff] }
 0x2a5   :  { %v964_v34 = vadd.f32 %v948_v27, %v894_v52  ;;  %1253 = vmatpush.msra.mxu3 %v1246_v16  ;;  %v1240_v52 = vld [vmem:[#allocation50 + $0x30] sm:$0xff] }
 0x2a6   :  { %1129 = vst [vmem:[#allocation4 + $0x4] sm:$0xff] %v1121_v20 }
 0x2a7   :  { %v1083_v25 = vpop.f32.mrf.mxu2  ;;  %1254 = vmatpush.msra.mxu3 %v1245_v18 }
 0x2a8   :  { %v1102_v30 = vadd.f32 %v1083_v25, %v1032_v23  ;;  %v1016_v26 = vpop.f32.mrf.mxu1  ;;  %v886_v23 = vpop.f32.mrf.mxu3 }
 0x2a9   :  { %v1033_v47 = vadd.f32 %v1016_v26, %v963_v45  ;;  %1255 = vmatpush.msra.mxu3 %v1244_v22  ;;  %v897_v38 = vadd.f32 %v886_v23, %v827_v24  ;;  %v10933_v22 = vld [vmem:[%s13917_s9 + $0x38] sm:$0xff]  ;;  %v10948_v24 = vld [vmem:[%s13917_s9 + $0xb0] sm:$0xff] }
 0x2aa   :  { %v1114_v42 = vadd.f32 %v12885_v9, %v1102_v30  ;;  %v10957_v23 = vld [vmem:[%s13918_s21 + $0x38] sm:$0xff]  ;;  %1451 = vmatpush.bf16.msra.mxu1 %v10933_v22  ;;  %v10981_v22 = vld [vmem:[#allocation24 + $0xb8] sm:$0xff] }
 0x2ab   :  { %1256 = vmatpush.msra.mxu3 %v1243_v28  ;;  %v10939_v28 = vld [vmem:[%s13917_s9 + $0x68] sm:$0xff] }
 0x2ac   :  { %v1122_v46 = vmax.f32 %v1114_v42, 0.0  ;;  %v951_v55 = vpop.f32.mrf.mxu0 }
 0x2ad   :  { %v1137_v56 = vld [vmem:[#allocation4] sm:$0xff]  ;;  %v965_v5 = vadd.f32 %v951_v55, %v895_v1  ;;  %v1236_v1 = vld [vmem:[#allocation50 + $0x10] sm:$0xff] }
 0x2ae   :  { %1130 = vst [vmem:[#allocation4 + $0xc] sm:$0xff] %v1122_v46  ;;  %v1153_v36 = vmax.f32 %v1137_v56, %v1121_v20 }
 0x2af   :  { %v1086_v49 = vpop.f32.mrf.mxu2 }
 0x2b0   :  { %v1103_v53 = vadd.f32 %v1086_v49, %v1033_v47  ;;  %v1018_v54 = vpop.f32.mrf.mxu1  ;;  %v757_v47 = vadd.f32 %v12873_v51, %v12861_v41 }
 0x2b1   :  { %v1034_v62 = vadd.f32 %v1018_v54, %v964_v34 }
 0x2b2   :  { %v1115_v29 = vadd.f32 %v12885_v9, %v1103_v53  ;;  %v828_v54 = vadd.f32 %v12879_v60, %v757_v47  ;;  %v10930_v47 = vld [vmem:[%s13917_s9 + $0x20] sm:$0xff] }
 0x2b4   :  { %v1123_v59 = vmax.f32 %v1115_v29, 0.0  ;;  %v953_v39 = vpop.f32.mrf.mxu0  ;;  %v888_v29 = vpop.f32.mrf.mxu3 }
 0x2b5   :  { %v1138_v61 = vld [vmem:[#allocation4 + $0x8] sm:$0xff]  ;;  %v966_v21 = vadd.f32 %v953_v39, %v896_v35  ;;  %v898_v51 = vadd.f32 %v888_v29, %v828_v54  ;;  %v10935_v54 = vld [vmem:[%s13917_s9 + $0x48] sm:$0xff] }
 0x2b6   :  { %1131 = vst [vmem:[#allocation4 + $0x14] sm:$0xff] %v1123_v59  ;;  %v1169_v63 = vmax.f32 %v1153_v36, %v1138_v61  ;;  %v1154_v11 = vmax.f32 %v1138_v61, %v1122_v46  ;;  %v1242_v46 = vld [vmem:[#allocation50 + $0x40] sm:$0xff] }
 0x2b7   :  { %v1088_v0 = vpop.f32.mrf.mxu2  ;;  %1257 = vmatpush.msra.mxu3 %v1242_v46  ;;  %v1238_v36 = vld [vmem:[#allocation50 + $0x20] sm:$0xff]  ;;  %v10953_v46 = vld [vmem:[%s13918_s21 + $0x18] sm:$0xff] }
 0x2b8   :  { %v1104_v2 = vadd.f32 %v1088_v0, %v1034_v62  ;;  %v1021_v3 = vpop.f32.mrf.mxu1  ;;  %1177 = vst [vmem:[#allocation5 + $0x4] sm:$0xf] %v1169_v63  ;;  %v1237_v0 = vld [vmem:[#allocation50 + $0x18] sm:$0xff]  ;;  %v1234_v39 = vld [vmem:[#allocation50] sm:$0xff] }
 0x2b9   :  { %v1035_v14 = vadd.f32 %v1021_v3, %v965_v5  ;;  %1258 = vmatpush.msra.mxu3 %v1241_v50  ;;  %v10934_v29 = vld [vmem:[%s13917_s9 + $0x40] sm:$0xff] }
 0x2ba   :  { %v1116_v37 = vadd.f32 %v12885_v9, %v1104_v2 }
 0x2bb   :  { %1259 = vmatpush.msra.mxu3 %v1240_v52  ;;  %v10946_v52 = vld [vmem:[%s13917_s9 + $0xa0] sm:$0xff] }
 0x2bc   :  { %v1124_v10 = vmax.f32 %v1116_v37, 0.0  ;;  %v956_v30 = vpop.f32.mrf.mxu0 }
 0x2bd   :  { %v1162_v13 = vld [vmem:[#allocation4 + $0x10] sm:$0xff]  ;;  %v967_v49 = vadd.f32 %v956_v30, %v897_v38  ;;  %1260 = vmatpush.msra.mxu3 %v1239_v57  ;;  %v10928_v57 = vld [vmem:[%s13917_s9 + $0x10] sm:$0xff] }
 0x2be   :  { %1132 = vst [vmem:[#allocation4 + $0x1c] sm:$0xff] %v1124_v10  ;;  %v1170_v15 = vmax.f32 %v1154_v11, %v1162_v13  ;;  %v1155_v27 = vmax.f32 %v1162_v13, %v1123_v59  ;;  %v10955_v30 = vld [vmem:[%s13918_s21 + $0x28] sm:$0xff] }
 0x2bf   :  { %v1091_v17 = vpop.f32.mrf.mxu2  ;;  %1261 = vmatpush.msra.mxu3 %v1238_v36  ;;  %v10931_v38 = vld [vmem:[%s13917_s9 + $0x28] sm:$0xff] }
 0x2c0   :  { %v1105_v40 = vadd.f32 %v1091_v17, %v1035_v14  ;;  %1178 = vst [vmem:[#allocation5 + $0x8] sm:$0xf] %v1170_v15  ;;  %v1023_v19 = vpop.f32.mrf.mxu1 }
 0x2c1   :  { %v1036_v31 = vadd.f32 %v1023_v19, %v966_v21  ;;  %1262 = vmatpush.msra.mxu3 %v1237_v0  ;;  %v10941_v21 = vld [vmem:[%s13917_s9 + $0x78] sm:$0xff] }
 0x2c2   :  { %v1117_v20 = vadd.f32 %v12885_v9, %v1105_v40  ;;  %1384 = vmatpush.bf16.msra.mxu0 %v10941_v21  ;;  %v10963_v21 = vld [vmem:[#allocation24 + $0x28] sm:$0xff] }
 0x2c3   :  { %1263 = vmatpush.msra.mxu3 %v1236_v1 }
 0x2c4   :  { %v1125_v25 = vmax.f32 %v1117_v20, 0.0  ;;  %v958_v41 = vpop.f32.mrf.mxu0  ;;  %v10949_v20 = vld [vmem:[%s13917_s9 + $0xb8] sm:$0xff] }
 0x2c5   :  { %v1140_v26 = vld [vmem:[#allocation4 + $0x18] sm:$0xff]  ;;  %v968_v60 = vadd.f32 %v958_v41, %v898_v51  ;;  %1264 = vmatpush.msra.mxu3 %v1235_v4  ;;  %1541 = vmatpush.bf16.msra.mxu2 %v10949_v20  ;;  %v10943_v51 = vld [vmem:[%s13917_s9 + $0x88] sm:$0xff] }
 0x2c6   :  { %1133 = vst [vmem:[#allocation4 + $0x24] sm:$0xff] %v1125_v25  ;;  %v1171_v42 = vmax.f32 %v1155_v27, %v1140_v26  ;;  %v1156_v56 = vmax.f32 %v1140_v26, %v1124_v10  ;;  %v10956_v27 = vld [vmem:[%s13918_s21 + $0x30] sm:$0xff] }
 0x2c7   :  { %v1093_v45 = vpop.f32.mrf.mxu2  ;;  %v12911_v33 = vld [vmem:[#allocation5 + $0x4] sm:$0xff]  ;;  %1265 = vmatpush.msra.mxu3 %v1234_v39  ;;  %v10932_v26 = vld [vmem:[%s13917_s9 + $0x30] sm:$0xff] }
 0x2c8   :  { %v1106_v44 = vadd.f32 %v1093_v45, %v1036_v31  ;;  %1221 = vmatmul.f32.vlgmr.msrb.gmra.mxu3 %v12911_v33  ;;  %1179 = vst [vmem:[#allocation5 + $0xc] sm:$0xf] %v1171_v42  ;;  %v1026_v53 = vpop.f32.mrf.mxu1  ;;  %v10947_v31 = vld [vmem:[%s13917_s9 + $0xa8] sm:$0xff]  ;;  %1452 = vmatpush.bf16.msra.mxu1 %v10932_v26  ;;  %v10938_v42 = vld [vmem:[%s13917_s9 + $0x60] sm:$0xff]  ;;  %v10944_v41 = vld [vmem:[%s13917_s9 + $0x90] sm:$0xff] }
 0x2c9   :  { %v1037_v58 = vadd.f32 %v1026_v53, %v967_v49  ;;  %1654 = vmatpush.bf16.msrb.mxu3 %v10957_v23  ;;  %1542 = vmatpush.bf16.msra.mxu2 %v10948_v24  ;;  %v10954_v45 = vld [vmem:[%s13918_s21 + $0x20] sm:$0xff]  ;;  %v10952_v49 = vld [vmem:[%s13918_s21 + $0x10] sm:$0xff]  ;;  %v10929_v53 = vld [vmem:[%s13917_s9 + $0x18] sm:$0xff] }
 0x2ca   :  { %v1118_v48 = vadd.f32 %v12885_v9, %v1106_v44  ;;  %v10937_v44 = vld [vmem:[%s13917_s9 + $0x58] sm:$0xff]  ;;  %v10970_v20 = vld [vmem:[#allocation24 + $0x60] sm:$0xff]  ;;  %v10969_v23 = vld [vmem:[#allocation24 + $0x58] sm:$0xff] }
 0x2cb   :  { %v10962_v24 = vld [vmem:[#allocation24 + $0x20] sm:$0xff]  ;;  %v10967_v26 = vld [vmem:[#allocation24 + $0x48] sm:$0xff] }
 0x2cc   :  { %v1126_v55 = vmax.f32 %v1118_v48, 0.0  ;;  %1453 = vmatpush.bf16.msra.mxu1 %v10931_v38  ;;  %v10936_v48 = vld [vmem:[%s13917_s9 + $0x50] sm:$0xff] }
 0x2cd   :  { %v1164_v34 = vld [vmem:[#allocation4 + $0x20] sm:$0xff]  ;;  %1655 = vmatpush.bf16.msrb.mxu3 %v10956_v27  ;;  %1543 = vmatpush.bf16.msra.mxu2 %v10947_v31 }
 0x2ce   :  { %1134 = vst [vmem:[#allocation4 + $0x2c] sm:$0xff] %v1126_v55  ;;  %v1172_v59 = vmax.f32 %v1156_v56, %v1164_v34  ;;  %v1157_v3 = vmax.f32 %v1164_v34, %v1125_v25  ;;  %v10940_v25 = vld [vmem:[%s13917_s9 + $0x70] sm:$0xff]  ;;  %v10950_v34 = vld [vmem:[%s13918_s21] sm:$0xff] }
 0x2cf   :  { %v1096_v61 = vpop.f32.mrf.mxu2  ;;  %1385 = vmatpush.bf16.msra.mxu0 %v10940_v25  ;;  %v10980_v25 = vld [vmem:[#allocation24 + $0xb0] sm:$0xff]  ;;  %v10959_v38 = vld [vmem:[#allocation24 + $0x8] sm:$0xff] }
 0x2d0   :  { %v1107_v62 = vadd.f32 %v1096_v61, %v1037_v58  ;;  %1180 = vst [vmem:[#allocation5 + $0x10] sm:$0xf] %v1172_v59  ;;  %v1028_v32 = vpop.f32.mrf.mxu1  ;;  %1454 = vmatpush.bf16.msra.mxu1 %v10930_v47  ;;  %v10945_v58 = vld [vmem:[%s13917_s9 + $0x98] sm:$0xff]  ;;  %v10927_v59 = vld [vmem:[%s13917_s9 + $0x8] sm:$0xff]  ;;  %v10926_v61 = vld [vmem:[%s13917_s9] sm:$0xff] }
 0x2d1   :  { %v1038_v5 = vadd.f32 %v1028_v32, %v968_v60  ;;  %1656 = vmatpush.bf16.msrb.mxu3 %v10955_v30  ;;  %1544 = vmatpush.bf16.msra.mxu2 %v10946_v52  ;;  %v10968_v27 = vld [vmem:[#allocation24 + $0x50] sm:$0xff]  ;;  %v10979_v30 = vld [vmem:[#allocation24 + $0xa8] sm:$0xff]  ;;  %v10974_v52 = vld [vmem:[#allocation24 + $0x80] sm:$0xff] }
 0x2d2   :  { %v1119_v63 = vadd.f32 %v12885_v9, %v1107_v62  ;;  %v10960_v31 = vld [vmem:[#allocation24 + $0x10] sm:$0xff] }
 0x2d3   :  { %1386 = vmatpush.bf16.msra.mxu0 %v10939_v28  ;;  %v10961_v28 = vld [vmem:[#allocation24 + $0x18] sm:$0xff] }
 0x2d4   :  { %v1127_v2 = vmax.f32 %v1119_v63, 0.0  ;;  %1455 = vmatpush.bf16.msra.mxu1 %v10929_v53  ;;  %v10942_v63 = vld [vmem:[%s13917_s9 + $0x80] sm:$0xff] }
 0x2d5   :  { %v1142_v37 = vld [vmem:[#allocation4 + $0x28] sm:$0xff]  ;;  %1657 = vmatpush.bf16.msrb.mxu3 %v10954_v45  ;;  %1545 = vmatpush.bf16.msra.mxu2 %v10945_v58  ;;  %v10966_v45 = vld [vmem:[#allocation24 + $0x40] sm:$0xff] }
 0x2d6   :  { %1135 = vst [vmem:[#allocation4 + $0x34] sm:$0xff] %v1127_v2  ;;  %v1173_v6 = vmax.f32 %v1157_v3, %v1142_v37  ;;  %v1158_v14 = vmax.f32 %v1142_v37, %v1126_v55  ;;  %v10951_v55 = vld [vmem:[%s13918_s21 + $0x8] sm:$0xff] }
 0x2d7   :  { %v1098_v7 = vpop.f32.mrf.mxu2  ;;  %v12919_v10 = vld [vmem:[#allocation5 + $0xc] sm:$0xff]  ;;  %1387 = vmatpush.bf16.msra.mxu0 %v10938_v42 }
 0x2d8   :  { %v1108_v11 = vadd.f32 %v1098_v7, %v1038_v5  ;;  %1224 = vmatmul.f32.gmra.mxu3 %v12919_v10  ;;  %1181 = vst [vmem:[#allocation5 + $0x14] sm:$0xf] %v1173_v6  ;;  %1456 = vmatpush.bf16.msra.mxu1 %v10928_v57  ;;  %v10978_v42 = vld [vmem:[#allocation24 + $0xa0] sm:$0xff] }
 0x2d9   :  { %1658 = vmatpush.bf16.msrb.mxu3 %v10953_v46  ;;  %1546 = vmatpush.bf16.msra.mxu2 %v10944_v41  ;;  %v10958_v46 = vld [vmem:[#allocation24] sm:$0xff] }
 0x2da   :  { %v1120_v12 = vadd.f32 %v12885_v9, %v1108_v11 }
 0x2db   :  { %1388 = vmatpush.bf16.msra.mxu0 %v10937_v44  ;;  %v10977_v44 = vld [vmem:[#allocation24 + $0x98] sm:$0xff] }
 0x2dc   :  { %v1128_v13 = vmax.f32 %v1120_v12, 0.0  ;;  %1457 = vmatpush.bf16.msra.mxu1 %v10927_v59 }
 0x2dd   :  { %v1166_v15 = vld [vmem:[#allocation4 + $0x30] sm:$0xff]  ;;  %1659 = vmatpush.bf16.msrb.mxu3 %v10952_v49  ;;  %1547 = vmatpush.bf16.msra.mxu2 %v10943_v51  ;;  %v10975_v49 = vld [vmem:[#allocation24 + $0x88] sm:$0xff] }
 0x2de   :  { %1136 = vst [vmem:[#allocation4 + $0x3c] sm:$0xff] %v1128_v13  ;;  %v1174_v8 = vmax.f32 %v1158_v14, %v1166_v15  ;;  %v1159_v16 = vmax.f32 %v1166_v15, %v1127_v2 }
 0x2df   :  { %1389 = vmatpush.bf16.msra.mxu0 %v10936_v48 }
 0x2e0   :  { %1182 = vst [vmem:[#allocation5 + $0x18] sm:$0xf] %v1174_v8  ;;  %1458 = vmatpush.bf16.msra.mxu1 %v10926_v61 }
 0x2e1   :  { %1660 = vmatpush.bf16.msrb.mxu3 %v10951_v55  ;;  %1548 = vmatpush.bf16.msra.mxu2 %v10942_v63 }
 0x2e3   :  { %1390 = vmatpush.bf16.msra.mxu0 %v10935_v54  ;;  %v11648_v54 = vld [vmem:[#allocation21] ss:$0 sm:$0xff] }
 0x2e5   :  { %v1144_v17 = vld [vmem:[#allocation4 + $0x38] sm:$0xff]  ;;  %v1168_v19 = vld [vmem:[#allocation4 + $0x40] sm:$0xff]  ;;  %1661 = vmatpush.bf16.msrb.mxu3 %v10950_v34  ;;  %1923 = vmatpush.bf16.msrb.mxu2 %v10981_v22  ;;  %v10995_v22 = vld [vmem:[%s13919_s2 + $0x64] sm:$0xf0] }
 0x2e6   :  { %v1160_v35 = vmax.f32 %v1144_v17, %v1128_v13  ;;  %v1175_v40 = vmax.f32 %v1159_v16, %v1144_v17 }
 0x2e7   :  { %v12923_v18 = vld [vmem:[#allocation5 + $0x14] sm:$0xff]  ;;  %1391 = vmatpush.bf16.msra.mxu0 %v10934_v29 }
 0x2e8   :  { %1227 = vmatmul.f32.gmra.mxu3 %v12923_v18  ;;  %v1176_v9 = vmax.f32 %v1160_v35, %v1168_v19  ;;  %1183 = vst [vmem:[#allocation5 + $0x1c] sm:$0xf] %v1175_v40  ;;  %v10973_v40 = vld [vmem:[#allocation24 + $0x78] sm:$0xff] }
 0x2e9   :  { %v10965_v19 = vld [vmem:[#allocation24 + $0x38] sm:$0xff]  ;;  %1924 = vmatpush.bf16.msrb.mxu2 %v10980_v25  ;;  %v8483_v25 = vld [vmem:[%s13919_s2 + $0x68] sm:$0xf0] }
 0x2ea   :  { %1184 = vst [vmem:[#allocation5 + $0x20] sm:$0xf] %v1176_v9  ;;  %v10971_v9 = vld [vmem:[#allocation24 + $0x68] sm:$0xff]  ;;  %1833 = vmatpush.bf16.msrb.mxu1 %v10965_v19 }
 0x2eb   :  { %1766 = vmatpush.bf16.msrb.mxu0 %v10973_v40  ;;  %v8489_v40 = vld [vmem:[%s13919_s2 + $0x70] sm:$0xf]  ;;  %v10996_v19 = vld [vmem:[%s13919_s2 + $0x74] sm:$0xf] }
 0x2ed   :  { %1925 = vmatpush.bf16.msrb.mxu2 %v10979_v30  ;;  %v11013_v30 = vld [vmem:[%s13919_s2 + $0xf4] sm:$0xf0] }
 0x2f1   :  { %v12926_v43 = vld [vmem:[#allocation5 + $0x1c] sm:$0xff]  ;;  %1926 = vmatpush.bf16.msrb.mxu2 %v10978_v42 }
 0x2f2   :  { %1230 = vmatmul.f32.gmra.mxu3 %v12926_v43  ;;  %v8427_v42 = vld [vmem:[%s13919_s2 + $0xf8] sm:$0xf0] }
 0x2f5   :  { %1927 = vmatpush.bf16.msrb.mxu2 %v10977_v44 }
 0x2fa   :  { %1266 = vmatmul.f32.vlgmr.msra.gmra.mxu3 %v12911_v33 }
 0x302   :  { %1269 = vmatmul.f32.gmra.mxu3 %v12919_v10 }
 0x30a   :  { %1272 = vmatmul.f32.gmra.mxu3 %v12923_v18 }
 0x312   :  { %1275 = vmatmul.f32.gmra.mxu3 %v12926_v43 }
 0x34b   :  { %v1222_v50 = vpop.f32.mrf.mxu3 }
 0x35b   :  { %v1225_v56 = vpop.f32.mrf.mxu3 }
 0x36b   :  { %v1228_v36 = vpop.f32.mrf.mxu3 }
 0x375   :  { %v1231_v62 = vpop.f32.mrf.mxu3 }
 0x37d   :  { %v1267_v60 = vpop.f32.mrf.mxu3 }
 0x37e   :  { %v1279_v0 = vmax.f32 %v1222_v50, %v1267_v60  ;;  %v10976_v50 = vld [vmem:[#allocation24 + $0x90] sm:$0xff] }
 0x37f   :  { %1928 = vmatpush.bf16.msrb.mxu2 %v10976_v50  ;;  %v10992_v50 = vld [vmem:[%s13919_s2 + $0x54] sm:$0xf] }
 0x380   :  { %v1283_v1 = vmax.f32 %v12911_v33, %v1279_v0 }
 0x382   :  { %1287 = vst [vmem:[#allocation5 + $0x4] sm:$0xff] %v1283_v1 }
 0x383   :  { %1929 = vmatpush.bf16.msrb.mxu2 %v10975_v49  ;;  %v8417_v49 = vld [vmem:[%s13919_s2 + $0xe0] sm:$0xf] }
 0x385   :  { %v1270_v2 = vpop.f32.mrf.mxu3 }
 0x386   :  { %v1280_v3 = vmax.f32 %v1225_v56, %v1270_v2 }
 0x387   :  { %1930 = vmatpush.bf16.msrb.mxu2 %v10974_v52  ;;  %v11011_v52 = vld [vmem:[%s13919_s2 + $0xe4] sm:$0xf0] }
 0x388   :  { %v1284_v4 = vmax.f32 %v12919_v10, %v1280_v3 }
 0x389   :  { %v1291_v39 = vld [vmem:[#allocation5] sm:$0xff] }
 0x38a   :  { %1288 = vst [vmem:[#allocation5 + $0xc] sm:$0xff] %v1284_v4  ;;  %v1334_v32 = vpack.c.bf16 %v1284_v4, %v1283_v1 }
 0x38c   :  { %1392 = vmatmul.bf16.vlgmr.msra.gmra.mxu0 %v1334_v32  ;;  %1662 = vmatmul.bf16.vlgmr.msrb.gmra.mxu3 %v1334_v32 }
 0x38d   :  { %v1273_v37 = vpop.f32.mrf.mxu3 }
 0x38e   :  { %v1281_v5 = vmax.f32 %v1228_v36, %v1273_v37 }
 0x390   :  { %v1285_v6 = vmax.f32 %v12923_v18, %v1281_v5  ;;  %v10972_v18 = vld [vmem:[#allocation24 + $0x70] sm:$0xff] }
 0x391   :  { %v1292_v7 = vld [vmem:[#allocation5 + $0x8] sm:$0xff]  ;;  %1767 = vmatpush.bf16.msrb.mxu0 %v10972_v18  ;;  %v10997_v18 = vld [vmem:[%s13919_s2 + $0x74] sm:$0xf0] }
 0x392   :  { %1289 = vst [vmem:[#allocation5 + $0x14] sm:$0xff] %v1285_v6  ;;  %v1311_v11 = vpack.c.bf16 %v1292_v7, %v1291_v39 }
 0x394   :  { %1459 = vmatmul.bf16.vlgmr.msra.gmra.mxu1 %v1311_v11 }
 0x395   :  { %v1276_v12 = vpop.f32.mrf.mxu3  ;;  %1768 = vmatpush.bf16.msrb.mxu0 %v10971_v9  ;;  %v8490_v9 = vor.u32 %v10997_v18, %v8489_v40 }
 0x396   :  { %v1282_v33 = vmax.f32 %v1231_v62, %v1276_v12 }
 0x398   :  { %v1286_v13 = vmax.f32 %v12926_v43, %v1282_v33  ;;  %v10964_v43 = vld [vmem:[#allocation24 + $0x30] sm:$0xff] }
 0x399   :  { %v1471_v14 = vld [vmem:[#allocation5 + $0x10] sm:$0xff]  ;;  %1834 = vmatpush.bf16.msrb.mxu1 %v10964_v43  ;;  %1769 = vmatpush.bf16.msrb.mxu0 %v10970_v20  ;;  %v8491_v43 = vld [vmem:[%s13919_s2 + $0x78] sm:$0xf0] }
 0x39a   :  { %1290 = vst [vmem:[#allocation5 + $0x1c] sm:$0xff] %v1286_v13  ;;  %v1491_v10 = vpack.c.bf16 %v1471_v14, %v1292_v7  ;;  %v1335_v15 = vpack.c.bf16 %v1286_v13, %v1285_v6  ;;  %v8494_v20 = vor.u32 %v10996_v19, %v8491_v43  ;;  %v8395_v19 = vld [vmem:[%s13919_s2 + $0xb8] sm:$0xf0]  ;;  %v10985_v43 = vld [vmem:[%s13919_s2 + $0x14] sm:$0xf0] }
 0x39c   :  { %1549 = vmatmul.bf16.vlgmr.msra.gmra.mxu2 %v1491_v10  ;;  %1397 = vmatmul.bf16.gmra.mxu0 %v1335_v15 }
 0x39d   :  { %1667 = vmatmul.bf16.gmra.mxu3 %v1335_v15  ;;  %1835 = vmatpush.bf16.msrb.mxu1 %v10963_v21  ;;  %v8481_v21 = vld [vmem:[%s13919_s2 + $0x60] sm:$0xf] }
 0x39e   :  { %1770 = vmatpush.bf16.msrb.mxu0 %v10969_v23  ;;  %2225 = vmatpush.bf16.msra.mxu2 %v8494_v20  ;;  %v8482_v23 = vor.u32 %v10995_v22, %v8481_v21  ;;  %v10984_v22 = vld [vmem:[%s13919_s2 + $0x14] sm:$0xf] }
 0x3a1   :  { %v1294_v8 = vld [vmem:[#allocation5 + $0x18] sm:$0xff]  ;;  %v1473_v17 = vld [vmem:[#allocation5 + $0x20] sm:$0xff]  ;;  %1836 = vmatpush.bf16.msrb.mxu1 %v10962_v24 }
 0x3a2   :  { %v1312_v16 = vpack.c.bf16 %v1294_v8, %v1471_v14  ;;  %v1492_v35 = vpack.c.bf16 %v1473_v17, %v1294_v8  ;;  %1771 = vmatpush.bf16.msrb.mxu0 %v10968_v27  ;;  %v10994_v24 = vld [vmem:[%s13919_s2 + $0x64] sm:$0xf] }
 0x3a3   :  { %v8486_v27 = vor.u32 %v10994_v24, %v8483_v25 }
 0x3a4   :  { %1464 = vmatmul.bf16.gmra.mxu1 %v1312_v16 }
 0x3a5   :  { %1837 = vmatpush.bf16.msrb.mxu1 %v10961_v28  ;;  %2226 = vmatpush.bf16.msra.mxu2 %v8486_v27  ;;  %v8425_v28 = vld [vmem:[%s13919_s2 + $0xf0] sm:$0xf]  ;;  %v8385_v27 = vld [vmem:[%s13919_s2 + $0xa0] sm:$0xf] }
 0x3a6   :  { %1772 = vmatpush.bf16.msrb.mxu0 %v10967_v26  ;;  %v11012_v26 = vld [vmem:[%s13919_s2 + $0xf4] sm:$0xf] }
 0x3a7   :  { %v8430_v44 = vor.u32 %v11012_v26, %v8427_v42  ;;  %v8387_v42 = vld [vmem:[%s13919_s2 + $0xa8] sm:$0xf0] }
 0x3a9   :  { %1838 = vmatpush.bf16.msrb.mxu1 %v10960_v31  ;;  %v8426_v31 = vor.u32 %v11013_v30, %v8425_v28  ;;  %v11003_v28 = vld [vmem:[%s13919_s2 + $0xa4] sm:$0xf0]  ;;  %v11002_v30 = vld [vmem:[%s13919_s2 + $0xa4] sm:$0xf] }
 0x3aa   :  { %1773 = vmatpush.bf16.msrb.mxu0 %v10966_v45  ;;  %v8473_v45 = vld [vmem:[%s13919_s2 + $0x50] sm:$0xf] }
 0x3ab   :  { %2103 = vmatpush.bf16.msra.mxu3 %v8426_v31  ;;  %v8386_v31 = vor.u32 %v11003_v28, %v8385_v27  ;;  %v8563_v27 = vld [vmem:[%s13919_s2 + $0x168] sm:$0xf0]  ;;  %v8609_v28 = vld [vmem:[%s13920_s7 + $0x40] sm:$0xf] }
 0x3ac   :  { %1554 = vmatmul.bf16.gmra.mxu2 %v1492_v35 }
 0x3ad   :  { %1839 = vmatpush.bf16.msrb.mxu1 %v10959_v38  ;;  %v10993_v38 = vld [vmem:[%s13919_s2 + $0x54] sm:$0xf0] }
 0x3ae   :  { %2117 = vmatpush.bf16.msra.mxu0 %v8430_v44  ;;  %v8390_v44 = vor.u32 %v11002_v30, %v8387_v42  ;;  %v11039_v30 = vld [vmem:[%s13920_s7 + $0x44] sm:$0xf0] }
 0x3b1   :  { %1840 = vmatpush.bf16.msrb.mxu1 %v10958_v46  ;;  %v8474_v46 = vor.u32 %v10993_v38, %v8473_v45  ;;  %v8433_v45 = vld [vmem:[%s13919_s2] sm:$0xf]  ;;  %v10983_v38 = vld [vmem:[%s13919_s2 + $0x4] sm:$0xf0] }
 0x3b5   :  { %2211 = vmatpush.bf16.msra.mxu1 %v8490_v9  ;;  %v8441_v9 = vld [vmem:[%s13919_s2 + $0x10] sm:$0xf] }
 0x3b6   :  { %v8442_v21 = vor.u32 %v10985_v43, %v8441_v9  ;;  %v8619_v9 = vld [vmem:[%s13920_s7 + $0x58] sm:$0xf0] }
 0x3b9   :  { %2212 = vmatpush.bf16.msra.mxu1 %v8482_v23  ;;  %v8443_v23 = vld [vmem:[%s13919_s2 + $0x18] sm:$0xf0] }
 0x3ba   :  { %v8446_v25 = vor.u32 %v10984_v22, %v8443_v23  ;;  %v8561_v22 = vld [vmem:[%s13919_s2 + $0x160] sm:$0xf]  ;;  %v11027_v23 = vld [vmem:[%s13919_s2 + $0x164] sm:$0xf0] }
 0x3bd   :  { %2213 = vmatpush.bf16.msra.mxu1 %v8474_v46  ;;  %v8434_v46 = vor.u32 %v10983_v38, %v8433_v45  ;;  %v8610_v45 = vor.u32 %v11039_v30, %v8609_v28  ;;  %v11038_v38 = vld [vmem:[%s13920_s7 + $0x44] sm:$0xf] }
 0x409   :  { %v1393_v48 = vpop.f32.mrf.mxu0 }
 0x40f   :  { %v1663_v26 = vpop.f32.mrf.mxu3 }
 0x411   :  { %v1460_v47 = vpop.f32.mrf.mxu1  ;;  %v1395_v29 = vpop.f32.mrf.mxu0 }
 0x412   :  { %v1461_v53 = vadd.f32 %v1460_v47, %v1393_v48  ;;  %v8475_v47 = vld [vmem:[%s13919_s2 + $0x58] sm:$0xf0] }
 0x413   :  { %v8478_v48 = vor.u32 %v10992_v50, %v8475_v47  ;;  %v10982_v50 = vld [vmem:[%s13919_s2 + $0x4] sm:$0xf]  ;;  %v8435_v47 = vld [vmem:[%s13919_s2 + $0x8] sm:$0xf0] }
 0x415   :  { %2227 = vmatpush.bf16.msra.mxu2 %v8478_v48  ;;  %v8633_v48 = vld [vmem:[%s13920_s7 + $0x70] sm:$0xf] }
 0x419   :  { %v1462_v55 = vpop.f32.mrf.mxu1  ;;  %v1398_v62 = vpop.f32.mrf.mxu0 }
 0x41a   :  { %v1463_v59 = vadd.f32 %v1462_v55, %v1395_v29  ;;  %v8419_v55 = vld [vmem:[%s13919_s2 + $0xe8] sm:$0xf0] }
 0x41f   :  { %v1550_v56 = vpop.f32.mrf.mxu2 }
 0x420   :  { %v1560_v57 = vadd.f32 %v1550_v56, %v1461_v53  ;;  %v11010_v53 = vld [vmem:[%s13919_s2 + $0xe4] sm:$0xf]  ;;  %v8465_v56 = vld [vmem:[%s13919_s2 + $0x40] sm:$0xf] }
 0x421   :  { %v1465_v41 = vpop.f32.mrf.mxu1  ;;  %v1400_v37 = vpop.f32.mrf.mxu0  ;;  %v8422_v29 = vor.u32 %v11010_v53, %v8419_v55  ;;  %v11044_v53 = vld [vmem:[%s13920_s7 + $0x74] sm:$0xf]  ;;  %v13029_v55 = vld [vmem:[#allocation23] ss:$0 sm:$0xff] }
 0x422   :  { %v1568_v34 = vadd.f32 %v11648_v54, %v1560_v57  ;;  %v1466_v60 = vadd.f32 %v1465_v41, %v1398_v62  ;;  %v10991_v57 = vld [vmem:[%s13919_s2 + $0x44] sm:$0xf0]  ;;  %v11009_v41 = vld [vmem:[%s13919_s2 + $0xd4] sm:$0xf0] }
 0x423   :  { %2118 = vmatpush.bf16.msra.mxu0 %v8422_v29  ;;  %v8377_v29 = vld [vmem:[%s13919_s2 + $0x90] sm:$0xf] }
 0x424   :  { %v1572_v58 = vmax.f32 %v1568_v34, 0.0  ;;  %v8466_v34 = vor.u32 %v10991_v57, %v8465_v56 }
 0x426   :  { %1576 = vst [vmem:[#allocation6 + $0x4] sm:$0xff] %v1572_v58  ;;  %2214 = vmatpush.bf16.msra.mxu1 %v8466_v34  ;;  %v11001_v34 = vld [vmem:[%s13919_s2 + $0x94] sm:$0xf0] }
 0x427   :  { %v1552_v36 = vpop.f32.mrf.mxu2 }
 0x428   :  { %v1561_v61 = vadd.f32 %v1552_v36, %v1463_v59  ;;  %v8467_v59 = vld [vmem:[%s13919_s2 + $0x48] sm:$0xf0] }
 0x429   :  { %v1467_v4 = vpop.f32.mrf.mxu1 }
 0x42a   :  { %v1569_v51 = vadd.f32 %v11648_v54, %v1561_v61  ;;  %v1468_v39 = vadd.f32 %v1467_v4, %v1400_v37  ;;  %v8409_v61 = vld [vmem:[%s13919_s2 + $0xd0] sm:$0xf]  ;;  %v8459_v4 = vld [vmem:[%s13919_s2 + $0x38] sm:$0xf0]  ;;  %v8401_v37 = vld [vmem:[%s13919_s2 + $0xc0] sm:$0xf] }
 0x42b   :  { %v8410_v62 = vor.u32 %v11009_v41, %v8409_v61  ;;  %v8625_v61 = vld [vmem:[%s13920_s7 + $0x60] sm:$0xf]  ;;  %v11043_v41 = vld [vmem:[%s13920_s7 + $0x64] sm:$0xf0] }
 0x42c   :  { %v1573_v63 = vmax.f32 %v1569_v51, 0.0  ;;  %v11008_v51 = vld [vmem:[%s13919_s2 + $0xd4] sm:$0xf] }
 0x42d   :  { %v1673_v5 = vld [vmem:[#allocation6] sm:$0xff] }
 0x42e   :  { %1577 = vst [vmem:[#allocation6 + $0xc] sm:$0xff] %v1573_v63  ;;  %v1716_v0 = vpack.c.bf16 %v1573_v63, %v1572_v58  ;;  %v10990_v58 = vld [vmem:[%s13919_s2 + $0x44] sm:$0xf]  ;;  %v8411_v63 = vld [vmem:[%s13919_s2 + $0xd8] sm:$0xf0] }
 0x42f   :  { %v1555_v1 = vpop.f32.mrf.mxu2  ;;  %v8470_v36 = vor.u32 %v10990_v58, %v8467_v59  ;;  %v11000_v58 = vld [vmem:[%s13919_s2 + $0x94] sm:$0xf]  ;;  %v8378_v59 = vor.u32 %v11001_v34, %v8377_v29  ;;  %v8555_v29 = vld [vmem:[%s13919_s2 + $0x158] sm:$0xf0]  ;;  %v8601_v34 = vld [vmem:[%s13920_s7 + $0x30] sm:$0xf] }
 0x430   :  { %v1562_v2 = vadd.f32 %v1555_v1, %v1466_v60  ;;  %1774 = vmatmul.bf16.vlgmr.msrb.gmra.mxu0 %v1716_v0  ;;  %v8457_v60 = vld [vmem:[%s13919_s2 + $0x30] sm:$0xf]  ;;  %v10989_v0 = vld [vmem:[%s13919_s2 + $0x34] sm:$0xf0]  ;;  %v8414_v1 = vor.u32 %v11008_v51, %v8411_v63 }
 0x431   :  { %2228 = vmatpush.bf16.msra.mxu2 %v8470_v36  ;;  %v8379_v36 = vld [vmem:[%s13919_s2 + $0x98] sm:$0xf0] }
 0x432   :  { %v1570_v3 = vadd.f32 %v11648_v54, %v1562_v2  ;;  %v8458_v2 = vor.u32 %v10989_v0, %v8457_v60  ;;  %2119 = vmatpush.bf16.msra.mxu0 %v8414_v1  ;;  %v8382_v63 = vor.u32 %v11000_v58, %v8379_v36  ;;  %v8626_v60 = vor.u32 %v11043_v41, %v8625_v61  ;;  %v11042_v0 = vld [vmem:[%s13920_s7 + $0x64] sm:$0xf]  ;;  %v8627_v1 = vld [vmem:[%s13920_s7 + $0x68] sm:$0xf0]  ;;  %v11037_v58 = vld [vmem:[%s13920_s7 + $0x34] sm:$0xf0] }
 0x433   :  { %v8602_v61 = vor.u32 %v11037_v58, %v8601_v34  ;;  %v11036_v41 = vld [vmem:[%s13920_s7 + $0x34] sm:$0xf]  ;;  %v8579_v34 = vld [vmem:[%s13920_s7 + $0x8] sm:$0xf0] }
 0x434   :  { %v1574_v32 = vmax.f32 %v1570_v3, 0.0  ;;  %v10988_v3 = vld [vmem:[%s13919_s2 + $0x34] sm:$0xf]  ;;  %2215 = vmatpush.bf16.msra.mxu1 %v8458_v2 }
 0x435   :  { %v1674_v6 = vld [vmem:[#allocation6 + $0x8] sm:$0xff] }
 0x436   :  { %1578 = vst [vmem:[#allocation6 + $0x14] sm:$0xff] %v1574_v32  ;;  %v1693_v7 = vpack.c.bf16 %v1674_v6, %v1673_v5  ;;  %v11007_v5 = vld [vmem:[%s13919_s2 + $0xc4] sm:$0xf0] }
 0x437   :  { %v1557_v11 = vpop.f32.mrf.mxu2 }
 0x438   :  { %v1563_v12 = vadd.f32 %v1557_v11, %v1468_v39  ;;  %1841 = vmatmul.bf16.vlgmr.msrb.gmra.mxu1 %v1693_v7  ;;  %v8402_v39 = vor.u32 %v11007_v5, %v8401_v37  ;;  %v8403_v7 = vld [vmem:[%s13919_s2 + $0xc8] sm:$0xf0]  ;;  %v8449_v11 = vld [vmem:[%s13919_s2 + $0x20] sm:$0xf]  ;;  %v10999_v5 = vld [vmem:[%s13919_s2 + $0x84] sm:$0xf0] }
 0x439   :  { %v8369_v37 = vld [vmem:[%s13919_s2 + $0x80] sm:$0xf] }
 0x43a   :  { %v1571_v33 = vadd.f32 %v11648_v54, %v1563_v12  ;;  %v8418_v54 = vor.u32 %v11011_v52, %v8417_v49  ;;  %v10987_v12 = vld [vmem:[%s13919_s2 + $0x24] sm:$0xf0]  ;;  %v8438_v49 = vor.u32 %v10982_v50, %v8435_v47  ;;  %v11045_v52 = vld [vmem:[%s13920_s7 + $0x74] sm:$0xf0] }
 0x43b   :  { %v8634_v56 = vor.u32 %v11045_v52, %v8633_v48  ;;  %v11025_v52 = vld [vmem:[%s13919_s2 + $0x154] sm:$0xf0] }
 0x43c   :  { %v1575_v13 = vmax.f32 %v1571_v33, 0.0  ;;  %2104 = vmatpush.bf16.msra.mxu3 %v8418_v54  ;;  %v8635_v54 = vld [vmem:[%s13920_s7 + $0x78] sm:$0xf0] }
 0x43d   :  { %v1853_v14 = vld [vmem:[#allocation6 + $0x10] sm:$0xff]  ;;  %v8638_v57 = vor.u32 %v11044_v53, %v8635_v54  ;;  %v11024_v53 = vld [vmem:[%s13919_s2 + $0x154] sm:$0xf] }
 0x43e   :  { %1579 = vst [vmem:[#allocation6 + $0x1c] sm:$0xff] %v1575_v13  ;;  %v1873_v10 = vpack.c.bf16 %v1853_v14, %v1674_v6  ;;  %v1717_v15 = vpack.c.bf16 %v1575_v13, %v1574_v32  ;;  %v8462_v32 = vor.u32 %v10988_v3, %v8459_v4  ;;  %v11006_v6 = vld [vmem:[%s13919_s2 + $0xc4] sm:$0xf]  ;;  %v8450_v13 = vor.u32 %v10987_v12, %v8449_v11  ;;  %v8371_v11 = vld [vmem:[%s13919_s2 + $0x88] sm:$0xf0] }
 0x43f   :  { %v8406_v33 = vor.u32 %v11006_v6, %v8403_v7  ;;  %v8630_v4 = vor.u32 %v11042_v0, %v8627_v1  ;;  %v10998_v6 = vld [vmem:[%s13919_s2 + $0x84] sm:$0xf]  ;;  %v8370_v7 = vor.u32 %v10999_v5, %v8369_v37  ;;  %v8569_v12 = vld [vmem:[%s13919_s2 + $0x170] sm:$0xf]  ;;  %v8558_v36 = vor.u32 %v11024_v53, %v8555_v29  ;;  %v11023_v1 = vld [vmem:[%s13919_s2 + $0x144] sm:$0xf0] }
 0x440   :  { %1931 = vmatmul.bf16.vlgmr.msrb.gmra.mxu2 %v1873_v10  ;;  %1779 = vmatmul.bf16.gmra.mxu0 %v1717_v15  ;;  %v8451_v10 = vld [vmem:[%s13919_s2 + $0x28] sm:$0xf0]  ;;  %v1974_v15 = vld [vmem:[#allocation7] sm:$0xf]  ;;  %v8593_v5 = vld [vmem:[%s13920_s7 + $0x20] sm:$0xf] }
 0x441   :  { %2105 = vmatpush.bf16.msra.mxu3 %v8410_v62  ;;  %2229 = vmatpush.bf16.msra.mxu2 %v8462_v32  ;;  %1975 = vst [vmem:[#allocation9] sm:$0xf] %v1974_v15  ;;  %v13037_v62 = vld [vmem:[#allocation26] ss:$0 sm:$0xff]  ;;  %v11028_v15 = vld [vmem:[%s13919_s2 + $0x174] sm:$0xf] }
 0x442   :  { %2120 = vmatpush.bf16.msra.mxu0 %v8406_v33  ;;  %2216 = vmatpush.bf16.msra.mxu1 %v8450_v13  ;;  %v11029_v33 = vld [vmem:[%s13919_s2 + $0x174] sm:$0xf0]  ;;  %v1664_v13 = vadd.f32 %v13029_v55, %v1663_v26  ;;  %v11030_v53 = vld [vmem:[%s13920_s7 + $0x4] sm:$0xf] }
 0x445   :  { %v1676_v8 = vld [vmem:[#allocation6 + $0x18] sm:$0xff]  ;;  %v1855_v17 = vld [vmem:[#allocation6 + $0x20] sm:$0xff]  ;;  %2106 = vmatpush.bf16.msra.mxu3 %v8402_v39 }
 0x446   :  { %v1694_v16 = vpack.c.bf16 %v1676_v8, %v1853_v14  ;;  %v1874_v35 = vpack.c.bf16 %v1855_v17, %v1676_v8  ;;  %v10986_v14 = vld [vmem:[%s13919_s2 + $0x24] sm:$0xf]  ;;  %v11005_v17 = vld [vmem:[%s13919_s2 + $0xb4] sm:$0xf0]  ;;  %2217 = vmatpush.bf16.msra.mxu1 %v8442_v21 }
 0x447   :  { %v8454_v8 = vor.u32 %v10986_v14, %v8451_v10  ;;  %v8374_v10 = vor.u32 %v10998_v6, %v8371_v11  ;;  %v11035_v6 = vld [vmem:[%s13920_s7 + $0x24] sm:$0xf0] }
 0x448   :  { %1846 = vmatmul.bf16.gmra.mxu1 %v1694_v16  ;;  %v8393_v16 = vld [vmem:[%s13919_s2 + $0xb0] sm:$0xf] }
 0x449   :  { %2230 = vmatpush.bf16.msra.mxu2 %v8454_v8  ;;  %v8394_v18 = vor.u32 %v11005_v17, %v8393_v16  ;;  %v8571_v8 = vld [vmem:[%s13919_s2 + $0x178] sm:$0xf0]  ;;  %v8617_v16 = vld [vmem:[%s13920_s7 + $0x50] sm:$0xf]  ;;  %v1665_v17 = vpop.f32.mrf.mxu3 }
 0x44a   :  { %2218 = vmatpush.bf16.msra.mxu1 %v8434_v46  ;;  %v1666_v54 = vadd.f32 %v13029_v55, %v1665_v17 }
 0x44b   :  { %2107 = vmatpush.bf16.msra.mxu3 %v8394_v18  ;;  %v11041_v18 = vld [vmem:[%s13920_s7 + $0x54] sm:$0xf0] }
 0x44d   :  { %2231 = vmatpush.bf16.msra.mxu2 %v8446_v25  ;;  %v8562_v25 = vor.u32 %v11027_v23, %v8561_v22  ;;  %v11033_v23 = vld [vmem:[%s13920_s7 + $0x14] sm:$0xf0] }
 0x44e   :  { %2515 = vmatpush.bf16.msrb.mxu1 %v8634_v56 }
 0x44f   :  { %2108 = vmatpush.bf16.msra.mxu3 %v8386_v31 }
 0x450   :  { %1936 = vmatmul.bf16.gmra.mxu2 %v1874_v35  ;;  %v11004_v35 = vld [vmem:[%s13919_s2 + $0xb4] sm:$0xf] }
 0x451   :  { %v8398_v20 = vor.u32 %v11004_v35, %v8395_v19  ;;  %2232 = vmatpush.bf16.msra.mxu2 %v8438_v49  ;;  %v8570_v35 = vor.u32 %v11029_v33, %v8569_v12  ;;  %v11040_v19 = vld [vmem:[%s13920_s7 + $0x54] sm:$0xf]  ;;  %v8553_v49 = vld [vmem:[%s13919_s2 + $0x150] sm:$0xf]  ;;  %v8594_v12 = vor.u32 %v11035_v6, %v8593_v5  ;;  %v8595_v33 = vld [vmem:[%s13920_s7 + $0x28] sm:$0xf0] }
 0x452   :  { %2516 = vmatpush.bf16.msrb.mxu1 %v8626_v60  ;;  %v8622_v21 = vor.u32 %v11040_v19, %v8619_v9  ;;  %v11020_v9 = vld [vmem:[%s13919_s2 + $0x134] sm:$0xf] }
 0x453   :  { %2121 = vmatpush.bf16.msra.mxu0 %v8398_v20  ;;  %2109 = vmatpush.bf16.msra.mxu3 %v8378_v59  ;;  %v8618_v20 = vor.u32 %v11041_v18, %v8617_v16 }
 0x455   :  { %2529 = vmatpush.bf16.msrb.mxu2 %v8638_v57  ;;  %v8554_v57 = vor.u32 %v11025_v52, %v8553_v49  ;;  %v11031_v52 = vld [vmem:[%s13920_s7 + $0x4] sm:$0xf0] }
 0x456   :  { %2517 = vmatpush.bf16.msrb.mxu1 %v8618_v20  ;;  %v8585_v20 = vld [vmem:[%s13920_s7 + $0x10] sm:$0xf] }
 0x457   :  { %2122 = vmatpush.bf16.msra.mxu0 %v8390_v44  ;;  %2110 = vmatpush.bf16.msra.mxu3 %v8370_v7  ;;  %v8611_v44 = vld [vmem:[%s13920_s7 + $0x48] sm:$0xf0]  ;;  %v8586_v28 = vor.u32 %v11033_v23, %v8585_v20  ;;  %v11083_v20 = vld [vmem:[%s13921_s1 + $0x124] sm:$0xf0] }
 0x458   :  { %v8614_v50 = vor.u32 %v11038_v38, %v8611_v44  ;;  %v8715_v23 = vld [vmem:[%s13921_s1 + $0x128] sm:$0xf0] }
 0x459   :  { %2530 = vmatpush.bf16.msrb.mxu2 %v8630_v4  ;;  %v1668_v4 = vpop.f32.mrf.mxu3 }
 0x45a   :  { %2518 = vmatpush.bf16.msrb.mxu1 %v8610_v45  ;;  %v1669_v16 = vadd.f32 %v13029_v55, %v1668_v4  ;;  %v11014_v4 = vld [vmem:[%s13919_s2 + $0x104] sm:$0xf] }
 0x45b   :  { %2123 = vmatpush.bf16.msra.mxu0 %v8382_v63  ;;  %2339 = vmatpush.bf16.msrb.mxu3 %v8570_v35  ;;  %v8545_v63 = vld [vmem:[%s13919_s2 + $0x140] sm:$0xf]  ;;  %v8537_v35 = vld [vmem:[%s13919_s2 + $0x130] sm:$0xf] }
 0x45d   :  { %2531 = vmatpush.bf16.msrb.mxu2 %v8622_v21 }
 0x45e   :  { %2519 = vmatpush.bf16.msrb.mxu1 %v8602_v61  ;;  %v8521_v61 = vld [vmem:[%s13919_s2 + $0x110] sm:$0xf] }
 0x45f   :  { %2124 = vmatpush.bf16.msra.mxu0 %v8374_v10  ;;  %2340 = vmatpush.bf16.msrb.mxu3 %v8562_v25  ;;  %v8587_v25 = vld [vmem:[%s13920_s7 + $0x18] sm:$0xf0] }
 0x461   :  { %2532 = vmatpush.bf16.msrb.mxu2 %v8614_v50  ;;  %v8577_v50 = vld [vmem:[%s13920_s7] sm:$0xf] }
 0x462   :  { %2520 = vmatpush.bf16.msrb.mxu1 %v8594_v12  ;;  %v8578_v29 = vor.u32 %v11031_v52, %v8577_v50  ;;  %v11079_v50 = vld [vmem:[%s13921_s1 + $0x104] sm:$0xf0] }
 0x463   :  { %2341 = vmatpush.bf16.msrb.mxu3 %v8554_v57 }
 0x466   :  { %2521 = vmatpush.bf16.msrb.mxu1 %v8586_v28 }
 0x46a   :  { %2522 = vmatpush.bf16.msrb.mxu1 %v8578_v29  ;;  %v11077_v29 = vld [vmem:[%s13921_s1 + $0xf4] sm:$0xf0] }
 0x4ad   :  { %v1775_v24 = vpop.f32.mrf.mxu0 }
 0x4b5   :  { %v1842_v40 = vpop.f32.mrf.mxu1  ;;  %v1777_v39 = vpop.f32.mrf.mxu0 }
 0x4b6   :  { %v1843_v51 = vadd.f32 %v1842_v40, %v1775_v24  ;;  %v8574_v40 = vor.u32 %v11028_v15, %v8571_v8  ;;  %v11026_v24 = vld [vmem:[%s13919_s2 + $0x164] sm:$0xf] }
 0x4b7   :  { %v8566_v42 = vor.u32 %v11026_v24, %v8563_v27  ;;  %v11032_v24 = vld [vmem:[%s13920_s7 + $0x14] sm:$0xf] }
 0x4b8   :  { %2353 = vmatpush.bf16.msrb.mxu0 %v8574_v40  ;;  %v11021_v40 = vld [vmem:[%s13919_s2 + $0x134] sm:$0xf0]  ;;  %v8590_v30 = vor.u32 %v11032_v24, %v8587_v25  ;;  %v8705_v25 = vld [vmem:[%s13921_s1 + $0x110] sm:$0xf] }
 0x4b9   :  { %v8538_v19 = vor.u32 %v11021_v40, %v8537_v35  ;;  %v11085_v35 = vld [vmem:[%s13921_s1 + $0x134] sm:$0xf0]  ;;  %v11084_v40 = vld [vmem:[%s13921_s1 + $0x134] sm:$0xf] }
 0x4bc   :  { %2354 = vmatpush.bf16.msrb.mxu0 %v8566_v42  ;;  %v11018_v42 = vld [vmem:[%s13919_s2 + $0x124] sm:$0xf] }
 0x4bd   :  { %v1844_v2 = vpop.f32.mrf.mxu1  ;;  %v1780_v59 = vpop.f32.mrf.mxu0 }
 0x4be   :  { %v1845_v26 = vadd.f32 %v1844_v2, %v1777_v39  ;;  %v11022_v2 = vld [vmem:[%s13919_s2 + $0x144] sm:$0xf] }
 0x4bf   :  { %v11034_v39 = vld [vmem:[%s13920_s7 + $0x24] sm:$0xf] }
 0x4c0   :  { %2355 = vmatpush.bf16.msrb.mxu0 %v8558_v36  ;;  %v8598_v10 = vor.u32 %v11034_v39, %v8595_v33  ;;  %v8582_v36 = vor.u32 %v11030_v53, %v8579_v34  ;;  %v11090_v53 = vld [vmem:[%s13921_s1 + $0x164] sm:$0xf] }
 0x4c3   :  { %v1932_v3 = vpop.f32.mrf.mxu2 }
 0x4c4   :  { %v1942_v32 = vadd.f32 %v1932_v3, %v1843_v51  ;;  %v8603_v51 = vld [vmem:[%s13920_s7 + $0x38] sm:$0xf0]  ;;  %v8547_v3 = vld [vmem:[%s13919_s2 + $0x148] sm:$0xf0] }
 0x4c5   :  { %v1847_v48 = vpop.f32.mrf.mxu1  ;;  %v8606_v0 = vor.u32 %v11036_v41, %v8603_v51  ;;  %v8550_v37 = vor.u32 %v11022_v2, %v8547_v3  ;;  %v1782_v27 = vpop.f32.mrf.mxu0  ;;  %v11017_v41 = vld [vmem:[%s13919_s2 + $0x114] sm:$0xf0]  ;;  %v11015_v3 = vld [vmem:[%s13919_s2 + $0x104] sm:$0xf0] }
 0x4c6   :  { %v1950_v14 = vadd.f32 %v13037_v62, %v1942_v32  ;;  %v8546_v32 = vor.u32 %v11023_v1, %v8545_v63  ;;  %v1848_v7 = vadd.f32 %v1847_v48, %v1780_v59  ;;  %v8522_v51 = vor.u32 %v11017_v41, %v8521_v61  ;;  %v11016_v63 = vld [vmem:[%s13919_s2 + $0x114] sm:$0xf]  ;;  %v8691_v41 = vld [vmem:[%s13921_s1 + $0xf8] sm:$0xf0] }
 0x4c7   :  { %2533 = vmatpush.bf16.msrb.mxu2 %v8606_v0  ;;  %2356 = vmatpush.bf16.msrb.mxu0 %v8550_v37  ;;  %v8513_v0 = vld [vmem:[%s13919_s2 + $0x100] sm:$0xf]  ;;  %v11076_v61 = vld [vmem:[%s13921_s1 + $0xf4] sm:$0xf] }
 0x4c8   :  { %v1954_v43 = vadd.f32 %v1950_v14, %v1664_v13  ;;  %2342 = vmatpush.bf16.msrb.mxu3 %v8546_v32  ;;  %v8514_v32 = vor.u32 %v11015_v3, %v8513_v0 }
 0x4ca   :  { %v1958_v31 = vmax.f32 %v1954_v43, 0.0  ;;  %v8539_v43 = vld [vmem:[%s13919_s2 + $0x138] sm:$0xf0] }
 0x4cb   :  { %v1934_v46 = vpop.f32.mrf.mxu2  ;;  %2534 = vmatpush.bf16.msrb.mxu2 %v8598_v10  ;;  %v8542_v22 = vor.u32 %v11020_v9, %v8539_v43  ;;  %v8713_v43 = vld [vmem:[%s13921_s1 + $0x120] sm:$0xf] }
 0x4cc   :  { %1962 = vst [vmem:[#allocation7 + $0x4] sm:$0xff] %v1958_v31  ;;  %v1943_v47 = vadd.f32 %v1934_v46, %v1845_v26  ;;  %2343 = vmatpush.bf16.msrb.mxu3 %v8538_v19  ;;  %v8529_v26 = vld [vmem:[%s13919_s2 + $0x120] sm:$0xf]  ;;  %v11019_v31 = vld [vmem:[%s13919_s2 + $0x124] sm:$0xf0] }
 0x4cd   :  { %v1849_v18 = vpop.f32.mrf.mxu1  ;;  %2357 = vmatpush.bf16.msrb.mxu0 %v8542_v22  ;;  %v8530_v44 = vor.u32 %v11019_v31, %v8529_v26  ;;  %v8531_v46 = vld [vmem:[%s13919_s2 + $0x128] sm:$0xf0]  ;;  %v8723_v19 = vld [vmem:[%s13921_s1 + $0x138] sm:$0xf0]  ;;  %v8714_v22 = vor.u32 %v11083_v20, %v8713_v43  ;;  %v13121_v31 = vld [vmem:[#allocation10] sm:$0xff] }
 0x4ce   :  { %v1951_v56 = vadd.f32 %v13037_v62, %v1943_v47  ;;  %v1850_v45 = vadd.f32 %v1849_v18, %v1782_v27  ;;  %v1670_v47 = vpop.f32.mrf.mxu3  ;;  %v8534_v49 = vor.u32 %v11018_v42, %v8531_v46  ;;  %v8726_v9 = vor.u32 %v11084_v40, %v8723_v19  ;;  %v11081_v27 = vld [vmem:[%s13921_s1 + $0x114] sm:$0xf0]  ;;  %v8707_v26 = vld [vmem:[%s13921_s1 + $0x118] sm:$0xf0]  ;;  %567 = vst.msk [vmem:[#allocation10 + $0x8] sm:$0xff] %vm566_vm1, %v13121_v31 }
 0x4cf   :  { %2535 = vmatpush.bf16.msrb.mxu2 %v8590_v30  ;;  %v1671_v58 = vadd.f32 %v13029_v55, %v1670_v47  ;;  %v8515_v55 = vld [vmem:[%s13919_s2 + $0x108] sm:$0xf0]  ;;  %v8706_v28 = vor.u32 %v11081_v27, %v8705_v25  ;;  %v11080_v30 = vld [vmem:[%s13921_s1 + $0x114] sm:$0xf]  ;;  %569 = vst.msk [vmem:[#allocation10 + $0x18] sm:$0xff] %vm566_vm1, %v13121_v31 }
 0x4d0   :  { %v1955_v60 = vadd.f32 %v1951_v56, %v1666_v54  ;;  %2344 = vmatpush.bf16.msrb.mxu3 %v8530_v44  ;;  %v8518_v37 = vor.u32 %v11014_v4, %v8515_v55  ;;  %v8710_v42 = vor.u32 %v11080_v30, %v8707_v26  ;;  %571 = vst.msk [vmem:[#allocation10 + $0x28] sm:$0xff] %vm566_vm1, %v13121_v31  ;;  %v8697_v44 = vld [vmem:[%s13921_s1 + $0x100] sm:$0xf]  ;;  %v11078_v47 = vld [vmem:[%s13921_s1 + $0x104] sm:$0xf] }
 0x4d1   :  { %2358 = vmatpush.bf16.msrb.mxu0 %v8534_v49  ;;  %573 = vst.msk [vmem:[#allocation11 + $0x8] sm:$0xff] %vm566_vm1, %v13121_v31  ;;  %v8699_v49 = vld [vmem:[%s13921_s1 + $0x108] sm:$0xf0]  ;;  %v8745_v4 = vld [vmem:[%s13921_s1 + $0x160] sm:$0xf] }
 0x4d2   :  { %v1959_v11 = vmax.f32 %v1955_v60, 0.0  ;;  %v8523_v60 = vld [vmem:[%s13919_s2 + $0x118] sm:$0xf0]  ;;  %575 = vst.msk [vmem:[#allocation11 + $0x18] sm:$0xff] %vm566_vm1, %v13121_v31  ;;  %v8702_v52 = vor.u32 %v11078_v47, %v8699_v49  ;;  %v11091_v55 = vld [vmem:[%s13921_s1 + $0x164] sm:$0xf0] }
 0x4d3   :  { %v1976_v13 = vld [vmem:[#allocation7 + $0x8] sm:$0xf]  ;;  %v1937_v14 = vpop.f32.mrf.mxu2  ;;  %v1966_v15 = vld [vmem:[#allocation7 + $0x4] sm:$0xf]  ;;  %2536 = vmatpush.bf16.msrb.mxu2 %v8582_v36  ;;  %v8526_v2 = vor.u32 %v11016_v63, %v8523_v60  ;;  %577 = vst.msk [vmem:[#allocation11 + $0x28] sm:$0xff] %vm566_vm1, %v13121_v31 }
 0x4d4   :  { %1977 = vst [vmem:[#allocation9 + $0x4] sm:$0xf] %v1976_v13  ;;  %v1944_v8 = vadd.f32 %v1937_v14, %v1848_v7  ;;  %2345 = vmatpush.bf16.msrb.mxu3 %v8522_v51  ;;  %v8694_v51 = vor.u32 %v11076_v61, %v8691_v41  ;;  %v11088_v63 = vld [vmem:[%s13921_s1 + $0x154] sm:$0xf]  ;;  %v8739_v60 = vld [vmem:[%s13921_s1 + $0x158] sm:$0xf0] }
 0x4d5   :  { %1963 = vst [vmem:[#allocation7 + $0xc] sm:$0xff] %v1959_v11  ;;  %2359 = vmatpush.bf16.msrb.mxu0 %v8526_v2  ;;  %v8742_v0 = vor.u32 %v11088_v63, %v8739_v60  ;;  %v11075_v2 = vld [vmem:[%s13921_s1 + $0xe4] sm:$0xf0]  ;;  %v8675_v40 = vld [vmem:[%s13921_s1 + $0xd8] sm:$0xf0] }
 0x4d6   :  { %v1952_v17 = vadd.f32 %v13037_v62, %v1944_v8  ;;  %1967 = vst [vmem:[#allocation8] sm:$0xf] %v1966_v15  ;;  %v11058_v19 = vld [vmem:[%s13921_s1 + $0x64] sm:$0xf]  ;;  %v8665_v20 = vld [vmem:[%s13921_s1 + $0xc0] sm:$0xf] }
 0x4d7   :  { %579 = vst.msk [vmem:[#allocation12 + $0x8] sm:$0xff] %vm566_vm1, %v13121_v31  ;;  %v11070_v25 = vld [vmem:[%s13921_s1 + $0xc4] sm:$0xf]  ;;  %v8667_v27 = vld [vmem:[%s13921_s1 + $0xc8] sm:$0xf0] }
 0x4d8   :  { %v1956_v21 = vadd.f32 %v1952_v17, %v1669_v16  ;;  %2346 = vmatpush.bf16.msrb.mxu3 %v8514_v32  ;;  %v8721_v17 = vld [vmem:[%s13921_s1 + $0x130] sm:$0xf]  ;;  %581 = vst.msk [vmem:[#allocation13 + $0x8] sm:$0xff] %vm566_vm1, %v13121_v31  ;;  %v8746_v32 = vor.u32 %v11091_v55, %v8745_v4  ;;  %v8670_v30 = vor.u32 %v11070_v25, %v8667_v27  ;;  %v11056_v49 = vld [vmem:[%s13921_s1 + $0x54] sm:$0xf] }
 0x4d9   :  { %2360 = vmatpush.bf16.msrb.mxu0 %v8518_v37  ;;  %v8722_v18 = vor.u32 %v11085_v35, %v8721_v17  ;;  %583 = vst.msk [vmem:[#allocation13 + $0x18] sm:$0xff] %vm566_vm1, %v13121_v31  ;;  %v8683_v37 = vld [vmem:[%s13921_s1 + $0xe8] sm:$0xf0]  ;;  %v11072_v35 = vld [vmem:[%s13921_s1 + $0xd4] sm:$0xf] }
 0x4da   :  { %v1960_v38 = vmax.f32 %v1956_v21, 0.0  ;;  %v11082_v21 = vld [vmem:[%s13921_s1 + $0x124] sm:$0xf]  ;;  %585 = vst.msk [vmem:[#allocation14 + $0x8] sm:$0xff] %vm566_vm1, %v13121_v31  ;;  %v8819_v26 = vld [vmem:[%s13921_s1 + $0x70] sm:$0xf] }
 0x4db   :  { %v1939_v48 = vpop.f32.mrf.mxu2  ;;  %v1984_v39 = vld [vmem:[#allocation9] sm:$0xff]  ;;  %v8718_v24 = vor.u32 %v11082_v21, %v8715_v23  ;;  %587 = vst.msk [vmem:[#allocation14 + $0x18] sm:$0xff] %vm566_vm1, %v13121_v31  ;;  %v8933_v61 = vld [vmem:[%s13921_s1 + $0x1e0] sm:$0xf]  ;;  %v11065_v4 = vld [vmem:[%s13921_s1 + $0x94] sm:$0xf0] }
 0x4dc   :  { %v1978_v54 = vld [vmem:[#allocation7 + $0x10] sm:$0xf]  ;;  %1964 = vst [vmem:[#allocation7 + $0x14] sm:$0xff] %v1960_v38  ;;  %v1945_v56 = vadd.f32 %v1939_v48, %v1850_v45  ;;  %v1968_v57 = vld [vmem:[#allocation7 + $0xc] sm:$0xf]  ;;  %v8698_v48 = vor.u32 %v11079_v50, %v8697_v44 }
 0x4dd   :  { %1979 = vst [vmem:[#allocation9 + $0x8] sm:$0xf] %v1978_v54  ;;  %v11092_v45 = vld [vmem:[%s13921_s1 + $0x174] sm:$0xf]  ;;  %v8755_v38 = vld [vmem:[%s13921_s1 + $0x178] sm:$0xf0] }
 0x4de   :  { %v1953_v59 = vadd.f32 %v13037_v62, %v1945_v56  ;;  %1969 = vst [vmem:[#allocation8 + $0x4] sm:$0xf] %v1968_v57  ;;  %v8758_v46 = vor.u32 %v11092_v45, %v8755_v38  ;;  %v8747_v54 = vld [vmem:[%s13921_s1 + $0x168] sm:$0xf0]  ;;  %v8689_v57 = vld [vmem:[%s13921_s1 + $0xf0] sm:$0xf] }
 0x4df   :  { %v8750_v56 = vor.u32 %v11090_v53, %v8747_v54  ;;  %v8690_v34 = vor.u32 %v11077_v29, %v8689_v57  ;;  %589 = vst.msk [vmem:[#allocation15 + $0x8] sm:$0xff] %vm566_vm1, %v13121_v31  ;;  %v11071_v21 = vld [vmem:[%s13921_s1 + $0xc4] sm:$0xf0]  ;;  %v11069_v44 = vld [vmem:[%s13921_s1 + $0xb4] sm:$0xf0] }
 0x4e0   :  { %v1957_v1 = vadd.f32 %v1953_v59, %v1671_v58  ;;  %v8753_v58 = vld [vmem:[%s13921_s1 + $0x170] sm:$0xf]  ;;  %v11093_v59 = vld [vmem:[%s13921_s1 + $0x174] sm:$0xf0]  ;;  %591 = vst.msk [vmem:[#allocation15 + $0x18] sm:$0xff] %vm566_vm1, %v13121_v31  ;;  %v8666_v23 = vor.u32 %v11071_v21, %v8665_v20 }
 0x4e1   :  { %v8754_v36 = vor.u32 %v11093_v59, %v8753_v58  ;;  %593 = vst.msk [vmem:[#allocation16 + $0x8] sm:$0xff] %vm566_vm1, %v13121_v31  ;;  %v11109_v50 = vld [vmem:[%s13921_s1 + $0x1f4] sm:$0xf0]  ;;  %v8811_v53 = vld [vmem:[%s13921_s1 + $0x60] sm:$0xf] }
 0x4e2   :  { %v1961_v62 = vmax.f32 %v1957_v1, 0.0  ;;  %v8681_v1 = vld [vmem:[%s13921_s1 + $0xe0] sm:$0xf]  ;;  %595 = vst.msk [vmem:[#allocation16 + $0x18] sm:$0xff] %vm566_vm1, %v13121_v31  ;;  %v11059_v57 = vld [vmem:[%s13921_s1 + $0x64] sm:$0xf0] }
 0x4e3   :  { %v1980_v5 = vld [vmem:[#allocation7 + $0x18] sm:$0xf]  ;;  %v1970_v6 = vld [vmem:[#allocation7 + $0x14] sm:$0xf]  ;;  %v8682_v3 = vor.u32 %v11075_v2, %v8681_v1  ;;  %597 = vst.msk [vmem:[#allocation17 + $0x8] sm:$0xff] %vm566_vm1, %v13121_v31  ;;  %v8812_v59 = vor.u32 %v11059_v57, %v8811_v53 }
 0x4e4   :  { %1981 = vst [vmem:[#allocation9 + $0xc] sm:$0xf] %v1980_v5  ;;  %v2239_v8 = vld [vmem:[#allocation9 + $0x4] sm:$0xff]  ;;  %v8843_v29 = vld [vmem:[%s13921_s1 + $0xa0] sm:$0xf] }
 0x4e5   :  { %1965 = vst [vmem:[#allocation7 + $0x1c] sm:$0xff] %v1961_v62  ;;  %v2003_v13 = vld [vmem:[#allocation8] sm:$0xff]  ;;  %v11074_v62 = vld [vmem:[%s13921_s1 + $0xe4] sm:$0xf]  ;;  %v13220_v58 = vld [vmem:[%s13922_s26] sm:$0x3] }
 0x4e6   :  { %1971 = vst [vmem:[#allocation8 + $0x8] sm:$0xf] %v1970_v6  ;;  %v8686_v5 = vor.u32 %v11074_v62, %v8683_v37  ;;  %v11086_v6 = vld [vmem:[%s13921_s1 + $0x144] sm:$0xf]  ;;  %v11107_v41 = vld [vmem:[%s13921_s1 + $0x1e4] sm:$0xf0] }
 0x4e7   :  { %599 = vst.msk [vmem:[#allocation17 + $0x18] sm:$0xff] %vm566_vm1, %v13121_v31  ;;  %v8934_v63 = vor.u32 %v11107_v41, %v8933_v61  ;;  %v8797_v60 = vld [vmem:[%s13921_s1 + $0x48] sm:$0xf0]  ;;  %v11057_v1 = vld [vmem:[%s13921_s1 + $0x54] sm:$0xf0] }
 0x4e8   :  { %601 = vst.msk [vmem:[#allocation18 + $0x8] sm:$0xff] %vm566_vm1, %v13121_v31  ;;  %v8925_v55 = vld [vmem:[%s13921_s1 + $0x1d0] sm:$0xf]  ;;  %v11105_v37 = vld [vmem:[%s13921_s1 + $0x1d4] sm:$0xf0] }
 0x4e9   :  { %603 = vst.msk [vmem:[#allocation18 + $0x18] sm:$0xff] %vm566_vm1, %v13121_v31  ;;  %v11061_v31 = vld [vmem:[%s13921_s1 + $0x74] sm:$0xf0]  ;;  %v8781_v21 = vld [vmem:[%s13921_s1 + $0x28] sm:$0xf0] }
 0x4ea   :  { %v8820_v38 = vor.u32 %v11061_v31, %v8819_v26  ;;  %v11053_v25 = vld [vmem:[%s13921_s1 + $0x34] sm:$0xf0]  ;;  %v8909_v27 = vld [vmem:[%s13921_s1 + $0x1b0] sm:$0xf]  ;;  %v8901_v53 = vld [vmem:[%s13921_s1 + $0x1a0] sm:$0xf] }
 0x4eb   :  { %v1985_v7 = vld [vmem:[#allocation9 + $0x8] sm:$0xff] }
 0x4ec   :  { %v2002_v11 = vpack.c.bf16 %v1985_v7, %v1984_v39  ;;  %v1972_v12 = vld [vmem:[#allocation7 + $0x1c] sm:$0xf]  ;;  %v1982_v33 = vld [vmem:[#allocation7 + $0x20] sm:$0xf] }
 0x4ed   :  { %1973 = vst [vmem:[#allocation8 + $0xc] sm:$0xf] %v1972_v12  ;;  %v8731_v39 = vld [vmem:[%s13921_s1 + $0x148] sm:$0xf0]  ;;  %v8821_v12 = vld [vmem:[%s13921_s1 + $0x78] sm:$0xf0] }
 0x4ee   :  { %2219 = vmatmul.bf16.vlgmr.msra.gmra.mxu1 %v2002_v11  ;;  %2233 = vmatmul.bf16.vlgmr.msra.gmra.mxu2 %v2002_v11  ;;  %1983 = vst [vmem:[#allocation9 + $0x10] sm:$0xf] %v1982_v33  ;;  %v8734_v7 = vor.u32 %v11086_v6, %v8731_v39  ;;  %v11060_v11 = vld [vmem:[%s13921_s1 + $0x74] sm:$0xf]  ;;  %v8926_v6 = vor.u32 %v11105_v37, %v8925_v55 }
 0x4ef   :  { %2769 = vmatpush.bf16.msra.mxu1 %v8726_v9  ;;  %2787 = vmatpush.bf16.msra.mxu2 %v8758_v46  ;;  %v8824_v33 = vor.u32 %v11060_v11, %v8821_v12  ;;  %v8813_v9 = vld [vmem:[%s13921_s1 + $0x68] sm:$0xf0]  ;;  %v8941_v46 = vld [vmem:[%s13921_s1 + $0x1f0] sm:$0xf]  ;;  %v11052_v11 = vld [vmem:[%s13921_s1 + $0x34] sm:$0xf] }
 0x4f0   :  { %v8816_v43 = vor.u32 %v11058_v19, %v8813_v9  ;;  %v8789_v12 = vld [vmem:[%s13921_s1 + $0x38] sm:$0xf0] }
 0x4f3   :  { %2770 = vmatpush.bf16.msra.mxu1 %v8718_v24  ;;  %2788 = vmatpush.bf16.msra.mxu2 %v8750_v56  ;;  %v11087_v24 = vld [vmem:[%s13921_s1 + $0x144] sm:$0xf0] }
 0x4f4   :  { %v2004_v14 = vld [vmem:[#allocation8 + $0x8] sm:$0xff] }
 0x4f5   :  { %v2022_v10 = vpack.c.bf16 %v2004_v14, %v2003_v13  ;;  %v2240_v15 = vld [vmem:[#allocation9 + $0xc] sm:$0xff]  ;;  %v8673_v13 = vld [vmem:[%s13921_s1 + $0xd0] sm:$0xf] }
 0x4f6   :  { %v2258_v16 = vpack.c.bf16 %v2240_v15, %v2239_v8  ;;  %v11073_v14 = vld [vmem:[%s13921_s1 + $0xd4] sm:$0xf0]  ;;  %v8737_v8 = vld [vmem:[%s13921_s1 + $0x150] sm:$0xf] }
 0x4f7   :  { %2111 = vmatmul.bf16.vlgmr.msra.gmra.mxu3 %v2022_v10  ;;  %2125 = vmatmul.bf16.vlgmr.msra.gmra.mxu0 %v2022_v10  ;;  %v8674_v15 = vor.u32 %v11073_v14, %v8673_v13  ;;  %v8792_v13 = vor.u32 %v11052_v11, %v8789_v12  ;;  %v8795_v14 = vld [vmem:[%s13921_s1 + $0x40] sm:$0xf] }
 0x4f8   :  { %2741 = vmatpush.bf16.msra.mxu3 %v8722_v18  ;;  %2771 = vmatpush.bf16.msra.mxu1 %v8710_v42  ;;  %v8678_v18 = vor.u32 %v11072_v35, %v8675_v40  ;;  %v8851_v42 = vld [vmem:[%s13921_s1 + $0xb0] sm:$0xf]  ;;  %v11063_v35 = vld [vmem:[%s13921_s1 + $0x84] sm:$0xf0]  ;;  %v8917_v40 = vld [vmem:[%s13921_s1 + $0x1c0] sm:$0xf] }
 0x4f9   :  { %2759 = vmatpush.bf16.msra.mxu0 %v8754_v36  ;;  %2789 = vmatpush.bf16.msra.mxu2 %v8742_v0  ;;  %v8852_v47 = vor.u32 %v11069_v44, %v8851_v42  ;;  %v8803_v0 = vld [vmem:[%s13921_s1 + $0x50] sm:$0xf]  ;;  %v2373_v42 = vperm.slane %v13220_v58, 0  ;;  %v11048_v44 = vld [vmem:[%s13921_s1 + $0x14] sm:$0xf] }
 0x4fa   :  { %v8804_v62 = vor.u32 %v11057_v1, %v8803_v0  ;;  %v11049_v0 = vld [vmem:[%s13921_s1 + $0x14] sm:$0xf0]  ;;  %v8893_v1 = vld [vmem:[%s13921_s1 + $0x190] sm:$0xf]  ;;  %v8763_v12 = vld [vmem:[%s13921_s1] sm:$0xf] }
 0x4fc   :  { %2742 = vmatpush.bf16.msra.mxu3 %v8714_v22  ;;  %2772 = vmatpush.bf16.msra.mxu1 %v8702_v52  ;;  %v8729_v22 = vld [vmem:[%s13921_s1 + $0x140] sm:$0xf]  ;;  %v8805_v52 = vld [vmem:[%s13921_s1 + $0x58] sm:$0xf0] }
 0x4fd   :  { %2760 = vmatpush.bf16.msra.mxu0 %v8746_v32  ;;  %2790 = vmatpush.bf16.msra.mxu2 %v8734_v7  ;;  %v8808_v56 = vor.u32 %v11056_v49, %v8805_v52  ;;  %v2374_v7 = vperm.slane %v13220_v58, 1  ;;  %v8779_v49 = vld [vmem:[%s13921_s1 + $0x20] sm:$0xf]  ;;  %v11051_v52 = vld [vmem:[%s13921_s1 + $0x24] sm:$0xf0] }
 0x4fe   :  { %2523 = vmatmul.bf16.vlgmr.msrb.gmra.mxu1 %v2022_v10  ;;  %2537 = vmatmul.bf16.vlgmr.msrb.gmra.mxu2 %v2022_v10 }
 0x500   :  { %2743 = vmatpush.bf16.msra.mxu3 %v8706_v28  ;;  %2773 = vmatpush.bf16.msra.mxu1 %v8694_v51  ;;  %v8730_v28 = vor.u32 %v11087_v24, %v8729_v22  ;;  %v11054_v51 = vld [vmem:[%s13921_s1 + $0x44] sm:$0xf]  ;;  %v8787_v24 = vld [vmem:[%s13921_s1 + $0x30] sm:$0xf] }
 0x501   :  { %2948 = vmatpush.bf16.msrb.mxu2 %v8824_v33  ;;  %v8800_v2 = vor.u32 %v11054_v51, %v8797_v60  ;;  %v11046_v51 = vld [vmem:[%s13921_s1 + $0x4] sm:$0xf]  ;;  %v8771_v60 = vld [vmem:[%s13921_s1 + $0x10] sm:$0xf] }
 0x504   :  { %2744 = vmatpush.bf16.msra.mxu3 %v8698_v48  ;;  %2774 = vmatpush.bf16.msra.mxu1 %v8686_v5  ;;  %v8942_v48 = vor.u32 %v11109_v50, %v8941_v46  ;;  %v8773_v46 = vld [vmem:[%s13921_s1 + $0x18] sm:$0xf0] }
 0x505   :  { %2949 = vmatpush.bf16.msrb.mxu2 %v8816_v43  ;;  %v11050_v43 = vld [vmem:[%s13921_s1 + $0x24] sm:$0xf] }
 0x507   :  { %2347 = vmatmul.bf16.vlgmr.msrb.gmra.mxu3 %v2258_v16  ;;  %2361 = vmatmul.bf16.vlgmr.msrb.gmra.mxu0 %v2258_v16  ;;  %v11089_v16 = vld [vmem:[%s13921_s1 + $0x154] sm:$0xf0] }
 0x508   :  { %2745 = vmatpush.bf16.msra.mxu3 %v8690_v34  ;;  %v8738_v17 = vor.u32 %v11089_v16, %v8737_v8  ;;  %2775 = vmatpush.bf16.msra.mxu1 %v8678_v18  ;;  %v11067_v34 = vld [vmem:[%s13921_s1 + $0xa4] sm:$0xf0]  ;;  %v8827_v8 = vld [vmem:[%s13921_s1 + $0x80] sm:$0xf] }
 0x509   :  { %v8844_v36 = vor.u32 %v11067_v34, %v8843_v29  ;;  %2950 = vmatpush.bf16.msrb.mxu2 %v8808_v56  ;;  %v11103_v18 = vld [vmem:[%s13921_s1 + $0x1c4] sm:$0xf0] }
 0x50a   :  { %2761 = vmatpush.bf16.msra.mxu0 %v8738_v17  ;;  %v8918_v9 = vor.u32 %v11103_v18, %v8917_v40  ;;  %v11099_v29 = vld [vmem:[%s13921_s1 + $0x1a4] sm:$0xf0]  ;;  %v11068_v18 = vld [vmem:[%s13921_s1 + $0xb4] sm:$0xf] }
 0x50b   :  { %v8902_v41 = vor.u32 %v11099_v29, %v8901_v53  ;;  %v8837_v29 = vld [vmem:[%s13921_s1 + $0x98] sm:$0xf0] }
 0x50c   :  { %2746 = vmatpush.bf16.msra.mxu3 %v8682_v3  ;;  %2776 = vmatpush.bf16.msra.mxu1 %v8670_v30  ;;  %v8835_v3 = vld [vmem:[%s13921_s1 + $0x90] sm:$0xf]  ;;  %v11101_v30 = vld [vmem:[%s13921_s1 + $0x1b4] sm:$0xf0] }
 0x50d   :  { %v8836_v5 = vor.u32 %v11065_v4, %v8835_v3  ;;  %2951 = vmatpush.bf16.msrb.mxu2 %v8800_v2  ;;  %v11097_v4 = vld [vmem:[%s13921_s1 + $0x194] sm:$0xf0] }
 0x50e   :  { %2762 = vmatpush.bf16.msra.mxu0 %v8730_v28  ;;  %v8788_v28 = vor.u32 %v11053_v25, %v8787_v24 }
 0x510   :  { %2747 = vmatpush.bf16.msra.mxu3 %v8674_v15  ;;  %3128 = vmatpush.bf16.msrb.mxu1 %v8942_v48  ;;  %v11055_v15 = vld [vmem:[%s13921_s1 + $0x44] sm:$0xf0]  ;;  %v8776_v48 = vor.u32 %v11048_v44, %v8773_v46  ;;  %v11114_v46 = vld [vmem:[%s13921_s1 + $0x224] sm:$0xf] }
 0x511   :  { %v8796_v17 = vor.u32 %v11055_v15, %v8795_v14  ;;  %2952 = vmatpush.bf16.msrb.mxu2 %v8792_v13  ;;  %v11047_v13 = vld [vmem:[%s13921_s1 + $0x4] sm:$0xf0]  ;;  %v8885_v14 = vld [vmem:[%s13921_s1 + $0x180] sm:$0xf] }
 0x512   :  { %2938 = vmatpush.bf16.msrb.mxu0 %v8852_v47  ;;  %v8764_v15 = vor.u32 %v11047_v13, %v8763_v12 }
 0x514   :  { %2748 = vmatpush.bf16.msra.mxu3 %v8666_v23  ;;  %3129 = vmatpush.bf16.msrb.mxu1 %v8934_v63  ;;  %v8784_v23 = vor.u32 %v11050_v43, %v8781_v21  ;;  %v8765_v63 = vld [vmem:[%s13921_s1 + $0x8] sm:$0xf0] }
 0x516   :  { %2939 = vmatpush.bf16.msrb.mxu0 %v8844_v36  ;;  %2953 = vmatpush.bf16.msrb.mxu2 %v8784_v23 }
 0x518   :  { %2920 = vmatpush.bf16.msrb.mxu3 %v8820_v38  ;;  %3130 = vmatpush.bf16.msrb.mxu1 %v8926_v6  ;;  %v8910_v38 = vor.u32 %v11101_v30, %v8909_v27  ;;  %v8894_v6 = vor.u32 %v11097_v4, %v8893_v1  ;;  %v8957_v4 = vld [vmem:[%s13921_s1 + $0x210] sm:$0xf] }
 0x51a   :  { %2940 = vmatpush.bf16.msrb.mxu0 %v8836_v5  ;;  %2954 = vmatpush.bf16.msrb.mxu2 %v8776_v48  ;;  %v8973_v48 = vld [vmem:[%s13921_s1 + $0x230] sm:$0xf] }
 0x51c   :  { %2921 = vmatpush.bf16.msrb.mxu3 %v8812_v59  ;;  %3131 = vmatpush.bf16.msrb.mxu1 %v8918_v9  ;;  %v8780_v59 = vor.u32 %v11051_v52, %v8779_v49  ;;  %v11116_v9 = vld [vmem:[%s13921_s1 + $0x234] sm:$0xf]  ;;  %v11117_v49 = vld [vmem:[%s13921_s1 + $0x234] sm:$0xf0] }
 0x520   :  { %2922 = vmatpush.bf16.msrb.mxu3 %v8804_v62  ;;  %3132 = vmatpush.bf16.msrb.mxu1 %v8910_v38 }
 0x524   :  { %2923 = vmatpush.bf16.msrb.mxu3 %v8796_v17  ;;  %3133 = vmatpush.bf16.msrb.mxu1 %v8902_v41  ;;  %v8965_v41 = vld [vmem:[%s13921_s1 + $0x220] sm:$0xf] }
 0x528   :  { %2924 = vmatpush.bf16.msrb.mxu3 %v8788_v28  ;;  %3134 = vmatpush.bf16.msrb.mxu1 %v8894_v6 }
 0x52c   :  { %2925 = vmatpush.bf16.msrb.mxu3 %v8780_v59  ;;  %v11112_v59 = vld [vmem:[%s13921_s1 + $0x214] sm:$0xf] }
 0x56b   :  { %v2220_v20 = vpop.f32.mrf.mxu1 }
 0x571   :  { %v2234_v32 = vpop.f32.mrf.mxu2 }
 0x573   :  { %v2222_v55 = vpop.f32.mrf.mxu1 }
 0x574   :  { %v13183_v10 = vpop.f32.mrf.mxu0 }
 0x575   :  { %v2235_v33 = vadd.f32 %v2234_v32, %v13183_v10  ;;  %v8828_v10 = vor.u32 %v11063_v35, %v8827_v8  ;;  %v8772_v32 = vor.u32 %v11049_v0, %v8771_v60  ;;  %v11095_v8 = vld [vmem:[%s13921_s1 + $0x184] sm:$0xf0]  ;;  %v8829_v0 = vld [vmem:[%s13921_s1 + $0x88] sm:$0xf0] }
 0x576   :  { %v8886_v17 = vor.u32 %v11095_v8, %v8885_v14  ;;  %v11106_v14 = vld [vmem:[%s13921_s1 + $0x1e4] sm:$0xf] }
 0x577   :  { %2941 = vmatpush.bf16.msrb.mxu0 %v8828_v10  ;;  %2926 = vmatpush.bf16.msrb.mxu3 %v8772_v32 }
 0x578   :  { %3135 = vmatpush.bf16.msrb.mxu1 %v8886_v17 }
 0x579   :  { %v2236_v50 = vpop.f32.mrf.mxu2 }
 0x57a   :  { %v13206_v45 = vpop.f32.mrf.mxu3 }
 0x57b   :  { %v2221_v26 = vadd.f32 %v2220_v20, %v13206_v45  ;;  %2927 = vmatpush.bf16.msrb.mxu3 %v8764_v15  ;;  %v8935_v15 = vld [vmem:[%s13921_s1 + $0x1e8] sm:$0xf0] }
 0x57c   :  { %v13214_v54 = vpop.f32.mrf.mxu0 }
 0x57d   :  { %v2237_v45 = vadd.f32 %v2236_v50, %v13214_v54  ;;  %v8768_v54 = vor.u32 %v11046_v51, %v8765_v63  ;;  %v8967_v50 = vld [vmem:[%s13921_s1 + $0x228] sm:$0xf0]  ;;  %v11115_v51 = vld [vmem:[%s13921_s1 + $0x224] sm:$0xf0] }
 0x57e   :  { %v8966_v1 = vor.u32 %v11115_v51, %v8965_v41  ;;  %v11154_v41 = vld [vmem:[%s13923_s5 + $0x124] sm:$0xf] }
 0x57f   :  { %2955 = vmatpush.bf16.msrb.mxu2 %v8768_v54  ;;  %v11062_v54 = vld [vmem:[%s13921_s1 + $0x84] sm:$0xf] }
 0x580   :  { %v8832_v32 = vor.u32 %v11062_v54, %v8829_v0  ;;  %v9057_v54 = vld [vmem:[%s13923_s5 + $0x128] sm:$0xf0] }
 0x582   :  { %v13232_v39 = vpop.f32.mrf.mxu3 }
 0x583   :  { %v2223_v62 = vadd.f32 %v2222_v55, %v13232_v39  ;;  %v11113_v55 = vld [vmem:[%s13921_s1 + $0x214] sm:$0xf0] }
 0x584   :  { %v2362_v16 = vpop.f32.mrf.mxu0 }
 0x585   :  { %v2368_v19 = vadd.f32 %v2362_v16, %v2235_v33 }
 0x587   :  { %v2378_v22 = vadd.f32 %v2374_v7, %v2368_v19  ;;  %v8853_v19 = vld [vmem:[%s13921_s1 + $0xb8] sm:$0xf0] }
 0x588   :  { %v8856_v28 = vor.u32 %v11068_v18, %v8853_v19  ;;  %v8927_v18 = vld [vmem:[%s13921_s1 + $0x1d8] sm:$0xf0] }
 0x589   :  { %v2382_v31 = vmax.f32 %v2378_v22, 0.0  ;;  %v8975_v22 = vld [vmem:[%s13921_s1 + $0x238] sm:$0xf0] }
 0x58a   :  { %v2348_v47 = vpop.f32.mrf.mxu3  ;;  %v8978_v30 = vor.u32 %v11116_v9, %v8975_v22  ;;  %v11102_v9 = vld [vmem:[%s13921_s1 + $0x1c4] sm:$0xf]  ;;  %v11100_v22 = vld [vmem:[%s13921_s1 + $0x1b4] sm:$0xf] }
 0x58b   :  { %v2391_v56 = vrot.slane %v2382_v31, 4  ;;  %v2367_v57 = vadd.f32 %v2348_v47, %v2221_v26  ;;  %v11066_v31 = vld [vmem:[%s13921_s1 + $0xa4] sm:$0xf] }
 0x58c   :  { %v2364_v34 = vpop.f32.mrf.mxu0 }
 0x58d   :  { %2404 = vst.msk [vmem:[#allocation10 + $0x8] sm:$0xf0] %vm2403_vm2, %v2391_v56  ;;  %v2377_v36 = vadd.f32 %v2373_v42, %v2367_v57  ;;  %v2370_v61 = vadd.f32 %v2364_v34, %v2237_v45  ;;  %v8970_v57 = vor.u32 %v11114_v46, %v8967_v50  ;;  %v8974_v34 = vor.u32 %v11117_v49, %v8973_v48  ;;  %v13337_v46 = vpop.f32.mrf.mxu2  ;;  %v13343_v48 = vpop.f32.mrf.mxu1 }
 0x58f   :  { %v2381_v2 = vmax.f32 %v2377_v36, 0.0  ;;  %v2380_v3 = vadd.f32 %v2374_v7, %v2370_v61  ;;  %v8959_v36 = vld [vmem:[%s13921_s1 + $0x218] sm:$0xf0] }
 0x590   :  { %v8962_v60 = vor.u32 %v11112_v59, %v8959_v36  ;;  %v9055_v36 = vld [vmem:[%s13923_s5 + $0x120] sm:$0xf] }
 0x591   :  { %v2390_v37 = vrot.slane %v2381_v2, 4  ;;  %v2384_v5 = vmax.f32 %v2380_v3, 0.0  ;;  %v11110_v2 = vld [vmem:[%s13921_s1 + $0x204] sm:$0xf]  ;;  %v8951_v3 = vld [vmem:[%s13921_s1 + $0x208] sm:$0xf0] }
 0x592   :  { %v2350_v11 = vpop.f32.mrf.mxu3 }
 0x593   :  { %2402 = vst [vmem:[#allocation10] sm:$0xf0] %v2390_v37  ;;  %v2394_v58 = vrot.slane %v2384_v5, 4  ;;  %v2369_v7 = vadd.f32 %v2350_v11, %v2223_v62  ;;  %v11108_v62 = vld [vmem:[%s13921_s1 + $0x1f4] sm:$0xf]  ;;  %v8954_v5 = vor.u32 %v11110_v2, %v8951_v3  ;;  %v8958_v11 = vor.u32 %v11113_v55, %v8957_v4 }
 0x594   :  { %v2574_v20 = vld [vmem:[#allocation10 + $0x8] sm:$0xf0]  ;;  %v9095_v2 = vld [vmem:[%s13923_s5 + $0x170] sm:$0xf]  ;;  %v11165_v3 = vld [vmem:[%s13923_s5 + $0x174] sm:$0xf0] }
 0x595   :  { %v2395_v33 = vsel %vm2389_vm3, %v2391_v56, %v2394_v58  ;;  %2409 = vst.msk [vmem:[#allocation10 + $0x28] sm:$0xf] %vm2408_vm4, %v2394_v58  ;;  %v2379_v39 = vadd.f32 %v2373_v42, %v2369_v7  ;;  %v8845_v42 = vld [vmem:[%s13921_s1 + $0xa8] sm:$0xf0]  ;;  %v11064_v56 = vld [vmem:[%s13921_s1 + $0x94] sm:$0xf]  ;;  %v13339_v50 = vpop.f32.mrf.mxu2  ;;  %v13358_v51 = vpop.f32.mrf.mxu1  ;;  %v9096_v55 = vor.u32 %v11165_v3, %v9095_v2 }
 0x596   :  { %2406 = vst.msk [vmem:[#allocation10 + $0x18] sm:$0xff] %vm566_vm1, %v2395_v33  ;;  %v8848_v45 = vor.u32 %v11066_v31, %v8845_v42  ;;  %v8840_v63 = vor.u32 %v11064_v56, %v8837_v29  ;;  %v8949_v58 = vld [vmem:[%s13921_s1 + $0x200] sm:$0xf]  ;;  %v11111_v7 = vld [vmem:[%s13921_s1 + $0x204] sm:$0xf0] }
 0x597   :  { %v2383_v16 = vmax.f32 %v2379_v39, 0.0  ;;  %v2544_v12 = vld [vmem:[#allocation10 + $0x8] sm:$0xff]  ;;  %v8950_v8 = vor.u32 %v11111_v7, %v8949_v58  ;;  %v8895_v31 = vld [vmem:[%s13921_s1 + $0x198] sm:$0xf0]  ;;  %v11156_v56 = vld [vmem:[%s13923_s5 + $0x134] sm:$0xf] }
 0x598   :  { %v9065_v29 = vld [vmem:[%s13923_s5 + $0x138] sm:$0xf0]  ;;  %v11164_v4 = vld [vmem:[%s13923_s5 + $0x174] sm:$0xf]  ;;  %v11133_v3 = vld [vmem:[%s13923_s5 + $0x74] sm:$0xf0] }
 0x599   :  { %v2392_v35 = vrot.slane %v2383_v16, 4  ;;  %v8938_v16 = vor.u32 %v11106_v14, %v8935_v15  ;;  %v9049_v58 = vld [vmem:[%s13923_s5 + $0x118] sm:$0xf0]  ;;  %v11162_v15 = vld [vmem:[%s13923_s5 + $0x164] sm:$0xf] }
 0x59a   :  { %v2573_v24 = vld [vmem:[#allocation10] sm:$0xf0] }
 0x59b   :  { %v13279_v40 = vsel %vm2389_vm3, %v2390_v37, %v2392_v35  ;;  %2407 = vst [vmem:[#allocation10 + $0x20] sm:$0xf] %v2392_v35  ;;  %v8943_v37 = vld [vmem:[%s13921_s1 + $0x1f8] sm:$0xf0]  ;;  %v2543_v6 = vld [vmem:[#allocation10] sm:$0xff] }
 0x59c   :  { %v2576_v10 = vld [vmem:[#allocation10 + $0x28] sm:$0xf]  ;;  %v2602_v26 = vpack.c.bf16 %v13279_v40, %v2573_v24  ;;  %v8946_v33 = vor.u32 %v11108_v62, %v8943_v37  ;;  %v2571_v13 = vpack.c.bf16 %v13279_v40, %v2543_v6  ;;  %v11104_v35 = vld [vmem:[%s13921_s1 + $0x1d4] sm:$0xf]  ;;  %v9047_v62 = vld [vmem:[%s13923_s5 + $0x110] sm:$0xf] }
 0x59d   :  { %v13284_v43 = vld [vmem:[#allocation10 + $0x18] sm:$0xff]  ;;  %v2605_v21 = vpack.c.bf16 %v2576_v10, %v2576_v10  ;;  %v8930_v10 = vor.u32 %v11104_v35, %v8927_v18  ;;  %v2977_v24 = vld [vmem:[#allocation10 + $0x28] sm:$0xff]  ;;  %v11150_v18 = vld [vmem:[%s13923_s5 + $0x104] sm:$0xf] }
 0x59e   :  { %v2603_v23 = vpack.c.bf16 %v13284_v43, %v2574_v20  ;;  %v2611_v52 = vrot.slane %v2602_v26, 2  ;;  %v2572_v39 = vpack.c.bf16 %v13284_v43, %v2544_v12  ;;  %v8919_v20 = vld [vmem:[%s13921_s1 + $0x1c8] sm:$0xf0]  ;;  %v11096_v26 = vld [vmem:[%s13921_s1 + $0x194] sm:$0xf] }
 0x59f   :  { %v2615_v25 = vrot.slane %v2605_v21, 2  ;;  %v8922_v21 = vor.u32 %v11102_v9, %v8919_v20  ;;  %v8898_v42 = vor.u32 %v11096_v26, %v8895_v31  ;;  %v11153_v37 = vld [vmem:[%s13923_s5 + $0x114] sm:$0xf0]  ;;  %v11151_v35 = vld [vmem:[%s13923_s5 + $0x104] sm:$0xf0] }
 0x5a0   :  { %v2614_v27 = vrot.slane %v2603_v23, 2  ;;  %v8911_v23 = vld [vmem:[%s13921_s1 + $0x1b8] sm:$0xf0]  ;;  %v9048_v6 = vor.u32 %v11153_v37, %v9047_v62  ;;  %v11148_v31 = vld [vmem:[%s13923_s5 + $0xf4] sm:$0xf] }
 0x5a1   :  { %v3242_v62 = vld [vmem:[#allocation11] sm:$0xf] }
 0x5a2   :  { %v2616_v38 = vsel %vm2610_vm5, %v2614_v27, %v2615_v25  ;;  %v2575_v44 = vld [vmem:[#allocation10 + $0x20] sm:$0xf]  ;;  %v8914_v25 = vor.u32 %v11100_v22, %v8911_v23  ;;  %v11098_v27 = vld [vmem:[%s13921_s1 + $0x1a4] sm:$0xf]  ;;  %v11161_v22 = vld [vmem:[%s13923_s5 + $0x154] sm:$0xf0] }
 0x5a3   :  { %8759 = vmatmul.msk.bf16.vlgmr.msra.gmra.mxu0 %vm566_vm1, %v2616_v38  ;;  %8760 = vmatmul.msk.bf16.vlgmr.msra.gmra.mxu2 %vm566_vm1, %v2616_v38  ;;  %v2604_v47 = vpack.c.bf16 %v2575_v44, %v2575_v44  ;;  %v2976_v17 = vld [vmem:[#allocation10 + $0x20] sm:$0xff]  ;;  %v11160_v23 = vld [vmem:[%s13923_s5 + $0x154] sm:$0xf]  ;;  %3244 = vst [vmem:[#allocation13] sm:$0xf] %v3242_v62 }
 0x5a4   :  { %2966 = vmatpush.bf16.msra.mxu0 %v8856_v28  ;;  %3174 = vmatpush.bf16.msra.mxu2 %v8978_v30  ;;  %v3003_v19 = vpack.c.bf16 %v2976_v17, %v13279_v40  ;;  %v3004_v40 = vpack.c.bf16 %v2977_v24, %v13284_v43  ;;  %v8903_v28 = vld [vmem:[%s13921_s1 + $0x1a8] sm:$0xf0]  ;;  %v11094_v38 = vld [vmem:[%s13921_s1 + $0x184] sm:$0xf] }
 0x5a5   :  { %v2612_v53 = vrot.slane %v2604_v47, 2  ;;  %v8906_v30 = vor.u32 %v11098_v27, %v8903_v28  ;;  %v8887_v43 = vld [vmem:[%s13921_s1 + $0x188] sm:$0xf0]  ;;  %v11149_v27 = vld [vmem:[%s13923_s5 + $0xf4] sm:$0xf0] }
 0x5a6   :  { %v8890_v44 = vor.u32 %v11094_v38, %v8887_v43 }
 0x5a7   :  { %v2613_v61 = vsel %vm2610_vm5, %v2611_v52, %v2612_v53  ;;  %v9063_v53 = vld [vmem:[%s13923_s5 + $0x130] sm:$0xf] }
 0x5a8   :  { %2749 = vmatmul.bf16.vlgmr.msra.gmra.mxu3 %v2613_v61  ;;  %2777 = vmatmul.bf16.vlgmr.msra.gmra.mxu1 %v2613_v61  ;;  %v11155_v61 = vld [vmem:[%s13923_s5 + $0x124] sm:$0xf0] }
 0x5a9   :  { %2967 = vmatpush.bf16.msra.mxu0 %v8848_v45  ;;  %3175 = vmatpush.bf16.msra.mxu2 %v8970_v57  ;;  %v11157_v45 = vld [vmem:[%s13923_s5 + $0x134] sm:$0xf0] }
 0x5aa   :  { %3146 = vmatpush.bf16.msra.mxu3 %v8974_v34  ;;  %v9064_v57 = vor.u32 %v11157_v45, %v9063_v53  ;;  %v9068_v34 = vor.u32 %v11156_v56, %v9065_v29  ;;  %3457 = vmatpush.bf16.msra.mxu1 %v9096_v55  ;;  %v11159_v53 = vld [vmem:[%s13923_s5 + $0x144] sm:$0xf0]  ;;  %v11158_v45 = vld [vmem:[%s13923_s5 + $0x144] sm:$0xf]  ;;  %v9023_v29 = vld [vmem:[%s13923_s5 + $0xe0] sm:$0xf] }
 0x5ab   :  { %v9163_v55 = vld [vmem:[%s13923_s5 + $0x78] sm:$0xf0] }
 0x5ad   :  { %2968 = vmatpush.bf16.msra.mxu0 %v8840_v63  ;;  %3176 = vmatpush.bf16.msra.mxu2 %v8962_v60  ;;  %v9056_v63 = vor.u32 %v11155_v61, %v9055_v36  ;;  %v9060_v60 = vor.u32 %v11154_v41, %v9057_v54  ;;  %v11146_v41 = vld [vmem:[%s13923_s5 + $0xe4] sm:$0xf]  ;;  %v9161_v54 = vld [vmem:[%s13923_s5 + $0x70] sm:$0xf] }
 0x5ae   :  { %3147 = vmatpush.bf16.msra.mxu3 %v8966_v1  ;;  %v9162_v37 = vor.u32 %v11133_v3, %v9161_v54  ;;  %v9185_v3 = vld [vmem:[%s13923_s5 + $0xa0] sm:$0xf] }
 0x5b1   :  { %2969 = vmatpush.bf16.msra.mxu0 %v8832_v32  ;;  %3177 = vmatpush.bf16.msra.mxu2 %v8954_v5  ;;  %v9097_v32 = vld [vmem:[%s13923_s5 + $0x178] sm:$0xf0] }
 0x5b2   :  { %3148 = vmatpush.bf16.msra.mxu3 %v8958_v11  ;;  %v9100_v5 = vor.u32 %v11164_v4, %v9097_v32  ;;  %v11152_v11 = vld [vmem:[%s13923_s5 + $0x114] sm:$0xf] }
 0x5b3   :  { %8857 = vmatmul.msk.bf16.vlgmr.msrb.gmra.mxu0 %vm566_vm1, %v2572_v39  ;;  %2956 = vmatmul.bf16.vlgmr.msrb.gmra.mxu2 %v2571_v13  ;;  %v9052_v12 = vor.u32 %v11152_v11, %v9049_v58  ;;  %v11132_v4 = vld [vmem:[%s13923_s5 + $0x74] sm:$0xf]  ;;  %v11145_v11 = vld [vmem:[%s13923_s5 + $0xd4] sm:$0xf0] }
 0x5b5   :  { %3156 = vmatpush.bf16.msrb.mxu0 %v8946_v33  ;;  %3466 = vmatpush.bf16.msrb.mxu2 %v9068_v34  ;;  %v9087_v33 = vld [vmem:[%s13923_s5 + $0x160] sm:$0xf]  ;;  %v11147_v34 = vld [vmem:[%s13923_s5 + $0xe4] sm:$0xf0] }
 0x5b6   :  { %3149 = vmatpush.bf16.msra.mxu3 %v8950_v8  ;;  %v9089_v8 = vld [vmem:[%s13923_s5 + $0x168] sm:$0xf0]  ;;  %v9024_v61 = vor.u32 %v11147_v34, %v9023_v29  ;;  %v11140_v29 = vld [vmem:[%s13923_s5 + $0xb4] sm:$0xf]  ;;  %v9195_v34 = vld [vmem:[%s13923_s5 + $0xb8] sm:$0xf0] }
 0x5b7   :  { %v9092_v17 = vor.u32 %v11162_v15, %v9089_v8  ;;  %v11131_v15 = vld [vmem:[%s13923_s5 + $0x64] sm:$0xf0]  ;;  %v11130_v8 = vld [vmem:[%s13923_s5 + $0x64] sm:$0xf] }
 0x5b8   :  { %2928 = vmatmul.bf16.vlgmr.msrb.gmra.mxu3 %v2571_v13  ;;  %3136 = vmatmul.bf16.vlgmr.msrb.gmra.mxu1 %v3003_v19 }
 0x5b9   :  { %3157 = vmatpush.bf16.msrb.mxu0 %v8938_v16  ;;  %3467 = vmatpush.bf16.msrb.mxu2 %v9060_v60  ;;  %v9039_v16 = vld [vmem:[%s13923_s5 + $0x100] sm:$0xf] }
 0x5ba   :  { %3440 = vmatpush.bf16.msrb.mxu3 %v9064_v57  ;;  %v9073_v57 = vld [vmem:[%s13923_s5 + $0x148] sm:$0xf0] }
 0x5bb   :  { %v9076_v36 = vor.u32 %v11158_v45, %v9073_v57 }
 0x5bd   :  { %3158 = vmatpush.bf16.msrb.mxu0 %v8930_v10  ;;  %3468 = vmatpush.bf16.msrb.mxu2 %v9052_v12  ;;  %v9040_v10 = vor.u32 %v11151_v35, %v9039_v16  ;;  %v11144_v12 = vld [vmem:[%s13923_s5 + $0xd4] sm:$0xf]  ;;  %v9155_v35 = vld [vmem:[%s13923_s5 + $0x68] sm:$0xf0] }
 0x5be   :  { %3441 = vmatpush.bf16.msrb.mxu3 %v9056_v63  ;;  %v9025_v63 = vld [vmem:[%s13923_s5 + $0xe8] sm:$0xf0] }
 0x5bf   :  { %v9028_v2 = vor.u32 %v11146_v41, %v9025_v63  ;;  %v9137_v41 = vld [vmem:[%s13923_s5 + $0x40] sm:$0xf]  ;;  %v11127_v63 = vld [vmem:[%s13923_s5 + $0x44] sm:$0xf0] }
 0x5c0   :  { %v9138_v54 = vor.u32 %v11127_v63, %v9137_v41 }
 0x5c1   :  { %3159 = vmatpush.bf16.msrb.mxu0 %v8922_v21  ;;  %v9079_v21 = vld [vmem:[%s13923_s5 + $0x150] sm:$0xf] }
 0x5c2   :  { %3442 = vmatpush.bf16.msrb.mxu3 %v9048_v6  ;;  %v9080_v24 = vor.u32 %v11161_v22, %v9079_v21  ;;  %v9015_v6 = vld [vmem:[%s13923_s5 + $0xd0] sm:$0xf]  ;;  %v11142_v21 = vld [vmem:[%s13923_s5 + $0xc4] sm:$0xf]  ;;  %v3243_v22 = vld [vmem:[#allocation11 + $0x8] sm:$0xf] }
 0x5c3   :  { %8858 = vmatmul.msk.bf16.vlgmr.msra.gmra.mxu0 %vm566_vm1, %v2572_v39  ;;  %8980 = vmatmul.msk.bf16.vlgmr.msra.gmra.mxu2 %vm566_vm1, %v3004_v40  ;;  %v11163_v39 = vld [vmem:[%s13923_s5 + $0x164] sm:$0xf0]  ;;  %v9016_v58 = vor.u32 %v11145_v11, %v9015_v6  ;;  %3245 = vst.msk [vmem:[#allocation13 + $0x8] sm:$0xf] %vm2408_vm4, %v3243_v22  ;;  %v11138_v11 = vld [vmem:[%s13923_s5 + $0xa4] sm:$0xf] }
 0x5c4   :  { %v9088_v14 = vor.u32 %v11163_v39, %v9087_v33  ;;  %v9017_v33 = vld [vmem:[%s13923_s5 + $0xd8] sm:$0xf0]  ;;  %v9177_v22 = vld [vmem:[%s13923_s5 + $0x90] sm:$0xf] }
 0x5c5   :  { %3160 = vmatpush.bf16.msrb.mxu0 %v8914_v25  ;;  %v9081_v25 = vld [vmem:[%s13923_s5 + $0x158] sm:$0xf0]  ;;  %v9020_v39 = vor.u32 %v11144_v12, %v9017_v33 }
 0x5c6   :  { %3458 = vmatpush.bf16.msra.mxu1 %v9088_v14  ;;  %3443 = vmatpush.bf16.msrb.mxu3 %v9040_v10  ;;  %v9153_v14 = vld [vmem:[%s13923_s5 + $0x60] sm:$0xf] }
 0x5c7   :  { %v9007_v10 = vld [vmem:[%s13923_s5 + $0xc0] sm:$0xf] }
 0x5c8   :  { %8979 = vmatmul.msk.bf16.vlgmr.msra.gmra.mxu3 %vm566_vm1, %v3004_v40  ;;  %v9031_v40 = vld [vmem:[%s13923_s5 + $0xf0] sm:$0xf] }
 0x5c9   :  { %3161 = vmatpush.bf16.msrb.mxu0 %v8906_v30  ;;  %v9084_v30 = vor.u32 %v11160_v23, %v9081_v25  ;;  %v9032_v26 = vor.u32 %v11149_v27, %v9031_v40  ;;  %v9145_v25 = vld [vmem:[%s13923_s5 + $0x50] sm:$0xf]  ;;  %v13432_v40 = vld [vmem:[#allocation27] sm:$0x3] }
 0x5ca   :  { %3459 = vmatpush.bf16.msra.mxu1 %v9080_v24  ;;  %v9009_v24 = vld [vmem:[%s13923_s5 + $0xc8] sm:$0xf0]  ;;  %v2432_v62 = vperm.slane %v13432_v40, 1 }
 0x5cb   :  { %3444 = vmatpush.bf16.msrb.mxu3 %v9032_v26  ;;  %v11129_v26 = vld [vmem:[%s13923_s5 + $0x54] sm:$0xf0] }
 0x5cd   :  { %3162 = vmatpush.bf16.msrb.mxu0 %v8898_v42  ;;  %v9033_v42 = vld [vmem:[%s13923_s5 + $0xf8] sm:$0xf0] }
 0x5ce   :  { %v9036_v43 = vor.u32 %v11148_v31, %v9033_v42  ;;  %v11128_v31 = vld [vmem:[%s13923_s5 + $0x54] sm:$0xf]  ;;  %v9146_v42 = vor.u32 %v11129_v26, %v9145_v25  ;;  %v9179_v25 = vld [vmem:[%s13923_s5 + $0x98] sm:$0xf0] }
 0x5cf   :  { %3445 = vmatpush.bf16.msrb.mxu3 %v9024_v61  ;;  %v9198_v61 = vor.u32 %v11140_v29, %v9195_v34  ;;  %v11135_v29 = vld [vmem:[%s13923_s5 + $0x84] sm:$0xf0] }
 0x5d1   :  { %3163 = vmatpush.bf16.msrb.mxu0 %v8890_v44  ;;  %v9071_v44 = vld [vmem:[%s13923_s5 + $0x140] sm:$0xf] }
 0x5d2   :  { %v9072_v56 = vor.u32 %v11159_v53, %v9071_v44  ;;  %v9193_v44 = vld [vmem:[%s13923_s5 + $0xb0] sm:$0xf]  ;;  %v11141_v53 = vld [vmem:[%s13923_s5 + $0xb4] sm:$0xf0] }
 0x5d3   :  { %3446 = vmatpush.bf16.msrb.mxu3 %v9016_v58  ;;  %v9194_v57 = vor.u32 %v11141_v53, %v9193_v44  ;;  %v9187_v58 = vld [vmem:[%s13923_s5 + $0xa8] sm:$0xf0]  ;;  %v11122_v44 = vld [vmem:[%s13923_s5 + $0x24] sm:$0xf] }
 0x5d4   :  { %3164 = vmatmul.bf16.vlgmr.msrb.gmra.mxu0 %v3003_v19  ;;  %v9041_v19 = vld [vmem:[%s13923_s5 + $0x108] sm:$0xf0]  ;;  %3460 = vmatpush.bf16.msra.mxu1 %v9072_v56 }
 0x5d5   :  { %3483 = vmatpush.bf16.msra.mxu0 %v9100_v5  ;;  %v9044_v9 = vor.u32 %v11150_v18, %v9041_v19  ;;  %v9166_v5 = vor.u32 %v11132_v4, %v9163_v55  ;;  %v9158_v19 = vor.u32 %v11130_v8, %v9155_v35  ;;  %v11139_v4 = vld [vmem:[%s13923_s5 + $0xa4] sm:$0xf0]  ;;  %v2431_v55 = vperm.slane %v13432_v40, 0  ;;  %v9129_v8 = vld [vmem:[%s13923_s5 + $0x30] sm:$0xf] }
 0x5d6   :  { %v9186_v6 = vor.u32 %v11139_v4, %v9185_v3  ;;  %v11124_v35 = vld [vmem:[%s13923_s5 + $0x34] sm:$0xf] }
 0x5d7   :  { %3469 = vmatpush.bf16.msrb.mxu2 %v9044_v9  ;;  %v11143_v9 = vld [vmem:[%s13923_s5 + $0xc4] sm:$0xf0] }
 0x5d8   :  { %3615 = vmatpush.bf16.msrb.mxu1 %v9162_v37  ;;  %v9008_v23 = vor.u32 %v11143_v9, %v9007_v10 }
 0x5d9   :  { %3484 = vmatpush.bf16.msra.mxu0 %v9092_v17  ;;  %v9154_v17 = vor.u32 %v11131_v15, %v9153_v14  ;;  %v9190_v14 = vor.u32 %v11138_v11, %v9187_v58 }
 0x5da   :  { %3447 = vmatpush.bf16.msrb.mxu3 %v9008_v23  ;;  %v11137_v23 = vld [vmem:[%s13923_s5 + $0x94] sm:$0xf0] }
 0x5db   :  { %3470 = vmatpush.bf16.msrb.mxu2 %v9036_v43  ;;  %v9147_v43 = vld [vmem:[%s13923_s5 + $0x58] sm:$0xf0] }
 0x5dc   :  { %3616 = vmatpush.bf16.msrb.mxu1 %v9154_v17  ;;  %v11125_v17 = vld [vmem:[%s13923_s5 + $0x34] sm:$0xf0] }
 0x5dd   :  { %3485 = vmatpush.bf16.msra.mxu0 %v9084_v30  ;;  %v9012_v30 = vor.u32 %v11142_v21, %v9009_v24  ;;  %v9131_v21 = vld [vmem:[%s13923_s5 + $0x38] sm:$0xf0]  ;;  %v11136_v24 = vld [vmem:[%s13923_s5 + $0x94] sm:$0xf] }
 0x5de   :  { %3632 = vmatpush.bf16.msra.mxu3 %v9194_v57  ;;  %v9169_v57 = vld [vmem:[%s13923_s5 + $0x80] sm:$0xf] }
 0x5df   :  { %3471 = vmatpush.bf16.msrb.mxu2 %v9028_v2  ;;  %v9139_v2 = vld [vmem:[%s13923_s5 + $0x48] sm:$0xf0] }
 0x5e0   :  { %3617 = vmatpush.bf16.msrb.mxu1 %v9146_v42  ;;  %v9121_v42 = vld [vmem:[%s13923_s5 + $0x20] sm:$0xf] }
 0x5e1   :  { %3486 = vmatpush.bf16.msra.mxu0 %v9076_v36 }
 0x5e2   :  { %3633 = vmatpush.bf16.msra.mxu3 %v9186_v6  ;;  %v2539_v6 = vadd.f32 %v13337_v46, %v2432_v62  ;;  %v2527_v46 = vadd.f32 %v13358_v51, %v2431_v55 }
 0x5e3   :  { %3472 = vmatpush.bf16.msrb.mxu2 %v9020_v39 }
 0x5e4   :  { %3618 = vmatpush.bf16.msrb.mxu1 %v9138_v54 }
 0x5e5   :  { %3641 = vmatpush.bf16.msrb.mxu0 %v9166_v5 }
 0x5e7   :  { %3473 = vmatpush.bf16.msrb.mxu2 %v9012_v30 }
 0x5e9   :  { %3642 = vmatpush.bf16.msrb.mxu0 %v9158_v19 }
 0x5eb   :  { %3658 = vmatpush.bf16.msra.mxu2 %v9198_v61  ;;  %v9171_v61 = vld [vmem:[%s13923_s5 + $0x88] sm:$0xf0] }
 0x5ef   :  { %3659 = vmatpush.bf16.msra.mxu2 %v9190_v14 }
 0x620   :  { %v13341_v47 = vpop.f32.mrf.mxu0 }
 0x625   :  { %v13377_v13 = vpop.f32.mrf.mxu1 }
 0x626   :  { %v13345_v49 = vpop.f32.mrf.mxu2 }
 0x627   :  { %v2793_v15 = vadd.f32 %v13345_v49, %v13377_v13 }
 0x628   :  { %v13347_v52 = vpop.f32.mrf.mxu0 }
 0x62b   :  { %v13353_v59 = vpop.f32.mrf.mxu3 }
 0x62c   :  { %v2765_v27 = vadd.f32 %v13341_v47, %v13353_v59  ;;  %v13445_v47 = vld [vmem:[#allocation29] sm:$0x3]  ;;  %v9150_v59 = vor.u32 %v11128_v31, %v9147_v43  ;;  %v9182_v31 = vor.u32 %v11136_v24, %v9179_v25  ;;  %v11123_v43 = vld [vmem:[%s13923_s5 + $0x24] sm:$0xf0] }
 0x62d   :  { %v13408_v60 = vpop.f32.mrf.mxu1  ;;  %v3190_v39 = vperm.slane %v13445_v47, 0  ;;  %v3191_v13 = vperm.slane %v13445_v47, 1 }
 0x62e   :  { %v13361_v0 = vpop.f32.mrf.mxu2  ;;  %3643 = vmatpush.bf16.msrb.mxu0 %v9150_v59  ;;  %v9123_v59 = vld [vmem:[%s13923_s5 + $0x28] sm:$0xf0]  ;;  %3660 = vmatpush.bf16.msra.mxu2 %v9182_v31 }
 0x62f   :  { %v2795_v11 = vadd.f32 %v13361_v0, %v13408_v60 }
 0x630   :  { %v13363_v1 = vpop.f32.mrf.mxu0 }
 0x633   :  { %v13373_v7 = vpop.f32.mrf.mxu3 }
 0x634   :  { %v2767_v19 = vadd.f32 %v13347_v52, %v13373_v7  ;;  %v9134_v52 = vor.u32 %v11124_v35, %v9131_v21  ;;  %v9178_v7 = vor.u32 %v11137_v23, %v9177_v22  ;;  %v11119_v21 = vld [vmem:[%s13923_s5 + $0x4] sm:$0xf0] }
 0x635   :  { %v3137_v36 = vpop.f32.mrf.mxu1 }
 0x636   :  { %v13393_v28 = vpop.f32.mrf.mxu2  ;;  %3634 = vmatpush.bf16.msra.mxu3 %v9178_v7 }
 0x637   :  { %v2958_v49 = vadd.f32 %v13393_v28, %v2793_v15 }
 0x638   :  { %v13385_v20 = vpop.f32.mrf.mxu0 }
 0x63b   :  { %v13397_v38 = vpop.f32.mrf.mxu3 }
 0x63c   :  { %v2930_v45 = vadd.f32 %v13397_v38, %v2765_v27  ;;  %v11126_v38 = vld [vmem:[%s13923_s5 + $0x44] sm:$0xf]  ;;  %v2525_v27 = vadd.f32 %v13343_v48, %v2431_v55  ;;  %v9122_v48 = vor.u32 %v11123_v43, %v9121_v42 }
 0x63d   :  { %v9142_v5 = vor.u32 %v11126_v38, %v9139_v2  ;;  %v3139_v41 = vpop.f32.mrf.mxu1 }
 0x63e   :  { %v13425_v18 = vpop.f32.mrf.mxu2  ;;  %v2944_v12 = vadd.f32 %v13363_v1, %v2930_v45  ;;  %v9130_v1 = vor.u32 %v11125_v17, %v9129_v8 }
 0x63f   :  { %3644 = vmatpush.bf16.msrb.mxu0 %v9142_v5  ;;  %v11121_v5 = vld [vmem:[%s13923_s5 + $0x14] sm:$0xf0]  ;;  %v2960_v17 = vadd.f32 %v13425_v18, %v2795_v11  ;;  %v9105_v18 = vld [vmem:[%s13923_s5] sm:$0xf] }
 0x640   :  { %v13413_v32 = vpop.f32.mrf.mxu0  ;;  %3619 = vmatpush.bf16.msrb.mxu1 %v9130_v1  ;;  %v9106_v23 = vor.u32 %v11119_v21, %v9105_v18 }
 0x641   :  { %v2972_v53 = vadd.f32 %v13413_v32, %v2958_v49  ;;  %v9170_v32 = vor.u32 %v11135_v29, %v9169_v57  ;;  %v11118_v49 = vld [vmem:[%s13923_s5 + $0x4] sm:$0xf]  ;;  %v11180_v57 = vld [vmem:[%s13923_s5 + $0x1f4] sm:$0xf]  ;;  %v9285_v29 = vld [vmem:[%s13923_s5 + $0x1f8] sm:$0xf0] }
 0x643   :  { %v13422_v16 = vpop.f32.mrf.mxu3  ;;  %3645 = vmatpush.bf16.msrb.mxu0 %v9134_v52  ;;  %3635 = vmatpush.bf16.msra.mxu3 %v9170_v32  ;;  %v9107_v52 = vld [vmem:[%s13923_s5 + $0x8] sm:$0xf0]  ;;  %v11179_v32 = vld [vmem:[%s13923_s5 + $0x1e4] sm:$0xf0] }
 0x644   :  { %v2932_v30 = vadd.f32 %v13422_v16, %v2767_v19  ;;  %v9126_v16 = vor.u32 %v11122_v44, %v9123_v59  ;;  %3620 = vmatpush.bf16.msrb.mxu1 %v9122_v48  ;;  %v9110_v55 = vor.u32 %v11118_v49, %v9107_v52  ;;  %v9299_v49 = vld [vmem:[%s13923_s5 + $0x210] sm:$0xf]  ;;  %v11185_v52 = vld [vmem:[%s13923_s5 + $0x214] sm:$0xf0] }
 0x646   :  { %v3179_v10 = vpop.f32.mrf.mxu2  ;;  %v2946_v2 = vadd.f32 %v13385_v20, %v2932_v30 }
 0x647   :  { %3646 = vmatpush.bf16.msrb.mxu0 %v9126_v16 }
 0x648   :  { %v13443_v56 = vpop.f32.mrf.mxu0 }
 0x64b   :  { %v3151_v37 = vpop.f32.mrf.mxu3 }
 0x64c   :  { %v3152_v33 = vadd.f32 %v3151_v37, %v3137_v36  ;;  %v11134_v36 = vld [vmem:[%s13923_s5 + $0x84] sm:$0xf]  ;;  %v9113_v37 = vld [vmem:[%s13923_s5 + $0x10] sm:$0xf] }
 0x64d   :  { %v9174_v54 = vor.u32 %v11134_v36, %v9171_v61  ;;  %v9114_v20 = vor.u32 %v11121_v5, %v9113_v37  ;;  %v11188_v37 = vld [vmem:[%s13923_s5 + $0x234] sm:$0xf]  ;;  %v9317_v5 = vld [vmem:[%s13923_s5 + $0x238] sm:$0xf0] }
 0x64e   :  { %v3184_v9 = vadd.f32 %v3152_v33, %v2944_v12  ;;  %v11120_v12 = vld [vmem:[%s13923_s5 + $0x14] sm:$0xf]  ;;  %v9115_v33 = vld [vmem:[%s13923_s5 + $0x18] sm:$0xf0]  ;;  %v3181_v0 = vpop.f32.mrf.mxu2 }
 0x64f   :  { %v9118_v8 = vor.u32 %v11120_v12, %v9115_v33  ;;  %3661 = vmatpush.bf16.msra.mxu2 %v9174_v54  ;;  %3621 = vmatpush.bf16.msrb.mxu1 %v9114_v20  ;;  %v11178_v54 = vld [vmem:[%s13923_s5 + $0x1e4] sm:$0xf]  ;;  %v9267_v12 = vld [vmem:[%s13923_s5 + $0x1d0] sm:$0xf]  ;;  %v11177_v33 = vld [vmem:[%s13923_s5 + $0x1d4] sm:$0xf0]  ;;  %v9320_v20 = vor.u32 %v11188_v37, %v9317_v5 }
 0x650   :  { %v3194_v28 = vadd.f32 %v3190_v39, %v3184_v9  ;;  %v9237_v37 = vld [vmem:[%s13923_s5 + $0x198] sm:$0xf0]  ;;  %v9373_v5 = vld [vmem:[#allocation32 + $0x60] sm:$0xf] }
 0x651   :  { %v3165_v26 = vpop.f32.mrf.mxu0  ;;  %3647 = vmatpush.bf16.msrb.mxu0 %v9118_v8  ;;  %v11176_v8 = vld [vmem:[%s13923_s5 + $0x1d4] sm:$0xf] }
 0x652   :  { %v3180_v45 = vadd.f32 %v3179_v10, %v3165_v26  ;;  %v3198_v34 = vadd.f32 %v3194_v28, %v2525_v27  ;;  %v2974_v10 = vadd.f32 %v13443_v56, %v2960_v17  ;;  %v9269_v17 = vld [vmem:[%s13923_s5 + $0x1d8] sm:$0xf0] }
 0x653   :  { %v3153_v38 = vpop.f32.mrf.mxu3  ;;  %3622 = vmatpush.bf16.msrb.mxu1 %v9106_v23  ;;  %v9261_v23 = vld [vmem:[%s13923_s5 + $0x1c8] sm:$0xf0] }
 0x654   :  { %v3185_v63 = vadd.f32 %v3180_v45, %v2972_v53  ;;  %v3202_v3 = vmax.f32 %v3198_v34, 0.0  ;;  %v3154_v4 = vadd.f32 %v3153_v38, %v3139_v41  ;;  %v9283_v53 = vld [vmem:[%s13923_s5 + $0x1f0] sm:$0xf]  ;;  %v11181_v45 = vld [vmem:[%s13923_s5 + $0x1f4] sm:$0xf0]  ;;  %v9288_v41 = vor.u32 %v11180_v57, %v9285_v29 }
 0x655   :  { %3648 = vmatpush.bf16.msrb.mxu0 %v9110_v55  ;;  %v9284_v61 = vor.u32 %v11181_v45, %v9283_v53  ;;  %v9275_v38 = vld [vmem:[%s13923_s5 + $0x1e0] sm:$0xf]  ;;  %v11170_v53 = vld [vmem:[%s13923_s5 + $0x1a4] sm:$0xf]  ;;  %v9245_v57 = vld [vmem:[%s13923_s5 + $0x1a8] sm:$0xf0] }
 0x656   :  { %v3195_v58 = vadd.f32 %v3191_v13, %v3185_v63  ;;  %v3210_v14 = vrot.slane %v3202_v3, 4  ;;  %v3186_v15 = vadd.f32 %v3154_v4, %v2946_v2  ;;  %v9277_v2 = vld [vmem:[%s13923_s5 + $0x1e8] sm:$0xf0]  ;;  %v9315_v3 = vld [vmem:[%s13923_s5 + $0x230] sm:$0xf]  ;;  %v9276_v11 = vor.u32 %v11179_v32, %v9275_v38 }
 0x657   :  { %v11189_v4 = vld [vmem:[%s13923_s5 + $0x234] sm:$0xf0]  ;;  %v9381_v29 = vld [vmem:[#allocation32 + $0x70] sm:$0xf]  ;;  %v9235_v38 = vld [vmem:[%s13923_s5 + $0x190] sm:$0xf] }
 0x658   :  { %v3199_v35 = vadd.f32 %v3195_v58, %v2539_v6  ;;  %3222 = vst [vmem:[#allocation11] sm:$0xf0] %v3210_v14  ;;  %v3196_v60 = vadd.f32 %v3190_v39, %v3186_v15  ;;  %v2541_v39 = vadd.f32 %v13339_v50, %v2432_v62  ;;  %v9280_v58 = vor.u32 %v11178_v54, %v9277_v2  ;;  %v11169_v32 = vld [vmem:[%s13923_s5 + $0x194] sm:$0xf0] }
 0x659   :  { %v3167_v19 = vpop.f32.mrf.mxu0  ;;  %v9316_v15 = vor.u32 %v11189_v4, %v9315_v3  ;;  %v11168_v4 = vld [vmem:[%s13923_s5 + $0x194] sm:$0xf] }
 0x65a   :  { %v3203_v9 = vmax.f32 %v3199_v35, 0.0  ;;  %v3182_v1 = vadd.f32 %v3181_v0, %v3167_v19  ;;  %v3200_v22 = vadd.f32 %v3196_v60, %v2527_v46  ;;  %v9307_v35 = vld [vmem:[%s13923_s5 + $0x220] sm:$0xf]  ;;  %v11187_v46 = vld [vmem:[%s13923_s5 + $0x224] sm:$0xf0]  ;;  %v9268_v19 = vor.u32 %v11177_v33, %v9267_v12 }
 0x65b   :  { %v11186_v0 = vld [vmem:[%s13923_s5 + $0x224] sm:$0xf]  ;;  %v9309_v60 = vld [vmem:[%s13923_s5 + $0x228] sm:$0xf0]  ;;  %v9308_v18 = vor.u32 %v11187_v46, %v9307_v35  ;;  %v9227_v12 = vld [vmem:[%s13923_s5 + $0x180] sm:$0xf]  ;;  %v9236_v33 = vor.u32 %v11169_v32, %v9235_v38 }
 0x65c   :  { %v3211_v7 = vrot.slane %v3203_v9, 4  ;;  %v3187_v51 = vadd.f32 %v3182_v1, %v2974_v10  ;;  %v3204_v24 = vmax.f32 %v3200_v22, 0.0  ;;  %v9272_v10 = vor.u32 %v11176_v8, %v9269_v17  ;;  %v9259_v9 = vld [vmem:[%s13923_s5 + $0x1c0] sm:$0xf]  ;;  %v11175_v1 = vld [vmem:[%s13923_s5 + $0x1c4] sm:$0xf0] }
 0x65d   :  { %v9312_v21 = vor.u32 %v11186_v0, %v9309_v60  ;;  %v11174_v22 = vld [vmem:[%s13923_s5 + $0x1c4] sm:$0xf]  ;;  %v9260_v55 = vor.u32 %v11175_v1, %v9259_v9  ;;  %v9229_v17 = vld [vmem:[%s13923_s5 + $0x188] sm:$0xf0]  ;;  %v9341_v32 = vld [vmem:[#allocation32 + $0x20] sm:$0xf] }
 0x65e   :  { %3223 = vst.msk [vmem:[#allocation11 + $0x8] sm:$0xf0] %vm2403_vm2, %v3211_v7  ;;  %v3197_v56 = vadd.f32 %v3191_v13, %v3187_v51  ;;  %v3212_v25 = vrot.slane %v3204_v24, 4  ;;  %v9301_v51 = vld [vmem:[%s13923_s5 + $0x218] sm:$0xf0]  ;;  %v9264_v24 = vor.u32 %v11174_v22, %v9261_v23 }
 0x65f   :  { %v3228_v27 = vld [vmem:[#allocation11] sm:$0xf0]  ;;  %v11166_v8 = vld [vmem:[%s13923_s5 + $0x184] sm:$0xf]  ;;  %v11201_v60 = vld [vmem:[#allocation32 + $0x54] sm:$0xf0] }
 0x660   :  { %v3201_v30 = vadd.f32 %v3197_v56, %v2541_v39  ;;  %v3232_v28 = vrot.slane %v3228_v27, 4  ;;  %v3213_v26 = vsel %vm2389_vm3, %v3210_v14, %v3212_v25  ;;  %3226 = vst [vmem:[#allocation11 + $0x20] sm:$0xf] %v3212_v25  ;;  %v9251_v39 = vld [vmem:[%s13923_s5 + $0x1b0] sm:$0xf] }
 0x661   :  { %3224 = vst [vmem:[#allocation11 + $0x10] sm:$0xff] %v3213_v26  ;;  %v11173_v56 = vld [vmem:[%s13923_s5 + $0x1b4] sm:$0xf0]  ;;  %v11172_v25 = vld [vmem:[%s13923_s5 + $0x1b4] sm:$0xf] }
 0x662   :  { %v3205_v31 = vmax.f32 %v3201_v30, 0.0  ;;  %3236 = vst [vmem:[#allocation12] sm:$0xf] %v3232_v28  ;;  %v9300_v30 = vor.u32 %v11185_v52, %v9299_v49  ;;  %v9253_v26 = vld [vmem:[%s13923_s5 + $0x1b8] sm:$0xf0]  ;;  %v9232_v49 = vor.u32 %v11166_v8, %v9229_v17 }
 0x663   :  { %v9365_v0 = vld [vmem:[#allocation32 + $0x50] sm:$0xf]  ;;  %v9415_v22 = vld [vmem:[#allocation32 + $0xb8] sm:$0xf0]  ;;  %v11192_v17 = vld [vmem:[#allocation32 + $0x14] sm:$0xf] }
 0x664   :  { %v3214_v50 = vrot.slane %v3205_v31, 4  ;;  %v9291_v31 = vld [vmem:[%s13923_s5 + $0x200] sm:$0xf]  ;;  %v9413_v1 = vld [vmem:[#allocation32 + $0xb0] sm:$0xf] }
 0x665   :  { %v3229_v40 = vld [vmem:[#allocation11 + $0x8] sm:$0xf0] }
 0x666   :  { %v3233_v62 = vrot.slane %v3229_v40, 4  ;;  %v3215_v47 = vsel %vm2389_vm3, %v3211_v7, %v3214_v50  ;;  %3227 = vst.msk [vmem:[#allocation11 + $0x28] sm:$0xf] %vm2408_vm4, %v3214_v50  ;;  %v11184_v7 = vld [vmem:[%s13923_s5 + $0x214] sm:$0xf] }
 0x667   :  { %3225 = vst.msk [vmem:[#allocation11 + $0x18] sm:$0xff] %vm566_vm1, %v3215_v47  ;;  %v3256_v13 = vld [vmem:[#allocation11 + $0x20] sm:$0xf]  ;;  %v9304_v28 = vor.u32 %v11184_v7, %v9301_v51  ;;  %v11183_v50 = vld [vmem:[%s13923_s5 + $0x204] sm:$0xf0]  ;;  %v9366_v7 = vor.u32 %v11201_v60, %v9365_v0 }
 0x668   :  { %3237 = vst.msk [vmem:[#allocation12 + $0x8] sm:$0xf] %vm2408_vm4, %v3233_v62  ;;  %v3246_v42 = vld [vmem:[#allocation11 + $0x10] sm:$0xf]  ;;  %v3238_v43 = vld [vmem:[#allocation11 + $0x10] sm:$0xf0]  ;;  %v9292_v45 = vor.u32 %v11183_v50, %v9291_v31 }
 0x669   :  { %3258 = vst [vmem:[#allocation13 + $0x10] sm:$0xf] %v3256_v13  ;;  %v3250_v44 = vrot.slane %v3246_v42, 4  ;;  %v11182_v40 = vld [vmem:[%s13923_s5 + $0x204] sm:$0xf]  ;;  %v9252_v13 = vor.u32 %v11173_v56, %v9251_v39  ;;  %v9256_v42 = vor.u32 %v11172_v25, %v9253_v26 }
 0x66a   :  { %3240 = vst [vmem:[#allocation12] sm:$0xf0] %v3238_v43  ;;  %v9293_v62 = vld [vmem:[%s13923_s5 + $0x208] sm:$0xf0]  ;;  %v9243_v43 = vld [vmem:[%s13923_s5 + $0x1a0] sm:$0xf] }
 0x66b   :  { %3254 = vst [vmem:[#allocation13] sm:$0xf0] %v3250_v44  ;;  %v11171_v44 = vld [vmem:[%s13923_s5 + $0x1a4] sm:$0xf0]  ;;  %v11199_v39 = vld [vmem:[#allocation32 + $0x44] sm:$0xf0] }
 0x66c   :  { %v11198_v56 = vld [vmem:[#allocation32 + $0x44] sm:$0xf]  ;;  %v9405_v26 = vld [vmem:[#allocation32 + $0xa0] sm:$0xf]  ;;  %v11211_v31 = vld [vmem:[#allocation32 + $0xa4] sm:$0xf0] }
 0x66d   :  { %v3257_v59 = vld [vmem:[#allocation11 + $0x28] sm:$0xf] }
 0x66e   :  { %v3239_v34 = vld [vmem:[#allocation11 + $0x18] sm:$0xf0]  ;;  %v3247_v48 = vld [vmem:[#allocation11 + $0x18] sm:$0xf]  ;;  %3259 = vst.msk [vmem:[#allocation13 + $0x18] sm:$0xf] %vm2408_vm4, %v3257_v59  ;;  %v9296_v59 = vor.u32 %v11182_v40, %v9293_v62 }
 0x66f   :  { %v3251_v16 = vrot.slane %v3247_v48, 4  ;;  %3241 = vst.msk [vmem:[#allocation12 + $0x8] sm:$0xf0] %vm2403_vm2, %v3239_v34  ;;  %v11205_v34 = vld [vmem:[#allocation32 + $0x74] sm:$0xf0] }
 0x670   :  { %v9382_v2 = vor.u32 %v11205_v34, %v9381_v29  ;;  %v3669_v52 = vld [vmem:[#allocation13 + $0x10] sm:$0xf]  ;;  %v11210_v50 = vld [vmem:[#allocation32 + $0xa4] sm:$0xf]  ;;  %v9397_v34 = vld [vmem:[#allocation32 + $0x90] sm:$0xf] }
 0x671   :  { %3255 = vst.msk [vmem:[#allocation13 + $0x8] sm:$0xf0] %vm2403_vm2, %v3251_v16  ;;  %v3288_v36 = vld [vmem:[#allocation12] sm:$0xff]  ;;  %v11204_v16 = vld [vmem:[#allocation32 + $0x74] sm:$0xf] }
 0x672   :  { %v13531_v63 = vpack.c.bf16 %v3288_v36, %v3288_v36  ;;  %v3260_v48 = vld [vmem:[#allocation13] sm:$0xff]  ;;  %v9407_v40 = vld [vmem:[#allocation32 + $0xa8] sm:$0xf0] }
 0x673   :  { %v9383_v36 = vld [vmem:[#allocation32 + $0x78] sm:$0xf0]  ;;  %v3286_v54 = vpack.c.bf16 %v3260_v48, %v3260_v48  ;;  %v3667_v9 = vld [vmem:[#allocation13] sm:$0xf0]  ;;  %v9410_v29 = vor.u32 %v11210_v50, %v9407_v40  ;;  %v11209_v48 = vld [vmem:[#allocation32 + $0x94] sm:$0xf0] }
 0x674   :  { %3448 = vmatmul.bf16.vlgmr.msrb.gmra.mxu3 %v13531_v63  ;;  %3474 = vmatmul.bf16.vlgmr.msrb.gmra.mxu2 %v13531_v63  ;;  %v9386_v3 = vor.u32 %v11204_v16, %v9383_v36  ;;  %v11208_v16 = vld [vmem:[#allocation32 + $0x94] sm:$0xf]  ;;  %v9399_v36 = vld [vmem:[#allocation32 + $0x98] sm:$0xf0]  ;;  %v11247_v50 = vld [vmem:[#allocation35 + $0x104] sm:$0xf0] }
 0x675   :  { %3826 = vmatpush.bf16.msrb.mxu3 %v9284_v61  ;;  %3852 = vmatpush.bf16.msrb.mxu2 %v9288_v41  ;;  %v9244_v61 = vor.u32 %v11171_v44, %v9243_v43  ;;  %v9248_v41 = vor.u32 %v11170_v53, %v9245_v57  ;;  %v3670_v62 = vld [vmem:[#allocation13 + $0x18] sm:$0xf]  ;;  %v9349_v44 = vld [vmem:[#allocation32 + $0x30] sm:$0xf]  ;;  %v11197_v53 = vld [vmem:[#allocation32 + $0x34] sm:$0xf0] }
 0x676   :  { %v3289_v6 = vld [vmem:[#allocation12 + $0x8] sm:$0xff]  ;;  %v9351_v57 = vld [vmem:[#allocation32 + $0x38] sm:$0xf0] }
 0x677   :  { %v13545_v14 = vpack.c.bf16 %v3289_v6, %v3289_v6  ;;  %v11203_v6 = vld [vmem:[#allocation32 + $0x64] sm:$0xf0] }
 0x678   :  { %v3261_v27 = vld [vmem:[#allocation13 + $0x8] sm:$0xff]  ;;  %v9374_v35 = vor.u32 %v11203_v6, %v9373_v5  ;;  %v9389_v5 = vld [vmem:[#allocation32 + $0x80] sm:$0xf] }
 0x679   :  { %9101 = vmatmul.msk.bf16.vlgmr.msra.gmra.mxu1 %vm566_vm1, %v13545_v14  ;;  %9102 = vmatmul.msk.bf16.vlgmr.msra.gmra.mxu0 %vm566_vm1, %v13545_v14  ;;  %v3287_v47 = vpack.c.bf16 %v3261_v27, %v3261_v27  ;;  %v9359_v27 = vld [vmem:[#allocation32 + $0x48] sm:$0xf0]  ;;  %v11207_v6 = vld [vmem:[#allocation32 + $0x84] sm:$0xf0] }
 0x67a   :  { %3827 = vmatpush.bf16.msrb.mxu3 %v9276_v11  ;;  %3853 = vmatpush.bf16.msrb.mxu2 %v9280_v58  ;;  %v11202_v11 = vld [vmem:[#allocation32 + $0x64] sm:$0xf]  ;;  %v9375_v58 = vld [vmem:[#allocation32 + $0x68] sm:$0xf0]  ;;  %v9390_v8 = vor.u32 %v11207_v6, %v9389_v5 }
 0x67b   :  { %3843 = vmatpush.bf16.msra.mxu1 %v9316_v15  ;;  %3869 = vmatpush.bf16.msra.mxu0 %v9320_v20  ;;  %v9240_v15 = vor.u32 %v11168_v4, %v9237_v37  ;;  %v11167_v20 = vld [vmem:[%s13923_s5 + $0x184] sm:$0xf0]  ;;  %v9378_v46 = vor.u32 %v11202_v11, %v9375_v58  ;;  %v9343_v4 = vld [vmem:[#allocation32 + $0x28] sm:$0xf0]  ;;  %v9402_v37 = vor.u32 %v11208_v16, %v9399_v36  ;;  %v11206_v11 = vld [vmem:[#allocation32 + $0x84] sm:$0xf] }
 0x67c   :  { %v9228_v23 = vor.u32 %v11167_v20, %v9227_v12  ;;  %v9391_v58 = vld [vmem:[#allocation32 + $0x88] sm:$0xf0]  ;;  %v11193_v20 = vld [vmem:[#allocation32 + $0x14] sm:$0xf0] }
 0x67d   :  { %v11245_v16 = vld [vmem:[#allocation35 + $0xf4] sm:$0xf0]  ;;  %v11244_v36 = vld [vmem:[#allocation35 + $0xf4] sm:$0xf]  ;;  %v9505_v5 = vld [vmem:[#allocation35 + $0x168] sm:$0xf0] }
 0x67e   :  { %3828 = vmatpush.bf16.msrb.mxu3 %v9268_v19  ;;  %3854 = vmatpush.bf16.msrb.mxu2 %v9272_v10  ;;  %v11200_v19 = vld [vmem:[#allocation32 + $0x54] sm:$0xf]  ;;  %v9367_v10 = vld [vmem:[#allocation32 + $0x58] sm:$0xf0] }
 0x67f   :  { %3844 = vmatpush.bf16.msra.mxu1 %v9308_v18  ;;  %3870 = vmatpush.bf16.msra.mxu0 %v9312_v21  ;;  %v11213_v18 = vld [vmem:[#allocation32 + $0xb4] sm:$0xf0]  ;;  %v11212_v21 = vld [vmem:[#allocation32 + $0xb4] sm:$0xf]  ;;  %v9370_v51 = vor.u32 %v11200_v19, %v9367_v10  ;;  %v9325_v19 = vld [vmem:[#allocation32] sm:$0xf] }
 0x680   :  { %v9414_v25 = vor.u32 %v11213_v18, %v9413_v1  ;;  %v11191_v10 = vld [vmem:[#allocation32 + $0x4] sm:$0xf0]  ;;  %v9327_v1 = vld [vmem:[#allocation32 + $0x8] sm:$0xf0] }
 0x681   :  { %v9326_v18 = vor.u32 %v11191_v10, %v9325_v19  ;;  %v11256_v10 = vld [vmem:[#allocation35 + $0x154] sm:$0xf] }
 0x682   :  { %3829 = vmatpush.bf16.msrb.mxu3 %v9260_v55  ;;  %3855 = vmatpush.bf16.msrb.mxu2 %v9264_v24  ;;  %v3696_v55 = vpack.c.bf16 %v3669_v52, %v3667_v9  ;;  %v9357_v24 = vld [vmem:[#allocation32 + $0x40] sm:$0xf]  ;;  %v11190_v9 = vld [vmem:[#allocation32 + $0x4] sm:$0xf] }
 0x683   :  { %3845 = vmatpush.bf16.msra.mxu1 %v9300_v30  ;;  %3871 = vmatpush.bf16.msra.mxu0 %v9304_v28  ;;  %v9418_v30 = vor.u32 %v11212_v21, %v9415_v22  ;;  %v3668_v28 = vld [vmem:[#allocation13 + $0x8] sm:$0xf0]  ;;  %v9330_v21 = vor.u32 %v11190_v9, %v9327_v1  ;;  %v9479_v22 = vld [vmem:[#allocation35 + $0x130] sm:$0xf]  ;;  %v9497_v9 = vld [vmem:[#allocation35 + $0x158] sm:$0xf0] }
 0x684   :  { %9199 = vmatmul.msk.bf16.vlgmr.msra.gmra.mxu3 %vm566_vm1, %v3287_v47  ;;  %9200 = vmatmul.msk.bf16.vlgmr.msra.gmra.mxu2 %vm566_vm1, %v3287_v47  ;;  %v3700_v47 = vrot.slane %v3696_v55, 2  ;;  %v3697_v43 = vpack.c.bf16 %v3670_v62, %v3668_v28  ;;  %v9471_v55 = vld [vmem:[#allocation35 + $0x120] sm:$0xf]  ;;  %v11248_v28 = vld [vmem:[#allocation35 + $0x114] sm:$0xf]  ;;  %v9500_v1 = vor.u32 %v11256_v10, %v9497_v9 }
 0x685   :  { %v11246_v62 = vld [vmem:[#allocation35 + $0x104] sm:$0xf]  ;;  %v9595_v10 = vld [vmem:[#allocation35 + $0x98] sm:$0xf0] }
 0x686   :  { %3830 = vmatpush.bf16.msrb.mxu3 %v9252_v13  ;;  %3856 = vmatpush.bf16.msrb.mxu2 %v9256_v42  ;;  %v9358_v13 = vor.u32 %v11199_v39, %v9357_v24  ;;  %v9362_v42 = vor.u32 %v11198_v56, %v9359_v27  ;;  %v11251_v24 = vld [vmem:[#allocation35 + $0x124] sm:$0xf0]  ;;  %v11250_v39 = vld [vmem:[#allocation35 + $0x124] sm:$0xf]  ;;  %v9463_v27 = vld [vmem:[#allocation35 + $0x110] sm:$0xf] }
 0x687   :  { %3846 = vmatpush.bf16.msra.mxu1 %v9292_v45  ;;  %3872 = vmatpush.bf16.msra.mxu0 %v9296_v59  ;;  %v9406_v45 = vor.u32 %v11211_v31, %v9405_v26  ;;  %v11196_v59 = vld [vmem:[#allocation32 + $0x34] sm:$0xf]  ;;  %v9472_v56 = vor.u32 %v11251_v24, %v9471_v55  ;;  %v9465_v26 = vld [vmem:[#allocation35 + $0x118] sm:$0xf0]  ;;  %v9455_v31 = vld [vmem:[#allocation35 + $0x100] sm:$0xf] }
 0x688   :  { %v9354_v38 = vor.u32 %v11196_v59, %v9351_v57  ;;  %v9468_v40 = vor.u32 %v11248_v28, %v9465_v26  ;;  %v11254_v55 = vld [vmem:[#allocation35 + $0x144] sm:$0xf]  ;;  %v9489_v24 = vld [vmem:[#allocation35 + $0x148] sm:$0xf0]  ;;  %v9579_v26 = vld [vmem:[#allocation35 + $0x78] sm:$0xf0] }
 0x689   :  { %3623 = vmatmul.bf16.vlgmr.msrb.gmra.mxu1 %v3286_v54  ;;  %3649 = vmatmul.bf16.vlgmr.msrb.gmra.mxu0 %v3286_v54  ;;  %v11195_v54 = vld [vmem:[#allocation32 + $0x24] sm:$0xf0] }
 0x68a   :  { %3831 = vmatpush.bf16.msrb.mxu3 %v9244_v61  ;;  %3857 = vmatpush.bf16.msrb.mxu2 %v9248_v41  ;;  %v3701_v61 = vrot.slane %v3697_v43, 2  ;;  %v9350_v41 = vor.u32 %v11197_v53, %v9349_v44  ;;  %v9342_v12 = vor.u32 %v11195_v54, %v9341_v32  ;;  %v11260_v43 = vld [vmem:[#allocation35 + $0x174] sm:$0xf]  ;;  %v9513_v44 = vld [vmem:[#allocation35 + $0x178] sm:$0xf0]  ;;  %v9456_v53 = vor.u32 %v11247_v50, %v9455_v31 }
 0x68b   :  { %4057 = vmatpush.bf16.msrb.mxu1 %v9382_v2  ;;  %4083 = vmatpush.bf16.msrb.mxu0 %v9386_v3  ;;  %v9398_v2 = vor.u32 %v11209_v48, %v9397_v34  ;;  %v11194_v3 = vld [vmem:[#allocation32 + $0x24] sm:$0xf]  ;;  %v9516_v59 = vor.u32 %v11260_v43, %v9513_v44  ;;  %v9447_v48 = vld [vmem:[#allocation35 + $0xf0] sm:$0xf]  ;;  %v9449_v32 = vld [vmem:[#allocation35 + $0xf8] sm:$0xf0] }
 0x68c   :  { %v9503_v54 = vld [vmem:[#allocation35 + $0x160] sm:$0xf]  ;;  %v11239_v50 = vld [vmem:[#allocation35 + $0xc4] sm:$0xf0]  ;;  %v9609_v43 = vld [vmem:[#allocation35 + $0xb0] sm:$0xf] }
 0x68d   :  { %v9423_v31 = vld [vmem:[#allocation35 + $0xc0] sm:$0xf] }
 0x68e   :  { %3832 = vmatpush.bf16.msrb.mxu3 %v9236_v33  ;;  %3858 = vmatpush.bf16.msrb.mxu2 %v9240_v15  ;;  %v9346_v33 = vor.u32 %v11194_v3, %v9343_v4  ;;  %v9333_v15 = vld [vmem:[#allocation32 + $0x10] sm:$0xf]  ;;  %v9452_v3 = vor.u32 %v11244_v36, %v9449_v32  ;;  %v9424_v44 = vor.u32 %v11239_v50, %v9423_v31  ;;  %v9569_v36 = vld [vmem:[#allocation35 + $0x60] sm:$0xf]  ;;  %v11226_v32 = vld [vmem:[#allocation35 + $0x64] sm:$0xf] }
 0x68f   :  { %4058 = vmatpush.bf16.msrb.mxu1 %v9374_v35  ;;  %4084 = vmatpush.bf16.msrb.mxu0 %v9378_v46  ;;  %v9335_v35 = vld [vmem:[#allocation32 + $0x18] sm:$0xf0]  ;;  %v9394_v46 = vor.u32 %v11206_v11, %v9391_v58  ;;  %v9334_v0 = vor.u32 %v11193_v20, %v9333_v15  ;;  %v11242_v15 = vld [vmem:[#allocation35 + $0xe4] sm:$0xf] }
 0x690   :  { %v9338_v60 = vor.u32 %v11192_v17, %v9335_v35  ;;  %v9441_v35 = vld [vmem:[#allocation35 + $0xe8] sm:$0xf0] }
 0x692   :  { %3833 = vmatpush.bf16.msrb.mxu3 %v9228_v23  ;;  %3859 = vmatpush.bf16.msrb.mxu2 %v9232_v49  ;;  %v11253_v23 = vld [vmem:[#allocation35 + $0x134] sm:$0xf0]  ;;  %v11252_v49 = vld [vmem:[#allocation35 + $0x134] sm:$0xf] }
 0x693   :  { %4059 = vmatpush.bf16.msrb.mxu1 %v9366_v7  ;;  %4085 = vmatpush.bf16.msrb.mxu0 %v9370_v51  ;;  %v9480_v52 = vor.u32 %v11253_v23, %v9479_v22  ;;  %v9481_v7 = vld [vmem:[#allocation35 + $0x138] sm:$0xf0]  ;;  %v11240_v23 = vld [vmem:[#allocation35 + $0xd4] sm:$0xf] }
 0x694   :  { %v9484_v51 = vor.u32 %v11252_v49, %v9481_v7  ;;  %v9433_v49 = vld [vmem:[#allocation35 + $0xd8] sm:$0xf0] }
 0x695   :  { %3834 = vmatmul.bf16.vlgmr.msrb.gmra.mxu3 %v3700_v47  ;;  %3860 = vmatmul.bf16.vlgmr.msrb.gmra.mxu2 %v3700_v47  ;;  %v9457_v47 = vld [vmem:[#allocation35 + $0x108] sm:$0xf0]  ;;  %v9436_v7 = vor.u32 %v11240_v23, %v9433_v49  ;;  %v11223_v23 = vld [vmem:[#allocation35 + $0x44] sm:$0xf0]  ;;  %v11222_v49 = vld [vmem:[#allocation35 + $0x44] sm:$0xf] }
 0x696   :  { %4074 = vmatpush.bf16.msra.mxu3 %v9414_v25  ;;  %4100 = vmatpush.bf16.msra.mxu2 %v9418_v30  ;;  %v9473_v25 = vld [vmem:[#allocation35 + $0x128] sm:$0xf0]  ;;  %v11249_v30 = vld [vmem:[#allocation35 + $0x114] sm:$0xf0]  ;;  %v9460_v57 = vor.u32 %v11246_v62, %v9457_v47 }
 0x697   :  { %4060 = vmatpush.bf16.msrb.mxu1 %v9358_v13  ;;  %4086 = vmatpush.bf16.msrb.mxu0 %v9362_v42  ;;  %v9511_v13 = vld [vmem:[#allocation35 + $0x170] sm:$0xf]  ;;  %v11261_v42 = vld [vmem:[#allocation35 + $0x174] sm:$0xf0] }
 0x699   :  { %9321 = vmatmul.msk.bf16.vlgmr.msra.gmra.mxu1 %vm566_vm1, %v3701_v61  ;;  %9322 = vmatmul.msk.bf16.vlgmr.msra.gmra.mxu0 %vm566_vm1, %v3701_v61 }
 0x69a   :  { %4075 = vmatpush.bf16.msra.mxu3 %v9406_v45  ;;  %4101 = vmatpush.bf16.msra.mxu2 %v9410_v29  ;;  %v9512_v45 = vor.u32 %v11261_v42, %v9511_v13  ;;  %v11238_v13 = vld [vmem:[#allocation35 + $0xc4] sm:$0xf]  ;;  %v9425_v42 = vld [vmem:[#allocation35 + $0xc8] sm:$0xf0] }
 0x69b   :  { %4061 = vmatpush.bf16.msrb.mxu1 %v9350_v41  ;;  %4087 = vmatpush.bf16.msrb.mxu0 %v9354_v38  ;;  %v9448_v38 = vor.u32 %v11245_v16, %v9447_v48 }
 0x69e   :  { %4076 = vmatpush.bf16.msra.mxu3 %v9398_v2  ;;  %4102 = vmatpush.bf16.msra.mxu2 %v9402_v37  ;;  %v11259_v2 = vld [vmem:[#allocation35 + $0x164] sm:$0xf0]  ;;  %v11258_v37 = vld [vmem:[#allocation35 + $0x164] sm:$0xf] }
 0x69f   :  { %4062 = vmatpush.bf16.msrb.mxu1 %v9342_v12  ;;  %4088 = vmatpush.bf16.msrb.mxu0 %v9346_v33  ;;  %v9504_v4 = vor.u32 %v11259_v2, %v9503_v54  ;;  %v9508_v6 = vor.u32 %v11258_v37, %v9505_v5  ;;  %v9439_v12 = vld [vmem:[#allocation35 + $0xe0] sm:$0xf]  ;;  %v11243_v33 = vld [vmem:[#allocation35 + $0xe4] sm:$0xf0]  ;;  %v9571_v2 = vld [vmem:[#allocation35 + $0x68] sm:$0xf0] }
 0x6a0   :  { %v9440_v17 = vor.u32 %v11243_v33, %v9439_v12  ;;  %v11235_v37 = vld [vmem:[#allocation35 + $0xa4] sm:$0xf0]  ;;  %v11234_v5 = vld [vmem:[#allocation35 + $0xa4] sm:$0xf]  ;;  %v11225_v12 = vld [vmem:[#allocation35 + $0x54] sm:$0xf0] }
 0x6a2   :  { %4077 = vmatpush.bf16.msra.mxu3 %v9390_v8  ;;  %4103 = vmatpush.bf16.msra.mxu2 %v9394_v46  ;;  %v9495_v46 = vld [vmem:[#allocation35 + $0x150] sm:$0xf] }
 0x6a3   :  { %4063 = vmatpush.bf16.msrb.mxu1 %v9334_v0  ;;  %4089 = vmatpush.bf16.msrb.mxu0 %v9338_v60  ;;  %v11257_v0 = vld [vmem:[#allocation35 + $0x154] sm:$0xf0]  ;;  %v9444_v60 = vor.u32 %v11242_v15, %v9441_v35 }
 0x6a4   :  { %v9496_v19 = vor.u32 %v11257_v0, %v9495_v46 }
 0x6a5   :  { %9419 = vmatmul.msk.bf16.vlgmr.msra.gmra.mxu3 %vm566_vm1, %v13545_v14  ;;  %9420 = vmatmul.msk.bf16.vlgmr.msra.gmra.mxu2 %vm566_vm1, %v13545_v14  ;;  %v9476_v14 = vor.u32 %v11250_v39, %v9473_v25  ;;  %v9577_v25 = vld [vmem:[#allocation35 + $0x70] sm:$0xf] }
 0x6a6   :  { %4296 = vmatpush.bf16.msrb.mxu3 %v9480_v52  ;;  %4322 = vmatpush.bf16.msrb.mxu2 %v9484_v51  ;;  %v9487_v52 = vld [vmem:[#allocation35 + $0x140] sm:$0xf]  ;;  %v11255_v51 = vld [vmem:[#allocation35 + $0x144] sm:$0xf0] }
 0x6a7   :  { %4064 = vmatpush.bf16.msrb.mxu1 %v9326_v18  ;;  %4090 = vmatpush.bf16.msrb.mxu0 %v9330_v21  ;;  %v9431_v18 = vld [vmem:[#allocation35 + $0xd0] sm:$0xf]  ;;  %v11241_v21 = vld [vmem:[#allocation35 + $0xd4] sm:$0xf0]  ;;  %v9488_v39 = vor.u32 %v11255_v51, %v9487_v52 }
 0x6a8   :  { %v9432_v22 = vor.u32 %v11241_v21, %v9431_v18 }
 0x6aa   :  { %4065 = vmatmul.bf16.vlgmr.msrb.gmra.mxu1 %v13531_v63  ;;  %4091 = vmatmul.bf16.vlgmr.msrb.gmra.mxu0 %v13531_v63  ;;  %v9464_v63 = vor.u32 %v11249_v30, %v9463_v27  ;;  %v11228_v27 = vld [vmem:[#allocation35 + $0x74] sm:$0xf] }
 0x6ab   :  { %4297 = vmatpush.bf16.msrb.mxu3 %v9472_v56  ;;  %4323 = vmatpush.bf16.msrb.mxu2 %v9476_v14  ;;  %v9492_v56 = vor.u32 %v11254_v55, %v9489_v24  ;;  %v11229_v14 = vld [vmem:[#allocation35 + $0x74] sm:$0xf0]  ;;  %v9582_v47 = vor.u32 %v11228_v27, %v9579_v26  ;;  %v9585_v24 = vld [vmem:[#allocation35 + $0x80] sm:$0xf]  ;;  %v9587_v27 = vld [vmem:[#allocation35 + $0x88] sm:$0xf0] }
 0x6ac   :  { %4313 = vmatpush.bf16.msra.mxu1 %v9512_v45  ;;  %4339 = vmatpush.bf16.msra.mxu0 %v9516_v59  ;;  %v11237_v45 = vld [vmem:[#allocation35 + $0xb4] sm:$0xf0]  ;;  %v11236_v59 = vld [vmem:[#allocation35 + $0xb4] sm:$0xf] }
 0x6ad   :  { %v9610_v48 = vor.u32 %v11237_v45, %v9609_v43  ;;  %v11221_v26 = vld [vmem:[#allocation35 + $0x34] sm:$0xf0]  ;;  %v11218_v45 = vld [vmem:[#allocation35 + $0x24] sm:$0xf] }
 0x6af   :  { %4298 = vmatpush.bf16.msrb.mxu3 %v9464_v63  ;;  %4324 = vmatpush.bf16.msrb.mxu2 %v9468_v40  ;;  %v9578_v63 = vor.u32 %v11229_v14, %v9577_v25 }
 0x6b0   :  { %4314 = vmatpush.bf16.msra.mxu1 %v9504_v4  ;;  %4340 = vmatpush.bf16.msra.mxu0 %v9508_v6  ;;  %v9574_v4 = vor.u32 %v11226_v32, %v9571_v2 }
 0x6b3   :  { %4299 = vmatpush.bf16.msrb.mxu3 %v9456_v53  ;;  %4325 = vmatpush.bf16.msrb.mxu2 %v9460_v57  ;;  %v9428_v53 = vor.u32 %v11238_v13, %v9425_v42  ;;  %v9611_v57 = vld [vmem:[#allocation35 + $0xb8] sm:$0xf0]  ;;  %v11220_v13 = vld [vmem:[#allocation35 + $0x34] sm:$0xf] }
 0x6b4   :  { %4315 = vmatpush.bf16.msra.mxu1 %v9496_v19  ;;  %4341 = vmatpush.bf16.msra.mxu0 %v9500_v1  ;;  %v9614_v16 = vor.u32 %v11236_v59, %v9611_v57  ;;  %v11232_v19 = vld [vmem:[#allocation35 + $0x94] sm:$0xf]  ;;  %v9547_v42 = vld [vmem:[#allocation35 + $0x38] sm:$0xf0]  ;;  %v9539_v59 = vld [vmem:[#allocation35 + $0x28] sm:$0xf0] }
 0x6b5   :  { %v9598_v21 = vor.u32 %v11232_v19, %v9595_v10  ;;  %v9550_v43 = vor.u32 %v11220_v13, %v9547_v42  ;;  %v9542_v2 = vor.u32 %v11218_v45, %v9539_v59 }
 0x6b7   :  { %4300 = vmatpush.bf16.msrb.mxu3 %v9448_v38  ;;  %4326 = vmatpush.bf16.msrb.mxu2 %v9452_v3  ;;  %v11227_v38 = vld [vmem:[#allocation35 + $0x64] sm:$0xf0]  ;;  %v9601_v3 = vld [vmem:[#allocation35 + $0xa0] sm:$0xf] }
 0x6b8   :  { %4316 = vmatpush.bf16.msra.mxu1 %v9488_v39  ;;  %4342 = vmatpush.bf16.msra.mxu0 %v9492_v56  ;;  %v9570_v54 = vor.u32 %v11227_v38, %v9569_v36  ;;  %v9602_v6 = vor.u32 %v11235_v37, %v9601_v3  ;;  %v11231_v39 = vld [vmem:[#allocation35 + $0x84] sm:$0xf0]  ;;  %v11230_v56 = vld [vmem:[#allocation35 + $0x84] sm:$0xf]  ;;  %v9529_v3 = vld [vmem:[#allocation35 + $0x10] sm:$0xf] }
 0x6b9   :  { %v9586_v14 = vor.u32 %v11231_v39, %v9585_v24  ;;  %v9590_v50 = vor.u32 %v11230_v56, %v9587_v27  ;;  %v11216_v37 = vld [vmem:[#allocation35 + $0x14] sm:$0xf]  ;;  %v9675_v39 = vld [vmem:[#allocation35 + $0x1f0] sm:$0xf]  ;;  %v11277_v56 = vld [vmem:[#allocation35 + $0x1f4] sm:$0xf0] }
 0x6bb   :  { %4301 = vmatpush.bf16.msrb.mxu3 %v9440_v17  ;;  %4327 = vmatpush.bf16.msrb.mxu2 %v9444_v60  ;;  %v9593_v17 = vld [vmem:[#allocation35 + $0x90] sm:$0xf]  ;;  %v11233_v60 = vld [vmem:[#allocation35 + $0x94] sm:$0xf0] }
 0x6bc   :  { %4471 = vmatpush.bf16.msrb.mxu1 %v9578_v63  ;;  %4497 = vmatpush.bf16.msrb.mxu0 %v9582_v47  ;;  %v9594_v18 = vor.u32 %v11233_v60, %v9593_v17  ;;  %v9545_v63 = vld [vmem:[#allocation35 + $0x30] sm:$0xf]  ;;  %v11214_v17 = vld [vmem:[#allocation35 + $0x4] sm:$0xf] }
 0x6bd   :  { %v9546_v47 = vor.u32 %v11221_v26, %v9545_v63  ;;  %v11276_v63 = vld [vmem:[#allocation35 + $0x1f4] sm:$0xf]  ;;  %v9677_v26 = vld [vmem:[#allocation35 + $0x1f8] sm:$0xf0] }
 0x6bf   :  { %4302 = vmatpush.bf16.msrb.mxu3 %v9432_v22  ;;  %4328 = vmatpush.bf16.msrb.mxu2 %v9436_v7  ;;  %v9553_v22 = vld [vmem:[#allocation35 + $0x40] sm:$0xf]  ;;  %v9555_v7 = vld [vmem:[#allocation35 + $0x48] sm:$0xf0] }
 0x6c0   :  { %4472 = vmatpush.bf16.msrb.mxu1 %v9570_v54  ;;  %4498 = vmatpush.bf16.msrb.mxu0 %v9574_v4  ;;  %v9554_v52 = vor.u32 %v11223_v23, %v9553_v22  ;;  %v9558_v51 = vor.u32 %v11222_v49, %v9555_v7  ;;  %v11217_v4 = vld [vmem:[#allocation35 + $0x14] sm:$0xf0] }
 0x6c3   :  { %4303 = vmatpush.bf16.msrb.mxu3 %v9424_v44  ;;  %4329 = vmatpush.bf16.msrb.mxu2 %v9428_v53  ;;  %v11219_v53 = vld [vmem:[#allocation35 + $0x24] sm:$0xf0] }
 0x6c7   :  { %4488 = vmatpush.bf16.msra.mxu3 %v9610_v48  ;;  %4514 = vmatpush.bf16.msra.mxu2 %v9614_v16 }
 0x6cb   :  { %4489 = vmatpush.bf16.msra.mxu3 %v9602_v6 }
 0x6cf   :  { %4490 = vmatpush.bf16.msra.mxu3 %v9594_v18  ;;  %v3928_v18 = vld [vmem:[#allocation33] sm:$0x3] }
 0x6d0   :  { %v3930_v22 = vperm.slane %v3928_v18, 0  ;;  %v3931_v23 = vperm.slane %v3928_v18, 1  ;;  %v9683_v18 = vld [vmem:[#allocation35 + $0x200] sm:$0xf] }
 0x6d3   :  { %4491 = vmatpush.bf16.msra.mxu3 %v9586_v14 }
 0x6f6   :  { %v13595_v29 = vpop.f32.mrf.mxu1  ;;  %v13597_v34 = vpop.f32.mrf.mxu0 }
 0x6f7   :  { %v13599_v61 = vpop.f32.mrf.mxu3  ;;  %v13601_v41 = vpop.f32.mrf.mxu2 }
 0x6f8   :  { %v3463_v55 = vadd.f32 %v13595_v29, %v13599_v61  ;;  %v3489_v25 = vadd.f32 %v13597_v34, %v13601_v41  ;;  %v3880_v61 = vld [vmem:[#allocation30] sm:$0x3]  ;;  %v9537_v41 = vld [vmem:[#allocation35 + $0x20] sm:$0xf] }
 0x6f9   :  { %v3882_v48 = vperm.slane %v3880_v61, 0  ;;  %v3883_v36 = vperm.slane %v3880_v61, 1  ;;  %v9538_v38 = vor.u32 %v11219_v53, %v9537_v41  ;;  %v9709_v61 = vld [vmem:[#allocation35 + $0x238] sm:$0xf0]  ;;  %v9667_v41 = vld [vmem:[#allocation35 + $0x1e0] sm:$0xf] }
 0x6fa   :  { %v11275_v53 = vld [vmem:[#allocation35 + $0x1e4] sm:$0xf0] }
 0x6fe   :  { %v3464_v11 = vpop.f32.mrf.mxu1  ;;  %v3490_v58 = vpop.f32.mrf.mxu0 }
 0x6ff   :  { %v3451_v20 = vpop.f32.mrf.mxu3  ;;  %v3477_v8 = vpop.f32.mrf.mxu2  ;;  %v9603_v11 = vld [vmem:[#allocation35 + $0xa8] sm:$0xf0]  ;;  %v9561_v58 = vld [vmem:[#allocation35 + $0x50] sm:$0xf] }
 0x700   :  { %v9606_v33 = vor.u32 %v11234_v5, %v9603_v11  ;;  %v9562_v15 = vor.u32 %v11225_v12, %v9561_v58  ;;  %v11224_v20 = vld [vmem:[#allocation35 + $0x54] sm:$0xf]  ;;  %v9563_v8 = vld [vmem:[#allocation35 + $0x58] sm:$0xf0] }
 0x701   :  { %v9566_v0 = vor.u32 %v11224_v20, %v9563_v8  ;;  %v9531_v5 = vld [vmem:[#allocation35 + $0x18] sm:$0xf0]  ;;  %v11215_v20 = vld [vmem:[#allocation35 + $0x4] sm:$0xf0] }
 0x702   :  { %4515 = vmatpush.bf16.msra.mxu2 %v9606_v33  ;;  %4473 = vmatpush.bf16.msrb.mxu1 %v9562_v15  ;;  %v9534_v33 = vor.u32 %v11216_v37, %v9531_v5  ;;  %v9521_v15 = vld [vmem:[#allocation35] sm:$0xf]  ;;  %v9701_v37 = vld [vmem:[#allocation35 + $0x228] sm:$0xf0]  ;;  %v9668_v5 = vor.u32 %v11275_v53, %v9667_v41  ;;  %v11265_v41 = vld [vmem:[#allocation35 + $0x194] sm:$0xf0] }
 0x703   :  { %4499 = vmatpush.bf16.msrb.mxu0 %v9566_v0  ;;  %v9522_v10 = vor.u32 %v11215_v20, %v9521_v15  ;;  %v9691_v20 = vld [vmem:[#allocation35 + $0x210] sm:$0xf]  ;;  %v11264_v53 = vld [vmem:[#allocation35 + $0x194] sm:$0xf] }
 0x706   :  { %v13603_v30 = vpop.f32.mrf.mxu1  ;;  %v13605_v28 = vpop.f32.mrf.mxu0  ;;  %4516 = vmatpush.bf16.msra.mxu2 %v9598_v21  ;;  %4474 = vmatpush.bf16.msrb.mxu1 %v9554_v52 }
 0x707   :  { %v13607_v40 = vpop.f32.mrf.mxu3  ;;  %v13609_v62 = vpop.f32.mrf.mxu2  ;;  %v3625_v31 = vadd.f32 %v13603_v30, %v3463_v55  ;;  %v3651_v29 = vadd.f32 %v13605_v28, %v3489_v25  ;;  %4500 = vmatpush.bf16.msrb.mxu0 %v9558_v51 }
 0x709   :  { %v3638_v30 = vadd.f32 %v13607_v40, %v3625_v31  ;;  %v3664_v28 = vadd.f32 %v13609_v62, %v3651_v29  ;;  %v9530_v40 = vor.u32 %v11217_v4, %v9529_v3  ;;  %v11284_v29 = vld [vmem:[#allocation35 + $0x234] sm:$0xf]  ;;  %v11282_v4 = vld [vmem:[#allocation35 + $0x224] sm:$0xf] }
 0x70a   :  { %4517 = vmatpush.bf16.msra.mxu2 %v9590_v50  ;;  %4475 = vmatpush.bf16.msrb.mxu1 %v9546_v47  ;;  %v9707_v50 = vld [vmem:[#allocation35 + $0x230] sm:$0xf]  ;;  %v11285_v47 = vld [vmem:[#allocation35 + $0x234] sm:$0xf0]  ;;  %v9704_v15 = vor.u32 %v11282_v4, %v9701_v37  ;;  %v4757_v4 = vld [vmem:[%s13924_s10 + $0x78] sm:$0xff] }
 0x70b   :  { %4501 = vmatpush.bf16.msrb.mxu0 %v9550_v43  ;;  %v4756_v37 = vld [vmem:[%s13924_s10 + $0x70] sm:$0xff] }
 0x70e   :  { %v3626_v35 = vpop.f32.mrf.mxu1  ;;  %v3652_v46 = vpop.f32.mrf.mxu0  ;;  %4476 = vmatpush.bf16.msrb.mxu1 %v9538_v38  ;;  %v9712_v38 = vor.u32 %v11284_v29, %v9709_v61  ;;  %v9637_v29 = vld [vmem:[#allocation35 + $0x1a8] sm:$0xf0] }
 0x70f   :  { %v3639_v9 = vpop.f32.mrf.mxu3  ;;  %v3665_v1 = vpop.f32.mrf.mxu2  ;;  %4502 = vmatpush.bf16.msrb.mxu0 %v9542_v2  ;;  %v9523_v35 = vld [vmem:[#allocation35 + $0x8] sm:$0xf0] }
 0x710   :  { %v9526_v21 = vor.u32 %v11214_v17, %v9523_v35  ;;  %v9693_v17 = vld [vmem:[#allocation35 + $0x218] sm:$0xf0] }
 0x712   :  { %4477 = vmatpush.bf16.msrb.mxu1 %v9530_v40  ;;  %v11273_v40 = vld [vmem:[#allocation35 + $0x1d4] sm:$0xf0] }
 0x713   :  { %4503 = vmatpush.bf16.msrb.mxu0 %v9534_v33 }
 0x716   :  { %v3848_v44 = vpop.f32.mrf.mxu1  ;;  %v3874_v34 = vpop.f32.mrf.mxu0  ;;  %4478 = vmatpush.bf16.msrb.mxu1 %v9522_v10  ;;  %v9653_v10 = vld [vmem:[#allocation35 + $0x1c8] sm:$0xf0] }
 0x717   :  { %4504 = vmatpush.bf16.msrb.mxu0 %v9526_v21  ;;  %v11279_v21 = vld [vmem:[#allocation35 + $0x204] sm:$0xf0] }
 0x718   :  { %v3835_v57 = vpop.f32.mrf.mxu3  ;;  %v3861_v16 = vpop.f32.mrf.mxu2 }
 0x719   :  { %v3849_v32 = vadd.f32 %v3848_v44, %v3835_v57  ;;  %v3875_v54 = vadd.f32 %v3874_v34, %v3861_v16  ;;  %v9676_v44 = vor.u32 %v11277_v56, %v9675_v39  ;;  %v9680_v34 = vor.u32 %v11276_v63, %v9677_v26  ;;  %v9669_v57 = vld [vmem:[#allocation35 + $0x1e8] sm:$0xf0] }
 0x71a   :  { %v9684_v56 = vor.u32 %v11279_v21, %v9683_v18 }
 0x71b   :  { %v3878_v6 = vadd.f32 %v3849_v32, %v3638_v30  ;;  %v3879_v11 = vadd.f32 %v3875_v54, %v3664_v28  ;;  %v11274_v30 = vld [vmem:[#allocation35 + $0x1e4] sm:$0xf]  ;;  %v9699_v28 = vld [vmem:[#allocation35 + $0x220] sm:$0xf]  ;;  %v11283_v32 = vld [vmem:[#allocation35 + $0x224] sm:$0xf0] }
 0x71c   :  { %v9700_v33 = vor.u32 %v11283_v32, %v9699_v28 }
 0x71d   :  { %v3886_v58 = vadd.f32 %v3882_v48, %v3878_v6  ;;  %v3887_v12 = vadd.f32 %v3883_v36, %v3879_v11  ;;  %v9708_v36 = vor.u32 %v11285_v47, %v9707_v50  ;;  %v9672_v6 = vor.u32 %v11274_v30, %v9669_v57  ;;  %v9659_v11 = vld [vmem:[#allocation35 + $0x1d0] sm:$0xf]  ;;  %v9635_v50 = vld [vmem:[#allocation35 + $0x1a0] sm:$0xf] }
 0x71e   :  { %v3850_v8 = vpop.f32.mrf.mxu1  ;;  %v3876_v62 = vpop.f32.mrf.mxu0  ;;  %v9660_v35 = vor.u32 %v11273_v40, %v9659_v11  ;;  %v9619_v57 = vld [vmem:[#allocation35 + $0x180] sm:$0xf] }
 0x71f   :  { %v3888_v46 = vmax.f32 %v3886_v58, 0.0  ;;  %v3889_v0 = vmax.f32 %v3887_v12, 0.0  ;;  %v11272_v58 = vld [vmem:[#allocation35 + $0x1d4] sm:$0xf]  ;;  %v9661_v12 = vld [vmem:[#allocation35 + $0x1d8] sm:$0xf0] }
 0x720   :  { %v3837_v60 = vpop.f32.mrf.mxu3  ;;  %v3863_v19 = vpop.f32.mrf.mxu2  ;;  %v11281_v8 = vld [vmem:[#allocation35 + $0x214] sm:$0xf0]  ;;  %v11280_v62 = vld [vmem:[#allocation35 + $0x214] sm:$0xf]  ;;  %v4753_v11 = vld [vmem:[%s13924_s10 + $0x58] sm:$0xff] }
 0x721   :  { %v3892_v9 = vrot.slane %v3888_v46, 4  ;;  %v3893_v1 = vrot.slane %v3889_v0, 4  ;;  %v9664_v46 = vor.u32 %v11272_v58, %v9661_v12  ;;  %v9651_v0 = vld [vmem:[#allocation35 + $0x1c0] sm:$0xf]  ;;  %v11271_v60 = vld [vmem:[#allocation35 + $0x1c4] sm:$0xf0] }
 0x722   :  { %v11270_v19 = vld [vmem:[#allocation35 + $0x1c4] sm:$0xf]  ;;  %v4752_v40 = vld [vmem:[%s13924_s10 + $0x50] sm:$0xff]  ;;  %v4751_v58 = vld [vmem:[%s13924_s10 + $0x48] sm:$0xff] }
 0x723   :  { %3896 = vst [vmem:[#allocation14] sm:$0xf0] %v3892_v9 }
 0x724   :  { %3898 = vst [vmem:[#allocation14 + $0x10] sm:$0xf] %v3892_v9  ;;  %v9692_v9 = vor.u32 %v11281_v8, %v9691_v20  ;;  %v4749_v20 = vld [vmem:[%s13924_s10 + $0x38] sm:$0xff] }
 0x725   :  { %3897 = vst.msk [vmem:[#allocation14 + $0x8] sm:$0xf0] %vm2403_vm2, %v3893_v1  ;;  %v4765_v8 = vld [vmem:[%s13924_s10 + $0xb8] sm:$0xff] }
 0x726   :  { %3899 = vst.msk [vmem:[#allocation14 + $0x18] sm:$0xf] %vm2408_vm4, %v3893_v1  ;;  %v9696_v1 = vor.u32 %v11280_v62, %v9693_v17  ;;  %v4764_v62 = vld [vmem:[%s13924_s10 + $0xb0] sm:$0xff] }
 0x727   :  { %v4066_v49 = vpop.f32.mrf.mxu1  ;;  %v4092_v52 = vpop.f32.mrf.mxu0  ;;  %v4748_v17 = vld [vmem:[%s13924_s10 + $0x30] sm:$0xff] }
 0x728   :  { %v4067_v7 = vadd.f32 %v4066_v49, %v3930_v22  ;;  %v4093_v51 = vadd.f32 %v4092_v52, %v3931_v23  ;;  %v4079_v55 = vpop.f32.mrf.mxu3  ;;  %v4105_v24 = vpop.f32.mrf.mxu2  ;;  %v11278_v22 = vld [vmem:[#allocation35 + $0x204] sm:$0xf]  ;;  %v9685_v23 = vld [vmem:[#allocation35 + $0x208] sm:$0xf0]  ;;  %v9652_v49 = vor.u32 %v11271_v60, %v9651_v0  ;;  %v9656_v52 = vor.u32 %v11270_v19, %v9653_v10  ;;  %v4747_v19 = vld [vmem:[%s13924_s10 + $0x28] sm:$0xff] }
 0x729   :  { %v4763_v10 = vld [vmem:[%s13924_s10 + $0xa8] sm:$0xff] }
 0x72a   :  { %v13621_v25 = vadd.f32 %v4079_v55, %v4067_v7  ;;  %v13623_v14 = vadd.f32 %v4105_v24, %v4093_v51  ;;  %v4137_v27 = vld [vmem:[#allocation14] sm:$0xf0]  ;;  %v9643_v7 = vld [vmem:[#allocation35 + $0x1b0] sm:$0xf]  ;;  %v11269_v51 = vld [vmem:[#allocation35 + $0x1b4] sm:$0xf0] }
 0x72b   :  { %v4139_v31 = vld [vmem:[#allocation14 + $0x10] sm:$0xf]  ;;  %v11268_v55 = vld [vmem:[#allocation35 + $0x1b4] sm:$0xf]  ;;  %v9645_v24 = vld [vmem:[#allocation35 + $0x1b8] sm:$0xf0]  ;;  %v9644_v26 = vor.u32 %v11269_v51, %v9643_v7 }
 0x72c   :  { %v4166_v13 = vpack.c.bf16 %v4139_v31, %v4137_v27  ;;  %v4138_v42 = vld [vmem:[#allocation14 + $0x8] sm:$0xf0]  ;;  %v9688_v27 = vor.u32 %v11278_v22, %v9685_v23  ;;  %v4109_v63 = vld [vmem:[#allocation14] sm:$0xff]  ;;  %v9648_v31 = vor.u32 %v11268_v55, %v9645_v24  ;;  %v4523_v32 = vld [vmem:[#allocation14 + $0x10] sm:$0xff] }
 0x72d   :  { %v4140_v43 = vld [vmem:[#allocation14 + $0x18] sm:$0xf]  ;;  %v4110_v39 = vld [vmem:[#allocation14 + $0x8] sm:$0xff]  ;;  %v4135_v61 = vpack.c.bf16 %v4109_v63, %v4109_v63 }
 0x72e   :  { %v4170_v45 = vrot.slane %v4166_v13, 2  ;;  %v4167_v59 = vpack.c.bf16 %v4140_v43, %v4138_v42  ;;  %v4136_v47 = vpack.c.bf16 %v4110_v39, %v4110_v39  ;;  %v11267_v13 = vld [vmem:[#allocation35 + $0x1a4] sm:$0xf0]  ;;  %v11266_v42 = vld [vmem:[#allocation35 + $0x1a4] sm:$0xf]  ;;  %v4743_v7 = vld [vmem:[%s13924_s10 + $0x8] sm:$0xff] }
 0x72f   :  { %v4068_v48 = vpop.f32.mrf.mxu1  ;;  %v4094_v16 = vpop.f32.mrf.mxu0  ;;  %v9636_v43 = vor.u32 %v11267_v13, %v9635_v50  ;;  %v4745_v22 = vld [vmem:[%s13924_s10 + $0x18] sm:$0xff]  ;;  %v4759_v51 = vld [vmem:[%s13924_s10 + $0x88] sm:$0xff]  ;;  %v4742_v39 = vld [vmem:[%s13924_s10] sm:$0xff] }
 0x730   :  { %4304 = vmatmul.bf16.vlgmr.msrb.gmra.mxu3 %v4170_v45  ;;  %v4171_v54 = vrot.slane %v4167_v59, 2  ;;  %4330 = vmatmul.bf16.vlgmr.msrb.gmra.mxu2 %v4170_v45  ;;  %v4081_v2 = vpop.f32.mrf.mxu3  ;;  %v4107_v3 = vpop.f32.mrf.mxu2  ;;  %v9629_v45 = vld [vmem:[#allocation35 + $0x198] sm:$0xf0]  ;;  %v11263_v48 = vld [vmem:[#allocation35 + $0x184] sm:$0xf0] }
 0x731   :  { %4675 = vmatpush.bf16.msrb.mxu3 %v9676_v44  ;;  %4701 = vmatpush.bf16.msrb.mxu2 %v9680_v34  ;;  %v9640_v44 = vor.u32 %v11266_v42, %v9637_v29  ;;  %v9627_v34 = vld [vmem:[#allocation35 + $0x190] sm:$0xf]  ;;  %v9632_v30 = vor.u32 %v11264_v53, %v9629_v45  ;;  %v11262_v16 = vld [vmem:[#allocation35 + $0x184] sm:$0xf]  ;;  %v4550_v2 = vpack.c.bf16 %v4523_v32, %v4523_v32 }
 0x732   :  { %9517 = vmatmul.msk.bf16.vlgmr.msra.gmra.mxu1 %vm566_vm1, %v4171_v54  ;;  %9518 = vmatmul.msk.bf16.vlgmr.msra.gmra.mxu0 %vm566_vm1, %v4171_v54  ;;  %v9628_v59 = vor.u32 %v11265_v41, %v9627_v34  ;;  %v4524_v54 = vld [vmem:[#allocation14 + $0x18] sm:$0xff]  ;;  %v4761_v23 = vld [vmem:[%s13924_s10 + $0x98] sm:$0xff] }
 0x733   :  { %4692 = vmatpush.bf16.msra.mxu1 %v9708_v36  ;;  %4718 = vmatpush.bf16.msra.mxu0 %v9712_v38  ;;  %v9621_v36 = vld [vmem:[#allocation35 + $0x188] sm:$0xf0]  ;;  %v9620_v38 = vor.u32 %v11263_v48, %v9619_v57  ;;  %v4551_v3 = vpack.c.bf16 %v4524_v54, %v4524_v54 }
 0x734   :  { %v9624_v28 = vor.u32 %v11262_v16, %v9621_v36 }
 0x735   :  { %4676 = vmatpush.bf16.msrb.mxu3 %v9668_v5  ;;  %4702 = vmatpush.bf16.msrb.mxu2 %v9672_v6  ;;  %v4755_v5 = vld [vmem:[%s13924_s10 + $0x68] sm:$0xff]  ;;  %v4754_v6 = vld [vmem:[%s13924_s10 + $0x60] sm:$0xff] }
 0x737   :  { %4693 = vmatpush.bf16.msra.mxu1 %v9700_v33  ;;  %4719 = vmatpush.bf16.msra.mxu0 %v9704_v15  ;;  %v4750_v15 = vld [vmem:[%s13924_s10 + $0x40] sm:$0xff] }
 0x739   :  { %4677 = vmatpush.bf16.msrb.mxu3 %v9660_v35  ;;  %4703 = vmatpush.bf16.msrb.mxu2 %v9664_v46 }
 0x73b   :  { %4694 = vmatpush.bf16.msra.mxu1 %v9692_v9  ;;  %4720 = vmatpush.bf16.msra.mxu0 %v9696_v1  ;;  %v4746_v9 = vld [vmem:[%s13924_s10 + $0x20] sm:$0xff] }
 0x73c   :  { %v4762_v1 = vld [vmem:[%s13924_s10 + $0xa0] sm:$0xff] }
 0x73d   :  { %4678 = vmatpush.bf16.msrb.mxu3 %v9652_v49  ;;  %4704 = vmatpush.bf16.msrb.mxu2 %v9656_v52  ;;  %v4744_v49 = vld [vmem:[%s13924_s10 + $0x10] sm:$0xff] }
 0x73e   :  { %v4760_v52 = vld [vmem:[%s13924_s10 + $0x90] sm:$0xff] }
 0x73f   :  { %4695 = vmatpush.bf16.msra.mxu1 %v9684_v56  ;;  %4721 = vmatpush.bf16.msra.mxu0 %v9688_v27  ;;  %v4758_v56 = vld [vmem:[%s13924_s10 + $0x80] sm:$0xff] }
 0x740   :  { %9615 = vmatmul.msk.bf16.vlgmr.msra.gmra.mxu3 %vm566_vm1, %v4136_v47  ;;  %9616 = vmatmul.msk.bf16.vlgmr.msra.gmra.mxu2 %vm566_vm1, %v4136_v47 }
 0x741   :  { %4679 = vmatpush.bf16.msrb.mxu3 %v9644_v26  ;;  %4705 = vmatpush.bf16.msrb.mxu2 %v9648_v31 }
 0x742   :  { %4479 = vmatmul.bf16.vlgmr.msrb.gmra.mxu1 %v4135_v61  ;;  %4505 = vmatmul.bf16.vlgmr.msrb.gmra.mxu0 %v4135_v61 }
 0x743   :  { %4769 = vmatpush.msrb.mxu1 %v4757_v4 }
 0x745   :  { %4680 = vmatpush.bf16.msrb.mxu3 %v9636_v43  ;;  %4706 = vmatpush.bf16.msrb.mxu2 %v9640_v44  ;;  %v4729_v43 = vld [vmem:[#allocation36] sm:$0x3] }
 0x746   :  { %4770 = vmatpush.msrb.mxu1 %v4756_v37  ;;  %v4731_v53 = vperm.slane %v4729_v43, 0 }
 0x748   :  { %4771 = vmatpush.msrb.mxu1 %v4755_v5 }
 0x749   :  { %4681 = vmatpush.bf16.msrb.mxu3 %v9628_v59  ;;  %4707 = vmatpush.bf16.msrb.mxu2 %v9632_v30  ;;  %v4732_v59 = vperm.slane %v4729_v43, 1  ;;  %v9770_v43 = vld [vmem:[#allocation38 + $0x110] sm:$0xf] }
 0x74a   :  { %4772 = vmatpush.msrb.mxu1 %v4754_v6 }
 0x74c   :  { %4773 = vmatpush.msrb.mxu1 %v4753_v11 }
 0x74d   :  { %4682 = vmatpush.bf16.msrb.mxu3 %v9620_v38  ;;  %4708 = vmatpush.bf16.msrb.mxu2 %v9624_v28 }
 0x74e   :  { %4774 = vmatpush.msrb.mxu1 %v4752_v40 }
 0x750   :  { %4683 = vmatmul.bf16.vlgmr.msrb.gmra.mxu3 %v4550_v2  ;;  %4709 = vmatmul.bf16.vlgmr.msrb.gmra.mxu2 %v4550_v2 }
 0x751   :  { %4775 = vmatpush.msrb.mxu1 %v4751_v58  ;;  %4797 = vmatpush.msra.mxu3 %v4765_v8 }
 0x752   :  { %9713 = vmatmul.msk.bf16.vlgmr.msra.gmra.mxu1 %vm566_vm1, %v4551_v3  ;;  %9714 = vmatmul.msk.bf16.vlgmr.msra.gmra.mxu0 %vm566_vm1, %v4551_v3 }
 0x753   :  { %4776 = vmatpush.msrb.mxu1 %v4750_v15  ;;  %4798 = vmatpush.msra.mxu3 %v4764_v62  ;;  %v4834_v15 = vld [vmem:[%s13925_s29] sm:$0xff] }
 0x754   :  { %v4862_v62 = vld [vmem:[%s12531_s20] sm:$0x3f]  ;;  %s13927_s20 = sld [smem:[#allocation88_spill]] }
 0x755   :  { %4777 = vmatpush.msrb.mxu1 %v4749_v20  ;;  %4799 = vmatpush.msra.mxu3 %v4763_v10 }
 0x756   :  { %9718 = vmatpush.msk.msra.mxu2 %vm2610_vm5, %v4862_v62 }
 0x757   :  { %4778 = vmatpush.msrb.mxu1 %v4748_v17  ;;  %4800 = vmatpush.msra.mxu3 %v4762_v1 }
 0x759   :  { %4779 = vmatpush.msrb.mxu1 %v4747_v19  ;;  %4801 = vmatpush.msra.mxu3 %v4761_v23  ;;  %v4941_v19 = vld [vmem:[#allocation51 + $0x10] sm:$0xff] }
 0x75a   :  { %v4910_v62 = vld [vmem:[%s13927_s20] sm:$0xff] }
 0x75b   :  { %4780 = vmatpush.msrb.mxu1 %v4746_v9  ;;  %4802 = vmatpush.msra.mxu3 %v4760_v52  ;;  %v4942_v9 = vld [vmem:[#allocation51 + $0x18] sm:$0xff] }
 0x75d   :  { %4781 = vmatpush.msrb.mxu1 %v4745_v22  ;;  %4803 = vmatpush.msra.mxu3 %v4759_v51 }
 0x75f   :  { %4782 = vmatpush.msrb.mxu1 %v4744_v49  ;;  %4804 = vmatpush.msra.mxu3 %v4758_v56  ;;  %v4911_v56 = vld [vmem:[#allocation53] sm:$0xf] }
 0x761   :  { %4783 = vmatpush.msrb.mxu1 %v4743_v7 }
 0x763   :  { %4784 = vmatpush.msrb.mxu1 %v4742_v39 }
 0x7af   :  { %v4318_v12 = vpop.f32.mrf.mxu1  ;;  %v4344_v33 = vpop.f32.mrf.mxu0 }
 0x7b3   :  { %v4305_v35 = vpop.f32.mrf.mxu3  ;;  %v4331_v46 = vpop.f32.mrf.mxu2 }
 0x7b4   :  { %v4319_v29 = vadd.f32 %v4318_v12, %v4305_v35  ;;  %v4345_v61 = vadd.f32 %v4344_v33, %v4331_v46  ;;  %v4741_v12 = vld [vmem:[%s13926_s6] sm:$0xf]  ;;  %v4835_v33 = vld [vmem:[%s13925_s29 + $0x8] sm:$0xff] }
 0x7b7   :  { %v4320_v0 = vpop.f32.mrf.mxu1  ;;  %v4346_v60 = vpop.f32.mrf.mxu0 }
 0x7b8   :  { %v4943_v0 = vld [vmem:[#allocation51 + $0x20] sm:$0xff]  ;;  %v4944_v60 = vld [vmem:[#allocation51 + $0x28] sm:$0xff] }
 0x7b9   :  { %4981 = vmatpush.msra.mxu1 %v4944_v60 }
 0x7bb   :  { %v4307_v18 = vpop.f32.mrf.mxu3  ;;  %v4333_v21 = vpop.f32.mrf.mxu2  ;;  %4982 = vmatpush.msra.mxu1 %v4942_v9  ;;  %v9812_v9 = vld [vmem:[#allocation38 + $0x168] sm:$0xf0] }
 0x7bf   :  { %v4480_v55 = vpop.f32.mrf.mxu1  ;;  %v4506_v24 = vpop.f32.mrf.mxu0 }
 0x7c0   :  { %v4481_v44 = vadd.f32 %v4480_v55, %v4319_v29  ;;  %v4507_v34 = vadd.f32 %v4506_v24, %v4345_v61  ;;  %v11323_v29 = vld [vmem:[#allocation38 + $0x124] sm:$0xf0] }
 0x7c3   :  { %v4493_v27 = vpop.f32.mrf.mxu3  ;;  %v4519_v63 = vpop.f32.mrf.mxu2 }
 0x7c4   :  { %v4494_v30 = vadd.f32 %v4493_v27, %v4481_v44  ;;  %v4520_v57 = vadd.f32 %v4519_v63, %v4507_v34  ;;  %v4939_v63 = vld [vmem:[#allocation51] sm:$0xff]  ;;  %v11321_v44 = vld [vmem:[#allocation38 + $0x114] sm:$0xf0] }
 0x7c5   :  { %v9771_v34 = vor.u32 %v11321_v44, %v9770_v43  ;;  %v9794_v43 = vld [vmem:[#allocation38 + $0x140] sm:$0xf]  ;;  %v11327_v44 = vld [vmem:[#allocation38 + $0x144] sm:$0xf0] }
 0x7c7   :  { %v4482_v26 = vpop.f32.mrf.mxu1  ;;  %v4508_v31 = vpop.f32.mrf.mxu0 }
 0x7c8   :  { %v4940_v26 = vld [vmem:[#allocation51 + $0x8] sm:$0xff] }
 0x7c9   :  { %4983 = vmatpush.msra.mxu1 %v4940_v26  ;;  %v9740_v26 = vld [vmem:[#allocation38 + $0xd8] sm:$0xf0] }
 0x7cb   :  { %v4495_v50 = vpop.f32.mrf.mxu3  ;;  %v4521_v47 = vpop.f32.mrf.mxu2 }
 0x7cc   :  { %v9786_v50 = vld [vmem:[#allocation38 + $0x130] sm:$0xf]  ;;  %v11325_v47 = vld [vmem:[#allocation38 + $0x134] sm:$0xf0] }
 0x7cf   :  { %v4697_v13 = vpop.f32.mrf.mxu1  ;;  %v4723_v42 = vpop.f32.mrf.mxu0 }
 0x7d3   :  { %v4684_v41 = vpop.f32.mrf.mxu3  ;;  %v4710_v45 = vpop.f32.mrf.mxu2 }
 0x7d4   :  { %v4698_v48 = vadd.f32 %v4697_v13, %v4684_v41  ;;  %v4724_v16 = vadd.f32 %v4723_v42, %v4710_v45  ;;  %v9787_v13 = vor.u32 %v11325_v47, %v9786_v50  ;;  %v9778_v42 = vld [vmem:[#allocation38 + $0x120] sm:$0xf]  ;;  %v9804_v47 = vld [vmem:[#allocation38 + $0x158] sm:$0xf0] }
 0x7d5   :  { %v9779_v61 = vor.u32 %v11323_v29, %v9778_v42  ;;  %v9762_v41 = vld [vmem:[#allocation38 + $0x100] sm:$0xf]  ;;  %v11311_v42 = vld [vmem:[#allocation38 + $0xc4] sm:$0xf0] }
 0x7d6   :  { %v4727_v36 = vadd.f32 %v4698_v48, %v4494_v30  ;;  %v4728_v38 = vadd.f32 %v4724_v16, %v4520_v57  ;;  %v11317_v30 = vld [vmem:[#allocation38 + $0xf4] sm:$0xf0]  ;;  %v9818_v57 = vld [vmem:[#allocation38 + $0x170] sm:$0xf] }
 0x7d7   :  { %v4699_v28 = vpop.f32.mrf.mxu1  ;;  %v4725_v32 = vpop.f32.mrf.mxu0  ;;  %v11333_v48 = vld [vmem:[#allocation38 + $0x174] sm:$0xf0] }
 0x7d8   :  { %v4735_v54 = vadd.f32 %v4731_v53, %v4727_v36  ;;  %v4736_v2 = vadd.f32 %v4732_v59, %v4728_v38  ;;  %v11319_v53 = vld [vmem:[#allocation38 + $0x104] sm:$0xf0]  ;;  %v9754_v59 = vld [vmem:[#allocation38 + $0xf0] sm:$0xf]  ;;  %v9819_v36 = vor.u32 %v11333_v48, %v9818_v57  ;;  %v9746_v38 = vld [vmem:[#allocation38 + $0xe0] sm:$0xf] }
 0x7d9   :  { %v9763_v45 = vor.u32 %v11319_v53, %v9762_v41  ;;  %v9755_v16 = vor.u32 %v11317_v30, %v9754_v59  ;;  %v11315_v28 = vld [vmem:[#allocation38 + $0xe4] sm:$0xf0]  ;;  %v9810_v32 = vld [vmem:[#allocation38 + $0x160] sm:$0xf]  ;;  %v9795_v41 = vor.u32 %v11327_v44, %v9794_v43  ;;  %v11301_v53 = vld [vmem:[#allocation38 + $0x74] sm:$0xf0] }
 0x7da   :  { %v13656_v3 = vadd.f32 %v4735_v54, %v13621_v25  ;;  %v13659_v4 = vadd.f32 %v4736_v2, %v13623_v14  ;;  %v4836_v25 = vld [vmem:[%s13925_s29 + $0x10] sm:$0xff]  ;;  %v11331_v54 = vld [vmem:[#allocation38 + $0x164] sm:$0xf0]  ;;  %v9747_v2 = vor.u32 %v11315_v28, %v9746_v38  ;;  %v11310_v48 = vld [vmem:[#allocation38 + $0xc4] sm:$0xf] }
 0x7db   :  { %v4686_v37 = vpop.f32.mrf.mxu3  ;;  %v4712_v5 = vpop.f32.mrf.mxu2  ;;  %4854 = vmatpush.msrb.mxu0 %v4836_v25  ;;  %v11313_v25 = vld [vmem:[#allocation38 + $0xd4] sm:$0xf0]  ;;  %v9886_v59 = vld [vmem:[#allocation38 + $0x78] sm:$0xf0]  ;;  %v9796_v28 = vld [vmem:[#allocation38 + $0x148] sm:$0xf0] }
 0x7dc   :  { %v4739_v6 = vmax.f32 %v13656_v3, 0.0  ;;  %v4740_v11 = vmax.f32 %v13659_v4, 0.0  ;;  %v9811_v37 = vor.u32 %v11331_v54, %v9810_v32  ;;  %v9738_v5 = vld [vmem:[#allocation38 + $0xd0] sm:$0xf]  ;;  %v11309_v54 = vld [vmem:[#allocation38 + $0xb4] sm:$0xf0] }
 0x7dd   :  { %4855 = vmatpush.msrb.mxu0 %v4835_v33  ;;  %v11324_v33 = vld [vmem:[#allocation38 + $0x134] sm:$0xf]  ;;  %v9916_v32 = vld [vmem:[#allocation38 + $0xb0] sm:$0xf]  ;;  %v9854_v44 = vld [vmem:[#allocation38 + $0x38] sm:$0xf0] }
 0x7de   :  { %4785 = vmatmul.f32.vlgmr.msrb.gmra.mxu1 %v4739_v6  ;;  %9715 = vmatmul.msk.f32.vlgmr.msra.gmra.mxu3 %vm566_vm1, %v4740_v11  ;;  %v11292_v43 = vld [vmem:[#allocation38 + $0x34] sm:$0xf] }
 0x7df   :  { %4856 = vmatpush.msrb.mxu0 %v4834_v15  ;;  %5253 = vmatpush.bf16.msrb.mxu1 %v9819_v36  ;;  %v9788_v15 = vld [vmem:[#allocation38 + $0x138] sm:$0xf0]  ;;  %v11326_v36 = vld [vmem:[#allocation38 + $0x144] sm:$0xf] }
 0x7e1   :  { %4961 = vmatpush.msra.mxu0 %v4943_v0 }
 0x7e3   :  { %4962 = vmatpush.msra.mxu0 %v4941_v19  ;;  %5254 = vmatpush.bf16.msrb.mxu1 %v9811_v37  ;;  %v9780_v19 = vld [vmem:[#allocation38 + $0x128] sm:$0xf0]  ;;  %v9917_v37 = vor.u32 %v11309_v54, %v9916_v32  ;;  %v9828_v54 = vld [vmem:[#allocation38] sm:$0xf] }
 0x7e5   :  { %4963 = vmatpush.msra.mxu0 %v4939_v63  ;;  %v11312_v63 = vld [vmem:[#allocation38 + $0xd4] sm:$0xf] }
 0x7e6   :  { %v9743_v50 = vor.u32 %v11312_v63, %v9740_v26  ;;  %v9892_v63 = vld [vmem:[#allocation38 + $0x80] sm:$0xf]  ;;  %v11303_v26 = vld [vmem:[#allocation38 + $0x84] sm:$0xf0] }
 0x85b   :  { %v4786_v14 = vpop.f32.mrf.mxu1 }
 0x861   :  { %v4806_v40 = vpop.f32.mrf.mxu3 }
 0x862   :  { %v4807_v58 = vadd.f32 %v4806_v40, %v4786_v14  ;;  %v9802_v14 = vld [vmem:[#allocation38 + $0x150] sm:$0xf]  ;;  %v11329_v40 = vld [vmem:[#allocation38 + $0x154] sm:$0xf0] }
 0x864   :  { %4828 = vmatpush.msrb.mxu3 %v4807_v58  ;;  %v9739_v58 = vor.u32 %v11313_v25, %v9738_v5  ;;  %v11308_v5 = vld [vmem:[#allocation38 + $0xb4] sm:$0xf]  ;;  %v9918_v25 = vld [vmem:[#allocation38 + $0xb8] sm:$0xf0] }
 0x865   :  { %9716 = vmatmul.msk.f32.vlgmr.msrb.gmra.mxu3 %vm4809_vm6, %v4741_v12  ;;  %v9803_v12 = vor.u32 %v11329_v40, %v9802_v14  ;;  %v9876_v14 = vld [vmem:[#allocation38 + $0x60] sm:$0xf]  ;;  %v9921_v40 = vor.u32 %v11308_v5, %v9918_v25  ;;  %v11287_v5 = vld [vmem:[#allocation38 + $0x4] sm:$0xf0]  ;;  %v11286_v25 = vld [vmem:[#allocation38 + $0x4] sm:$0xf] }
 0x867   :  { %5255 = vmatpush.bf16.msrb.mxu1 %v9803_v12  ;;  %v11298_v12 = vld [vmem:[#allocation38 + $0x64] sm:$0xf] }
 0x86b   :  { %5256 = vmatpush.bf16.msrb.mxu1 %v9795_v41  ;;  %v9844_v41 = vld [vmem:[#allocation38 + $0x20] sm:$0xf] }
 0x8e8   :  { %v4830_v20 = vpop.f32.mrf.mxu3 }
 0x8e9   :  { %v4833_v8 = vmul.f32 0.0625, %v4830_v20  ;;  %v11332_v20 = vld [vmem:[#allocation38 + $0x174] sm:$0xf] }
 0x8eb   :  { %9717 = vmatmul.msk.f32.vlgmr.msrb.gmra.mxu0 %vm4837_vm7, %v4833_v8  ;;  %v9820_v8 = vld [vmem:[#allocation38 + $0x178] sm:$0xf0] }
 0x8ec   :  { %5236 = vmatpush.bf16.msrb.mxu0 %v9787_v13  ;;  %v9730_v13 = vld [vmem:[#allocation38 + $0xc0] sm:$0xf] }
 0x8f0   :  { %5237 = vmatpush.bf16.msrb.mxu0 %v9779_v61  ;;  %v9731_v61 = vor.u32 %v11311_v42, %v9730_v13  ;;  %v9852_v13 = vld [vmem:[#allocation38 + $0x30] sm:$0xf]  ;;  %v11293_v42 = vld [vmem:[#allocation38 + $0x34] sm:$0xf0] }
 0x8f4   :  { %5238 = vmatpush.bf16.msrb.mxu0 %v9771_v34  ;;  %v9884_v34 = vld [vmem:[#allocation38 + $0x70] sm:$0xf] }
 0x8f5   :  { %v9885_v30 = vor.u32 %v11301_v53, %v9884_v34  ;;  %v9857_v34 = vor.u32 %v11292_v43, %v9854_v44  ;;  %v11291_v53 = vld [vmem:[#allocation38 + $0x24] sm:$0xf0]  ;;  %v9966_v43 = vld [vmem:[#allocation38 + $0x1d0] sm:$0xf] }
 0x8f8   :  { %5239 = vmatpush.bf16.msrb.mxu0 %v9763_v45  ;;  %v11300_v45 = vld [vmem:[#allocation38 + $0x74] sm:$0xf] }
 0x8f9   :  { %v9889_v57 = vor.u32 %v11300_v45, %v9886_v59  ;;  %v11290_v45 = vld [vmem:[#allocation38 + $0x24] sm:$0xf]  ;;  %v9845_v59 = vor.u32 %v11291_v53, %v9844_v41  ;;  %v9998_v41 = vld [vmem:[#allocation38 + $0x210] sm:$0xf]  ;;  %v11353_v53 = vld [vmem:[#allocation38 + $0x214] sm:$0xf0] }
 0x8fc   :  { %5240 = vmatpush.bf16.msrb.mxu0 %v9755_v16  ;;  %v9732_v16 = vld [vmem:[#allocation38 + $0xc8] sm:$0xf0] }
 0x8fd   :  { %v9735_v38 = vor.u32 %v11310_v48, %v9732_v16  ;;  %v9836_v48 = vld [vmem:[#allocation38 + $0x10] sm:$0xf]  ;;  %v11289_v16 = vld [vmem:[#allocation38 + $0x14] sm:$0xf0] }
 0x900   :  { %5241 = vmatpush.bf16.msrb.mxu0 %v9747_v2  ;;  %v9799_v2 = vor.u32 %v11326_v36, %v9796_v28  ;;  %v11288_v36 = vld [vmem:[#allocation38 + $0x14] sm:$0xf]  ;;  %v9837_v28 = vor.u32 %v11289_v16, %v9836_v48  ;;  %v11350_v48 = vld [vmem:[#allocation38 + $0x204] sm:$0xf]  ;;  %v9992_v16 = vld [vmem:[#allocation38 + $0x208] sm:$0xf0] }
 0x904   :  { %5242 = vmatpush.bf16.msrb.mxu0 %v9739_v58  ;;  %v11299_v58 = vld [vmem:[#allocation38 + $0x64] sm:$0xf0] }
 0x908   :  { %5243 = vmatpush.bf16.msrb.mxu0 %v9731_v61  ;;  %v9853_v61 = vor.u32 %v11293_v42, %v9852_v13  ;;  %v9968_v13 = vld [vmem:[#allocation38 + $0x1d8] sm:$0xf0]  ;;  %v11352_v42 = vld [vmem:[#allocation38 + $0x214] sm:$0xf] }
 0x968   :  { %v4858_v17 = vpop.f32.mrf.mxu0 }
 0x969   :  { %v4861_v35 = vmax.f32 %v4858_v17, 0.0  ;;  %v9791_v17 = vor.u32 %v11324_v33, %v9788_v15  ;;  %v9878_v33 = vld [vmem:[#allocation38 + $0x68] sm:$0xf0]  ;;  %v9877_v15 = vor.u32 %v11299_v58, %v9876_v14 }
 0x96a   :  { %v9830_v14 = vld [vmem:[#allocation38 + $0x8] sm:$0xf0] }
 0x96b   :  { %9719 = vmatmul.msk.f32.vlgmr.msra.gmra.mxu2 %vm4863_vm8, %v4861_v35  ;;  %v11322_v35 = vld [vmem:[#allocation38 + $0x124] sm:$0xf] }
 0x9ee   :  { %v4888_v46 = vpop.f32.mrf.mxu2 }
 0x9ef   :  { %v4891_v10 = vsub.f32 0.0, %v4888_v46  ;;  %v9823_v46 = vor.u32 %v11332_v20, %v9820_v8  ;;  %v9881_v20 = vor.u32 %v11298_v12, %v9878_v33  ;;  %v9908_v8 = vld [vmem:[#allocation38 + $0xa0] sm:$0xf]  ;;  %v9829_v12 = vor.u32 %v11287_v5, %v9828_v54 }
 0x9f0   :  { %v9990_v54 = vld [vmem:[#allocation38 + $0x200] sm:$0xf]  ;;  %v9995_v5 = vor.u32 %v11350_v48, %v9992_v16  ;;  %v11391_v16 = vld [vmem:[#allocation41 + $0x104] sm:$0xf0] }
 0x9f1   :  { %v4892_v1 = vmul.f32 1.442695, %v4891_v10  ;;  %v11330_v10 = vld [vmem:[#allocation38 + $0x164] sm:$0xf] }
 0x9f2   :  { %v10056_v48 = vld [vmem:[#allocation41 + $0x100] sm:$0xf] }
 0x9f3   :  { %11650 = vpow2.f32 %v4892_v1  ;;  %v9783_v1 = vor.u32 %v11322_v35, %v9780_v19 }
 0x9f9   :  { %v11651_v18 = vpop.eup %11650 }
 0x9fa   :  { %v4894_v21 = vadd.f32 1.0, %v11651_v18  ;;  %v9815_v18 = vor.u32 %v11330_v10, %v9812_v9  ;;  %v11296_v9 = vld [vmem:[#allocation38 + $0x54] sm:$0xf] }
 0x9fc   :  { %11652 = vrcp.f32 %v4894_v21  ;;  %v4906_v52 = vand.u32 2147483648, %v4894_v21  ;;  %v4904_v51 = vand.u32 2147483647, %v4894_v21  ;;  %vm4900_vm10 = vweird.f32 %v4894_v21 }
 0x9fe   :  { %v4907_v24 = vor.u32 1.1754944e-38, %v4906_v52  ;;  %vm4905_vm12 = vcmp.eq.f32.partialorder %v4904_v51, 8.507059e+37  ;;  %v9764_v52 = vld [vmem:[#allocation38 + $0x108] sm:$0xf0]  ;;  %v11316_v51 = vld [vmem:[#allocation38 + $0xf4] sm:$0xf] }
 0xa02   :  { %v11653_v22 = vpop.eup %11652 }
 0xa03   :  { %v4896_v23 = vmul.f32 %v11653_v22, %v4894_v21  ;;  %vm4901_vm9 = vweird.f32 %v11653_v22  ;;  %v11320_v21 = vld [vmem:[#allocation38 + $0x114] sm:$0xf] }
 0xa04   :  { %vm4902_vm11 = vmor %vm4900_vm10, %vm4901_vm9 }
 0xa05   :  { %v4897_v49 = vsub.f32 1.0, %v4896_v23 }
 0xa07   :  { %v4898_v7 = vmul.f32 %v11653_v22, %v4897_v49  ;;  %v11318_v49 = vld [vmem:[#allocation38 + $0x104] sm:$0xf] }
 0xa09   :  { %v4899_v55 = vadd.f32 %v11653_v22, %v4898_v7  ;;  %v9767_v7 = vor.u32 %v11318_v49, %v9764_v52  ;;  %v9902_v49 = vld [vmem:[#allocation38 + $0x98] sm:$0xf0]  ;;  %v9860_v52 = vld [vmem:[#allocation38 + $0x40] sm:$0xf] }
 0xa0b   :  { %v4903_v39 = vsel %vm4902_vm11, %v11653_v22, %v4899_v55  ;;  %v9772_v22 = vld [vmem:[#allocation38 + $0x118] sm:$0xf0] }
 0xa0c   :  { %v4908_v27 = vsel %vm4905_vm12, %v4907_v24, %v4903_v39  ;;  %v9775_v23 = vor.u32 %v11320_v21, %v9772_v22  ;;  %v9756_v55 = vld [vmem:[#allocation38 + $0xf8] sm:$0xf0]  ;;  %v11314_v39 = vld [vmem:[#allocation38 + $0xe4] sm:$0xf]  ;;  %v11305_v22 = vld [vmem:[#allocation38 + $0x94] sm:$0xf0] }
 0xa0d   :  { %9720 = vmatpush.msk.msra.mxu3 %vm2389_vm3, %v4908_v27  ;;  %v9759_v24 = vor.u32 %v11316_v51, %v9756_v55  ;;  %v11294_v51 = vld [vmem:[#allocation38 + $0x44] sm:$0xf] }
 0xa0e   :  { %9721 = vmatmul.msk.f32.vlgmr.msra.gmra.mxu3 %vm4912_vm13, %v4911_v56  ;;  %v9748_v56 = vld [vmem:[#allocation38 + $0xe8] sm:$0xf0] }
 0xa0f   :  { %v9751_v27 = vor.u32 %v11314_v39, %v9748_v56  ;;  %v9862_v39 = vld [vmem:[#allocation38 + $0x48] sm:$0xf0] }
 0xa91   :  { %v4936_v31 = vpop.f32.mrf.mxu3 }
 0xa92   :  { %9722 = vmatmul.msk.f32.vlgmr.msra.gmra.mxu0 %vm4837_vm7, %v4936_v31  ;;  %9723 = vmatmul.msk.f32.vlgmr.msra.gmra.mxu1 %vm4837_vm7, %v4936_v31  ;;  %v11328_v31 = vld [vmem:[#allocation38 + $0x154] sm:$0xf] }
 0xa93   :  { %v9807_v29 = vor.u32 %v11328_v31, %v9804_v47  ;;  %5411 = vmatpush.bf16.msra.mxu1 %v9885_v30  ;;  %5437 = vmatpush.bf16.msra.mxu0 %v9889_v57  ;;  %v11302_v31 = vld [vmem:[#allocation38 + $0x84] sm:$0xf]  ;;  %v9894_v47 = vld [vmem:[#allocation38 + $0x88] sm:$0xf0] }
 0xa94   :  { %v9846_v30 = vld [vmem:[#allocation38 + $0x28] sm:$0xf0] }
 0xa95   :  { %v9849_v57 = vor.u32 %v11290_v45, %v9846_v30 }
 0xa97   :  { %5412 = vmatpush.bf16.msra.mxu1 %v9877_v15  ;;  %5438 = vmatpush.bf16.msra.mxu0 %v9881_v20  ;;  %v9833_v20 = vor.u32 %v11286_v25, %v9830_v14  ;;  %v11340_v25 = vld [vmem:[#allocation38 + $0x1b4] sm:$0xf]  ;;  %v9952_v14 = vld [vmem:[#allocation38 + $0x1b8] sm:$0xf0] }
 0xb0f   :  { %v4965_v0 = vpop.f32.mrf.mxu0  ;;  %v4985_v60 = vpop.f32.mrf.mxu1 }
 0xb10   :  { %9724 = vmatpush.msk.msrb.mxu2 %vm2389_vm3, %v4965_v0  ;;  %9726 = vmatpush.msk.msrb.mxu3 %vm2389_vm3, %v4985_v60  ;;  %v9868_v0 = vld [vmem:[#allocation38 + $0x50] sm:$0xf]  ;;  %v11297_v60 = vld [vmem:[#allocation38 + $0x54] sm:$0xf0] }
 0xb11   :  { %9725 = vmatmul.msk.f32.vlgmr.msrb.gmra.mxu2 %vm4912_vm13, %v4910_v62  ;;  %9727 = vmatmul.msk.f32.vlgmr.msrb.gmra.mxu3 %vm4912_vm13, %v4910_v62  ;;  %v11307_v62 = vld [vmem:[#allocation38 + $0xa4] sm:$0xf0]  ;;  %v9869_v10 = vor.u32 %v11297_v60, %v9868_v0  ;;  %v11349_v0 = vld [vmem:[#allocation38 + $0x1f4] sm:$0xf0] }
 0xb12   :  { %5262 = vmatpush.bf16.msra.mxu2 %v9791_v17  ;;  %5279 = vmatpush.bf16.msra.mxu3 %v9823_v46  ;;  %v11306_v17 = vld [vmem:[#allocation38 + $0xa4] sm:$0xf]  ;;  %v9909_v35 = vor.u32 %v11307_v62, %v9908_v8  ;;  %v9910_v46 = vld [vmem:[#allocation38 + $0xa8] sm:$0xf0] }
 0xb13   :  { %v9913_v19 = vor.u32 %v11306_v17, %v9910_v46  ;;  %5413 = vmatpush.bf16.msra.mxu1 %v9869_v10  ;;  %v11348_v17 = vld [vmem:[#allocation38 + $0x1f4] sm:$0xf]  ;;  %v10016_v46 = vld [vmem:[#allocation38 + $0x238] sm:$0xf0]  ;;  %v10014_v10 = vld [vmem:[#allocation38 + $0x230] sm:$0xf] }
 0xb16   :  { %5263 = vmatpush.bf16.msra.mxu2 %v9783_v1  ;;  %5280 = vmatpush.bf16.msra.mxu3 %v9815_v18  ;;  %v9870_v1 = vld [vmem:[#allocation38 + $0x58] sm:$0xf0]  ;;  %v9900_v18 = vld [vmem:[#allocation38 + $0x90] sm:$0xf] }
 0xb17   :  { %v9873_v21 = vor.u32 %v11296_v9, %v9870_v1  ;;  %v9901_v55 = vor.u32 %v11305_v22, %v9900_v18  ;;  %v11357_v9 = vld [vmem:[#allocation38 + $0x234] sm:$0xf0]  ;;  %v9976_v22 = vld [vmem:[#allocation38 + $0x1e8] sm:$0xf0] }
 0xb19   :  { %5439 = vmatpush.bf16.msra.mxu0 %v9873_v21  ;;  %v11346_v21 = vld [vmem:[#allocation38 + $0x1e4] sm:$0xf] }
 0xb1a   :  { %5264 = vmatpush.bf16.msra.mxu2 %v9775_v23  ;;  %5281 = vmatpush.bf16.msra.mxu3 %v9807_v29  ;;  %v11304_v23 = vld [vmem:[#allocation38 + $0x94] sm:$0xf]  ;;  %v9897_v29 = vor.u32 %v11302_v31, %v9894_v47  ;;  %v9979_v31 = vor.u32 %v11346_v21, %v9976_v22  ;;  %v9928_v21 = vld [vmem:[#allocation38 + $0x188] sm:$0xf0] }
 0xb1e   :  { %5265 = vmatpush.bf16.msra.mxu2 %v9767_v7  ;;  %5282 = vmatpush.bf16.msra.mxu3 %v9799_v2  ;;  %v11295_v7 = vld [vmem:[#allocation38 + $0x44] sm:$0xf0] }
 0xb1f   :  { %v9861_v56 = vor.u32 %v11295_v7, %v9860_v52  ;;  %v11354_v7 = vld [vmem:[#allocation38 + $0x224] sm:$0xf] }
 0xb21   :  { %5414 = vmatpush.bf16.msra.mxu1 %v9861_v56  ;;  %v10015_v56 = vor.u32 %v11357_v9, %v10014_v10  ;;  %v9934_v10 = vld [vmem:[#allocation38 + $0x190] sm:$0xf]  ;;  %v11337_v9 = vld [vmem:[#allocation38 + $0x194] sm:$0xf0] }
 0xb22   :  { %5266 = vmatpush.bf16.msra.mxu2 %v9759_v24  ;;  %5428 = vmatpush.bf16.msrb.mxu3 %v9917_v37  ;;  %v9905_v24 = vor.u32 %v11304_v23, %v9902_v49  ;;  %v9935_v22 = vor.u32 %v11337_v9, %v9934_v10  ;;  %v11386_v10 = vld [vmem:[#allocation41 + $0xe4] sm:$0xf] }
 0xb25   :  { %5415 = vmatpush.bf16.msra.mxu1 %v9853_v61 }
 0xb26   :  { %5267 = vmatpush.bf16.msra.mxu2 %v9751_v27  ;;  %5429 = vmatpush.bf16.msrb.mxu3 %v9909_v35  ;;  %v9865_v27 = vor.u32 %v11294_v51, %v9862_v39  ;;  %v9984_v35 = vld [vmem:[#allocation38 + $0x1f8] sm:$0xf0]  ;;  %v10008_v51 = vld [vmem:[#allocation38 + $0x228] sm:$0xf0]  ;;  %v11347_v39 = vld [vmem:[#allocation38 + $0x1e4] sm:$0xf0] }
 0xb27   :  { %v9987_v18 = vor.u32 %v11348_v17, %v9984_v35  ;;  %v10011_v47 = vor.u32 %v11354_v7, %v10008_v51  ;;  %v11338_v35 = vld [vmem:[#allocation38 + $0x1a4] sm:$0xf] }
 0xb28   :  { %5440 = vmatpush.bf16.msra.mxu0 %v9865_v27 }
 0xb29   :  { %5416 = vmatpush.bf16.msra.mxu1 %v9845_v59  ;;  %v11342_v59 = vld [vmem:[#allocation38 + $0x1c4] sm:$0xf] }
 0xb2a   :  { %5268 = vmatpush.bf16.msra.mxu2 %v9743_v50  ;;  %5430 = vmatpush.bf16.msrb.mxu3 %v9901_v55  ;;  %v9893_v50 = vor.u32 %v11303_v26, %v9892_v63  ;;  %v10006_v63 = vld [vmem:[#allocation38 + $0x220] sm:$0xf]  ;;  %v11355_v26 = vld [vmem:[#allocation38 + $0x224] sm:$0xf0] }
 0xb2b   :  { %v10007_v44 = vor.u32 %v11355_v26, %v10006_v63  ;;  %v11396_v63 = vld [vmem:[#allocation41 + $0x134] sm:$0xf] }
 0xb2c   :  { %5441 = vmatpush.bf16.msra.mxu0 %v9857_v34  ;;  %v11345_v34 = vld [vmem:[#allocation38 + $0x1d4] sm:$0xf0] }
 0xb2d   :  { %5417 = vmatpush.bf16.msra.mxu1 %v9837_v28  ;;  %v9999_v28 = vor.u32 %v11353_v53, %v9998_v41  ;;  %v11392_v41 = vld [vmem:[#allocation41 + $0x114] sm:$0xf]  ;;  %v10066_v53 = vld [vmem:[#allocation41 + $0x118] sm:$0xf0] }
 0xb2e   :  { %5269 = vmatpush.bf16.msra.mxu2 %v9735_v38  ;;  %5431 = vmatpush.bf16.msrb.mxu3 %v9893_v50  ;;  %v9838_v38 = vld [vmem:[#allocation38 + $0x18] sm:$0xf0]  ;;  %v11344_v50 = vld [vmem:[#allocation38 + $0x1d4] sm:$0xf] }
 0xb2f   :  { %v9841_v32 = vor.u32 %v11288_v36, %v9838_v38  ;;  %v9971_v45 = vor.u32 %v11344_v50, %v9968_v13  ;;  %v9967_v36 = vor.u32 %v11345_v34, %v9966_v43  ;;  %v9958_v38 = vld [vmem:[#allocation38 + $0x1c0] sm:$0xf]  ;;  %v11395_v13 = vld [vmem:[#allocation41 + $0x124] sm:$0xf0]  ;;  %v10064_v43 = vld [vmem:[#allocation41 + $0x110] sm:$0xf] }
 0xb30   :  { %5442 = vmatpush.bf16.msra.mxu0 %v9849_v57  ;;  %v9960_v57 = vld [vmem:[#allocation38 + $0x1c8] sm:$0xf0] }
 0xb31   :  { %5418 = vmatpush.bf16.msra.mxu1 %v9829_v12 }
 0xb32   :  { %5454 = vmatpush.bf16.msrb.mxu2 %v9921_v40 }
 0xb34   :  { %5443 = vmatpush.bf16.msra.mxu0 %v9841_v32  ;;  %v11343_v32 = vld [vmem:[#allocation38 + $0x1c4] sm:$0xf0] }
 0xb36   :  { %5455 = vmatpush.bf16.msrb.mxu2 %v9913_v19 }
 0xb38   :  { %5444 = vmatpush.bf16.msra.mxu0 %v9833_v20  ;;  %v11341_v20 = vld [vmem:[#allocation38 + $0x1b4] sm:$0xf0] }
 0xb3a   :  { %5456 = vmatpush.bf16.msrb.mxu2 %v9905_v24  ;;  %v9974_v24 = vld [vmem:[#allocation38 + $0x1e0] sm:$0xf] }
 0xb3b   :  { %v9975_v61 = vor.u32 %v11347_v39, %v9974_v24 }
 0xb3e   :  { %5457 = vmatpush.bf16.msrb.mxu2 %v9897_v29  ;;  %v10000_v29 = vld [vmem:[#allocation38 + $0x218] sm:$0xf0] }
 0xb3f   :  { %v10003_v30 = vor.u32 %v11352_v42, %v10000_v29  ;;  %v11394_v42 = vld [vmem:[#allocation41 + $0x124] sm:$0xf] }
 0xb94   :  { %v5014_v2 = vpop.f32.mrf.mxu2  ;;  %v5034_v37 = vpop.f32.mrf.mxu3 }
 0xb95   :  { %v5015_v40 = vadd.f32 1.0, %v5014_v2  ;;  %v5035_v58 = vadd.f32 1.0, %v5034_v37  ;;  %v11351_v2 = vld [vmem:[#allocation38 + $0x204] sm:$0xf0]  ;;  %v9963_v37 = vor.u32 %v11342_v59, %v9960_v57  ;;  %v10069_v59 = vor.u32 %v11392_v41, %v10066_v53 }
 0xb97   :  { %v5037_v33 = vmul.f32 %v5015_v40, %v4739_v6  ;;  %v5038_v15 = vmul.f32 %v5035_v58, %v4740_v11  ;;  %v11356_v6 = vld [vmem:[#allocation38 + $0x234] sm:$0xf]  ;;  %v9982_v11 = vld [vmem:[#allocation38 + $0x1f0] sm:$0xf]  ;;  %v9959_v40 = vor.u32 %v11343_v32, %v9958_v38  ;;  %v10057_v38 = vor.u32 %v11391_v16, %v10056_v48  ;;  %v11383_v48 = vld [vmem:[#allocation41 + $0xc4] sm:$0xf0] }
 0xb98   :  { %v10019_v23 = vor.u32 %v11356_v6, %v10016_v46  ;;  %v9983_v55 = vor.u32 %v11349_v0, %v9982_v11  ;;  %v9942_v46 = vld [vmem:[#allocation38 + $0x1a0] sm:$0xf]  ;;  %v11336_v0 = vld [vmem:[#allocation38 + $0x194] sm:$0xf] }
 0xb99   :  { %v5041_v8 = vrot.slane %v5037_v33, 4  ;;  %v5042_v62 = vrot.slane %v5038_v15, 4  ;;  %v9991_v33 = vor.u32 %v11351_v2, %v9990_v54  ;;  %v9950_v15 = vld [vmem:[#allocation38 + $0x1b0] sm:$0xf]  ;;  %v11405_v54 = vld [vmem:[#allocation41 + $0x174] sm:$0xf0] }
 0xb9a   :  { %v9951_v6 = vor.u32 %v11341_v20, %v9950_v15  ;;  %v10112_v32 = vld [vmem:[#allocation41 + $0x170] sm:$0xf] }
 0xb9b   :  { %5045 = vst [vmem:[#allocation15] sm:$0xf0] %v5041_v8 }
 0xb9c   :  { %5047 = vst [vmem:[#allocation15 + $0x10] sm:$0xf] %v5041_v8  ;;  %v9955_v8 = vor.u32 %v11340_v25, %v9952_v14  ;;  %v10114_v25 = vld [vmem:[#allocation41 + $0x178] sm:$0xf0]  ;;  %v10048_v14 = vld [vmem:[#allocation41 + $0xf0] sm:$0xf] }
 0xb9d   :  { %5046 = vst.msk [vmem:[#allocation15 + $0x8] sm:$0xf0] %vm2403_vm2, %v5042_v62 }
 0xb9e   :  { %5048 = vst.msk [vmem:[#allocation15 + $0x18] sm:$0xf] %vm2408_vm4, %v5042_v62 }
 0xba2   :  { %v5077_v3 = vld [vmem:[#allocation15] sm:$0xf0] }
 0xba3   :  { %v5079_v4 = vld [vmem:[#allocation15 + $0x10] sm:$0xf]  ;;  %v5049_v58 = vld [vmem:[#allocation15] sm:$0xff] }
 0xba4   :  { %v5106_v60 = vpack.c.bf16 %v5079_v4, %v5077_v3  ;;  %v5078_v19 = vld [vmem:[#allocation15 + $0x8] sm:$0xf0]  ;;  %v5075_v62 = vpack.c.bf16 %v5049_v58, %v5049_v58  ;;  %v9944_v3 = vld [vmem:[#allocation38 + $0x1a8] sm:$0xf0]  ;;  %v11339_v4 = vld [vmem:[#allocation38 + $0x1a4] sm:$0xf0] }
 0xba5   :  { %v5080_v1 = vld [vmem:[#allocation15 + $0x18] sm:$0xf]  ;;  %v5050_v12 = vld [vmem:[#allocation15 + $0x8] sm:$0xff]  ;;  %v9947_v11 = vor.u32 %v11338_v35, %v9944_v3  ;;  %v5463_v51 = vld [vmem:[#allocation15 + $0x10] sm:$0xff] }
 0xba6   :  { %v5110_v49 = vrot.slane %v5106_v60, 2  ;;  %v5107_v52 = vpack.c.bf16 %v5080_v1, %v5078_v19  ;;  %v5076_v17 = vpack.c.bf16 %v5050_v12, %v5050_v12  ;;  %v9936_v60 = vld [vmem:[#allocation38 + $0x198] sm:$0xf0]  ;;  %v9943_v19 = vor.u32 %v11339_v4, %v9942_v46  ;;  %v11388_v12 = vld [vmem:[#allocation41 + $0xf4] sm:$0xf] }
 0xba7   :  { %v9939_v1 = vor.u32 %v11336_v0, %v9936_v60  ;;  %v5490_v24 = vpack.c.bf16 %v5463_v51, %v5463_v51  ;;  %v11389_v58 = vld [vmem:[#allocation41 + $0xf4] sm:$0xf0]  ;;  %v11402_v35 = vld [vmem:[#allocation41 + $0x164] sm:$0xf]  ;;  %v10040_v60 = vld [vmem:[#allocation41 + $0xe0] sm:$0xf] }
 0xba8   :  { %5244 = vmatmul.bf16.vlgmr.msrb.gmra.mxu0 %v5110_v49  ;;  %v5111_v27 = vrot.slane %v5107_v52, 2  ;;  %5270 = vmatmul.bf16.vlgmr.msra.gmra.mxu2 %v5110_v49  ;;  %v11335_v49 = vld [vmem:[#allocation38 + $0x184] sm:$0xf0]  ;;  %v10049_v20 = vor.u32 %v11389_v58, %v10048_v14 }
 0xba9   :  { %5641 = vmatpush.bf16.msra.mxu2 %v9987_v18  ;;  %5658 = vmatpush.bf16.msrb.mxu0 %v10019_v23  ;;  %v11334_v18 = vld [vmem:[#allocation38 + $0x184] sm:$0xf]  ;;  %v9926_v23 = vld [vmem:[#allocation38 + $0x180] sm:$0xf]  ;;  %v11371_v58 = vld [vmem:[#allocation41 + $0x64] sm:$0xf0] }
 0xbaa   :  { %9824 = vmatmul.msk.bf16.vlgmr.msrb.gmra.mxu1 %vm566_vm1, %v5111_v27  ;;  %9825 = vmatmul.msk.bf16.vlgmr.msra.gmra.mxu3 %vm566_vm1, %v5111_v27  ;;  %v9931_v52 = vor.u32 %v11334_v18, %v9928_v21  ;;  %v9927_v7 = vor.u32 %v11335_v49, %v9926_v23  ;;  %v11397_v27 = vld [vmem:[#allocation41 + $0x134] sm:$0xf0]  ;;  %v10096_v18 = vld [vmem:[#allocation41 + $0x150] sm:$0xf]  ;;  %v11400_v23 = vld [vmem:[#allocation41 + $0x154] sm:$0xf] }
 0xbab   :  { %5615 = vmatpush.bf16.msra.mxu3 %v9983_v55  ;;  %5632 = vmatpush.bf16.msrb.mxu1 %v10015_v56  ;;  %v5464_v55 = vld [vmem:[#allocation15 + $0x18] sm:$0xff] }
 0xbac   :  { %v5491_v39 = vpack.c.bf16 %v5464_v55, %v5464_v55  ;;  %v10080_v56 = vld [vmem:[#allocation41 + $0x130] sm:$0xf] }
 0xbad   :  { %5642 = vmatpush.bf16.msra.mxu2 %v9979_v31  ;;  %5659 = vmatpush.bf16.msrb.mxu0 %v10011_v47  ;;  %v10081_v26 = vor.u32 %v11397_v27, %v10080_v56  ;;  %v10082_v31 = vld [vmem:[#allocation41 + $0x138] sm:$0xf0]  ;;  %v10072_v47 = vld [vmem:[#allocation41 + $0x120] sm:$0xf]  ;;  %v10032_v55 = vld [vmem:[#allocation41 + $0xd0] sm:$0xf] }
 0xbae   :  { %v10085_v50 = vor.u32 %v11396_v63, %v10082_v31  ;;  %v10073_v29 = vor.u32 %v11395_v13, %v10072_v47  ;;  %v11384_v56 = vld [vmem:[#allocation41 + $0xd4] sm:$0xf]  ;;  %v10034_v27 = vld [vmem:[#allocation41 + $0xd8] sm:$0xf0]  ;;  %v10088_v63 = vld [vmem:[#allocation41 + $0x140] sm:$0xf] }
 0xbaf   :  { %5616 = vmatpush.bf16.msra.mxu3 %v9975_v61  ;;  %5633 = vmatpush.bf16.msrb.mxu1 %v10007_v44  ;;  %v10074_v61 = vld [vmem:[#allocation41 + $0x128] sm:$0xf0]  ;;  %v11393_v44 = vld [vmem:[#allocation41 + $0x114] sm:$0xf0]  ;;  %v11399_v47 = vld [vmem:[#allocation41 + $0x144] sm:$0xf0] }
 0xbb0   :  { %v10077_v34 = vor.u32 %v11394_v42, %v10074_v61  ;;  %v11398_v13 = vld [vmem:[#allocation41 + $0x144] sm:$0xf]  ;;  %v10090_v42 = vld [vmem:[#allocation41 + $0x148] sm:$0xf0] }
 0xbb1   :  { %5643 = vmatpush.bf16.msra.mxu2 %v9971_v45  ;;  %5660 = vmatpush.bf16.msrb.mxu0 %v10003_v30  ;;  %v10065_v45 = vor.u32 %v11393_v44, %v10064_v43  ;;  %v10093_v61 = vor.u32 %v11398_v13, %v10090_v42  ;;  %v10178_v43 = vld [vmem:[#allocation41 + $0x70] sm:$0xf]  ;;  %v11373_v44 = vld [vmem:[#allocation41 + $0x74] sm:$0xf0]  ;;  %v11375_v13 = vld [vmem:[#allocation41 + $0x84] sm:$0xf0] }
 0xbb2   :  { %v10179_v53 = vor.u32 %v11373_v44, %v10178_v43  ;;  %v11374_v42 = vld [vmem:[#allocation41 + $0x84] sm:$0xf]  ;;  %v10188_v44 = vld [vmem:[#allocation41 + $0x88] sm:$0xf0] }
 0xbb3   :  { %5617 = vmatpush.bf16.msra.mxu3 %v9967_v36  ;;  %5634 = vmatpush.bf16.msrb.mxu1 %v9999_v28  ;;  %v11390_v36 = vld [vmem:[#allocation41 + $0x104] sm:$0xf]  ;;  %v10058_v28 = vld [vmem:[#allocation41 + $0x108] sm:$0xf0] }
 0xbb4   :  { %v10061_v2 = vor.u32 %v11390_v36, %v10058_v28  ;;  %v10026_v28 = vld [vmem:[#allocation41 + $0xc8] sm:$0xf0] }
 0xbb5   :  { %5644 = vmatpush.bf16.msra.mxu2 %v9963_v37  ;;  %5661 = vmatpush.bf16.msrb.mxu0 %v9995_v5  ;;  %v10113_v37 = vor.u32 %v11405_v54, %v10112_v32  ;;  %v11404_v5 = vld [vmem:[#allocation41 + $0x174] sm:$0xf]  ;;  %v10210_v32 = vld [vmem:[#allocation41 + $0xb0] sm:$0xf] }
 0xbb7   :  { %5618 = vmatpush.bf16.msra.mxu3 %v9959_v40  ;;  %5635 = vmatpush.bf16.msrb.mxu1 %v9991_v33  ;;  %v10117_v40 = vor.u32 %v11404_v5, %v10114_v25  ;;  %v10050_v33 = vld [vmem:[#allocation41 + $0xf8] sm:$0xf0] }
 0xbb8   :  { %5445 = vmatmul.bf16.vlgmr.msra.gmra.mxu0 %v5075_v62  ;;  %9923 = vmatmul.msk.bf16.vlgmr.msrb.gmra.mxu2 %vm566_vm1, %v5076_v17  ;;  %v10212_v5 = vld [vmem:[#allocation41 + $0xb8] sm:$0xf0] }
 0xbb9   :  { %5645 = vmatpush.bf16.msra.mxu2 %v9955_v8  ;;  %5902 = vmatpush.bf16.msra.mxu0 %v10085_v50  ;;  %v10053_v8 = vor.u32 %v11388_v12, %v10050_v33  ;;  %v10037_v50 = vor.u32 %v11384_v56, %v10034_v27  ;;  %v11370_v12 = vld [vmem:[#allocation41 + $0x64] sm:$0xf]  ;;  %v10156_v27 = vld [vmem:[#allocation41 + $0x48] sm:$0xf0] }
 0xbba   :  { %5419 = vmatmul.bf16.vlgmr.msra.gmra.mxu1 %v5075_v62  ;;  %9922 = vmatmul.msk.bf16.vlgmr.msrb.gmra.mxu3 %vm566_vm1, %v5076_v17  ;;  %v10104_v62 = vld [vmem:[#allocation41 + $0x160] sm:$0xf]  ;;  %v11403_v17 = vld [vmem:[#allocation41 + $0x164] sm:$0xf0]  ;;  %v11366_v56 = vld [vmem:[#allocation41 + $0x44] sm:$0xf] }
 0xbbb   :  { %5619 = vmatpush.bf16.msra.mxu3 %v9951_v6  ;;  %5876 = vmatpush.bf16.msra.mxu1 %v10081_v26  ;;  %v10105_v3 = vor.u32 %v11403_v17, %v10104_v62  ;;  %v10106_v6 = vld [vmem:[#allocation41 + $0x168] sm:$0xf0]  ;;  %v10202_v62 = vld [vmem:[#allocation41 + $0xa0] sm:$0xf]  ;;  %v11379_v17 = vld [vmem:[#allocation41 + $0xa4] sm:$0xf0] }
 0xbbd   :  { %5646 = vmatpush.bf16.msra.mxu2 %v9947_v11  ;;  %5903 = vmatpush.bf16.msra.mxu0 %v10077_v34  ;;  %v10109_v11 = vor.u32 %v11402_v35, %v10106_v6  ;;  %v11372_v34 = vld [vmem:[#allocation41 + $0x74] sm:$0xf]  ;;  %v11378_v6 = vld [vmem:[#allocation41 + $0xa4] sm:$0xf] }
 0xbbf   :  { %5620 = vmatpush.bf16.msra.mxu3 %v9943_v19  ;;  %5877 = vmatpush.bf16.msra.mxu1 %v10073_v29  ;;  %v11387_v19 = vld [vmem:[#allocation41 + $0xe4] sm:$0xf0]  ;;  %v10089_v29 = vor.u32 %v11399_v47, %v10088_v63  ;;  %v10186_v47 = vld [vmem:[#allocation41 + $0x80] sm:$0xf] }
 0xbc0   :  { %v10041_v9 = vor.u32 %v11387_v19, %v10040_v60  ;;  %v10187_v43 = vor.u32 %v11375_v13, %v10186_v47  ;;  %v10276_v47 = vld [vmem:[#allocation41 + $0x1f0] sm:$0xf]  ;;  %v11421_v13 = vld [vmem:[#allocation41 + $0x1f4] sm:$0xf0] }
 0xbc1   :  { %5647 = vmatpush.bf16.msra.mxu2 %v9939_v1  ;;  %5904 = vmatpush.bf16.msra.mxu0 %v10069_v59  ;;  %v10042_v1 = vld [vmem:[#allocation41 + $0xe8] sm:$0xf0]  ;;  %v10024_v59 = vld [vmem:[#allocation41 + $0xc0] sm:$0xf] }
 0xbc2   :  { %v10045_v21 = vor.u32 %v11386_v10, %v10042_v1  ;;  %v10025_v36 = vor.u32 %v11383_v48, %v10024_v59  ;;  %v11369_v10 = vld [vmem:[#allocation41 + $0x54] sm:$0xf0]  ;;  %v10164_v1 = vld [vmem:[#allocation41 + $0x58] sm:$0xf0]  ;;  %v11364_v48 = vld [vmem:[#allocation41 + $0x34] sm:$0xf] }
 0xbc3   :  { %5621 = vmatpush.bf16.msra.mxu3 %v9935_v22  ;;  %5878 = vmatpush.bf16.msra.mxu1 %v10065_v45  ;;  %v11401_v22 = vld [vmem:[#allocation41 + $0x154] sm:$0xf0]  ;;  %v10180_v45 = vld [vmem:[#allocation41 + $0x78] sm:$0xf0] }
 0xbc4   :  { %v10097_v49 = vor.u32 %v11401_v22, %v10096_v18  ;;  %v10183_v16 = vor.u32 %v11372_v34, %v10180_v45  ;;  %v10194_v22 = vld [vmem:[#allocation41 + $0x90] sm:$0xf]  ;;  %v10191_v45 = vor.u32 %v11374_v42, %v10188_v44 }
 0xbc5   :  { %5648 = vmatpush.bf16.msra.mxu2 %v9931_v52  ;;  %5905 = vmatpush.bf16.msra.mxu0 %v10061_v2  ;;  %v10098_v52 = vld [vmem:[#allocation41 + $0x158] sm:$0xf0]  ;;  %v11381_v2 = vld [vmem:[#allocation41 + $0xb4] sm:$0xf0]  ;;  %v10146_v34 = vld [vmem:[#allocation41 + $0x30] sm:$0xf] }
 0xbc6   :  { %v10101_v51 = vor.u32 %v11400_v23, %v10098_v52  ;;  %v10211_v25 = vor.u32 %v11381_v2, %v10210_v32  ;;  %v11377_v23 = vld [vmem:[#allocation41 + $0x94] sm:$0xf0]  ;;  %v10138_v32 = vld [vmem:[#allocation41 + $0x20] sm:$0xf]  ;;  %v11362_v2 = vld [vmem:[#allocation41 + $0x24] sm:$0xf] }
 0xbc7   :  { %5622 = vmatpush.bf16.msra.mxu3 %v9927_v7  ;;  %5879 = vmatpush.bf16.msra.mxu1 %v10057_v38  ;;  %v11382_v38 = vld [vmem:[#allocation41 + $0xc4] sm:$0xf] }
 0xbc8   :  { %5649 = vmatmul.bf16.vlgmr.msra.gmra.mxu2 %v5490_v24  ;;  %10021 = vmatmul.msk.bf16.vlgmr.msrb.gmra.mxu0 %vm566_vm1, %v5491_v39  ;;  %v10029_v54 = vor.u32 %v11382_v38, %v10026_v28 }
 0xbc9   :  { %5919 = vmatpush.bf16.msrb.mxu2 %v10117_v40  ;;  %5906 = vmatpush.bf16.msra.mxu0 %v10053_v8  ;;  %v10170_v40 = vld [vmem:[#allocation41 + $0x60] sm:$0xf]  ;;  %v10172_v8 = vld [vmem:[#allocation41 + $0x68] sm:$0xf0] }
 0xbca   :  { %5623 = vmatmul.bf16.vlgmr.msra.gmra.mxu3 %v5490_v24  ;;  %10020 = vmatmul.msk.bf16.vlgmr.msrb.gmra.mxu1 %vm566_vm1, %v5491_v39  ;;  %v11385_v24 = vld [vmem:[#allocation41 + $0xd4] sm:$0xf0]  ;;  %v10175_v35 = vor.u32 %v11370_v12, %v10172_v8  ;;  %v10130_v12 = vld [vmem:[#allocation41 + $0x10] sm:$0xf] }
 0xbcb   :  { %5893 = vmatpush.bf16.msrb.mxu3 %v10113_v37  ;;  %5880 = vmatpush.bf16.msra.mxu1 %v10049_v20  ;;  %v10033_v39 = vor.u32 %v11385_v24, %v10032_v55  ;;  %v11380_v37 = vld [vmem:[#allocation41 + $0xb4] sm:$0xf]  ;;  %v10171_v20 = vor.u32 %v11371_v58, %v10170_v40  ;;  %v11367_v55 = vld [vmem:[#allocation41 + $0x44] sm:$0xf0]  ;;  %v10195_v24 = vor.u32 %v11377_v23, %v10194_v22  ;;  %v11361_v8 = vld [vmem:[#allocation41 + $0x14] sm:$0xf0] }
 0xbcc   :  { %v10215_v14 = vor.u32 %v11380_v37, %v10212_v5  ;;  %v5669_v37 = vld [vmem:[#allocation39] sm:$0x3] }
 0xbcd   :  { %5920 = vmatpush.bf16.msrb.mxu2 %v10109_v11  ;;  %5907 = vmatpush.bf16.msra.mxu0 %v10045_v21  ;;  %v10162_v11 = vld [vmem:[#allocation41 + $0x50] sm:$0xf] }
 0xbce   :  { %v10163_v18 = vor.u32 %v11369_v10, %v10162_v11  ;;  %v10122_v10 = vld [vmem:[#allocation41] sm:$0xf] }
 0xbcf   :  { %5894 = vmatpush.bf16.msrb.mxu3 %v10105_v3  ;;  %5881 = vmatpush.bf16.msra.mxu1 %v10041_v9  ;;  %v10203_v3 = vor.u32 %v11379_v17, %v10202_v62  ;;  %v11368_v9 = vld [vmem:[#allocation41 + $0x54] sm:$0xf] }
 0xbd0   :  { %v10167_v21 = vor.u32 %v11368_v9, %v10164_v1  ;;  %v11359_v9 = vld [vmem:[#allocation41 + $0x4] sm:$0xf0] }
 0xbd1   :  { %5921 = vmatpush.bf16.msrb.mxu2 %v10101_v51  ;;  %5908 = vmatpush.bf16.msra.mxu0 %v10037_v50  ;;  %v10154_v51 = vld [vmem:[#allocation41 + $0x40] sm:$0xf]  ;;  %v10123_v22 = vor.u32 %v11359_v9, %v10122_v10  ;;  %v11415_v9 = vld [vmem:[#allocation41 + $0x1c4] sm:$0xf0] }
 0xbd2   :  { %v10155_v63 = vor.u32 %v11367_v55, %v10154_v51  ;;  %v10252_v10 = vld [vmem:[#allocation41 + $0x1c0] sm:$0xf] }
 0xbd3   :  { %5895 = vmatpush.bf16.msrb.mxu3 %v10097_v49  ;;  %5882 = vmatpush.bf16.msra.mxu1 %v10033_v39  ;;  %v11376_v49 = vld [vmem:[#allocation41 + $0x94] sm:$0xf] }
 0xbd5   :  { %5922 = vmatpush.bf16.msrb.mxu2 %v10093_v61  ;;  %5909 = vmatpush.bf16.msra.mxu0 %v10029_v54  ;;  %v11363_v54 = vld [vmem:[#allocation41 + $0x24] sm:$0xf0] }
 0xbd6   :  { %v10139_v5 = vor.u32 %v11363_v54, %v10138_v32  ;;  %v10268_v54 = vld [vmem:[#allocation41 + $0x1e0] sm:$0xf] }
 0xbd7   :  { %5896 = vmatpush.bf16.msrb.mxu3 %v10089_v29  ;;  %5883 = vmatpush.bf16.msra.mxu1 %v10025_v36 }
 0xbd9   :  { %6077 = vmatpush.bf16.msra.mxu2 %v10183_v16  ;;  %6094 = vmatpush.bf16.msrb.mxu0 %v10215_v14  ;;  %v10148_v16 = vld [vmem:[#allocation41 + $0x38] sm:$0xf0] }
 0xbda   :  { %v10151_v38 = vor.u32 %v11364_v48, %v10148_v16 }
 0xbdb   :  { %6051 = vmatpush.bf16.msra.mxu3 %v10179_v53  ;;  %6068 = vmatpush.bf16.msrb.mxu1 %v10211_v25  ;;  %v11365_v53 = vld [vmem:[#allocation41 + $0x34] sm:$0xf0]  ;;  %v10140_v25 = vld [vmem:[#allocation41 + $0x28] sm:$0xf0] }
 0xbdc   :  { %v10147_v59 = vor.u32 %v11365_v53, %v10146_v34  ;;  %v10143_v58 = vor.u32 %v11362_v2, %v10140_v25  ;;  %v11419_v2 = vld [vmem:[#allocation41 + $0x1e4] sm:$0xf0]  ;;  %v10270_v25 = vld [vmem:[#allocation41 + $0x1e8] sm:$0xf0] }
 0xbdd   :  { %6078 = vmatpush.bf16.msra.mxu2 %v10175_v35 }
 0xbdf   :  { %6052 = vmatpush.bf16.msra.mxu3 %v10171_v20  ;;  %6069 = vmatpush.bf16.msrb.mxu1 %v10203_v3  ;;  %v5672_v3 = vperm.slane %v5669_v37, 1 }
 0xbe1   :  { %6079 = vmatpush.bf16.msra.mxu2 %v10167_v21 }
 0xbe3   :  { %6053 = vmatpush.bf16.msra.mxu3 %v10163_v18  ;;  %6070 = vmatpush.bf16.msrb.mxu1 %v10195_v24  ;;  %v11358_v18 = vld [vmem:[#allocation41 + $0x4] sm:$0xf] }
 0xbe7   :  { %6054 = vmatpush.bf16.msra.mxu3 %v10155_v63  ;;  %6071 = vmatpush.bf16.msrb.mxu1 %v10187_v43  ;;  %v11428_v63 = vld [vmem:[#allocation41 + $0x234] sm:$0xf]  ;;  %v10278_v43 = vld [vmem:[#allocation41 + $0x1f8] sm:$0xf0] }
 0xbeb   :  { %6055 = vmatpush.bf16.msra.mxu3 %v10147_v59  ;;  %v11427_v59 = vld [vmem:[#allocation41 + $0x224] sm:$0xf0] }
 0xbef   :  { %6056 = vmatpush.bf16.msra.mxu3 %v10139_v5  ;;  %v11418_v5 = vld [vmem:[#allocation41 + $0x1e4] sm:$0xf] }
 0xc25   :  { %v13698_v30 = vpop.f32.mrf.mxu0 }
 0xc27   :  { %v13700_v57 = vpop.f32.mrf.mxu1 }
 0xc28   :  { %v5259_v14 = vadd.f32 %v13700_v57, %v13698_v30  ;;  %v10131_v30 = vor.u32 %v11361_v8, %v10130_v12  ;;  %v11425_v12 = vld [vmem:[#allocation41 + $0x214] sm:$0xf0]  ;;  %v10294_v8 = vld [vmem:[#allocation41 + $0x218] sm:$0xf0] }
 0xc2a   :  { %6057 = vmatpush.bf16.msra.mxu3 %v10131_v30  ;;  %v11423_v30 = vld [vmem:[#allocation41 + $0x204] sm:$0xf0] }
 0xc2b   :  { %v13702_v15 = vpop.f32.mrf.mxu2 }
 0xc2d   :  { %v13704_v46 = vpop.f32.mrf.mxu3  ;;  %v5247_v4 = vpop.f32.mrf.mxu0 }
 0xc2e   :  { %v10204_v4 = vld [vmem:[#allocation41 + $0xa8] sm:$0xf0]  ;;  %v5285_v28 = vadd.f32 %v13704_v46, %v13702_v15  ;;  %v11360_v15 = vld [vmem:[#allocation41 + $0x14] sm:$0xf]  ;;  %v10132_v46 = vld [vmem:[#allocation41 + $0x18] sm:$0xf0]  ;;  %6058 = vmatpush.bf16.msra.mxu3 %v10123_v22 }
 0xc2f   :  { %v5260_v0 = vpop.f32.mrf.mxu1  ;;  %v10207_v19 = vor.u32 %v11378_v6, %v10204_v4  ;;  %v5671_v4 = vperm.slane %v5669_v37, 0 }
 0xc31   :  { %6095 = vmatpush.bf16.msrb.mxu0 %v10207_v19  ;;  %v10135_v19 = vor.u32 %v11360_v15, %v10132_v46  ;;  %v10269_v15 = vor.u32 %v11419_v2, %v10268_v54  ;;  %v10273_v46 = vor.u32 %v11418_v5, %v10270_v25  ;;  %v10374_v2 = vld [vmem:[#allocation44 + $0x130] sm:$0xf]  ;;  %v11468_v5 = vld [vmem:[#allocation44 + $0x134] sm:$0xf] }
 0xc33   :  { %v5273_v7 = vpop.f32.mrf.mxu2 }
 0xc34   :  { %v10196_v7 = vld [vmem:[#allocation41 + $0x98] sm:$0xf0] }
 0xc35   :  { %v5286_v26 = vpop.f32.mrf.mxu3  ;;  %v13706_v31 = vpop.f32.mrf.mxu0  ;;  %v10199_v39 = vor.u32 %v11376_v49, %v10196_v7 }
 0xc36   :  { %v10159_v26 = vor.u32 %v11366_v56, %v10156_v27  ;;  %v5447_v40 = vadd.f32 %v13706_v31, %v5285_v28  ;;  %v11429_v56 = vld [vmem:[#allocation41 + $0x234] sm:$0xf0]  ;;  %v10277_v28 = vor.u32 %v11421_v13, %v10276_v47 }
 0xc37   :  { %v13708_v41 = vpop.f32.mrf.mxu1  ;;  %6096 = vmatpush.bf16.msrb.mxu0 %v10199_v39  ;;  %v10308_v39 = vld [vmem:[#allocation41 + $0x230] sm:$0xf] }
 0xc38   :  { %6080 = vmatpush.bf16.msra.mxu2 %v10159_v26  ;;  %v5421_v62 = vadd.f32 %v13708_v41, %v5259_v14  ;;  %v10124_v41 = vld [vmem:[#allocation41 + $0x8] sm:$0xf0]  ;;  %v10310_v26 = vld [vmem:[#allocation41 + $0x238] sm:$0xf0]  ;;  %v10309_v34 = vor.u32 %v11429_v56, %v10308_v39  ;;  %v10236_v56 = vld [vmem:[#allocation41 + $0x1a0] sm:$0xf] }
 0xc39   :  { %v10313_v53 = vor.u32 %v11428_v63, %v10310_v26  ;;  %v11411_v63 = vld [vmem:[#allocation41 + $0x1a4] sm:$0xf0]  ;;  %v11410_v26 = vld [vmem:[#allocation41 + $0x1a4] sm:$0xf] }
 0xc3a   :  { %v10237_v47 = vor.u32 %v11411_v63, %v10236_v56  ;;  %v11475_v63 = vld [vmem:[#allocation44 + $0x164] sm:$0xf0] }
 0xc3b   :  { %v13710_v33 = vpop.f32.mrf.mxu2  ;;  %6097 = vmatpush.bf16.msrb.mxu0 %v10191_v45  ;;  %v10300_v45 = vld [vmem:[#allocation41 + $0x220] sm:$0xf] }
 0xc3c   :  { %6081 = vmatpush.bf16.msra.mxu2 %v10151_v38  ;;  %v5460_v17 = vadd.f32 %v13710_v33, %v5447_v40  ;;  %v10302_v38 = vld [vmem:[#allocation41 + $0x228] sm:$0xf0]  ;;  %v10301_v14 = vor.u32 %v11427_v59, %v10300_v45  ;;  %v11407_v45 = vld [vmem:[#allocation41 + $0x184] sm:$0xf0]  ;;  %v11406_v59 = vld [vmem:[#allocation41 + $0x184] sm:$0xf] }
 0xc3d   :  { %v13712_v0 = vpop.f32.mrf.mxu3  ;;  %v5448_v60 = vpop.f32.mrf.mxu0 }
 0xc3e   :  { %v5434_v57 = vadd.f32 %v13712_v0, %v5421_v62  ;;  %v10260_v62 = vld [vmem:[#allocation41 + $0x1d0] sm:$0xf] }
 0xc3f   :  { %v5422_v52 = vpop.f32.mrf.mxu1 }
 0xc40   :  { %6082 = vmatpush.bf16.msra.mxu2 %v10143_v58  ;;  %v10127_v52 = vor.u32 %v11358_v18, %v10124_v41  ;;  %v10292_v58 = vld [vmem:[#allocation41 + $0x210] sm:$0xf]  ;;  %v10254_v18 = vld [vmem:[#allocation41 + $0x1c8] sm:$0xf0] }
 0xc43   :  { %v5461_v50 = vpop.f32.mrf.mxu2 }
 0xc44   :  { %6083 = vmatpush.bf16.msra.mxu2 %v10135_v19 }
 0xc45   :  { %v5435_v29 = vpop.f32.mrf.mxu3  ;;  %v5663_v61 = vpop.f32.mrf.mxu0 }
 0xc47   :  { %v5637_v36 = vpop.f32.mrf.mxu1 }
 0xc48   :  { %6084 = vmatpush.bf16.msra.mxu2 %v10127_v52  ;;  %v11413_v52 = vld [vmem:[#allocation41 + $0x1b4] sm:$0xf0] }
 0xc4b   :  { %v5650_v20 = vpop.f32.mrf.mxu2 }
 0xc4c   :  { %v5664_v35 = vadd.f32 %v5663_v61, %v5650_v20  ;;  %v11420_v61 = vld [vmem:[#allocation41 + $0x1f4] sm:$0xf] }
 0xc4d   :  { %v5624_v6 = vpop.f32.mrf.mxu3  ;;  %v5665_v11 = vpop.f32.mrf.mxu0  ;;  %v10281_v32 = vor.u32 %v11420_v61, %v10278_v43  ;;  %v11424_v20 = vld [vmem:[#allocation41 + $0x214] sm:$0xf]  ;;  %v10230_v43 = vld [vmem:[#allocation41 + $0x198] sm:$0xf0] }
 0xc4e   :  { %v5638_v31 = vadd.f32 %v5637_v36, %v5624_v6  ;;  %v5668_v60 = vadd.f32 %v5664_v35, %v5460_v17  ;;  %v11426_v36 = vld [vmem:[#allocation41 + $0x224] sm:$0xf]  ;;  %v11417_v17 = vld [vmem:[#allocation41 + $0x1d4] sm:$0xf0]  ;;  %v11416_v35 = vld [vmem:[#allocation41 + $0x1d4] sm:$0xf]  ;;  %v10293_v6 = vor.u32 %v11425_v12, %v10292_v58 }
 0xc4f   :  { %v5639_v1 = vpop.f32.mrf.mxu1  ;;  %v10305_v40 = vor.u32 %v11426_v36, %v10302_v38  ;;  %v10284_v11 = vld [vmem:[#allocation41 + $0x200] sm:$0xf]  ;;  %v11408_v61 = vld [vmem:[#allocation41 + $0x194] sm:$0xf]  ;;  %v11467_v12 = vld [vmem:[#allocation44 + $0x124] sm:$0xf0] }
 0xc50   :  { %v5667_v21 = vadd.f32 %v5638_v31, %v5434_v57  ;;  %v5676_v33 = vadd.f32 %v5672_v3, %v5668_v60  ;;  %v10262_v3 = vld [vmem:[#allocation41 + $0x1d8] sm:$0xf0]  ;;  %v11422_v57 = vld [vmem:[#allocation41 + $0x204] sm:$0xf]  ;;  %v10286_v31 = vld [vmem:[#allocation41 + $0x208] sm:$0xf0]  ;;  %v10261_v60 = vor.u32 %v11417_v17, %v10260_v62  ;;  %v10285_v41 = vor.u32 %v11423_v30, %v10284_v11 }
 0xc51   :  { %v10265_v19 = vor.u32 %v11416_v35, %v10262_v3  ;;  %v11414_v1 = vld [vmem:[#allocation41 + $0x1c4] sm:$0xf]  ;;  %v10358_v62 = vld [vmem:[#allocation44 + $0x110] sm:$0xf]  ;;  %v11465_v17 = vld [vmem:[#allocation44 + $0x114] sm:$0xf0] }
 0xc52   :  { %v5675_v23 = vadd.f32 %v5671_v4, %v5667_v21  ;;  %v5678_v49 = vmax.f32 %v5676_v33, 0.0  ;;  %v10297_v4 = vor.u32 %v11424_v20, %v10294_v8  ;;  %v10289_v21 = vor.u32 %v11422_v57, %v10286_v31  ;;  %v10366_v58 = vld [vmem:[#allocation44 + $0x120] sm:$0xf]  ;;  %v11466_v20 = vld [vmem:[#allocation44 + $0x124] sm:$0xf] }
 0xc53   :  { %v5652_v7 = vpop.f32.mrf.mxu2  ;;  %v10253_v33 = vor.u32 %v11415_v9, %v10252_v10  ;;  %v10257_v22 = vor.u32 %v11414_v1, %v10254_v18  ;;  %v10367_v8 = vor.u32 %v11467_v12, %v10366_v58  ;;  %v11464_v35 = vld [vmem:[#allocation44 + $0x114] sm:$0xf]  ;;  %v10359_v3 = vor.u32 %v11465_v17, %v10358_v62  ;;  %v10350_v57 = vld [vmem:[#allocation44 + $0x100] sm:$0xf]  ;;  %v11463_v31 = vld [vmem:[#allocation44 + $0x104] sm:$0xf0] }
 0xc54   :  { %v5677_v51 = vmax.f32 %v5675_v23, 0.0  ;;  %v5682_v0 = vrot.slane %v5678_v49, 4  ;;  %v10244_v49 = vld [vmem:[#allocation41 + $0x1b0] sm:$0xf]  ;;  %v11412_v7 = vld [vmem:[#allocation41 + $0x1b4] sm:$0xf] }
 0xc55   :  { %v5626_v55 = vpop.f32.mrf.mxu3  ;;  %v10352_v10 = vld [vmem:[#allocation44 + $0x108] sm:$0xf0]  ;;  %v10406_v9 = vld [vmem:[#allocation44 + $0x170] sm:$0xf]  ;;  %v11477_v1 = vld [vmem:[#allocation44 + $0x174] sm:$0xf0] }
 0xc56   :  { %v5681_v24 = vrot.slane %v5677_v51, 4  ;;  %5686 = vst.msk [vmem:[#allocation16 + $0x8] sm:$0xf0] %vm2403_vm2, %v5682_v0  ;;  %v10246_v51 = vld [vmem:[#allocation41 + $0x1b8] sm:$0xf0] }
 0xc57   :  { %5688 = vst.msk [vmem:[#allocation16 + $0x18] sm:$0xf] %vm2408_vm4, %v5682_v0  ;;  %v10249_v39 = vor.u32 %v11412_v7, %v10246_v51  ;;  %v11461_v7 = vld [vmem:[#allocation44 + $0xf4] sm:$0xf0]  ;;  %v11471_v58 = vld [vmem:[#allocation44 + $0x144] sm:$0xf0] }
 0xc58   :  { %5685 = vst [vmem:[#allocation16] sm:$0xf0] %v5681_v24  ;;  %v11445_v17 = vld [vmem:[#allocation44 + $0x74] sm:$0xf0] }
 0xc59   :  { %5687 = vst [vmem:[#allocation16 + $0x10] sm:$0xf] %v5681_v24  ;;  %v10245_v24 = vor.u32 %v11413_v52, %v10244_v49  ;;  %v10342_v52 = vld [vmem:[#allocation44 + $0xf0] sm:$0xf] }
 0xc5d   :  { %v5718_v27 = vld [vmem:[#allocation16 + $0x8] sm:$0xf0] }
 0xc5e   :  { %v5720_v50 = vld [vmem:[#allocation16 + $0x18] sm:$0xf]  ;;  %v5690_v0 = vld [vmem:[#allocation16 + $0x8] sm:$0xff] }
 0xc5f   :  { %v5717_v42 = vld [vmem:[#allocation16] sm:$0xf0]  ;;  %v5747_v29 = vpack.c.bf16 %v5720_v50, %v5718_v27  ;;  %v5716_v27 = vpack.c.bf16 %v5690_v0, %v5690_v0  ;;  %v10238_v50 = vld [vmem:[#allocation41 + $0x1a8] sm:$0xf0] }
 0xc60   :  { %v5719_v44 = vld [vmem:[#allocation16 + $0x10] sm:$0xf]  ;;  %v5689_v23 = vld [vmem:[#allocation16] sm:$0xff]  ;;  %v10241_v13 = vor.u32 %v11410_v26, %v10238_v50  ;;  %v6104_v38 = vld [vmem:[#allocation16 + $0x18] sm:$0xff] }
 0xc61   :  { %v5746_v48 = vpack.c.bf16 %v5719_v44, %v5717_v42  ;;  %v5751_v16 = vrot.slane %v5747_v29, 2  ;;  %v5715_v55 = vpack.c.bf16 %v5689_v23, %v5689_v23  ;;  %v10228_v42 = vld [vmem:[#allocation41 + $0x190] sm:$0xf]  ;;  %v11409_v29 = vld [vmem:[#allocation41 + $0x194] sm:$0xf0] }
 0xc62   :  { %v10229_v44 = vor.u32 %v11409_v29, %v10228_v42  ;;  %v11474_v26 = vld [vmem:[#allocation44 + $0x164] sm:$0xf]  ;;  %v10334_v42 = vld [vmem:[#allocation44 + $0xe0] sm:$0xf]  ;;  %v11459_v29 = vld [vmem:[#allocation44 + $0xe4] sm:$0xf0] }
 0xc63   :  { %v5750_v37 = vrot.slane %v5746_v48, 2  ;;  %10118 = vmatmul.msk.bf16.vlgmr.msrb.gmra.mxu3 %vm566_vm1, %v5751_v16  ;;  %10119 = vmatmul.msk.bf16.vlgmr.msrb.gmra.mxu2 %vm566_vm1, %v5751_v16  ;;  %v10222_v48 = vld [vmem:[#allocation41 + $0x188] sm:$0xf0] }
 0xc64   :  { %6272 = vmatpush.bf16.msrb.mxu3 %v10309_v34  ;;  %6298 = vmatpush.bf16.msrb.mxu2 %v10313_v53  ;;  %v10233_v34 = vor.u32 %v11408_v61, %v10230_v43  ;;  %v10220_v53 = vld [vmem:[#allocation41 + $0x180] sm:$0xf]  ;;  %v10225_v36 = vor.u32 %v11406_v59, %v10222_v48  ;;  %v11458_v61 = vld [vmem:[#allocation44 + $0xe4] sm:$0xf]  ;;  %v11473_v48 = vld [vmem:[#allocation44 + $0x154] sm:$0xf0] }
 0xc65   :  { %5884 = vmatmul.bf16.vlgmr.msra.gmra.mxu1 %v5750_v37  ;;  %5910 = vmatmul.bf16.vlgmr.msra.gmra.mxu0 %v5750_v37  ;;  %v10221_v16 = vor.u32 %v11407_v45, %v10220_v53  ;;  %v11469_v37 = vld [vmem:[#allocation44 + $0x134] sm:$0xf0]  ;;  %v10336_v53 = vld [vmem:[#allocation44 + $0xe8] sm:$0xf0]  ;;  %v10390_v45 = vld [vmem:[#allocation44 + $0x150] sm:$0xf] }
 0xc66   :  { %6255 = vmatpush.bf16.msra.mxu1 %v10277_v28  ;;  %6281 = vmatpush.bf16.msra.mxu0 %v10281_v32  ;;  %v6103_v28 = vld [vmem:[#allocation16 + $0x10] sm:$0xff]  ;;  %v6131_v32 = vpack.c.bf16 %v6104_v38, %v6104_v38  ;;  %v10375_v25 = vor.u32 %v11469_v37, %v10374_v2  ;;  %v10339_v59 = vor.u32 %v11458_v61, %v10336_v53  ;;  %v11456_v2 = vld [vmem:[#allocation44 + $0xd4] sm:$0xf]  ;;  %v11441_v61 = vld [vmem:[#allocation44 + $0x54] sm:$0xf0] }
 0xc67   :  { %v6130_v54 = vpack.c.bf16 %v6103_v28, %v6103_v28  ;;  %v10391_v38 = vor.u32 %v11473_v48, %v10390_v45  ;;  %v10458_v53 = vld [vmem:[#allocation44 + $0x58] sm:$0xf0]  ;;  %v10488_v45 = vld [vmem:[#allocation44 + $0x90] sm:$0xf]  ;;  %v11449_v48 = vld [vmem:[#allocation44 + $0x94] sm:$0xf0] }
 0xc68   :  { %6273 = vmatpush.bf16.msrb.mxu3 %v10301_v14  ;;  %6299 = vmatpush.bf16.msrb.mxu2 %v10305_v40  ;;  %v10376_v14 = vld [vmem:[#allocation44 + $0x138] sm:$0xf0] }
 0xc69   :  { %v10379_v40 = vor.u32 %v11468_v5, %v10376_v14  ;;  %v10328_v14 = vld [vmem:[#allocation44 + $0xd8] sm:$0xf0] }
 0xc6a   :  { %6256 = vmatpush.bf16.msra.mxu1 %v10269_v15  ;;  %6282 = vmatpush.bf16.msra.mxu0 %v10273_v46  ;;  %v10368_v15 = vld [vmem:[#allocation44 + $0x128] sm:$0xf0]  ;;  %v10331_v12 = vor.u32 %v11456_v2, %v10328_v14  ;;  %v10489_v14 = vor.u32 %v11449_v48, %v10488_v45 }
 0xc6b   :  { %v10371_v46 = vor.u32 %v11466_v20, %v10368_v15  ;;  %v10384_v15 = vld [vmem:[#allocation44 + $0x148] sm:$0xf0] }
 0xc6c   :  { %6274 = vmatpush.bf16.msrb.mxu3 %v10293_v6  ;;  %6300 = vmatpush.bf16.msrb.mxu2 %v10297_v4  ;;  %v10360_v6 = vld [vmem:[#allocation44 + $0x118] sm:$0xf0] }
 0xc6d   :  { %v10363_v4 = vor.u32 %v11464_v35, %v10360_v6  ;;  %v11444_v35 = vld [vmem:[#allocation44 + $0x74] sm:$0xf] }
 0xc6e   :  { %6257 = vmatpush.bf16.msra.mxu1 %v10261_v60  ;;  %6283 = vmatpush.bf16.msra.mxu0 %v10265_v19  ;;  %v11462_v60 = vld [vmem:[#allocation44 + $0x104] sm:$0xf]  ;;  %v10351_v19 = vor.u32 %v11463_v31, %v10350_v57  ;;  %v10318_v57 = vld [vmem:[#allocation44 + $0xc0] sm:$0xf]  ;;  %v11455_v31 = vld [vmem:[#allocation44 + $0xc4] sm:$0xf0] }
 0xc6f   :  { %v10355_v18 = vor.u32 %v11462_v60, %v10352_v10  ;;  %v11454_v60 = vld [vmem:[#allocation44 + $0xc4] sm:$0xf] }
 0xc70   :  { %6275 = vmatpush.bf16.msrb.mxu3 %v10285_v41  ;;  %6301 = vmatpush.bf16.msrb.mxu2 %v10289_v21  ;;  %v10407_v41 = vor.u32 %v11477_v1, %v10406_v9  ;;  %v11476_v21 = vld [vmem:[#allocation44 + $0x174] sm:$0xf]  ;;  %v10319_v9 = vor.u32 %v11455_v31, %v10318_v57  ;;  %v10320_v1 = vld [vmem:[#allocation44 + $0xc8] sm:$0xf0]  ;;  %v11446_v57 = vld [vmem:[#allocation44 + $0x84] sm:$0xf] }
 0xc72   :  { %6258 = vmatpush.bf16.msra.mxu1 %v10253_v33  ;;  %6284 = vmatpush.bf16.msra.mxu0 %v10257_v22  ;;  %v10408_v33 = vld [vmem:[#allocation44 + $0x178] sm:$0xf0] }
 0xc73   :  { %6059 = vmatmul.bf16.vlgmr.msra.gmra.mxu3 %v5715_v55  ;;  %6085 = vmatmul.bf16.vlgmr.msra.gmra.mxu2 %v5715_v55  ;;  %v10411_v22 = vor.u32 %v11476_v21, %v10408_v33  ;;  %v10343_v55 = vor.u32 %v11461_v7, %v10342_v52  ;;  %v10323_v21 = vor.u32 %v11454_v60, %v10320_v1  ;;  %v11452_v33 = vld [vmem:[#allocation44 + $0xb4] sm:$0xf]  ;;  %v10464_v52 = vld [vmem:[#allocation44 + $0x60] sm:$0xf]  ;;  %v10440_v60 = vld [vmem:[#allocation44 + $0x30] sm:$0xf] }
 0xc74   :  { %6534 = vmatpush.bf16.msra.mxu3 %v10375_v25  ;;  %6560 = vmatpush.bf16.msra.mxu2 %v10379_v40  ;;  %v10382_v40 = vld [vmem:[#allocation44 + $0x140] sm:$0xf] }
 0xc75   :  { %10216 = vmatmul.msk.bf16.vlgmr.msrb.gmra.mxu1 %vm566_vm1, %v5716_v27  ;;  %10217 = vmatmul.msk.bf16.vlgmr.msrb.gmra.mxu0 %vm566_vm1, %v5716_v27  ;;  %v10398_v27 = vld [vmem:[#allocation44 + $0x160] sm:$0xf]  ;;  %v10383_v20 = vor.u32 %v11471_v58, %v10382_v40  ;;  %v10450_v58 = vld [vmem:[#allocation44 + $0x48] sm:$0xf0] }
 0xc76   :  { %6259 = vmatpush.bf16.msra.mxu1 %v10245_v24  ;;  %6285 = vmatpush.bf16.msra.mxu0 %v10249_v39  ;;  %v11460_v24 = vld [vmem:[#allocation44 + $0xf4] sm:$0xf]  ;;  %v10344_v39 = vld [vmem:[#allocation44 + $0xf8] sm:$0xf0]  ;;  %v10399_v50 = vor.u32 %v11475_v63, %v10398_v27  ;;  %v10496_v27 = vld [vmem:[#allocation44 + $0xa0] sm:$0xf] }
 0xc77   :  { %v10347_v56 = vor.u32 %v11460_v24, %v10344_v39  ;;  %v10466_v24 = vld [vmem:[#allocation44 + $0x68] sm:$0xf0]  ;;  %v11451_v63 = vld [vmem:[#allocation44 + $0xa4] sm:$0xf0] }
 0xc78   :  { %6535 = vmatpush.bf16.msra.mxu3 %v10367_v8  ;;  %6561 = vmatpush.bf16.msra.mxu2 %v10371_v46  ;;  %v11470_v8 = vld [vmem:[#allocation44 + $0x144] sm:$0xf]  ;;  %v10472_v46 = vld [vmem:[#allocation44 + $0x70] sm:$0xf] }
 0xc79   :  { %v10387_v62 = vor.u32 %v11470_v8, %v10384_v15  ;;  %v10473_v6 = vor.u32 %v11445_v17, %v10472_v46  ;;  %v6309_v46 = vld [vmem:[#allocation42] sm:$0x3] }
 0xc7a   :  { %6260 = vmatpush.bf16.msra.mxu1 %v10237_v47  ;;  %6286 = vmatpush.bf16.msra.mxu0 %v10241_v13  ;;  %v10400_v47 = vld [vmem:[#allocation44 + $0x168] sm:$0xf0] }
 0xc7b   :  { %v10403_v13 = vor.u32 %v11474_v26, %v10400_v47  ;;  %v11450_v26 = vld [vmem:[#allocation44 + $0xa4] sm:$0xf] }
 0xc7c   :  { %6536 = vmatpush.bf16.msra.mxu3 %v10359_v3  ;;  %6562 = vmatpush.bf16.msra.mxu2 %v10363_v4  ;;  %v10474_v3 = vld [vmem:[#allocation44 + $0x78] sm:$0xf0] }
 0xc7d   :  { %v10477_v4 = vor.u32 %v11444_v35, %v10474_v3 }
 0xc7e   :  { %6261 = vmatpush.bf16.msra.mxu1 %v10229_v44  ;;  %6287 = vmatpush.bf16.msra.mxu0 %v10233_v34  ;;  %v10335_v34 = vor.u32 %v11459_v29, %v10334_v42  ;;  %v10498_v42 = vld [vmem:[#allocation44 + $0xa8] sm:$0xf0]  ;;  %v10456_v29 = vld [vmem:[#allocation44 + $0x50] sm:$0xf] }
 0xc80   :  { %6537 = vmatpush.bf16.msra.mxu3 %v10351_v19  ;;  %6563 = vmatpush.bf16.msra.mxu2 %v10355_v18  ;;  %v10504_v18 = vld [vmem:[#allocation44 + $0xb0] sm:$0xf] }
 0xc82   :  { %6262 = vmatpush.bf16.msra.mxu1 %v10221_v16  ;;  %6288 = vmatpush.bf16.msra.mxu0 %v10225_v36  ;;  %v11472_v16 = vld [vmem:[#allocation44 + $0x154] sm:$0xf]  ;;  %v10392_v36 = vld [vmem:[#allocation44 + $0x158] sm:$0xf0] }
 0xc83   :  { %10314 = vmatmul.msk.bf16.vlgmr.msrb.gmra.mxu3 %vm566_vm1, %v6131_v32  ;;  %10315 = vmatmul.msk.bf16.vlgmr.msrb.gmra.mxu2 %vm566_vm1, %v6131_v32  ;;  %v10395_v28 = vor.u32 %v11472_v16, %v10392_v36  ;;  %v10326_v32 = vld [vmem:[#allocation44 + $0xd0] sm:$0xf]  ;;  %v11448_v16 = vld [vmem:[#allocation44 + $0x94] sm:$0xf]  ;;  %v10490_v36 = vld [vmem:[#allocation44 + $0x98] sm:$0xf0] }
 0xc84   :  { %6538 = vmatpush.bf16.msra.mxu3 %v10343_v55  ;;  %6564 = vmatpush.bf16.msra.mxu2 %v10347_v56  ;;  %v11442_v55 = vld [vmem:[#allocation44 + $0x64] sm:$0xf]  ;;  %v10493_v40 = vor.u32 %v11448_v16, %v10490_v36 }
 0xc85   :  { %6263 = vmatmul.bf16.vlgmr.msra.gmra.mxu1 %v6130_v54  ;;  %6289 = vmatmul.bf16.vlgmr.msra.gmra.mxu0 %v6130_v54  ;;  %v11457_v54 = vld [vmem:[#allocation44 + $0xd4] sm:$0xf0]  ;;  %v10469_v56 = vor.u32 %v11442_v55, %v10466_v24  ;;  %v11435_v55 = vld [vmem:[#allocation44 + $0x24] sm:$0xf0]  ;;  %v11434_v24 = vld [vmem:[#allocation44 + $0x24] sm:$0xf] }
 0xc86   :  { %6551 = vmatpush.bf16.msrb.mxu1 %v10407_v41  ;;  %6577 = vmatpush.bf16.msrb.mxu0 %v10411_v22  ;;  %v10327_v25 = vor.u32 %v11457_v54, %v10326_v32  ;;  %v11453_v41 = vld [vmem:[#allocation44 + $0xb4] sm:$0xf0]  ;;  %v10506_v22 = vld [vmem:[#allocation44 + $0xb8] sm:$0xf0]  ;;  %v11438_v32 = vld [vmem:[#allocation44 + $0x44] sm:$0xf] }
 0xc87   :  { %v10505_v7 = vor.u32 %v11453_v41, %v10504_v18  ;;  %v10453_v8 = vor.u32 %v11438_v32, %v10450_v58  ;;  %v11436_v18 = vld [vmem:[#allocation44 + $0x34] sm:$0xf]  ;;  %v6311_v41 = vperm.slane %v6309_v46, 0  ;;  %v11431_v32 = vld [vmem:[#allocation44 + $0x4] sm:$0xf0] }
 0xc88   :  { %6539 = vmatpush.bf16.msra.mxu3 %v10335_v34  ;;  %6565 = vmatpush.bf16.msra.mxu2 %v10339_v59  ;;  %v11440_v34 = vld [vmem:[#allocation44 + $0x54] sm:$0xf] }
 0xc89   :  { %v10461_v59 = vor.u32 %v11440_v34, %v10458_v53  ;;  %v10426_v34 = vld [vmem:[#allocation44 + $0x18] sm:$0xf0] }
 0xc8a   :  { %6552 = vmatpush.bf16.msrb.mxu1 %v10399_v50  ;;  %6578 = vmatpush.bf16.msrb.mxu0 %v10403_v13  ;;  %v10497_v13 = vor.u32 %v11451_v63, %v10496_v27 }
 0xc8c   :  { %6540 = vmatpush.bf16.msra.mxu3 %v10327_v25  ;;  %6566 = vmatpush.bf16.msra.mxu2 %v10331_v12  ;;  %v13746_v25 = vld [vmem:[#allocation15] sm:$0xf0] }
 0xc8e   :  { %6553 = vmatpush.bf16.msrb.mxu1 %v10391_v38  ;;  %6579 = vmatpush.bf16.msrb.mxu0 %v10395_v28  ;;  %v10448_v38 = vld [vmem:[#allocation44 + $0x40] sm:$0xf]  ;;  %v11439_v28 = vld [vmem:[#allocation44 + $0x44] sm:$0xf0] }
 0xc8f   :  { %v10449_v12 = vor.u32 %v11439_v28, %v10448_v38  ;;  %v10416_v28 = vld [vmem:[#allocation44] sm:$0xf] }
 0xc90   :  { %6541 = vmatpush.bf16.msra.mxu3 %v10319_v9  ;;  %6567 = vmatpush.bf16.msra.mxu2 %v10323_v21  ;;  %v11437_v9 = vld [vmem:[#allocation44 + $0x34] sm:$0xf0]  ;;  %v6312_v21 = vperm.slane %v6309_v46, 1 }
 0xc91   :  { %v10441_v1 = vor.u32 %v11437_v9, %v10440_v60  ;;  %v11500_v9 = vld [vmem:[#allocation44 + $0x234] sm:$0xf] }
 0xc92   :  { %6554 = vmatpush.bf16.msrb.mxu1 %v10383_v20  ;;  %6580 = vmatpush.bf16.msrb.mxu0 %v10387_v62  ;;  %v6325_v62 = vrot.slane %v13746_v25, 4  ;;  %v11430_v25 = vld [vmem:[#allocation44 + $0x4] sm:$0xf] }
 0xc94   :  { %6726 = vmatpush.bf16.msrb.mxu3 %v10505_v7 }
 0xc96   :  { %6709 = vmatpush.bf16.msra.mxu1 %v10473_v6  ;;  %6735 = vmatpush.bf16.msra.mxu0 %v10477_v4  ;;  %v10480_v6 = vld [vmem:[#allocation44 + $0x80] sm:$0xf]  ;;  %v11447_v4 = vld [vmem:[#allocation44 + $0x84] sm:$0xf0] }
 0xc98   :  { %6727 = vmatpush.bf16.msrb.mxu3 %v10497_v13 }
 0xc9a   :  { %6736 = vmatpush.bf16.msra.mxu0 %v10469_v56 }
 0xc9c   :  { %6728 = vmatpush.bf16.msrb.mxu3 %v10489_v14  ;;  %v10418_v14 = vld [vmem:[#allocation44 + $0x8] sm:$0xf0] }
 0xc9e   :  { %6737 = vmatpush.bf16.msra.mxu0 %v10461_v59 }
 0xca2   :  { %6738 = vmatpush.bf16.msra.mxu0 %v10453_v8  ;;  %v10417_v8 = vor.u32 %v11431_v32, %v10416_v28  ;;  %v11494_v28 = vld [vmem:[#allocation44 + $0x204] sm:$0xf]  ;;  %v10580_v32 = vld [vmem:[#allocation44 + $0x208] sm:$0xf0] }
 0xce2   :  { %v13730_v11 = vpop.f32.mrf.mxu1  ;;  %v13732_v30 = vpop.f32.mrf.mxu0 }
 0xce6   :  { %v13734_v23 = vpop.f32.mrf.mxu3  ;;  %v13736_v49 = vpop.f32.mrf.mxu2 }
 0xce7   :  { %v5899_v20 = vadd.f32 %v13734_v23, %v13730_v11  ;;  %v5925_v15 = vadd.f32 %v13736_v49, %v13732_v30  ;;  %v10481_v11 = vor.u32 %v11447_v4, %v10480_v6  ;;  %v10482_v23 = vld [vmem:[#allocation44 + $0x88] sm:$0xf0]  ;;  %v6319_v30 = vld [vmem:[#allocation15 + $0x10] sm:$0xf]  ;;  %v11492_v6 = vld [vmem:[#allocation44 + $0x1f4] sm:$0xf] }
 0xce8   :  { %v10485_v49 = vor.u32 %v11446_v57, %v10482_v23  ;;  %v10572_v4 = vld [vmem:[#allocation44 + $0x1f8] sm:$0xf0] }
 0xce9   :  { %6729 = vmatpush.bf16.msrb.mxu3 %v10481_v11  ;;  %v11501_v11 = vld [vmem:[#allocation44 + $0x234] sm:$0xf0] }
 0xcea   :  { %v5887_v51 = vpop.f32.mrf.mxu1  ;;  %v5913_v0 = vpop.f32.mrf.mxu0 }
 0xceb   :  { %v10509_v51 = vor.u32 %v11452_v33, %v10506_v22  ;;  %v11443_v0 = vld [vmem:[#allocation44 + $0x64] sm:$0xf0]  ;;  %v6318_v33 = vld [vmem:[#allocation15 + $0x8] sm:$0xf0]  ;;  %v6320_v22 = vld [vmem:[#allocation15 + $0x18] sm:$0xf] }
 0xcec   :  { %v10465_v39 = vor.u32 %v11443_v0, %v10464_v52  ;;  %v10432_v0 = vld [vmem:[#allocation44 + $0x20] sm:$0xf]  ;;  %v6329_v13 = vrot.slane %v6320_v22, 4  ;;  %v11490_v22 = vld [vmem:[#allocation44 + $0x1e4] sm:$0xf] }
 0xced   :  { %6752 = vmatpush.bf16.msrb.mxu2 %v10509_v51  ;;  %v10433_v63 = vor.u32 %v11435_v55, %v10432_v0  ;;  %v11499_v0 = vld [vmem:[#allocation44 + $0x224] sm:$0xf0] }
 0xcee   :  { %v5900_v43 = vpop.f32.mrf.mxu3  ;;  %v5926_v44 = vpop.f32.mrf.mxu2  ;;  %6710 = vmatpush.bf16.msra.mxu1 %v10465_v39 }
 0xcef   :  { %v10501_v43 = vor.u32 %v11450_v26, %v10498_v42  ;;  %v10457_v44 = vor.u32 %v11441_v61, %v10456_v29  ;;  %v10434_v26 = vld [vmem:[#allocation44 + $0x28] sm:$0xf0] }
 0xcf0   :  { %v10437_v42 = vor.u32 %v11434_v24, %v10434_v26  ;;  %v11498_v24 = vld [vmem:[#allocation44 + $0x224] sm:$0xf]  ;;  %v11489_v26 = vld [vmem:[#allocation44 + $0x1d4] sm:$0xf0] }
 0xcf1   :  { %6753 = vmatpush.bf16.msrb.mxu2 %v10501_v43  ;;  %v11433_v43 = vld [vmem:[#allocation44 + $0x14] sm:$0xf0] }
 0xcf2   :  { %v13738_v37 = vpop.f32.mrf.mxu1  ;;  %v13740_v5 = vpop.f32.mrf.mxu0  ;;  %6711 = vmatpush.bf16.msra.mxu1 %v10457_v44  ;;  %v11432_v44 = vld [vmem:[#allocation44 + $0x14] sm:$0xf] }
 0xcf3   :  { %v10429_v38 = vor.u32 %v11432_v44, %v10426_v34 }
 0xcf5   :  { %6754 = vmatpush.bf16.msrb.mxu2 %v10493_v40 }
 0xcf6   :  { %v13742_v19 = vpop.f32.mrf.mxu3  ;;  %v13744_v10 = vpop.f32.mrf.mxu2  ;;  %6712 = vmatpush.bf16.msra.mxu1 %v10449_v12 }
 0xcf7   :  { %v6061_v17 = vadd.f32 %v13742_v19, %v5899_v20  ;;  %v6087_v31 = vadd.f32 %v13744_v10, %v5925_v15  ;;  %v10442_v19 = vld [vmem:[#allocation44 + $0x38] sm:$0xf0]  ;;  %v10421_v15 = vor.u32 %v11430_v25, %v10418_v14  ;;  %v10538_v25 = vld [vmem:[#allocation44 + $0x1b0] sm:$0xf]  ;;  %v11485_v14 = vld [vmem:[#allocation44 + $0x1b4] sm:$0xf0] }
 0xcf8   :  { %v10445_v52 = vor.u32 %v11436_v18, %v10442_v19  ;;  %v10575_v18 = vor.u32 %v11492_v6, %v10572_v4  ;;  %v10562_v19 = vld [vmem:[#allocation44 + $0x1e0] sm:$0xf]  ;;  %v11482_v6 = vld [vmem:[#allocation44 + $0x1a4] sm:$0xf]  ;;  %v10532_v4 = vld [vmem:[#allocation44 + $0x1a8] sm:$0xf0] }
 0xcf9   :  { %v6074_v7 = vadd.f32 %v13738_v37, %v6061_v17  ;;  %6755 = vmatpush.bf16.msrb.mxu2 %v10485_v49  ;;  %v6100_v39 = vadd.f32 %v13740_v5, %v6087_v31  ;;  %v10424_v37 = vld [vmem:[#allocation44 + $0x10] sm:$0xf] }
 0xcfa   :  { %v6075_v50 = vpop.f32.mrf.mxu1  ;;  %v6101_v47 = vpop.f32.mrf.mxu0  ;;  %6713 = vmatpush.bf16.msra.mxu1 %v10441_v1  ;;  %6739 = vmatpush.bf16.msra.mxu0 %v10445_v52  ;;  %v10425_v48 = vor.u32 %v11433_v43, %v10424_v37  ;;  %v10570_v17 = vld [vmem:[#allocation44 + $0x1f0] sm:$0xf]  ;;  %v10564_v52 = vld [vmem:[#allocation44 + $0x1e8] sm:$0xf0]  ;;  %v10588_v43 = vld [vmem:[#allocation44 + $0x218] sm:$0xf0] }
 0xcfb   :  { %v6326_v50 = vrot.slane %v6319_v30, 4  ;;  %v6328_v47 = vrot.slane %v6318_v33, 4  ;;  %v10602_v31 = vld [vmem:[#allocation44 + $0x230] sm:$0xf]  ;;  %v10604_v30 = vld [vmem:[#allocation44 + $0x238] sm:$0xf0] }
 0xcfc   :  { %v10586_v37 = vld [vmem:[#allocation44 + $0x210] sm:$0xf] }
 0xcfd   :  { %v6327_v16 = vsel %vm2389_vm3, %v6325_v62, %v6326_v50  ;;  %v6330_v36 = vsel %vm2389_vm3, %v6328_v47, %v6329_v13  ;;  %v11488_v50 = vld [vmem:[#allocation44 + $0x1d4] sm:$0xf]  ;;  %v10556_v47 = vld [vmem:[#allocation44 + $0x1d8] sm:$0xf0] }
 0xcfe   :  { %v6062_v54 = vpop.f32.mrf.mxu3  ;;  %v6088_v2 = vpop.f32.mrf.mxu2  ;;  %6714 = vmatpush.bf16.msra.mxu1 %v10433_v63  ;;  %6740 = vmatpush.bf16.msra.mxu0 %v10437_v42  ;;  %v10554_v63 = vld [vmem:[#allocation44 + $0x1d0] sm:$0xf]  ;;  %v10559_v34 = vor.u32 %v11488_v50, %v10556_v47  ;;  %v11538_v50 = vld [vmem:[#allocation47 + $0x124] sm:$0xf] }
 0xcff   :  { %v10555_v44 = vor.u32 %v11489_v26, %v10554_v63  ;;  %v10660_v63 = vld [vmem:[#allocation47 + $0x120] sm:$0xf]  ;;  %v11539_v26 = vld [vmem:[#allocation47 + $0x124] sm:$0xf0] }
 0xd00   :  { %v10661_v47 = vor.u32 %v11539_v26, %v10660_v63  ;;  %v11542_v63 = vld [vmem:[#allocation47 + $0x144] sm:$0xf]  ;;  %v10678_v26 = vld [vmem:[#allocation47 + $0x148] sm:$0xf0] }
 0xd02   :  { %v6264_v35 = vpop.f32.mrf.mxu1  ;;  %v6290_v3 = vpop.f32.mrf.mxu0  ;;  %6715 = vmatpush.bf16.msra.mxu1 %v10425_v48  ;;  %6741 = vmatpush.bf16.msra.mxu0 %v10429_v38  ;;  %v11495_v38 = vld [vmem:[#allocation44 + $0x204] sm:$0xf0] }
 0xd06   :  { %v6277_v51 = vpop.f32.mrf.mxu3  ;;  %v6303_v10 = vpop.f32.mrf.mxu2  ;;  %6716 = vmatpush.bf16.msra.mxu1 %v10417_v8  ;;  %6742 = vmatpush.bf16.msra.mxu0 %v10421_v15  ;;  %v10583_v8 = vor.u32 %v11494_v28, %v10580_v32  ;;  %v11549_v28 = vld [vmem:[#allocation47 + $0x174] sm:$0xf0] }
 0xd07   :  { %v6278_v56 = vadd.f32 %v6277_v51, %v6264_v35  ;;  %v6304_v27 = vadd.f32 %v6303_v10, %v6290_v3  ;;  %v11493_v35 = vld [vmem:[#allocation44 + $0x1f4] sm:$0xf0]  ;;  %v10607_v51 = vor.u32 %v11500_v9, %v10604_v30  ;;  %v10594_v10 = vld [vmem:[#allocation44 + $0x220] sm:$0xf]  ;;  %v11480_v9 = vld [vmem:[#allocation44 + $0x194] sm:$0xf] }
 0xd08   :  { %v10571_v1 = vor.u32 %v11493_v35, %v10570_v17  ;;  %v10595_v13 = vor.u32 %v11499_v0, %v10594_v10  ;;  %v10530_v17 = vld [vmem:[#allocation44 + $0x1a0] sm:$0xf]  ;;  %v10524_v30 = vld [vmem:[#allocation44 + $0x198] sm:$0xf0]  ;;  %v10668_v0 = vld [vmem:[#allocation47 + $0x130] sm:$0xf] }
 0xd09   :  { %v6307_v29 = vadd.f32 %v6278_v56, %v6074_v7  ;;  %v6308_v61 = vadd.f32 %v6304_v27, %v6100_v39  ;;  %v10603_v7 = vor.u32 %v11501_v11, %v10602_v31  ;;  %v10596_v39 = vld [vmem:[#allocation44 + $0x228] sm:$0xf0]  ;;  %v10567_v27 = vor.u32 %v11490_v22, %v10564_v52 }
 0xd0a   :  { %v6266_v53 = vpop.f32.mrf.mxu1  ;;  %v6292_v45 = vpop.f32.mrf.mxu0  ;;  %v10599_v42 = vor.u32 %v11498_v24, %v10596_v39  ;;  %v10535_v11 = vor.u32 %v11482_v6, %v10532_v4  ;;  %v11540_v24 = vld [vmem:[#allocation47 + $0x134] sm:$0xf]  ;;  %v10694_v4 = vld [vmem:[#allocation47 + $0x168] sm:$0xf0] }
 0xd0b   :  { %v6315_v59 = vadd.f32 %v6311_v41, %v6307_v29  ;;  %v6316_v5 = vadd.f32 %v6312_v21, %v6308_v61  ;;  %v11491_v41 = vld [vmem:[#allocation44 + $0x1e4] sm:$0xf0]  ;;  %v11497_v29 = vld [vmem:[#allocation44 + $0x214] sm:$0xf0]  ;;  %v11496_v61 = vld [vmem:[#allocation44 + $0x214] sm:$0xf] }
 0xd0c   :  { %v10563_v56 = vor.u32 %v11491_v41, %v10562_v19  ;;  %v10546_v53 = vld [vmem:[#allocation44 + $0x1c0] sm:$0xf]  ;;  %v11487_v45 = vld [vmem:[#allocation44 + $0x1c4] sm:$0xf0]  ;;  %v10587_v48 = vor.u32 %v11497_v29, %v10586_v37  ;;  %v11478_v41 = vld [vmem:[#allocation44 + $0x184] sm:$0xf] }
 0xd0d   :  { %v6333_v54 = vadd.f32 %v6327_v16, %v6315_v59  ;;  %v6334_v2 = vadd.f32 %v6330_v36, %v6316_v5  ;;  %v11486_v59 = vld [vmem:[#allocation44 + $0x1c4] sm:$0xf]  ;;  %v10548_v5 = vld [vmem:[#allocation44 + $0x1c8] sm:$0xf0]  ;;  %v10591_v16 = vor.u32 %v11496_v61, %v10588_v43  ;;  %v10578_v36 = vld [vmem:[#allocation44 + $0x200] sm:$0xf] }
 0xd0e   :  { %v6279_v40 = vpop.f32.mrf.mxu3  ;;  %v6305_v58 = vpop.f32.mrf.mxu2  ;;  %v11479_v19 = vld [vmem:[#allocation44 + $0x184] sm:$0xf0]  ;;  %v11537_v37 = vld [vmem:[#allocation47 + $0x114] sm:$0xf0]  ;;  %v11536_v61 = vld [vmem:[#allocation47 + $0x114] sm:$0xf] }
 0xd0f   :  { %v6335_v12 = vmax.f32 %v6333_v54, 0.0  ;;  %v6336_v20 = vmax.f32 %v6334_v2, 0.0  ;;  %v10547_v54 = vor.u32 %v11487_v45, %v10546_v53  ;;  %v10551_v2 = vor.u32 %v11486_v59, %v10548_v5  ;;  %v11484_v40 = vld [vmem:[#allocation44 + $0x1b4] sm:$0xf]  ;;  %v10540_v58 = vld [vmem:[#allocation44 + $0x1b8] sm:$0xf0] }
 0xd10   :  { %v10654_v43 = vld [vmem:[#allocation47 + $0x118] sm:$0xf0]  ;;  %v10644_v59 = vld [vmem:[#allocation47 + $0x100] sm:$0xf]  ;;  %v11535_v5 = vld [vmem:[#allocation47 + $0x104] sm:$0xf0] }
 0xd11   :  { %v6339_v46 = vrot.slane %v6335_v12, 4  ;;  %v6340_v62 = vrot.slane %v6336_v20, 4  ;;  %v10579_v20 = vor.u32 %v11495_v38, %v10578_v36  ;;  %v10646_v36 = vld [vmem:[#allocation47 + $0x108] sm:$0xf0]  ;;  %v10700_v38 = vld [vmem:[#allocation47 + $0x170] sm:$0xf] }
 0xd13   :  { %6343 = vst [vmem:[#allocation17] sm:$0xf0] %v6339_v46 }
 0xd14   :  { %6345 = vst [vmem:[#allocation17 + $0x10] sm:$0xf] %v6339_v46  ;;  %v10539_v46 = vor.u32 %v11485_v14, %v10538_v25  ;;  %v10702_v25 = vld [vmem:[#allocation47 + $0x178] sm:$0xf0]  ;;  %v10636_v14 = vld [vmem:[#allocation47 + $0xf0] sm:$0xf] }
 0xd15   :  { %6344 = vst.msk [vmem:[#allocation17 + $0x8] sm:$0xf0] %vm2403_vm2, %v6340_v62 }
 0xd16   :  { %6346 = vst.msk [vmem:[#allocation17 + $0x18] sm:$0xf] %vm2408_vm4, %v6340_v62  ;;  %v10543_v62 = vor.u32 %v11484_v40, %v10540_v58  ;;  %v11533_v58 = vld [vmem:[#allocation47 + $0xf4] sm:$0xf0] }
 0xd1a   :  { %v6375_v3 = vld [vmem:[#allocation17] sm:$0xf0] }
 0xd1b   :  { %v6377_v57 = vld [vmem:[#allocation17 + $0x10] sm:$0xf]  ;;  %v6347_v15 = vld [vmem:[#allocation17] sm:$0xff] }
 0xd1c   :  { %v6404_v23 = vpack.c.bf16 %v6377_v57, %v6375_v3  ;;  %v6376_v60 = vld [vmem:[#allocation17 + $0x8] sm:$0xf0]  ;;  %v11483_v3 = vld [vmem:[#allocation44 + $0x1a4] sm:$0xf0]  ;;  %v6373_v57 = vpack.c.bf16 %v6347_v15, %v6347_v15 }
 0xd1d   :  { %v6378_v49 = vld [vmem:[#allocation17 + $0x18] sm:$0xf]  ;;  %v6348_v12 = vld [vmem:[#allocation17 + $0x8] sm:$0xff]  ;;  %v10531_v31 = vor.u32 %v11483_v3, %v10530_v17  ;;  %v6761_v52 = vld [vmem:[#allocation17 + $0x10] sm:$0xff] }
 0xd1e   :  { %v6408_v21 = vrot.slane %v6404_v23, 2  ;;  %v6405_v33 = vpack.c.bf16 %v6378_v49, %v6376_v60  ;;  %v6374_v35 = vpack.c.bf16 %v6348_v12, %v6348_v12  ;;  %v10522_v23 = vld [vmem:[#allocation44 + $0x190] sm:$0xf]  ;;  %v11481_v60 = vld [vmem:[#allocation44 + $0x194] sm:$0xf0] }
 0xd1f   :  { %v10523_v49 = vor.u32 %v11481_v60, %v10522_v23  ;;  %v11532_v12 = vld [vmem:[#allocation47 + $0xf4] sm:$0xf]  ;;  %v10692_v17 = vld [vmem:[#allocation47 + $0x160] sm:$0xf]  ;;  %v11546_v3 = vld [vmem:[#allocation47 + $0x164] sm:$0xf] }
 0xd20   :  { %6542 = vmatmul.bf16.vlgmr.msra.gmra.mxu3 %v6408_v21  ;;  %v6409_v55 = vrot.slane %v6405_v33, 2  ;;  %6568 = vmatmul.bf16.vlgmr.msra.gmra.mxu2 %v6408_v21  ;;  %v10516_v21 = vld [vmem:[#allocation44 + $0x188] sm:$0xf0]  ;;  %v10628_v23 = vld [vmem:[#allocation47 + $0xe0] sm:$0xf] }
 0xd21   :  { %6913 = vmatpush.bf16.msra.mxu3 %v10571_v1  ;;  %6939 = vmatpush.bf16.msra.mxu2 %v10575_v18  ;;  %v10527_v1 = vor.u32 %v11480_v9, %v10524_v30  ;;  %v10514_v18 = vld [vmem:[#allocation44 + $0x180] sm:$0xf]  ;;  %v10519_v22 = vor.u32 %v11478_v41, %v10516_v21  ;;  %v11531_v60 = vld [vmem:[#allocation47 + $0xe4] sm:$0xf0]  ;;  %v11530_v30 = vld [vmem:[#allocation47 + $0xe4] sm:$0xf] }
 0xd22   :  { %10412 = vmatmul.msk.bf16.vlgmr.msrb.gmra.mxu1 %vm566_vm1, %v6409_v55  ;;  %10413 = vmatmul.msk.bf16.vlgmr.msrb.gmra.mxu0 %vm566_vm1, %v6409_v55  ;;  %v10515_v33 = vor.u32 %v11479_v19, %v10514_v18  ;;  %v11541_v55 = vld [vmem:[#allocation47 + $0x134] sm:$0xf0]  ;;  %v10629_v9 = vor.u32 %v11531_v60, %v10628_v23  ;;  %v11544_v41 = vld [vmem:[#allocation47 + $0x154] sm:$0xf]  ;;  %v10686_v21 = vld [vmem:[#allocation47 + $0x158] sm:$0xf0] }
 0xd23   :  { %6930 = vmatpush.bf16.msrb.mxu1 %v10603_v7  ;;  %6956 = vmatpush.bf16.msrb.mxu0 %v10607_v51  ;;  %v6762_v7 = vld [vmem:[#allocation17 + $0x18] sm:$0xff]  ;;  %v6788_v51 = vpack.c.bf16 %v6761_v52, %v6761_v52  ;;  %v10669_v39 = vor.u32 %v11541_v55, %v10668_v0  ;;  %v11545_v19 = vld [vmem:[#allocation47 + $0x154] sm:$0xf0]  ;;  %v11528_v55 = vld [vmem:[#allocation47 + $0xd4] sm:$0xf] }
 0xd24   :  { %v6789_v10 = vpack.c.bf16 %v6762_v7, %v6762_v7  ;;  %v11513_v60 = vld [vmem:[#allocation47 + $0x54] sm:$0xf0] }
 0xd25   :  { %6914 = vmatpush.bf16.msra.mxu3 %v10563_v56  ;;  %6940 = vmatpush.bf16.msra.mxu2 %v10567_v27  ;;  %v10670_v56 = vld [vmem:[#allocation47 + $0x138] sm:$0xf0] }
 0xd26   :  { %v10673_v27 = vor.u32 %v11540_v24, %v10670_v56  ;;  %v10622_v24 = vld [vmem:[#allocation47 + $0xd8] sm:$0xf0] }
 0xd27   :  { %6931 = vmatpush.bf16.msrb.mxu1 %v10595_v13  ;;  %6957 = vmatpush.bf16.msrb.mxu0 %v10599_v42  ;;  %v10662_v13 = vld [vmem:[#allocation47 + $0x128] sm:$0xf0]  ;;  %v10652_v42 = vld [vmem:[#allocation47 + $0x110] sm:$0xf]  ;;  %v10625_v56 = vor.u32 %v11528_v55, %v10622_v24 }
 0xd28   :  { %v10665_v29 = vor.u32 %v11538_v50, %v10662_v13  ;;  %v10766_v13 = vld [vmem:[#allocation47 + $0x70] sm:$0xf]  ;;  %v10744_v55 = vld [vmem:[#allocation47 + $0x48] sm:$0xf0] }
 0xd29   :  { %6915 = vmatpush.bf16.msra.mxu3 %v10555_v44  ;;  %6941 = vmatpush.bf16.msra.mxu2 %v10559_v34  ;;  %v10653_v44 = vor.u32 %v11537_v37, %v10652_v42  ;;  %v10657_v34 = vor.u32 %v11536_v61, %v10654_v43  ;;  %v11517_v42 = vld [vmem:[#allocation47 + $0x74] sm:$0xf0]  ;;  %v11516_v37 = vld [vmem:[#allocation47 + $0x74] sm:$0xf] }
 0xd2a   :  { %v10767_v43 = vor.u32 %v11517_v42, %v10766_v13  ;;  %v10776_v13 = vld [vmem:[#allocation47 + $0x88] sm:$0xf0]  ;;  %v10734_v42 = vld [vmem:[#allocation47 + $0x30] sm:$0xf] }
 0xd2b   :  { %6932 = vmatpush.bf16.msrb.mxu1 %v10587_v48  ;;  %6958 = vmatpush.bf16.msrb.mxu0 %v10591_v16  ;;  %v11534_v48 = vld [vmem:[#allocation47 + $0x104] sm:$0xf]  ;;  %v10645_v16 = vor.u32 %v11535_v5, %v10644_v59  ;;  %v11527_v59 = vld [vmem:[#allocation47 + $0xc4] sm:$0xf0] }
 0xd2c   :  { %v10649_v32 = vor.u32 %v11534_v48, %v10646_v36  ;;  %v11526_v48 = vld [vmem:[#allocation47 + $0xc4] sm:$0xf]  ;;  %v10798_v36 = vld [vmem:[#allocation47 + $0xb0] sm:$0xf] }
 0xd2d   :  { %6916 = vmatpush.bf16.msra.mxu3 %v10547_v54  ;;  %6942 = vmatpush.bf16.msra.mxu2 %v10551_v2  ;;  %v10701_v54 = vor.u32 %v11549_v28, %v10700_v38  ;;  %v11548_v2 = vld [vmem:[#allocation47 + $0x174] sm:$0xf] }
 0xd2e   :  { %v10705_v40 = vor.u32 %v11548_v2, %v10702_v25  ;;  %v10800_v2 = vld [vmem:[#allocation47 + $0xb8] sm:$0xf0] }
 0xd2f   :  { %6933 = vmatpush.bf16.msrb.mxu1 %v10579_v20  ;;  %6959 = vmatpush.bf16.msrb.mxu0 %v10583_v8  ;;  %v10638_v20 = vld [vmem:[#allocation47 + $0xf8] sm:$0xf0] }
 0xd30   :  { %10510 = vmatmul.msk.bf16.vlgmr.msrb.gmra.mxu3 %vm566_vm1, %v6374_v35  ;;  %10511 = vmatmul.msk.bf16.vlgmr.msrb.gmra.mxu2 %vm566_vm1, %v6374_v35  ;;  %v11547_v35 = vld [vmem:[#allocation47 + $0x164] sm:$0xf0] }
 0xd31   :  { %6917 = vmatpush.bf16.msra.mxu3 %v10539_v46  ;;  %6943 = vmatpush.bf16.msra.mxu2 %v10543_v62  ;;  %v10637_v46 = vor.u32 %v11533_v58, %v10636_v14  ;;  %v10641_v62 = vor.u32 %v11532_v12, %v10638_v20  ;;  %v10693_v6 = vor.u32 %v11547_v35, %v10692_v17  ;;  %v11515_v58 = vld [vmem:[#allocation47 + $0x64] sm:$0xf0]  ;;  %v11514_v12 = vld [vmem:[#allocation47 + $0x64] sm:$0xf]  ;;  %v10760_v17 = vld [vmem:[#allocation47 + $0x68] sm:$0xf0] }
 0xd32   :  { %6717 = vmatmul.bf16.vlgmr.msra.gmra.mxu1 %v6373_v57  ;;  %6743 = vmatmul.bf16.vlgmr.msra.gmra.mxu0 %v6373_v57  ;;  %v10697_v57 = vor.u32 %v11546_v3, %v10694_v4  ;;  %v10790_v35 = vld [vmem:[#allocation47 + $0xa0] sm:$0xf]  ;;  %v11523_v3 = vld [vmem:[#allocation47 + $0xa4] sm:$0xf0]  ;;  %v11522_v4 = vld [vmem:[#allocation47 + $0xa4] sm:$0xf] }
 0xd33   :  { %7174 = vmatpush.bf16.msra.mxu1 %v10669_v39  ;;  %7200 = vmatpush.bf16.msra.mxu0 %v10673_v27  ;;  %v10676_v39 = vld [vmem:[#allocation47 + $0x140] sm:$0xf]  ;;  %v11543_v27 = vld [vmem:[#allocation47 + $0x144] sm:$0xf0] }
 0xd34   :  { %v10677_v50 = vor.u32 %v11543_v27, %v10676_v39 }
 0xd35   :  { %6918 = vmatpush.bf16.msra.mxu3 %v10531_v31  ;;  %6944 = vmatpush.bf16.msra.mxu2 %v10535_v11 }
 0xd37   :  { %7175 = vmatpush.bf16.msra.mxu1 %v10661_v47  ;;  %7201 = vmatpush.bf16.msra.mxu0 %v10665_v29  ;;  %v10681_v47 = vor.u32 %v11542_v63, %v10678_v26  ;;  %v10774_v63 = vld [vmem:[#allocation47 + $0x80] sm:$0xf]  ;;  %v11519_v26 = vld [vmem:[#allocation47 + $0x84] sm:$0xf0] }
 0xd39   :  { %6919 = vmatpush.bf16.msra.mxu3 %v10523_v49  ;;  %6945 = vmatpush.bf16.msra.mxu2 %v10527_v1  ;;  %v10630_v49 = vld [vmem:[#allocation47 + $0xe8] sm:$0xf0]  ;;  %v10684_v1 = vld [vmem:[#allocation47 + $0x150] sm:$0xf] }
 0xd3a   :  { %v10633_v18 = vor.u32 %v11530_v30, %v10630_v49  ;;  %v10752_v30 = vld [vmem:[#allocation47 + $0x58] sm:$0xf0] }
 0xd3b   :  { %7176 = vmatpush.bf16.msra.mxu1 %v10653_v44  ;;  %7202 = vmatpush.bf16.msra.mxu0 %v10657_v34  ;;  %v10768_v44 = vld [vmem:[#allocation47 + $0x78] sm:$0xf0]  ;;  %v10612_v34 = vld [vmem:[#allocation47 + $0xc0] sm:$0xf] }
 0xd3c   :  { %v10771_v5 = vor.u32 %v11516_v37, %v10768_v44  ;;  %v10613_v38 = vor.u32 %v11527_v59, %v10612_v34  ;;  %v11509_v37 = vld [vmem:[#allocation47 + $0x34] sm:$0xf0]  ;;  %v11508_v59 = vld [vmem:[#allocation47 + $0x34] sm:$0xf] }
 0xd3d   :  { %6920 = vmatpush.bf16.msra.mxu3 %v10515_v33  ;;  %6946 = vmatpush.bf16.msra.mxu2 %v10519_v22  ;;  %v10685_v33 = vor.u32 %v11545_v19, %v10684_v1  ;;  %v10689_v22 = vor.u32 %v11544_v41, %v10686_v21  ;;  %v11521_v19 = vld [vmem:[#allocation47 + $0x94] sm:$0xf0]  ;;  %v11520_v41 = vld [vmem:[#allocation47 + $0x94] sm:$0xf]  ;;  %v10735_v34 = vor.u32 %v11509_v37, %v10734_v42 }
 0xd3f   :  { %7177 = vmatpush.bf16.msra.mxu1 %v10645_v16  ;;  %7203 = vmatpush.bf16.msra.mxu0 %v10649_v32  ;;  %v10614_v16 = vld [vmem:[#allocation47 + $0xc8] sm:$0xf0]  ;;  %v11525_v32 = vld [vmem:[#allocation47 + $0xb4] sm:$0xf0] }
 0xd40   :  { %6921 = vmatmul.bf16.vlgmr.msra.gmra.mxu3 %v6788_v51  ;;  %6947 = vmatmul.bf16.vlgmr.msra.gmra.mxu2 %v6788_v51  ;;  %v10620_v51 = vld [vmem:[#allocation47 + $0xd0] sm:$0xf]  ;;  %v10617_v28 = vor.u32 %v11526_v48, %v10614_v16  ;;  %v10799_v25 = vor.u32 %v11525_v32, %v10798_v36  ;;  %v10726_v32 = vld [vmem:[#allocation47 + $0x20] sm:$0xf] }
 0xd41   :  { %7191 = vmatpush.bf16.msrb.mxu3 %v10701_v54  ;;  %7217 = vmatpush.bf16.msrb.mxu2 %v10705_v40  ;;  %v11524_v54 = vld [vmem:[#allocation47 + $0xb4] sm:$0xf]  ;;  %v10758_v40 = vld [vmem:[#allocation47 + $0x60] sm:$0xf] }
 0xd42   :  { %10608 = vmatmul.msk.bf16.vlgmr.msrb.gmra.mxu1 %vm566_vm1, %v6789_v10  ;;  %10609 = vmatmul.msk.bf16.vlgmr.msrb.gmra.mxu0 %vm566_vm1, %v6789_v10  ;;  %v11529_v10 = vld [vmem:[#allocation47 + $0xd4] sm:$0xf0]  ;;  %v10803_v14 = vor.u32 %v11524_v54, %v10800_v2  ;;  %v11507_v54 = vld [vmem:[#allocation47 + $0x24] sm:$0xf0]  ;;  %v11506_v2 = vld [vmem:[#allocation47 + $0x24] sm:$0xf] }
 0xd43   :  { %7178 = vmatpush.bf16.msra.mxu1 %v10637_v46  ;;  %7204 = vmatpush.bf16.msra.mxu0 %v10641_v62  ;;  %v10621_v0 = vor.u32 %v11529_v10, %v10620_v51  ;;  %v10759_v62 = vor.u32 %v11515_v58, %v10758_v40  ;;  %v10728_v40 = vld [vmem:[#allocation47 + $0x28] sm:$0xf0] }
 0xd45   :  { %7192 = vmatpush.bf16.msrb.mxu3 %v10693_v6  ;;  %7218 = vmatpush.bf16.msrb.mxu2 %v10697_v57  ;;  %v10763_v6 = vor.u32 %v11514_v12, %v10760_v17  ;;  %v10792_v57 = vld [vmem:[#allocation47 + $0xa8] sm:$0xf0]  ;;  %v10731_v17 = vor.u32 %v11506_v2, %v10728_v40  ;;  %v11570_v2 = vld [vmem:[#allocation47 + $0x224] sm:$0xf] }
 0xd46   :  { %v10795_v23 = vor.u32 %v11522_v4, %v10792_v57 }
 0xd47   :  { %7179 = vmatpush.bf16.msra.mxu1 %v10629_v9  ;;  %7205 = vmatpush.bf16.msra.mxu0 %v10633_v18  ;;  %v11512_v9 = vld [vmem:[#allocation47 + $0x54] sm:$0xf]  ;;  %v10782_v18 = vld [vmem:[#allocation47 + $0x90] sm:$0xf] }
 0xd48   :  { %v10755_v1 = vor.u32 %v11512_v9, %v10752_v30  ;;  %v10783_v51 = vor.u32 %v11521_v19, %v10782_v18  ;;  %v11503_v9 = vld [vmem:[#allocation47 + $0x4] sm:$0xf0]  ;;  %v10712_v18 = vld [vmem:[#allocation47 + $0x8] sm:$0xf0] }
 0xd49   :  { %7193 = vmatpush.bf16.msrb.mxu3 %v10685_v33  ;;  %7219 = vmatpush.bf16.msrb.mxu2 %v10689_v22  ;;  %v10784_v22 = vld [vmem:[#allocation47 + $0x98] sm:$0xf0] }
 0xd4a   :  { %v10787_v10 = vor.u32 %v11520_v41, %v10784_v22 }
 0xd4b   :  { %7180 = vmatpush.bf16.msra.mxu1 %v10621_v0  ;;  %7206 = vmatpush.bf16.msra.mxu0 %v10625_v56  ;;  %v11510_v0 = vld [vmem:[#allocation47 + $0x44] sm:$0xf] }
 0xd4c   :  { %v10747_v39 = vor.u32 %v11510_v0, %v10744_v55  ;;  %v11565_v0 = vld [vmem:[#allocation47 + $0x1f4] sm:$0xf0] }
 0xd4d   :  { %7194 = vmatpush.bf16.msrb.mxu3 %v10677_v50  ;;  %7220 = vmatpush.bf16.msrb.mxu2 %v10681_v47  ;;  %v11518_v50 = vld [vmem:[#allocation47 + $0x84] sm:$0xf]  ;;  %v10775_v47 = vor.u32 %v11519_v26, %v10774_v63  ;;  %v11573_v63 = vld [vmem:[#allocation47 + $0x234] sm:$0xf0] }
 0xd4e   :  { %v10779_v44 = vor.u32 %v11518_v50, %v10776_v13  ;;  %v10898_v13 = vld [vmem:[#allocation47 + $0x238] sm:$0xf0] }
 0xd4f   :  { %7181 = vmatpush.bf16.msra.mxu1 %v10613_v38  ;;  %7207 = vmatpush.bf16.msra.mxu0 %v10617_v28 }
 0xd51   :  { %7349 = vmatpush.bf16.msra.mxu3 %v10767_v43  ;;  %7375 = vmatpush.bf16.msra.mxu2 %v10771_v5  ;;  %v6967_v43 = vld [vmem:[#allocation45] sm:$0x3] }
 0xd52   :  { %v10736_v5 = vld [vmem:[#allocation47 + $0x38] sm:$0xf0] }
 0xd53   :  { %7366 = vmatpush.bf16.msrb.mxu1 %v10799_v25  ;;  %7392 = vmatpush.bf16.msrb.mxu0 %v10803_v14  ;;  %v10739_v36 = vor.u32 %v11508_v59, %v10736_v5  ;;  %v6969_v25 = vperm.slane %v6967_v43, 0  ;;  %v10727_v14 = vor.u32 %v11507_v54, %v10726_v32  ;;  %v11571_v32 = vld [vmem:[#allocation47 + $0x224] sm:$0xf0] }
 0xd55   :  { %7350 = vmatpush.bf16.msra.mxu3 %v10759_v62  ;;  %7376 = vmatpush.bf16.msra.mxu2 %v10763_v6  ;;  %v6970_v62 = vperm.slane %v6967_v43, 1 }
 0xd57   :  { %7393 = vmatpush.bf16.msrb.mxu0 %v10795_v23 }
 0xd59   :  { %7377 = vmatpush.bf16.msra.mxu2 %v10755_v1  ;;  %v11502_v1 = vld [vmem:[#allocation47 + $0x4] sm:$0xf] }
 0xd5b   :  { %7394 = vmatpush.bf16.msrb.mxu0 %v10787_v10  ;;  %v10864_v10 = vld [vmem:[#allocation47 + $0x1f0] sm:$0xf] }
 0xd5c   :  { %v10865_v37 = vor.u32 %v11565_v0, %v10864_v10  ;;  %v10824_v10 = vld [vmem:[#allocation47 + $0x1a0] sm:$0xf] }
 0xd5d   :  { %7378 = vmatpush.bf16.msra.mxu2 %v10747_v39  ;;  %v10866_v39 = vld [vmem:[#allocation47 + $0x1f8] sm:$0xf0] }
 0xd5f   :  { %7395 = vmatpush.bf16.msrb.mxu0 %v10779_v44  ;;  %v10856_v44 = vld [vmem:[#allocation47 + $0x1e0] sm:$0xf] }
 0xd61   :  { %7379 = vmatpush.bf16.msra.mxu2 %v10739_v36 }
 0xd65   :  { %7380 = vmatpush.bf16.msra.mxu2 %v10731_v17  ;;  %v10850_v17 = vld [vmem:[#allocation47 + $0x1d8] sm:$0xf0] }
 0xd9f   :  { %v13767_v53 = vpop.f32.mrf.mxu1  ;;  %v13769_v45 = vpop.f32.mrf.mxu0 }
 0xda3   :  { %v13771_v8 = vpop.f32.mrf.mxu3  ;;  %v13773_v15 = vpop.f32.mrf.mxu2 }
 0xda4   :  { %v6557_v38 = vadd.f32 %v13767_v53, %v13771_v8  ;;  %v6583_v28 = vadd.f32 %v13769_v45, %v13773_v15  ;;  %v10718_v53 = vld [vmem:[#allocation47 + $0x10] sm:$0xf]  ;;  %v11505_v45 = vld [vmem:[#allocation47 + $0x14] sm:$0xf0]  ;;  %v11504_v15 = vld [vmem:[#allocation47 + $0x14] sm:$0xf] }
 0xda7   :  { %v6558_v31 = vpop.f32.mrf.mxu1  ;;  %v6584_v11 = vpop.f32.mrf.mxu0 }
 0xda8   :  { %v10750_v31 = vld [vmem:[#allocation47 + $0x50] sm:$0xf]  ;;  %v10791_v11 = vor.u32 %v11523_v3, %v10790_v35  ;;  %v10720_v3 = vld [vmem:[#allocation47 + $0x18] sm:$0xf0] }
 0xda9   :  { %v10751_v49 = vor.u32 %v11513_v60, %v10750_v31  ;;  %v10710_v60 = vld [vmem:[#allocation47] sm:$0xf] }
 0xdaa   :  { %7367 = vmatpush.bf16.msrb.mxu1 %v10791_v11  ;;  %v10719_v11 = vor.u32 %v11505_v45, %v10718_v53  ;;  %v11569_v45 = vld [vmem:[#allocation47 + $0x214] sm:$0xf0] }
 0xdab   :  { %v6545_v52 = vpop.f32.mrf.mxu3  ;;  %v6571_v7 = vpop.f32.mrf.mxu2  ;;  %7351 = vmatpush.bf16.msra.mxu3 %v10751_v49 }
 0xdac   :  { %v10742_v52 = vld [vmem:[#allocation47 + $0x40] sm:$0xf]  ;;  %v11511_v7 = vld [vmem:[#allocation47 + $0x44] sm:$0xf0] }
 0xdad   :  { %v10743_v24 = vor.u32 %v11511_v7, %v10742_v52 }
 0xdae   :  { %7368 = vmatpush.bf16.msrb.mxu1 %v10783_v51 }
 0xdaf   :  { %v13775_v29 = vpop.f32.mrf.mxu1  ;;  %v13777_v61 = vpop.f32.mrf.mxu0  ;;  %7352 = vmatpush.bf16.msra.mxu3 %v10743_v24  ;;  %v11564_v24 = vld [vmem:[#allocation47 + $0x1f4] sm:$0xf] }
 0xdb0   :  { %v6719_v58 = vadd.f32 %v13775_v29, %v6557_v38  ;;  %v6745_v12 = vadd.f32 %v13777_v61, %v6583_v28  ;;  %v10723_v61 = vor.u32 %v11504_v15, %v10720_v3  ;;  %v10869_v43 = vor.u32 %v11564_v24, %v10866_v39  ;;  %v10888_v28 = vld [vmem:[#allocation47 + $0x220] sm:$0xf]  ;;  %v11568_v15 = vld [vmem:[#allocation47 + $0x214] sm:$0xf]  ;;  %v10882_v3 = vld [vmem:[#allocation47 + $0x218] sm:$0xf0] }
 0xdb1   :  { %v10889_v53 = vor.u32 %v11571_v32, %v10888_v28  ;;  %v11554_v24 = vld [vmem:[#allocation47 + $0x1a4] sm:$0xf]  ;;  %v10826_v39 = vld [vmem:[#allocation47 + $0x1a8] sm:$0xf0]  ;;  %v7651_v32 = vld [vmem:[%s13924_s10 + $0x78] sm:$0xff] }
 0xdb2   :  { %7369 = vmatpush.bf16.msrb.mxu1 %v10775_v47  ;;  %7381 = vmatpush.bf16.msra.mxu2 %v10723_v61  ;;  %v11572_v47 = vld [vmem:[#allocation47 + $0x234] sm:$0xf]  ;;  %v10885_v61 = vor.u32 %v11568_v15, %v10882_v3 }
 0xdb3   :  { %v13779_v20 = vpop.f32.mrf.mxu3  ;;  %v13781_v46 = vpop.f32.mrf.mxu2  ;;  %7353 = vmatpush.bf16.msra.mxu3 %v10735_v34  ;;  %v11563_v34 = vld [vmem:[#allocation47 + $0x1e4] sm:$0xf0]  ;;  %v10901_v38 = vor.u32 %v11572_v47, %v10898_v13  ;;  %v11552_v47 = vld [vmem:[#allocation47 + $0x194] sm:$0xf]  ;;  %v10818_v13 = vld [vmem:[#allocation47 + $0x198] sm:$0xf0] }
 0xdb4   :  { %v6732_v6 = vadd.f32 %v13779_v20, %v6719_v58  ;;  %v6758_v4 = vadd.f32 %v13781_v46, %v6745_v12  ;;  %v10711_v20 = vor.u32 %v11503_v9, %v10710_v60  ;;  %v10848_v58 = vld [vmem:[#allocation47 + $0x1d0] sm:$0xf]  ;;  %v11561_v12 = vld [vmem:[#allocation47 + $0x1d4] sm:$0xf0]  ;;  %v10872_v60 = vld [vmem:[#allocation47 + $0x200] sm:$0xf] }
 0xdb5   :  { %v11567_v9 = vld [vmem:[#allocation47 + $0x204] sm:$0xf0] }
 0xdb7   :  { %v6720_v21 = vpop.f32.mrf.mxu1  ;;  %v6746_v33 = vpop.f32.mrf.mxu0  ;;  %7354 = vmatpush.bf16.msra.mxu3 %v10727_v14  ;;  %v10857_v14 = vor.u32 %v11563_v34, %v10856_v44  ;;  %v11551_v44 = vld [vmem:[#allocation47 + $0x184] sm:$0xf0]  ;;  %v11550_v34 = vld [vmem:[#allocation47 + $0x184] sm:$0xf] }
 0xdb8   :  { %v10715_v33 = vor.u32 %v11502_v1, %v10712_v18 }
 0xdba   :  { %7382 = vmatpush.bf16.msra.mxu2 %v10715_v33  ;;  %v10873_v33 = vor.u32 %v11567_v9, %v10872_v60 }
 0xdbb   :  { %v6733_v56 = vpop.f32.mrf.mxu3  ;;  %v6759_v27 = vpop.f32.mrf.mxu2  ;;  %7355 = vmatpush.bf16.msra.mxu3 %v10719_v11  ;;  %v11558_v11 = vld [vmem:[#allocation47 + $0x1c4] sm:$0xf] }
 0xdbc   :  { %v10896_v27 = vld [vmem:[#allocation47 + $0x230] sm:$0xf] }
 0xdbd   :  { %v10897_v36 = vor.u32 %v11573_v63, %v10896_v27  ;;  %v10829_v63 = vor.u32 %v11554_v24, %v10826_v39 }
 0xdbf   :  { %v6935_v48 = vpop.f32.mrf.mxu1  ;;  %v6961_v16 = vpop.f32.mrf.mxu0  ;;  %7356 = vmatpush.bf16.msra.mxu3 %v10711_v20  ;;  %v11556_v20 = vld [vmem:[#allocation47 + $0x1b4] sm:$0xf] }
 0xdc3   :  { %v6922_v8 = vpop.f32.mrf.mxu3  ;;  %v6948_v35 = vpop.f32.mrf.mxu2 }
 0xdc4   :  { %v6936_v57 = vadd.f32 %v6935_v48, %v6922_v8  ;;  %v6962_v31 = vadd.f32 %v6961_v16, %v6948_v35  ;;  %v11562_v48 = vld [vmem:[#allocation47 + $0x1e4] sm:$0xf]  ;;  %v10858_v16 = vld [vmem:[#allocation47 + $0x1e8] sm:$0xf0]  ;;  %v10880_v35 = vld [vmem:[#allocation47 + $0x210] sm:$0xf] }
 0xdc5   :  { %v10861_v40 = vor.u32 %v11562_v48, %v10858_v16 }
 0xdc6   :  { %v6965_v29 = vadd.f32 %v6936_v57, %v6732_v6  ;;  %v6966_v23 = vadd.f32 %v6962_v31, %v6758_v4  ;;  %v10849_v6 = vor.u32 %v11561_v12, %v10848_v58  ;;  %v10840_v57 = vld [vmem:[#allocation47 + $0x1c0] sm:$0xf]  ;;  %v11559_v31 = vld [vmem:[#allocation47 + $0x1c4] sm:$0xf0] }
 0xdc7   :  { %v6937_v30 = vpop.f32.mrf.mxu1  ;;  %v6963_v49 = vpop.f32.mrf.mxu0  ;;  %v10841_v1 = vor.u32 %v11559_v31, %v10840_v57  ;;  %v7641_v57 = vld [vmem:[%s13924_s10 + $0x28] sm:$0xff] }
 0xdc8   :  { %v6973_v19 = vadd.f32 %v6969_v25, %v6965_v29  ;;  %v6974_v41 = vadd.f32 %v6970_v62, %v6966_v23  ;;  %v10890_v25 = vld [vmem:[#allocation47 + $0x228] sm:$0xf0]  ;;  %v11560_v62 = vld [vmem:[#allocation47 + $0x1d4] sm:$0xf]  ;;  %v10881_v23 = vor.u32 %v11569_v45, %v10880_v35  ;;  %v11566_v30 = vld [vmem:[#allocation47 + $0x204] sm:$0xf] }
 0xdc9   :  { %v10893_v8 = vor.u32 %v11570_v2, %v10890_v25  ;;  %v10853_v4 = vor.u32 %v11560_v62, %v10850_v17  ;;  %v10842_v29 = vld [vmem:[#allocation47 + $0x1c8] sm:$0xf0]  ;;  %v7648_v25 = vld [vmem:[%s13924_s10 + $0x60] sm:$0xff]  ;;  %v7659_v17 = vld [vmem:[%s13924_s10 + $0xb8] sm:$0xff] }
 0xdca   :  { %v6975_v21 = vmax.f32 %v6973_v19, 0.0  ;;  %v6976_v46 = vmax.f32 %v6974_v41, 0.0  ;;  %v10874_v49 = vld [vmem:[#allocation47 + $0x208] sm:$0xf0]  ;;  %v10845_v18 = vor.u32 %v11558_v11, %v10842_v29  ;;  %v10832_v19 = vld [vmem:[#allocation47 + $0x1b0] sm:$0xf] }
 0xdcb   :  { %v6924_v22 = vpop.f32.mrf.mxu3  ;;  %v6950_v52 = vpop.f32.mrf.mxu2  ;;  %v11557_v41 = vld [vmem:[#allocation47 + $0x1b4] sm:$0xf0]  ;;  %v7649_v2 = vld [vmem:[%s13924_s10 + $0x68] sm:$0xff]  ;;  %v7640_v11 = vld [vmem:[%s13924_s10 + $0x20] sm:$0xff] }
 0xdcc   :  { %v6979_v7 = vrot.slane %v6975_v21, 4  ;;  %v6980_v51 = vrot.slane %v6976_v46, 4  ;;  %v10834_v21 = vld [vmem:[#allocation47 + $0x1b8] sm:$0xf0]  ;;  %v10877_v22 = vor.u32 %v11566_v30, %v10874_v49  ;;  %v7645_v62 = vld [vmem:[%s13924_s10 + $0x48] sm:$0xff]  ;;  %v7642_v45 = vld [vmem:[%s13924_s10 + $0x30] sm:$0xff] }
 0xdcd   :  { %v7643_v35 = vld [vmem:[%s13924_s10 + $0x38] sm:$0xff]  ;;  %v7657_v31 = vld [vmem:[%s13924_s10 + $0xa8] sm:$0xff]  ;;  %v7656_v29 = vld [vmem:[%s13924_s10 + $0xa0] sm:$0xff] }
 0xdce   :  { %6983 = vst [vmem:[#allocation18] sm:$0xf0] %v6979_v7 }
 0xdcf   :  { %6985 = vst [vmem:[#allocation18 + $0x10] sm:$0xf] %v6979_v7  ;;  %v10833_v7 = vor.u32 %v11557_v41, %v10832_v19  ;;  %v7833_v19 = vld [vmem:[#allocation51 + $0x20] sm:$0xff]  ;;  %v7637_v41 = vld [vmem:[%s13924_s10 + $0x8] sm:$0xff] }
 0xdd0   :  { %6984 = vst.msk [vmem:[#allocation18 + $0x8] sm:$0xf0] %vm2403_vm2, %v6980_v51 }
 0xdd1   :  { %6986 = vst.msk [vmem:[#allocation18 + $0x18] sm:$0xf] %vm2408_vm4, %v6980_v51  ;;  %v10837_v51 = vor.u32 %v11556_v20, %v10834_v21  ;;  %v7653_v20 = vld [vmem:[%s13924_s10 + $0x88] sm:$0xff]  ;;  %v7831_v21 = vld [vmem:[#allocation51 + $0x10] sm:$0xff] }
 0xdd5   :  { %v7015_v55 = vld [vmem:[#allocation18] sm:$0xf0] }
 0xdd6   :  { %v7017_v56 = vld [vmem:[#allocation18 + $0x10] sm:$0xf]  ;;  %v6987_v52 = vld [vmem:[#allocation18] sm:$0xff] }
 0xdd7   :  { %v7044_v26 = vpack.c.bf16 %v7017_v56, %v7015_v55  ;;  %v7016_v50 = vld [vmem:[#allocation18 + $0x8] sm:$0xf0]  ;;  %v11555_v55 = vld [vmem:[#allocation47 + $0x1a4] sm:$0xf0]  ;;  %v7013_v56 = vpack.c.bf16 %v6987_v52, %v6987_v52 }
 0xdd8   :  { %v7018_v42 = vld [vmem:[#allocation18 + $0x18] sm:$0xf]  ;;  %v6988_v46 = vld [vmem:[#allocation18 + $0x8] sm:$0xff]  ;;  %v10825_v27 = vor.u32 %v11555_v55, %v10824_v10  ;;  %v7401_v16 = vld [vmem:[#allocation18 + $0x10] sm:$0xff] }
 0xdd9   :  { %v7048_v59 = vrot.slane %v7044_v26, 2  ;;  %v7045_v5 = vpack.c.bf16 %v7018_v42, %v7016_v50  ;;  %v7014_v0 = vpack.c.bf16 %v6988_v46, %v6988_v46  ;;  %v10816_v26 = vld [vmem:[#allocation47 + $0x190] sm:$0xf]  ;;  %v11553_v50 = vld [vmem:[#allocation47 + $0x194] sm:$0xf0]  ;;  %v7636_v46 = vld [vmem:[%s13924_s10] sm:$0xff] }
 0xdda   :  { %v10817_v42 = vor.u32 %v11553_v50, %v10816_v26  ;;  %v7607_v50 = vld [vmem:[#allocation48] sm:$0x3] }
 0xddb   :  { %7182 = vmatmul.bf16.vlgmr.msra.gmra.mxu1 %v7048_v59  ;;  %v7049_v54 = vrot.slane %v7045_v5, 2  ;;  %7208 = vmatmul.bf16.vlgmr.msra.gmra.mxu0 %v7048_v59  ;;  %v10810_v59 = vld [vmem:[#allocation47 + $0x188] sm:$0xf0] }
 0xddc   :  { %7553 = vmatpush.bf16.msra.mxu1 %v10865_v37  ;;  %7579 = vmatpush.bf16.msra.mxu0 %v10869_v43  ;;  %v10821_v37 = vor.u32 %v11552_v47, %v10818_v13  ;;  %v10808_v43 = vld [vmem:[#allocation47 + $0x180] sm:$0xf]  ;;  %v10813_v48 = vor.u32 %v11550_v34, %v10810_v59  ;;  %v7615_v47 = vld [vmem:[#allocation17] sm:$0xf0]  ;;  %v7610_v59 = vperm.slane %v7607_v50, 1 }
 0xddd   :  { %10706 = vmatmul.msk.bf16.vlgmr.msrb.gmra.mxu3 %vm566_vm1, %v7049_v54  ;;  %10707 = vmatmul.msk.bf16.vlgmr.msrb.gmra.mxu2 %vm566_vm1, %v7049_v54  ;;  %v10809_v5 = vor.u32 %v11551_v44, %v10808_v43  ;;  %v7650_v54 = vld [vmem:[%s13924_s10 + $0x70] sm:$0xff]  ;;  %v7617_v13 = vld [vmem:[#allocation17 + $0x10] sm:$0xf]  ;;  %v7609_v44 = vperm.slane %v7607_v50, 0 }
 0xdde   :  { %7570 = vmatpush.bf16.msrb.mxu3 %v10897_v36  ;;  %7596 = vmatpush.bf16.msrb.mxu2 %v10901_v38  ;;  %v7402_v36 = vld [vmem:[#allocation18 + $0x18] sm:$0xff]  ;;  %v7428_v38 = vpack.c.bf16 %v7401_v16, %v7401_v16 }
 0xddf   :  { %v7429_v28 = vpack.c.bf16 %v7402_v36, %v7402_v36 }
 0xde0   :  { %7554 = vmatpush.bf16.msra.mxu1 %v10857_v14  ;;  %7580 = vmatpush.bf16.msra.mxu0 %v10861_v40  ;;  %v7647_v14 = vld [vmem:[%s13924_s10 + $0x58] sm:$0xff]  ;;  %v7646_v40 = vld [vmem:[%s13924_s10 + $0x50] sm:$0xff] }
 0xde2   :  { %7571 = vmatpush.bf16.msrb.mxu3 %v10889_v53  ;;  %7597 = vmatpush.bf16.msrb.mxu2 %v10893_v8  ;;  %v7644_v53 = vld [vmem:[%s13924_s10 + $0x40] sm:$0xff]  ;;  %v7658_v8 = vld [vmem:[%s13924_s10 + $0xb0] sm:$0xff] }
 0xde4   :  { %7555 = vmatpush.bf16.msra.mxu1 %v10849_v6  ;;  %7581 = vmatpush.bf16.msra.mxu0 %v10853_v4 }
 0xde6   :  { %7572 = vmatpush.bf16.msrb.mxu3 %v10881_v23  ;;  %7598 = vmatpush.bf16.msrb.mxu2 %v10885_v61  ;;  %v7639_v23 = vld [vmem:[%s13924_s10 + $0x18] sm:$0xff] }
 0xde7   :  { %v7655_v61 = vld [vmem:[%s13924_s10 + $0x98] sm:$0xff] }
 0xde8   :  { %7556 = vmatpush.bf16.msra.mxu1 %v10841_v1  ;;  %7582 = vmatpush.bf16.msra.mxu0 %v10845_v18  ;;  %v7638_v1 = vld [vmem:[%s13924_s10 + $0x10] sm:$0xff] }
 0xde9   :  { %v7654_v18 = vld [vmem:[%s13924_s10 + $0x90] sm:$0xff] }
 0xdea   :  { %7573 = vmatpush.bf16.msrb.mxu3 %v10873_v33  ;;  %7599 = vmatpush.bf16.msrb.mxu2 %v10877_v22  ;;  %v7652_v33 = vld [vmem:[%s13924_s10 + $0x80] sm:$0xff] }
 0xdeb   :  { %10804 = vmatmul.msk.bf16.vlgmr.msrb.gmra.mxu1 %vm566_vm1, %v7014_v0  ;;  %10805 = vmatmul.msk.bf16.vlgmr.msrb.gmra.mxu0 %vm566_vm1, %v7014_v0  ;;  %v7829_v22 = vld [vmem:[#allocation51] sm:$0xff] }
 0xdec   :  { %7557 = vmatpush.bf16.msra.mxu1 %v10833_v7  ;;  %7583 = vmatpush.bf16.msra.mxu0 %v10837_v51 }
 0xded   :  { %7357 = vmatmul.bf16.vlgmr.msra.gmra.mxu3 %v7013_v56  ;;  %7383 = vmatmul.bf16.vlgmr.msra.gmra.mxu2 %v7013_v56 }
 0xdee   :  { %7663 = vmatpush.msra.mxu3 %v7651_v32  ;;  %v7623_v32 = vrot.slane %v7615_v47, 4  ;;  %v7828_v47 = vld [vmem:[%s13927_s20] sm:$0xff] }
 0xdf0   :  { %7558 = vmatpush.bf16.msra.mxu1 %v10825_v27  ;;  %7584 = vmatpush.bf16.msra.mxu0 %v10829_v63 }
 0xdf1   :  { %7664 = vmatpush.msra.mxu3 %v7650_v54  ;;  %v7624_v54 = vrot.slane %v7617_v13, 4 }
 0xdf3   :  { %7665 = vmatpush.msra.mxu3 %v7649_v2 }
 0xdf4   :  { %7559 = vmatpush.bf16.msra.mxu1 %v10817_v42  ;;  %7585 = vmatpush.bf16.msra.mxu0 %v10821_v37  ;;  %v7616_v42 = vld [vmem:[#allocation17 + $0x8] sm:$0xf0]  ;;  %v7618_v37 = vld [vmem:[#allocation17 + $0x18] sm:$0xf] }
 0xdf5   :  { %7666 = vmatpush.msra.mxu3 %v7648_v25  ;;  %v7626_v2 = vrot.slane %v7616_v42, 4  ;;  %v7627_v25 = vrot.slane %v7618_v37, 4 }
 0xdf7   :  { %7667 = vmatpush.msra.mxu3 %v7647_v14 }
 0xdf8   :  { %7560 = vmatpush.bf16.msra.mxu1 %v10809_v5  ;;  %7586 = vmatpush.bf16.msra.mxu0 %v10813_v48 }
 0xdf9   :  { %7668 = vmatpush.msra.mxu3 %v7646_v40 }
 0xdfb   :  { %7561 = vmatmul.bf16.vlgmr.msra.gmra.mxu1 %v7428_v38  ;;  %7587 = vmatmul.bf16.vlgmr.msra.gmra.mxu0 %v7428_v38 }
 0xdfc   :  { %7691 = vmatpush.msrb.mxu1 %v7659_v17  ;;  %7669 = vmatpush.msra.mxu3 %v7645_v62  ;;  %v7625_v62 = vsel %vm2389_vm3, %v7623_v32, %v7624_v54  ;;  %v7628_v17 = vsel %vm2389_vm3, %v7626_v2, %v7627_v25 }
 0xdfd   :  { %10902 = vmatmul.msk.bf16.vlgmr.msrb.gmra.mxu3 %vm566_vm1, %v7429_v28  ;;  %10903 = vmatmul.msk.bf16.vlgmr.msrb.gmra.mxu2 %vm566_vm1, %v7429_v28 }
 0xdfe   :  { %7692 = vmatpush.msrb.mxu1 %v7658_v8  ;;  %7670 = vmatpush.msra.mxu3 %v7644_v53 }
 0xdff   :  { %7851 = vmatpush.msrb.mxu0 %v7833_v19 }
 0xe00   :  { %7671 = vmatpush.msra.mxu3 %v7643_v35  ;;  %7693 = vmatpush.msrb.mxu1 %v7657_v31  ;;  %v7635_v31 = vld [vmem:[%s13926_s6] sm:$0xf] }
 0xe01   :  { %7852 = vmatpush.msrb.mxu0 %v7831_v21 }
 0xe02   :  { %7672 = vmatpush.msra.mxu3 %v7642_v45  ;;  %7694 = vmatpush.msrb.mxu1 %v7656_v29 }
 0xe03   :  { %7853 = vmatpush.msrb.mxu0 %v7829_v22 }
 0xe04   :  { %7673 = vmatpush.msra.mxu3 %v7641_v57  ;;  %7695 = vmatpush.msrb.mxu1 %v7655_v61  ;;  %v7727_v61 = vld [vmem:[#allocation53] sm:$0xf] }
 0xe06   :  { %7674 = vmatpush.msra.mxu3 %v7640_v11  ;;  %7696 = vmatpush.msrb.mxu1 %v7654_v18  ;;  %v7757_v11 = vld [vmem:[%s12536_s25 + $0x10] sm:$0xff] }
 0xe08   :  { %7675 = vmatpush.msra.mxu3 %v7639_v23  ;;  %7697 = vmatpush.msrb.mxu1 %v7653_v20 }
 0xe0a   :  { %7676 = vmatpush.msra.mxu3 %v7638_v1  ;;  %7698 = vmatpush.msrb.mxu1 %v7652_v33  ;;  %v7755_v1 = vld [vmem:[%s12536_s25] sm:$0xff] }
 0xe0c   :  { %7677 = vmatpush.msra.mxu3 %v7637_v41  ;;  %v7782_v41 = vld [vmem:[#allocation54] sm:$0x3f] }
 0xe0e   :  { %7678 = vmatpush.msra.mxu3 %v7636_v46 }
 0xe10   :  { %10909 = vmatpush.msk.msrb.mxu3 %vm2610_vm5, %v7782_v41 }
 0xe58   :  { %v7183_v58 = vpop.f32.mrf.mxu1  ;;  %v7209_v12 = vpop.f32.mrf.mxu0 }
 0xe60   :  { %v7196_v15 = vpop.f32.mrf.mxu3  ;;  %v7222_v3 = vpop.f32.mrf.mxu2 }
 0xe61   :  { %v7185_v6 = vpop.f32.mrf.mxu1  ;;  %v7211_v4 = vpop.f32.mrf.mxu0  ;;  %v7197_v56 = vadd.f32 %v7196_v15, %v7183_v58  ;;  %v7223_v27 = vadd.f32 %v7222_v3, %v7209_v12 }
 0xe68   :  { %v7198_v60 = vpop.f32.mrf.mxu3  ;;  %v7224_v9 = vpop.f32.mrf.mxu2 }
 0xe69   :  { %v7371_v30 = vpop.f32.mrf.mxu1  ;;  %v7397_v49 = vpop.f32.mrf.mxu0  ;;  %v7834_v60 = vld [vmem:[#allocation51 + $0x28] sm:$0xff]  ;;  %v7832_v9 = vld [vmem:[#allocation51 + $0x18] sm:$0xff] }
 0xe70   :  { %v7358_v52 = vpop.f32.mrf.mxu3  ;;  %v7384_v7 = vpop.f32.mrf.mxu2 }
 0xe71   :  { %v7373_v51 = vpop.f32.mrf.mxu1  ;;  %v7399_v10 = vpop.f32.mrf.mxu0  ;;  %v7359_v63 = vadd.f32 %v7358_v52, %v7197_v56  ;;  %v7385_v26 = vadd.f32 %v7384_v7, %v7223_v27 }
 0xe73   :  { %v7372_v5 = vadd.f32 %v7371_v30, %v7359_v63  ;;  %v7398_v48 = vadd.f32 %v7397_v49, %v7385_v26  ;;  %v7830_v30 = vld [vmem:[#allocation51 + $0x8] sm:$0xff] }
 0xe74   :  { %v7756_v49 = vld [vmem:[%s12536_s25 + $0x8] sm:$0xff]  ;;  %s13928_s25 = sld [smem:[#allocation91_spill]] }
 0xe78   :  { %v7360_v0 = vpop.f32.mrf.mxu3  ;;  %v7386_v55 = vpop.f32.mrf.mxu2 }
 0xe79   :  { %v7562_v24 = vpop.f32.mrf.mxu1  ;;  %v7588_v39 = vpop.f32.mrf.mxu0 }
 0xe7a   :  { %v7927_v50 = vld [vmem:[%s13928_s25] sm:$0xff] }
 0xe80   :  { %v7575_v43 = vpop.f32.mrf.mxu3  ;;  %v7601_v34 = vpop.f32.mrf.mxu2 }
 0xe81   :  { %v7576_v16 = vadd.f32 %v7575_v43, %v7562_v24  ;;  %v7602_v36 = vadd.f32 %v7601_v34, %v7588_v39  ;;  %v7564_v38 = vpop.f32.mrf.mxu1  ;;  %v7590_v28 = vpop.f32.mrf.mxu0 }
 0xe83   :  { %v7605_v14 = vadd.f32 %v7576_v16, %v7372_v5  ;;  %v7606_v40 = vadd.f32 %v7602_v36, %v7398_v48 }
 0xe85   :  { %v7613_v58 = vadd.f32 %v7609_v44, %v7605_v14  ;;  %v7614_v12 = vadd.f32 %v7610_v59, %v7606_v40 }
 0xe87   :  { %v7631_v53 = vadd.f32 %v7625_v62, %v7613_v58  ;;  %v7632_v8 = vadd.f32 %v7628_v17, %v7614_v12 }
 0xe88   :  { %v7577_v35 = vpop.f32.mrf.mxu3  ;;  %v7603_v45 = vpop.f32.mrf.mxu2 }
 0xe89   :  { %v13825_v15 = vmax.f32 %v7631_v53, 0.0  ;;  %v13827_v3 = vmax.f32 %v7632_v8, 0.0 }
 0xe8b   :  { %7679 = vmatmul.f32.vlgmr.msra.gmra.mxu3 %v13825_v15  ;;  %10904 = vmatmul.msk.f32.vlgmr.msrb.gmra.mxu1 %vm566_vm1, %v13827_v3 }
 0xe8c   :  { %7946 = vmatpush.msra.mxu0 %v13825_v15 }
 0xf08   :  { %v7700_v6 = vpop.f32.mrf.mxu1 }
 0xf0e   :  { %v7680_v4 = vpop.f32.mrf.mxu3 }
 0xf0f   :  { %v7701_v57 = vadd.f32 %v7700_v6, %v7680_v4 }
 0xf11   :  { %7721 = vmatpush.msra.mxu2 %v7701_v57 }
 0xf12   :  { %10905 = vmatmul.msk.f32.vlgmr.msra.gmra.mxu2 %vm4809_vm6, %v7635_v31 }
 0xf13   :  { %7774 = vmatpush.msrb.mxu2 %v7757_v11 }
 0xf15   :  { %7775 = vmatpush.msrb.mxu2 %v7756_v49 }
 0xf17   :  { %7776 = vmatpush.msrb.mxu2 %v7755_v1 }
 0xf95   :  { %v7723_v29 = vpop.f32.mrf.mxu2 }
 0xf96   :  { %v7726_v23 = vmul.f32 0.0625, %v7723_v29 }
 0xf98   :  { %10906 = vmatpush.msk.msra.mxu1 %vm2389_vm3, %v7726_v23 }
 0xf99   :  { %10907 = vmatmul.msk.f32.vlgmr.msra.gmra.mxu1 %vm4912_vm13, %v7727_v61 }
 0xf9a   :  { %7871 = vmatpush.msrb.mxu1 %v7834_v60 }
 0xf9c   :  { %7872 = vmatpush.msrb.mxu1 %v7832_v9 }
 0xf9e   :  { %7873 = vmatpush.msrb.mxu1 %v7830_v30 }
 0xfa0   :  { %7966 = vmatpush.msra.mxu1 %v13827_v3 }
0x1016   :  { %v7751_v18 = vpop.f32.mrf.mxu1 }
0x1017   :  { %v7754_v19 = vadd.f32 %v7751_v18, %v7726_v23 }
0x1019   :  { %10908 = vmatmul.msk.f32.vlgmr.msrb.gmra.mxu2 %vm4837_vm7, %v7754_v19 }
0x109c   :  { %v7778_v20 = vpop.f32.mrf.mxu2 }
0x109d   :  { %v7781_v21 = vmax.f32 %v7778_v20, 0.0 }
0x109f   :  { %10910 = vmatmul.msk.f32.vlgmr.msrb.gmra.mxu3 %vm4863_vm8, %v7781_v21 }
0x1122   :  { %v7806_v46 = vpop.f32.mrf.mxu3 }
0x1123   :  { %v7809_v33 = vsub.f32 0.0, %v7806_v46 }
0x1125   :  { %v7810_v22 = vmul.f32 1.442695, %v7809_v33 }
0x1127   :  { %11654 = vpow2.f32 %v7810_v22 }
0x112d   :  { %v11655_v52 = vpop.eup %11654 }
0x112e   :  { %v7812_v7 = vadd.f32 1.0, %v11655_v52 }
0x1130   :  { %11656 = vrcp.f32 %v7812_v7  ;;  %v7824_v55 = vand.u32 2147483648, %v7812_v7  ;;  %v7822_v39 = vand.u32 2147483647, %v7812_v7  ;;  %vm7818_vm15 = vweird.f32 %v7812_v7 }
0x1132   :  { %v7825_v27 = vor.u32 1.1754944e-38, %v7824_v55  ;;  %vm7823_vm2 = vcmp.eq.f32.partialorder %v7822_v39, 8.507059e+37 }
0x1136   :  { %v11657_v51 = vpop.eup %11656 }
0x1137   :  { %v7814_v10 = vmul.f32 %v11657_v51, %v7812_v7  ;;  %vm7819_vm14 = vweird.f32 %v11657_v51 }
0x1138   :  { %vm7820_vm0 = vmor %vm7818_vm15, %vm7819_vm14 }
0x1139   :  { %v7815_v0 = vsub.f32 1.0, %v7814_v10 }
0x113b   :  { %v7816_v24 = vmul.f32 %v11657_v51, %v7815_v0 }
0x113d   :  { %v7817_v56 = vadd.f32 %v11657_v51, %v7816_v24 }
0x113f   :  { %v7821_v63 = vsel %vm7820_vm0, %v11657_v51, %v7817_v56 }
0x1140   :  { %v7826_v26 = vsel %vm7823_vm2, %v7825_v27, %v7821_v63 }
0x1141   :  { %10911 = vmatmul.msk.f32.vlgmr.msrb.gmra.mxu0 %vm4837_vm7, %v7826_v26  ;;  %10912 = vmatmul.msk.f32.vlgmr.msrb.gmra.mxu1 %vm4837_vm7, %v7826_v26 }
0x1149   :  { %10917 = vmatmul.msk.f32.vlgmr.msra.gmra.mxu0 %vm4809_vm6, %v7927_v50  ;;  %10918 = vmatmul.msk.f32.vlgmr.msra.gmra.mxu1 %vm4809_vm6, %v7927_v50 }
0x11be   :  { %v7855_v13 = vpop.f32.mrf.mxu0  ;;  %v7875_v42 = vpop.f32.mrf.mxu1 }
0x11bf   :  { %10913 = vmatpush.msk.msra.mxu2 %vm2389_vm3, %v7855_v13  ;;  %10915 = vmatpush.msk.msra.mxu3 %vm2389_vm3, %v7875_v42 }
0x11c0   :  { %10914 = vmatmul.msk.f32.vlgmr.msra.gmra.mxu2 %vm4912_vm13, %v7828_v47  ;;  %10916 = vmatmul.msk.f32.vlgmr.msra.gmra.mxu3 %vm4912_vm13, %v7828_v47 }
0x11c6   :  { %v7948_v37 = vpop.f32.mrf.mxu0  ;;  %v7968_v43 = vpop.f32.mrf.mxu1 }
0x1243   :  { %v7904_v44 = vpop.f32.mrf.mxu2  ;;  %v7924_v34 = vpop.f32.mrf.mxu3 }
0x1244   :  { %v7973_v59 = vsub.f32 1.0, %v7904_v44  ;;  %v7974_v5 = vsub.f32 1.0, %v7924_v34  ;;  %v7971_v48 = vmul.f32 %v7904_v44, %v13825_v15  ;;  %v7972_v16 = vmul.f32 %v7924_v34, %v13827_v3 }
0x1246   :  { %v7975_v36 = vmul.f32 %v7973_v59, %v7948_v37  ;;  %v7976_v38 = vmul.f32 %v7974_v5, %v7968_v43 }
0x1248   :  { %v7977_v28 = vadd.f32 %v7975_v36, %v7971_v48  ;;  %v7978_v32 = vadd.f32 %v7976_v38, %v7972_v16 }
0x124a   :  { %7979 = vst [vmem:[%s12546_s13] sm:$0xff] %v7977_v28 }
0x124b   :  { %7980 = vst.msk [vmem:[%s12546_s13 + $0x8] sm:$0xff] %vm566_vm1, %v7978_v32 }
0x124c   :  { %7985 = vsyncpa [#allocation20], 1 }
0x124d   :  { %7986 = vsyncpa [#allocation22], 1 }
0x124e   :  { %7987 = vsyncpa [#allocation25], 1 }
0x124f   :  { %7988 = vsyncpa [#allocation28], 1 }
0x1250   :  { %7989 = vsyncpa [#allocation31], 1 }
0x1251   :  { %7990 = vsyncpa [#allocation34], 1 }
0x1252   :  { %7991 = vsyncpa [#allocation37], 1 }
0x1253   :  { %7992 = vsyncpa [#allocation40], 1 }
0x1254   :  { %7993 = vsyncpa [#allocation43], 1 }
0x1255   :  { %7994 = vsyncpa [#allocation46], 1 }
0x1256   :  { %7995 = vsyncpa [#allocation49], 1 }
0x1257   :  { %7996 = vsyncpa [#allocation52], 1 }
0x1258   :  { %7997 = vsyncpa [#allocation55], 1 }

</bundles_post_ra>
